<compile_context>
chip_gen: v7x
topology: tpu7x:2x2x1
jax: 0.10.0
libtpu: 0.0.40
codegen_flags: <defaults>
</compile_context>

<pallas_src>
import jax
import jax.numpy as jnp
from jax import lax
from jax.experimental import pallas as pl
from jax.experimental.pallas import tpu as pltpu

SUB = 8          # channel dims padded to a multiple of the f32 sublane tile
ROW_CHUNK = 128  # wide-rows accumulated in registers per single store
B_CAP = 4        # max images folded into one grid step


def _round_up(x, m):
    return (x + m - 1) // m * m


def _pick_batch_tile(n, cap=B_CAP):
    for b in range(min(n, cap), 0, -1):
        if n % b == 0:
            return b
    return 1


# ------------------------------ fused stage kernel ---------------------------

def _make_stage_kernel(H, W, b_tile):
    """Fused (conv3x3+ReLU, conv3x3+ReLU, maxpool2x2) stage kernel.

    Activations use a row-major "wide" flattened layout (H*W, C) per image:
    conv outputs keep row stride W; the garbage columns past the valid width
    are never read for any valid result.
    """
    assert H >= 6 and W >= 6, "stage needs H, W >= 6 (two VALID 3x3 convs + pool)"
    H1, W1 = H - 2, W - 2              # conv1 output spatial dims
    H2, W2 = H - 4, W - 4              # conv2 output spatial dims
    Hp, Wp = H2 // 2, W2 // 2          # floor pooling == nn.MaxPool2d(2)
    M1 = (H1 - 1) * W + W1             # wide rows of conv1 output
    M2 = (H2 - 1) * W + W2             # wide rows of conv2 output

    def conv3x3_relu(src_load, dst_ref, w_ref, b_ref, M):
        # 3x3 VALID conv = 9 shifted GEMMs; accumulate in registers per chunk,
        # store each chunk once with fused bias + ReLU.
        bias = b_ref[...]                                       # (1, Cout) f32
        for start in range(0, M, ROW_CHUNK):
            size = min(ROW_CHUNK, M - start)
            acc = None
            for ki in range(3):
                for kj in range(3):
                    t = ki * 3 + kj
                    tap = src_load(start + ki * W + kj, size)   # (size, K) f32
                    part = jnp.dot(tap.astype(jnp.bfloat16), w_ref[t],
                                   preferred_element_type=jnp.float32)
                    acc = part if acc is None else acc + part
            dst_ref[pl.ds(start, size), :] = jnp.maximum(acc + bias, 0.0)

    def kernel(x_ref, w1_ref, b1_ref, w2_ref, b2_ref, o_ref, y1_ref, y2_ref):
        # x_ref : (b_tile, H*W, Cp_in)  flattened NHWC images (no 128-pad)
        # w*_ref: (9, Cp_in, Cp_out) / (9, Cp_out, Cp_out) bf16, tap-major
        # b*_ref: (1, Cp_out) f32
        # o_ref : (b_tile, Hp, Wp, Cp_out) pooled output
        # y1_ref: (M1, Cp_out) f32 scratch, y2_ref: (M2, Cp_out) f32 scratch
        for b in range(b_tile):
            conv3x3_relu(lambda s, n, b=b: x_ref[b, pl.ds(s, n), :],
                         y1_ref, w1_ref, b1_ref, M1)
            conv3x3_relu(lambda s, n: y1_ref[pl.ds(s, n), :],
                         y2_ref, w2_ref, b2_ref, M2)
            # 2x2 stride-2 max pool via sublane-strided reads of conv2 output.
            for i in range(Hp):
                r0 = (2 * i) * W
                r1 = (2 * i + 1) * W
                p00 = y2_ref[pl.ds(r0, Wp, 2), :]       # even cols, row 2i
                p01 = y2_ref[pl.ds(r0 + 1, Wp, 2), :]   # odd  cols, row 2i
                p10 = y2_ref[pl.ds(r1, Wp, 2), :]       # even cols, row 2i+1
                p11 = y2_ref[pl.ds(r1 + 1, Wp, 2), :]   # odd  cols, row 2i+1
                o_ref[b, i] = jnp.maximum(jnp.maximum(p00, p01),
                                          jnp.maximum(p10, p11))

    return kernel, Hp, Wp, M1, M2


def _encoder_stage(x_flat, w1p, b1p, w2p, b2p, H, W, b_tile):
    """x_flat: (N, H*W, Cp_in) f32 -> pooled (N, Hp, Wp, Cp_out) f32."""
    N, HW, Cp_in = x_flat.shape
    Cp_out = w1p.shape[2]
    kernel, Hp, Wp, M1, M2 = _make_stage_kernel(H, W, b_tile)

    out = pl.pallas_call(
        kernel,
        out_shape=jax.ShapeDtypeStruct((N, Hp, Wp, Cp_out), jnp.float32),
        grid_spec=pltpu.PrefetchScalarGridSpec(
            num_scalar_prefetch=0,
            grid=(N // b_tile,),
            in_specs=[
                pl.BlockSpec((b_tile, HW, Cp_in), lambda n: (n, 0, 0)),
                pl.BlockSpec((9, Cp_in, Cp_out), lambda n: (0, 0, 0)),
                pl.BlockSpec((1, Cp_out), lambda n: (0, 0)),
                pl.BlockSpec((9, Cp_out, Cp_out), lambda n: (0, 0, 0)),
                pl.BlockSpec((1, Cp_out), lambda n: (0, 0)),
            ],
            out_specs=pl.BlockSpec((b_tile, Hp, Wp, Cp_out),
                                   lambda n: (n, 0, 0, 0)),
            scratch_shapes=[pltpu.VMEM((M1, Cp_out), jnp.float32),
                            pltpu.VMEM((M2, Cp_out), jnp.float32)],
        ),
        compiler_params=pltpu.CompilerParams(
            dimension_semantics=("parallel",)),
    )(x_flat, w1p, b1p, w2p, b2p)
    return out, Hp, Wp


# --------------------------- parameter handling ------------------------------

def init_encoder_params(key, channels):
    """Deterministic params in PyTorch OIHW layout (f32)."""
    params = []
    for i in range(len(channels) - 1):
        cin, cout = channels[i], channels[i + 1]
        k1, k2, k3, k4, key = jax.random.split(key, 5)
        w1 = jax.random.normal(k1, (cout, cin, 3, 3), jnp.float32) * 0.1
        b1 = jax.random.normal(k2, (cout,), jnp.float32) * 0.1
        w2 = jax.random.normal(k3, (cout, cout, 3, 3), jnp.float32) * 0.1
        b2 = jax.random.normal(k4, (cout,), jnp.float32) * 0.1
        params.append((w1, b1, w2, b2))
    return params


def _pack_conv_weight(w_oihw):
    """(Cout, Cin, 3, 3) -> (9, Cp_in, Cp_out) bf16, tap-major, zero-padded."""
    cout, cin = w_oihw.shape[0], w_oihw.shape[1]
    cp_in, cp_out = _round_up(cin, SUB), _round_up(cout, SUB)
    w = jnp.transpose(w_oihw, (2, 3, 1, 0))                    # (3,3,Cin,Cout)
    w = jnp.pad(w, ((0, 0), (0, 0), (0, cp_in - cin), (0, cp_out - cout)))
    return w.reshape(9, cp_in, cp_out).astype(jnp.bfloat16)


def _pack_bias(b):
    cp = _round_up(b.shape[0], SUB)
    return jnp.pad(b, (0, cp - b.shape[0])).reshape(1, cp).astype(jnp.float32)


def pack_encoder_params(params):
    """Done once, outside the jit'd forward (hoisted weight repacking)."""
    return tuple(
        (_pack_conv_weight(w1), _pack_bias(b1), _pack_conv_weight(w2), _pack_bias(b2))
        for (w1, b1, w2, b2) in params)


# ------------------------------ forward pass ----------------------------------

def make_encoder_forward(channels):
    cout_last = int(channels[-1])

    @jax.jit
    def forward(x_nchw, packed):
        N, Cin, H, W = x_nchw.shape
        b_tile = _pick_batch_tile(N)
        cp_in = _round_up(Cin, SUB)
        x = jnp.transpose(x_nchw, (0, 2, 3, 1))                  # NHWC
        if cp_in != Cin:                                         # 4 -> 8 only
            x = jnp.pad(x, ((0, 0), (0, 0), (0, 0), (0, cp_in - Cin)))
        x = x.reshape(N, H * W, cp_in)
        h, w = H, W
        for (w1p, b1p, w2p, b2p) in packed:
            y, h, w = _encoder_stage(x, w1p, b1p, w2p, b2p, h, w, b_tile)
            x = y.reshape(N, h * w, y.shape[-1])
        out = x.reshape(N, h, w, -1)[:, :, :, :cout_last]
        return jnp.transpose(out, (0, 3, 1, 2))                  # NCHW

    return forward


# ------------------------------ reference (JAX) -------------------------------

def encoder_reference(x_nchw, params):
    x = x_nchw
    for (w1, b1, w2, b2) in params:
        for (w, b) in ((w1, b1), (w2, b2)):
            x = lax.conv_general_dilated(
                x, w, window_strides=(1, 1), padding="VALID",
                dimension_numbers=("NCHW", "OIHW", "NCHW"))
            x = jnp.maximum(x + b.reshape(1, -1, 1, 1), 0.0)
        x = lax.reduce_window(x, -jnp.inf, lax.max,
                              window_dimensions=(1, 1, 2, 2),
                              window_strides=(1, 1, 2, 2), padding="VALID")
    return x


# ---------------------------------- main ---------------------------------------

if __name__ == "__main__":
    channels = [4, 8, 16]          # Encoder(channels) -> two Blocks
    N, H, W = 2, 16, 16

    key = jax.random.PRNGKey(0)
    kx, kp = jax.random.split(key)
    x = jax.random.normal(kx, (N, channels[0], H, W), jnp.float32)
    params = init_encoder_params(kp, channels)
    packed = pack_encoder_params(params)

    forward = make_encoder_forward(channels)
    out = jax.block_until_ready(forward(x, packed))

    ref = jax.block_until_ready(encoder_reference(x, params))
    assert out.shape == ref.shape, (out.shape, ref.shape)
    max_err = float(jnp.max(jnp.abs(out - ref)))
    assert max_err < 3e-2, max_err     # bf16 MXU operands, f32 accumulation

    print("KERNEL_OK")
</pallas_src>

<mosaic_0001>
module attributes {stable_mosaic.version = 11 : i64} {
  func.func @kernel(%arg0: i32, %arg1: memref<2x256x8xf32, #tpu.memory_space<vmem>>, %arg2: memref<9x8x8xbf16, #tpu.memory_space<vmem>>, %arg3: memref<1x8xf32, #tpu.memory_space<vmem>>, %arg4: memref<9x8x8xbf16, #tpu.memory_space<vmem>>, %arg5: memref<1x8xf32, #tpu.memory_space<vmem>>, %arg6: memref<2x6x6x8xf32, #tpu.memory_space<vmem>>, %arg7: memref<222x8xf32, #tpu.memory_space<vmem>>, %arg8: memref<188x8xf32, #tpu.memory_space<vmem>>) attributes {dimension_semantics = [#tpu.dimension_semantics<parallel>], iteration_bounds = array<i64: 1>, scalar_prefetch = 0 : i64, scratch_operands = 2 : i64, tpu.core_type = #tpu.core_type<tc>, window_params = [{transform_indices = @transform_0, window_bounds = array<i64: 2, 256, 8>}, {pipeline_mode = #tpu.pipeline_mode<synchronous>, transform_indices = @transform_1, window_bounds = array<i64: 9, 8, 8>}, {pipeline_mode = #tpu.pipeline_mode<synchronous>, transform_indices = @transform_2, window_bounds = array<i64: 1, 8>}, {pipeline_mode = #tpu.pipeline_mode<synchronous>, transform_indices = @transform_3, window_bounds = array<i64: 9, 8, 8>}, {pipeline_mode = #tpu.pipeline_mode<synchronous>, transform_indices = @transform_4, window_bounds = array<i64: 1, 8>}, {transform_indices = @transform_5, window_bounds = array<i64: 2, 6, 6, 8>}]} {
    %c0 = arith.constant 0 : index
    %c0_0 = arith.constant 0 : index
    %0 = vector.load %arg3[%c0, %c0_0] : memref<1x8xf32, #tpu.memory_space<vmem>>, vector<1x8xf32>
    %c0_1 = arith.constant 0 : index
    %c0_2 = arith.constant 0 : index
    %c0_3 = arith.constant 0 : index
    %1 = vector.load %arg1[%c0_1, %c0_2, %c0_3] : memref<2x256x8xf32, #tpu.memory_space<vmem>>, vector<1x128x8xf32>
    %2 = vector.shape_cast %1 : vector<1x128x8xf32> to vector<128x8xf32>
    %3 = arith.truncf %2 : vector<128x8xf32> to vector<128x8xbf16>
    %c0_4 = arith.constant 0 : index
    %c0_5 = arith.constant 0 : index
    %c0_6 = arith.constant 0 : index
    %4 = vector.load %arg2[%c0_4, %c0_5, %c0_6] : memref<9x8x8xbf16, #tpu.memory_space<vmem>>, vector<1x8x8xbf16>
    %5 = vector.shape_cast %4 : vector<1x8x8xbf16> to vector<8x8xbf16>
    %cst = arith.constant dense<0.000000e+00> : vector<128x8xf32>
    %6 = tpu.matmul %3, %5, %cst {dimension_numbers = #tpu.dot_dimension_numbers<[1], [0], [0], [1], [0, 0, 1, 1], [], []>} : vector<128x8xbf16>, vector<8x8xbf16>, vector<128x8xf32> -> vector<128x8xf32>
    %c0_7 = arith.constant 0 : index
    %c1 = arith.constant 1 : index
    %c0_8 = arith.constant 0 : index
    %7 = vector.load %arg1[%c0_7, %c1, %c0_8] : memref<2x256x8xf32, #tpu.memory_space<vmem>>, vector<1x128x8xf32>
    %8 = vector.shape_cast %7 : vector<1x128x8xf32> to vector<128x8xf32>
    %9 = arith.truncf %8 : vector<128x8xf32> to vector<128x8xbf16>
    %c1_9 = arith.constant 1 : index
    %c0_10 = arith.constant 0 : index
    %c0_11 = arith.constant 0 : index
    %10 = vector.load %arg2[%c1_9, %c0_10, %c0_11] : memref<9x8x8xbf16, #tpu.memory_space<vmem>>, vector<1x8x8xbf16>
    %11 = vector.shape_cast %10 : vector<1x8x8xbf16> to vector<8x8xbf16>
    %cst_12 = arith.constant dense<0.000000e+00> : vector<128x8xf32>
    %12 = tpu.matmul %9, %11, %cst_12 {dimension_numbers = #tpu.dot_dimension_numbers<[1], [0], [0], [1], [0, 0, 1, 1], [], []>} : vector<128x8xbf16>, vector<8x8xbf16>, vector<128x8xf32> -> vector<128x8xf32>
    %13 = arith.addf %6, %12 : vector<128x8xf32>
    %c0_13 = arith.constant 0 : index
    %c2 = arith.constant 2 : index
    %c0_14 = arith.constant 0 : index
    %14 = vector.load %arg1[%c0_13, %c2, %c0_14] : memref<2x256x8xf32, #tpu.memory_space<vmem>>, vector<1x128x8xf32>
    %15 = vector.shape_cast %14 : vector<1x128x8xf32> to vector<128x8xf32>
    %16 = arith.truncf %15 : vector<128x8xf32> to vector<128x8xbf16>
    %c2_15 = arith.constant 2 : index
    %c0_16 = arith.constant 0 : index
    %c0_17 = arith.constant 0 : index
    %17 = vector.load %arg2[%c2_15, %c0_16, %c0_17] : memref<9x8x8xbf16, #tpu.memory_space<vmem>>, vector<1x8x8xbf16>
    %18 = vector.shape_cast %17 : vector<1x8x8xbf16> to vector<8x8xbf16>
    %cst_18 = arith.constant dense<0.000000e+00> : vector<128x8xf32>
    %19 = tpu.matmul %16, %18, %cst_18 {dimension_numbers = #tpu.dot_dimension_numbers<[1], [0], [0], [1], [0, 0, 1, 1], [], []>} : vector<128x8xbf16>, vector<8x8xbf16>, vector<128x8xf32> -> vector<128x8xf32>
    %20 = arith.addf %13, %19 : vector<128x8xf32>
    %c0_19 = arith.constant 0 : index
    %c16 = arith.constant 16 : index
    %c0_20 = arith.constant 0 : index
    %21 = vector.load %arg1[%c0_19, %c16, %c0_20] : memref<2x256x8xf32, #tpu.memory_space<vmem>>, vector<1x128x8xf32>
    %22 = vector.shape_cast %21 : vector<1x128x8xf32> to vector<128x8xf32>
    %23 = arith.truncf %22 : vector<128x8xf32> to vector<128x8xbf16>
    %c3 = arith.constant 3 : index
    %c0_21 = arith.constant 0 : index
    %c0_22 = arith.constant 0 : index
    %24 = vector.load %arg2[%c3, %c0_21, %c0_22] : memref<9x8x8xbf16, #tpu.memory_space<vmem>>, vector<1x8x8xbf16>
    %25 = vector.shape_cast %24 : vector<1x8x8xbf16> to vector<8x8xbf16>
    %cst_23 = arith.constant dense<0.000000e+00> : vector<128x8xf32>
    %26 = tpu.matmul %23, %25, %cst_23 {dimension_numbers = #tpu.dot_dimension_numbers<[1], [0], [0], [1], [0, 0, 1, 1], [], []>} : vector<128x8xbf16>, vector<8x8xbf16>, vector<128x8xf32> -> vector<128x8xf32>
    %27 = arith.addf %20, %26 : vector<128x8xf32>
    %c0_24 = arith.constant 0 : index
    %c17 = arith.constant 17 : index
    %c0_25 = arith.constant 0 : index
    %28 = vector.load %arg1[%c0_24, %c17, %c0_25] : memref<2x256x8xf32, #tpu.memory_space<vmem>>, vector<1x128x8xf32>
    %29 = vector.shape_cast %28 : vector<1x128x8xf32> to vector<128x8xf32>
    %30 = arith.truncf %29 : vector<128x8xf32> to vector<128x8xbf16>
    %c4 = arith.constant 4 : index
    %c0_26 = arith.constant 0 : index
    %c0_27 = arith.constant 0 : index
    %31 = vector.load %arg2[%c4, %c0_26, %c0_27] : memref<9x8x8xbf16, #tpu.memory_space<vmem>>, vector<1x8x8xbf16>
    %32 = vector.shape_cast %31 : vector<1x8x8xbf16> to vector<8x8xbf16>
    %cst_28 = arith.constant dense<0.000000e+00> : vector<128x8xf32>
    %33 = tpu.matmul %30, %32, %cst_28 {dimension_numbers = #tpu.dot_dimension_numbers<[1], [0], [0], [1], [0, 0, 1, 1], [], []>} : vector<128x8xbf16>, vector<8x8xbf16>, vector<128x8xf32> -> vector<128x8xf32>
    %34 = arith.addf %27, %33 : vector<128x8xf32>
    %c0_29 = arith.constant 0 : index
    %c18 = arith.constant 18 : index
    %c0_30 = arith.constant 0 : index
    %35 = vector.load %arg1[%c0_29, %c18, %c0_30] : memref<2x256x8xf32, #tpu.memory_space<vmem>>, vector<1x128x8xf32>
    %36 = vector.shape_cast %35 : vector<1x128x8xf32> to vector<128x8xf32>
    %37 = arith.truncf %36 : vector<128x8xf32> to vector<128x8xbf16>
    %c5 = arith.constant 5 : index
    %c0_31 = arith.constant 0 : index
    %c0_32 = arith.constant 0 : index
    %38 = vector.load %arg2[%c5, %c0_31, %c0_32] : memref<9x8x8xbf16, #tpu.memory_space<vmem>>, vector<1x8x8xbf16>
    %39 = vector.shape_cast %38 : vector<1x8x8xbf16> to vector<8x8xbf16>
    %cst_33 = arith.constant dense<0.000000e+00> : vector<128x8xf32>
    %40 = tpu.matmul %37, %39, %cst_33 {dimension_numbers = #tpu.dot_dimension_numbers<[1], [0], [0], [1], [0, 0, 1, 1], [], []>} : vector<128x8xbf16>, vector<8x8xbf16>, vector<128x8xf32> -> vector<128x8xf32>
    %41 = arith.addf %34, %40 : vector<128x8xf32>
    %c0_34 = arith.constant 0 : index
    %c32 = arith.constant 32 : index
    %c0_35 = arith.constant 0 : index
    %42 = vector.load %arg1[%c0_34, %c32, %c0_35] : memref<2x256x8xf32, #tpu.memory_space<vmem>>, vector<1x128x8xf32>
    %43 = vector.shape_cast %42 : vector<1x128x8xf32> to vector<128x8xf32>
    %44 = arith.truncf %43 : vector<128x8xf32> to vector<128x8xbf16>
    %c6 = arith.constant 6 : index
    %c0_36 = arith.constant 0 : index
    %c0_37 = arith.constant 0 : index
    %45 = vector.load %arg2[%c6, %c0_36, %c0_37] : memref<9x8x8xbf16, #tpu.memory_space<vmem>>, vector<1x8x8xbf16>
    %46 = vector.shape_cast %45 : vector<1x8x8xbf16> to vector<8x8xbf16>
    %cst_38 = arith.constant dense<0.000000e+00> : vector<128x8xf32>
    %47 = tpu.matmul %44, %46, %cst_38 {dimension_numbers = #tpu.dot_dimension_numbers<[1], [0], [0], [1], [0, 0, 1, 1], [], []>} : vector<128x8xbf16>, vector<8x8xbf16>, vector<128x8xf32> -> vector<128x8xf32>
    %48 = arith.addf %41, %47 : vector<128x8xf32>
    %c0_39 = arith.constant 0 : index
    %c33 = arith.constant 33 : index
    %c0_40 = arith.constant 0 : index
    %49 = vector.load %arg1[%c0_39, %c33, %c0_40] : memref<2x256x8xf32, #tpu.memory_space<vmem>>, vector<1x128x8xf32>
    %50 = vector.shape_cast %49 : vector<1x128x8xf32> to vector<128x8xf32>
    %51 = arith.truncf %50 : vector<128x8xf32> to vector<128x8xbf16>
    %c7 = arith.constant 7 : index
    %c0_41 = arith.constant 0 : index
    %c0_42 = arith.constant 0 : index
    %52 = vector.load %arg2[%c7, %c0_41, %c0_42] : memref<9x8x8xbf16, #tpu.memory_space<vmem>>, vector<1x8x8xbf16>
    %53 = vector.shape_cast %52 : vector<1x8x8xbf16> to vector<8x8xbf16>
    %cst_43 = arith.constant dense<0.000000e+00> : vector<128x8xf32>
    %54 = tpu.matmul %51, %53, %cst_43 {dimension_numbers = #tpu.dot_dimension_numbers<[1], [0], [0], [1], [0, 0, 1, 1], [], []>} : vector<128x8xbf16>, vector<8x8xbf16>, vector<128x8xf32> -> vector<128x8xf32>
    %55 = arith.addf %48, %54 : vector<128x8xf32>
    %c0_44 = arith.constant 0 : index
    %c34 = arith.constant 34 : index
    %c0_45 = arith.constant 0 : index
    %56 = vector.load %arg1[%c0_44, %c34, %c0_45] : memref<2x256x8xf32, #tpu.memory_space<vmem>>, vector<1x128x8xf32>
    %57 = vector.shape_cast %56 : vector<1x128x8xf32> to vector<128x8xf32>
    %58 = arith.truncf %57 : vector<128x8xf32> to vector<128x8xbf16>
    %c8 = arith.constant 8 : index
    %c0_46 = arith.constant 0 : index
    %c0_47 = arith.constant 0 : index
    %59 = vector.load %arg2[%c8, %c0_46, %c0_47] : memref<9x8x8xbf16, #tpu.memory_space<vmem>>, vector<1x8x8xbf16>
    %60 = vector.shape_cast %59 : vector<1x8x8xbf16> to vector<8x8xbf16>
    %cst_48 = arith.constant dense<0.000000e+00> : vector<128x8xf32>
    %61 = tpu.matmul %58, %60, %cst_48 {dimension_numbers = #tpu.dot_dimension_numbers<[1], [0], [0], [1], [0, 0, 1, 1], [], []>} : vector<128x8xbf16>, vector<8x8xbf16>, vector<128x8xf32> -> vector<128x8xf32>
    %62 = arith.addf %55, %61 : vector<128x8xf32>
    %63 = vector.broadcast %0 : vector<1x8xf32> to vector<128x8xf32>
    %64 = arith.addf %62, %63 : vector<128x8xf32>
    %cst_49 = arith.constant 0.000000e+00 : f32
    %65 = vector.broadcast %cst_49 : f32 to vector<128x8xf32>
    %66 = arith.maximumf %64, %65 : vector<128x8xf32>
    %c0_50 = arith.constant 0 : index
    %c0_51 = arith.constant 0 : index
    %67 = vector.load %arg7[%c0_50, %c0_51] : memref<222x8xf32, #tpu.memory_space<vmem>>, vector<128x8xf32>
    tpu.vector_store %arg7[%c0_50, %c0_51], %66 {strides = array<i32>} : memref<222x8xf32, #tpu.memory_space<vmem>>, vector<128x8xf32>,
    %c0_52 = arith.constant 0 : index
    %c128 = arith.constant 128 : index
    %c0_53 = arith.constant 0 : index
    %68 = vector.load %arg1[%c0_52, %c128, %c0_53] : memref<2x256x8xf32, #tpu.memory_space<vmem>>, vector<1x94x8xf32>
    %69 = vector.shape_cast %68 : vector<1x94x8xf32> to vector<94x8xf32>
    %70 = arith.truncf %69 : vector<94x8xf32> to vector<94x8xbf16>
    %c0_54 = arith.constant 0 : index
    %c0_55 = arith.constant 0 : index
    %c0_56 = arith.constant 0 : index
    %71 = vector.load %arg2[%c0_54, %c0_55, %c0_56] : memref<9x8x8xbf16, #tpu.memory_space<vmem>>, vector<1x8x8xbf16>
    %72 = vector.shape_cast %71 : vector<1x8x8xbf16> to vector<8x8xbf16>
    %cst_57 = arith.constant dense<0.000000e+00> : vector<94x8xf32>
    %73 = tpu.matmul %70, %72, %cst_57 {dimension_numbers = #tpu.dot_dimension_numbers<[1], [0], [0], [1], [0, 0, 1, 1], [], []>} : vector<94x8xbf16>, vector<8x8xbf16>, vector<94x8xf32> -> vector<94x8xf32>
    %c0_58 = arith.constant 0 : index
    %c129 = arith.constant 129 : index
    %c0_59 = arith.constant 0 : index
    %74 = vector.load %arg1[%c0_58, %c129, %c0_59] : memref<2x256x8xf32, #tpu.memory_space<vmem>>, vector<1x94x8xf32>
    %75 = vector.shape_cast %74 : vector<1x94x8xf32> to vector<94x8xf32>
    %76 = arith.truncf %75 : vector<94x8xf32> to vector<94x8xbf16>
    %c1_60 = arith.constant 1 : index
    %c0_61 = arith.constant 0 : index
    %c0_62 = arith.constant 0 : index
    %77 = vector.load %arg2[%c1_60, %c0_61, %c0_62] : memref<9x8x8xbf16, #tpu.memory_space<vmem>>, vector<1x8x8xbf16>
    %78 = vector.shape_cast %77 : vector<1x8x8xbf16> to vector<8x8xbf16>
    %cst_63 = arith.constant dense<0.000000e+00> : vector<94x8xf32>
    %79 = tpu.matmul %76, %78, %cst_63 {dimension_numbers = #tpu.dot_dimension_numbers<[1], [0], [0], [1], [0, 0, 1, 1], [], []>} : vector<94x8xbf16>, vector<8x8xbf16>, vector<94x8xf32> -> vector<94x8xf32>
    %80 = arith.addf %73, %79 : vector<94x8xf32>
    %c0_64 = arith.constant 0 : index
    %c130 = arith.constant 130 : index
    %c0_65 = arith.constant 0 : index
    %81 = vector.load %arg1[%c0_64, %c130, %c0_65] : memref<2x256x8xf32, #tpu.memory_space<vmem>>, vector<1x94x8xf32>
    %82 = vector.shape_cast %81 : vector<1x94x8xf32> to vector<94x8xf32>
    %83 = arith.truncf %82 : vector<94x8xf32> to vector<94x8xbf16>
    %c2_66 = arith.constant 2 : index
    %c0_67 = arith.constant 0 : index
    %c0_68 = arith.constant 0 : index
    %84 = vector.load %arg2[%c2_66, %c0_67, %c0_68] : memref<9x8x8xbf16, #tpu.memory_space<vmem>>, vector<1x8x8xbf16>
    %85 = vector.shape_cast %84 : vector<1x8x8xbf16> to vector<8x8xbf16>
    %cst_69 = arith.constant dense<0.000000e+00> : vector<94x8xf32>
    %86 = tpu.matmul %83, %85, %cst_69 {dimension_numbers = #tpu.dot_dimension_numbers<[1], [0], [0], [1], [0, 0, 1, 1], [], []>} : vector<94x8xbf16>, vector<8x8xbf16>, vector<94x8xf32> -> vector<94x8xf32>
    %87 = arith.addf %80, %86 : vector<94x8xf32>
    %c0_70 = arith.constant 0 : index
    %c144 = arith.constant 144 : index
    %c0_71 = arith.constant 0 : index
    %88 = vector.load %arg1[%c0_70, %c144, %c0_71] : memref<2x256x8xf32, #tpu.memory_space<vmem>>, vector<1x94x8xf32>
    %89 = vector.shape_cast %88 : vector<1x94x8xf32> to vector<94x8xf32>
    %90 = arith.truncf %89 : vector<94x8xf32> to vector<94x8xbf16>
    %c3_72 = arith.constant 3 : index
    %c0_73 = arith.constant 0 : index
    %c0_74 = arith.constant 0 : index
    %91 = vector.load %arg2[%c3_72, %c0_73, %c0_74] : memref<9x8x8xbf16, #tpu.memory_space<vmem>>, vector<1x8x8xbf16>
    %92 = vector.shape_cast %91 : vector<1x8x8xbf16> to vector<8x8xbf16>
    %cst_75 = arith.constant dense<0.000000e+00> : vector<94x8xf32>
    %93 = tpu.matmul %90, %92, %cst_75 {dimension_numbers = #tpu.dot_dimension_numbers<[1], [0], [0], [1], [0, 0, 1, 1], [], []>} : vector<94x8xbf16>, vector<8x8xbf16>, vector<94x8xf32> -> vector<94x8xf32>
    %94 = arith.addf %87, %93 : vector<94x8xf32>
    %c0_76 = arith.constant 0 : index
    %c145 = arith.constant 145 : index
    %c0_77 = arith.constant 0 : index
    %95 = vector.load %arg1[%c0_76, %c145, %c0_77] : memref<2x256x8xf32, #tpu.memory_space<vmem>>, vector<1x94x8xf32>
    %96 = vector.shape_cast %95 : vector<1x94x8xf32> to vector<94x8xf32>
    %97 = arith.truncf %96 : vector<94x8xf32> to vector<94x8xbf16>
    %c4_78 = arith.constant 4 : index
    %c0_79 = arith.constant 0 : index
    %c0_80 = arith.constant 0 : index
    %98 = vector.load %arg2[%c4_78, %c0_79, %c0_80] : memref<9x8x8xbf16, #tpu.memory_space<vmem>>, vector<1x8x8xbf16>
    %99 = vector.shape_cast %98 : vector<1x8x8xbf16> to vector<8x8xbf16>
    %cst_81 = arith.constant dense<0.000000e+00> : vector<94x8xf32>
    %100 = tpu.matmul %97, %99, %cst_81 {dimension_numbers = #tpu.dot_dimension_numbers<[1], [0], [0], [1], [0, 0, 1, 1], [], []>} : vector<94x8xbf16>, vector<8x8xbf16>, vector<94x8xf32> -> vector<94x8xf32>
    %101 = arith.addf %94, %100 : vector<94x8xf32>
    %c0_82 = arith.constant 0 : index
    %c146 = arith.constant 146 : index
    %c0_83 = arith.constant 0 : index
    %102 = vector.load %arg1[%c0_82, %c146, %c0_83] : memref<2x256x8xf32, #tpu.memory_space<vmem>>, vector<1x94x8xf32>
    %103 = vector.shape_cast %102 : vector<1x94x8xf32> to vector<94x8xf32>
    %104 = arith.truncf %103 : vector<94x8xf32> to vector<94x8xbf16>
    %c5_84 = arith.constant 5 : index
    %c0_85 = arith.constant 0 : index
    %c0_86 = arith.constant 0 : index
    %105 = vector.load %arg2[%c5_84, %c0_85, %c0_86] : memref<9x8x8xbf16, #tpu.memory_space<vmem>>, vector<1x8x8xbf16>
    %106 = vector.shape_cast %105 : vector<1x8x8xbf16> to vector<8x8xbf16>
    %cst_87 = arith.constant dense<0.000000e+00> : vector<94x8xf32>
    %107 = tpu.matmul %104, %106, %cst_87 {dimension_numbers = #tpu.dot_dimension_numbers<[1], [0], [0], [1], [0, 0, 1, 1], [], []>} : vector<94x8xbf16>, vector<8x8xbf16>, vector<94x8xf32> -> vector<94x8xf32>
    %108 = arith.addf %101, %107 : vector<94x8xf32>
    %c0_88 = arith.constant 0 : index
    %c160 = arith.constant 160 : index
    %c0_89 = arith.constant 0 : index
    %109 = vector.load %arg1[%c0_88, %c160, %c0_89] : memref<2x256x8xf32, #tpu.memory_space<vmem>>, vector<1x94x8xf32>
    %110 = vector.shape_cast %109 : vector<1x94x8xf32> to vector<94x8xf32>
    %111 = arith.truncf %110 : vector<94x8xf32> to vector<94x8xbf16>
    %c6_90 = arith.constant 6 : index
    %c0_91 = arith.constant 0 : index
    %c0_92 = arith.constant 0 : index
    %112 = vector.load %arg2[%c6_90, %c0_91, %c0_92] : memref<9x8x8xbf16, #tpu.memory_space<vmem>>, vector<1x8x8xbf16>
    %113 = vector.shape_cast %112 : vector<1x8x8xbf16> to vector<8x8xbf16>
    %cst_93 = arith.constant dense<0.000000e+00> : vector<94x8xf32>
    %114 = tpu.matmul %111, %113, %cst_93 {dimension_numbers = #tpu.dot_dimension_numbers<[1], [0], [0], [1], [0, 0, 1, 1], [], []>} : vector<94x8xbf16>, vector<8x8xbf16>, vector<94x8xf32> -> vector<94x8xf32>
    %115 = arith.addf %108, %114 : vector<94x8xf32>
    %c0_94 = arith.constant 0 : index
    %c161 = arith.constant 161 : index
    %c0_95 = arith.constant 0 : index
    %116 = vector.load %arg1[%c0_94, %c161, %c0_95] : memref<2x256x8xf32, #tpu.memory_space<vmem>>, vector<1x94x8xf32>
    %117 = vector.shape_cast %116 : vector<1x94x8xf32> to vector<94x8xf32>
    %118 = arith.truncf %117 : vector<94x8xf32> to vector<94x8xbf16>
    %c7_96 = arith.constant 7 : index
    %c0_97 = arith.constant 0 : index
    %c0_98 = arith.constant 0 : index
    %119 = vector.load %arg2[%c7_96, %c0_97, %c0_98] : memref<9x8x8xbf16, #tpu.memory_space<vmem>>, vector<1x8x8xbf16>
    %120 = vector.shape_cast %119 : vector<1x8x8xbf16> to vector<8x8xbf16>
    %cst_99 = arith.constant dense<0.000000e+00> : vector<94x8xf32>
    %121 = tpu.matmul %118, %120, %cst_99 {dimension_numbers = #tpu.dot_dimension_numbers<[1], [0], [0], [1], [0, 0, 1, 1], [], []>} : vector<94x8xbf16>, vector<8x8xbf16>, vector<94x8xf32> -> vector<94x8xf32>
    %122 = arith.addf %115, %121 : vector<94x8xf32>
    %c0_100 = arith.constant 0 : index
    %c162 = arith.constant 162 : index
    %c0_101 = arith.constant 0 : index
    %123 = vector.load %arg1[%c0_100, %c162, %c0_101] : memref<2x256x8xf32, #tpu.memory_space<vmem>>, vector<1x94x8xf32>
    %124 = vector.shape_cast %123 : vector<1x94x8xf32> to vector<94x8xf32>
    %125 = arith.truncf %124 : vector<94x8xf32> to vector<94x8xbf16>
    %c8_102 = arith.constant 8 : index
    %c0_103 = arith.constant 0 : index
    %c0_104 = arith.constant 0 : index
    %126 = vector.load %arg2[%c8_102, %c0_103, %c0_104] : memref<9x8x8xbf16, #tpu.memory_space<vmem>>, vector<1x8x8xbf16>
    %127 = vector.shape_cast %126 : vector<1x8x8xbf16> to vector<8x8xbf16>
    %cst_105 = arith.constant dense<0.000000e+00> : vector<94x8xf32>
    %128 = tpu.matmul %125, %127, %cst_105 {dimension_numbers = #tpu.dot_dimension_numbers<[1], [0], [0], [1], [0, 0, 1, 1], [], []>} : vector<94x8xbf16>, vector<8x8xbf16>, vector<94x8xf32> -> vector<94x8xf32>
    %129 = arith.addf %122, %128 : vector<94x8xf32>
    %130 = vector.broadcast %0 : vector<1x8xf32> to vector<94x8xf32>
    %131 = arith.addf %129, %130 : vector<94x8xf32>
    %cst_106 = arith.constant 0.000000e+00 : f32
    %132 = vector.broadcast %cst_106 : f32 to vector<94x8xf32>
    %133 = arith.maximumf %131, %132 : vector<94x8xf32>
    %c128_107 = arith.constant 128 : index
    %c0_108 = arith.constant 0 : index
    %134 = vector.load %arg7[%c128_107, %c0_108] : memref<222x8xf32, #tpu.memory_space<vmem>>, vector<94x8xf32>
    tpu.vector_store %arg7[%c128_107, %c0_108], %133 {strides = array<i32>} : memref<222x8xf32, #tpu.memory_space<vmem>>, vector<94x8xf32>,
    %c0_109 = arith.constant 0 : index
    %c0_110 = arith.constant 0 : index
    %135 = vector.load %arg5[%c0_109, %c0_110] : memref<1x8xf32, #tpu.memory_space<vmem>>, vector<1x8xf32>
    %c0_111 = arith.constant 0 : index
    %c0_112 = arith.constant 0 : index
    %136 = vector.load %arg7[%c0_111, %c0_112] : memref<222x8xf32, #tpu.memory_space<vmem>>, vector<128x8xf32>
    %137 = arith.truncf %136 : vector<128x8xf32> to vector<128x8xbf16>
    %c0_113 = arith.constant 0 : index
    %c0_114 = arith.constant 0 : index
    %c0_115 = arith.constant 0 : index
    %138 = vector.load %arg4[%c0_113, %c0_114, %c0_115] : memref<9x8x8xbf16, #tpu.memory_space<vmem>>, vector<1x8x8xbf16>
    %139 = vector.shape_cast %138 : vector<1x8x8xbf16> to vector<8x8xbf16>
    %cst_116 = arith.constant dense<0.000000e+00> : vector<128x8xf32>
    %140 = tpu.matmul %137, %139, %cst_116 {dimension_numbers = #tpu.dot_dimension_numbers<[1], [0], [0], [1], [0, 0, 1, 1], [], []>} : vector<128x8xbf16>, vector<8x8xbf16>, vector<128x8xf32> -> vector<128x8xf32>
    %c1_117 = arith.constant 1 : index
    %c0_118 = arith.constant 0 : index
    %141 = vector.load %arg7[%c1_117, %c0_118] : memref<222x8xf32, #tpu.memory_space<vmem>>, vector<128x8xf32>
    %142 = arith.truncf %141 : vector<128x8xf32> to vector<128x8xbf16>
    %c1_119 = arith.constant 1 : index
    %c0_120 = arith.constant 0 : index
    %c0_121 = arith.constant 0 : index
    %143 = vector.load %arg4[%c1_119, %c0_120, %c0_121] : memref<9x8x8xbf16, #tpu.memory_space<vmem>>, vector<1x8x8xbf16>
    %144 = vector.shape_cast %143 : vector<1x8x8xbf16> to vector<8x8xbf16>
    %cst_122 = arith.constant dense<0.000000e+00> : vector<128x8xf32>
    %145 = tpu.matmul %142, %144, %cst_122 {dimension_numbers = #tpu.dot_dimension_numbers<[1], [0], [0], [1], [0, 0, 1, 1], [], []>} : vector<128x8xbf16>, vector<8x8xbf16>, vector<128x8xf32> -> vector<128x8xf32>
    %146 = arith.addf %140, %145 : vector<128x8xf32>
    %c2_123 = arith.constant 2 : index
    %c0_124 = arith.constant 0 : index
    %147 = vector.load %arg7[%c2_123, %c0_124] : memref<222x8xf32, #tpu.memory_space<vmem>>, vector<128x8xf32>
    %148 = arith.truncf %147 : vector<128x8xf32> to vector<128x8xbf16>
    %c2_125 = arith.constant 2 : index
    %c0_126 = arith.constant 0 : index
    %c0_127 = arith.constant 0 : index
    %149 = vector.load %arg4[%c2_125, %c0_126, %c0_127] : memref<9x8x8xbf16, #tpu.memory_space<vmem>>, vector<1x8x8xbf16>
    %150 = vector.shape_cast %149 : vector<1x8x8xbf16> to vector<8x8xbf16>
    %cst_128 = arith.constant dense<0.000000e+00> : vector<128x8xf32>
    %151 = tpu.matmul %148, %150, %cst_128 {dimension_numbers = #tpu.dot_dimension_numbers<[1], [0], [0], [1], [0, 0, 1, 1], [], []>} : vector<128x8xbf16>, vector<8x8xbf16>, vector<128x8xf32> -> vector<128x8xf32>
    %152 = arith.addf %146, %151 : vector<128x8xf32>
    %c16_129 = arith.constant 16 : index
    %c0_130 = arith.constant 0 : index
    %153 = vector.load %arg7[%c16_129, %c0_130] : memref<222x8xf32, #tpu.memory_space<vmem>>, vector<128x8xf32>
    %154 = arith.truncf %153 : vector<128x8xf32> to vector<128x8xbf16>
    %c3_131 = arith.constant 3 : index
    %c0_132 = arith.constant 0 : index
    %c0_133 = arith.constant 0 : index
    %155 = vector.load %arg4[%c3_131, %c0_132, %c0_133] : memref<9x8x8xbf16, #tpu.memory_space<vmem>>, vector<1x8x8xbf16>
    %156 = vector.shape_cast %155 : vector<1x8x8xbf16> to vector<8x8xbf16>
    %cst_134 = arith.constant dense<0.000000e+00> : vector<128x8xf32>
    %157 = tpu.matmul %154, %156, %cst_134 {dimension_numbers = #tpu.dot_dimension_numbers<[1], [0], [0], [1], [0, 0, 1, 1], [], []>} : vector<128x8xbf16>, vector<8x8xbf16>, vector<128x8xf32> -> vector<128x8xf32>
    %158 = arith.addf %152, %157 : vector<128x8xf32>
    %c17_135 = arith.constant 17 : index
    %c0_136 = arith.constant 0 : index
    %159 = vector.load %arg7[%c17_135, %c0_136] : memref<222x8xf32, #tpu.memory_space<vmem>>, vector<128x8xf32>
    %160 = arith.truncf %159 : vector<128x8xf32> to vector<128x8xbf16>
    %c4_137 = arith.constant 4 : index
    %c0_138 = arith.constant 0 : index
    %c0_139 = arith.constant 0 : index
    %161 = vector.load %arg4[%c4_137, %c0_138, %c0_139] : memref<9x8x8xbf16, #tpu.memory_space<vmem>>, vector<1x8x8xbf16>
    %162 = vector.shape_cast %161 : vector<1x8x8xbf16> to vector<8x8xbf16>
    %cst_140 = arith.constant dense<0.000000e+00> : vector<128x8xf32>
    %163 = tpu.matmul %160, %162, %cst_140 {dimension_numbers = #tpu.dot_dimension_numbers<[1], [0], [0], [1], [0, 0, 1, 1], [], []>} : vector<128x8xbf16>, vector<8x8xbf16>, vector<128x8xf32> -> vector<128x8xf32>
    %164 = arith.addf %158, %163 : vector<128x8xf32>
    %c18_141 = arith.constant 18 : index
    %c0_142 = arith.constant 0 : index
    %165 = vector.load %arg7[%c18_141, %c0_142] : memref<222x8xf32, #tpu.memory_space<vmem>>, vector<128x8xf32>
    %166 = arith.truncf %165 : vector<128x8xf32> to vector<128x8xbf16>
    %c5_143 = arith.constant 5 : index
    %c0_144 = arith.constant 0 : index
    %c0_145 = arith.constant 0 : index
    %167 = vector.load %arg4[%c5_143, %c0_144, %c0_145] : memref<9x8x8xbf16, #tpu.memory_space<vmem>>, vector<1x8x8xbf16>
    %168 = vector.shape_cast %167 : vector<1x8x8xbf16> to vector<8x8xbf16>
    %cst_146 = arith.constant dense<0.000000e+00> : vector<128x8xf32>
    %169 = tpu.matmul %166, %168, %cst_146 {dimension_numbers = #tpu.dot_dimension_numbers<[1], [0], [0], [1], [0, 0, 1, 1], [], []>} : vector<128x8xbf16>, vector<8x8xbf16>, vector<128x8xf32> -> vector<128x8xf32>
    %170 = arith.addf %164, %169 : vector<128x8xf32>
    %c32_147 = arith.constant 32 : index
    %c0_148 = arith.constant 0 : index
    %171 = vector.load %arg7[%c32_147, %c0_148] : memref<222x8xf32, #tpu.memory_space<vmem>>, vector<128x8xf32>
    %172 = arith.truncf %171 : vector<128x8xf32> to vector<128x8xbf16>
    %c6_149 = arith.constant 6 : index
    %c0_150 = arith.constant 0 : index
    %c0_151 = arith.constant 0 : index
    %173 = vector.load %arg4[%c6_149, %c0_150, %c0_151] : memref<9x8x8xbf16, #tpu.memory_space<vmem>>, vector<1x8x8xbf16>
    %174 = vector.shape_cast %173 : vector<1x8x8xbf16> to vector<8x8xbf16>
    %cst_152 = arith.constant dense<0.000000e+00> : vector<128x8xf32>
    %175 = tpu.matmul %172, %174, %cst_152 {dimension_numbers = #tpu.dot_dimension_numbers<[1], [0], [0], [1], [0, 0, 1, 1], [], []>} : vector<128x8xbf16>, vector<8x8xbf16>, vector<128x8xf32> -> vector<128x8xf32>
    %176 = arith.addf %170, %175 : vector<128x8xf32>
    %c33_153 = arith.constant 33 : index
    %c0_154 = arith.constant 0 : index
    %177 = vector.load %arg7[%c33_153, %c0_154] : memref<222x8xf32, #tpu.memory_space<vmem>>, vector<128x8xf32>
    %178 = arith.truncf %177 : vector<128x8xf32> to vector<128x8xbf16>
    %c7_155 = arith.constant 7 : index
    %c0_156 = arith.constant 0 : index
    %c0_157 = arith.constant 0 : index
    %179 = vector.load %arg4[%c7_155, %c0_156, %c0_157] : memref<9x8x8xbf16, #tpu.memory_space<vmem>>, vector<1x8x8xbf16>
    %180 = vector.shape_cast %179 : vector<1x8x8xbf16> to vector<8x8xbf16>
    %cst_158 = arith.constant dense<0.000000e+00> : vector<128x8xf32>
    %181 = tpu.matmul %178, %180, %cst_158 {dimension_numbers = #tpu.dot_dimension_numbers<[1], [0], [0], [1], [0, 0, 1, 1], [], []>} : vector<128x8xbf16>, vector<8x8xbf16>, vector<128x8xf32> -> vector<128x8xf32>
    %182 = arith.addf %176, %181 : vector<128x8xf32>
    %c34_159 = arith.constant 34 : index
    %c0_160 = arith.constant 0 : index
    %183 = vector.load %arg7[%c34_159, %c0_160] : memref<222x8xf32, #tpu.memory_space<vmem>>, vector<128x8xf32>
    %184 = arith.truncf %183 : vector<128x8xf32> to vector<128x8xbf16>
    %c8_161 = arith.constant 8 : index
    %c0_162 = arith.constant 0 : index
    %c0_163 = arith.constant 0 : index
    %185 = vector.load %arg4[%c8_161, %c0_162, %c0_163] : memref<9x8x8xbf16, #tpu.memory_space<vmem>>, vector<1x8x8xbf16>
    %186 = vector.shape_cast %185 : vector<1x8x8xbf16> to vector<8x8xbf16>
    %cst_164 = arith.constant dense<0.000000e+00> : vector<128x8xf32>
    %187 = tpu.matmul %184, %186, %cst_164 {dimension_numbers = #tpu.dot_dimension_numbers<[1], [0], [0], [1], [0, 0, 1, 1], [], []>} : vector<128x8xbf16>, vector<8x8xbf16>, vector<128x8xf32> -> vector<128x8xf32>
    %188 = arith.addf %182, %187 : vector<128x8xf32>
    %189 = vector.broadcast %135 : vector<1x8xf32> to vector<128x8xf32>
    %190 = arith.addf %188, %189 : vector<128x8xf32>
    %cst_165 = arith.constant 0.000000e+00 : f32
    %191 = vector.broadcast %cst_165 : f32 to vector<128x8xf32>
    %192 = arith.maximumf %190, %191 : vector<128x8xf32>
    %c0_166 = arith.constant 0 : index
    %c0_167 = arith.constant 0 : index
    %193 = vector.load %arg8[%c0_166, %c0_167] : memref<188x8xf32, #tpu.memory_space<vmem>>, vector<128x8xf32>
    tpu.vector_store %arg8[%c0_166, %c0_167], %192 {strides = array<i32>} : memref<188x8xf32, #tpu.memory_space<vmem>>, vector<128x8xf32>,
    %c128_168 = arith.constant 128 : index
    %c0_169 = arith.constant 0 : index
    %194 = vector.load %arg7[%c128_168, %c0_169] : memref<222x8xf32, #tpu.memory_space<vmem>>, vector<60x8xf32>
    %195 = arith.truncf %194 : vector<60x8xf32> to vector<60x8xbf16>
    %c0_170 = arith.constant 0 : index
    %c0_171 = arith.constant 0 : index
    %c0_172 = arith.constant 0 : index
    %196 = vector.load %arg4[%c0_170, %c0_171, %c0_172] : memref<9x8x8xbf16, #tpu.memory_space<vmem>>, vector<1x8x8xbf16>
    %197 = vector.shape_cast %196 : vector<1x8x8xbf16> to vector<8x8xbf16>
    %cst_173 = arith.constant dense<0.000000e+00> : vector<60x8xf32>
    %198 = tpu.matmul %195, %197, %cst_173 {dimension_numbers = #tpu.dot_dimension_numbers<[1], [0], [0], [1], [0, 0, 1, 1], [], []>} : vector<60x8xbf16>, vector<8x8xbf16>, vector<60x8xf32> -> vector<60x8xf32>
    %c129_174 = arith.constant 129 : index
    %c0_175 = arith.constant 0 : index
    %199 = vector.load %arg7[%c129_174, %c0_175] : memref<222x8xf32, #tpu.memory_space<vmem>>, vector<60x8xf32>
    %200 = arith.truncf %199 : vector<60x8xf32> to vector<60x8xbf16>
    %c1_176 = arith.constant 1 : index
    %c0_177 = arith.constant 0 : index
    %c0_178 = arith.constant 0 : index
    %201 = vector.load %arg4[%c1_176, %c0_177, %c0_178] : memref<9x8x8xbf16, #tpu.memory_space<vmem>>, vector<1x8x8xbf16>
    %202 = vector.shape_cast %201 : vector<1x8x8xbf16> to vector<8x8xbf16>
    %cst_179 = arith.constant dense<0.000000e+00> : vector<60x8xf32>
    %203 = tpu.matmul %200, %202, %cst_179 {dimension_numbers = #tpu.dot_dimension_numbers<[1], [0], [0], [1], [0, 0, 1, 1], [], []>} : vector<60x8xbf16>, vector<8x8xbf16>, vector<60x8xf32> -> vector<60x8xf32>
    %204 = arith.addf %198, %203 : vector<60x8xf32>
    %c130_180 = arith.constant 130 : index
    %c0_181 = arith.constant 0 : index
    %205 = vector.load %arg7[%c130_180, %c0_181] : memref<222x8xf32, #tpu.memory_space<vmem>>, vector<60x8xf32>
    %206 = arith.truncf %205 : vector<60x8xf32> to vector<60x8xbf16>
    %c2_182 = arith.constant 2 : index
    %c0_183 = arith.constant 0 : index
    %c0_184 = arith.constant 0 : index
    %207 = vector.load %arg4[%c2_182, %c0_183, %c0_184] : memref<9x8x8xbf16, #tpu.memory_space<vmem>>, vector<1x8x8xbf16>
    %208 = vector.shape_cast %207 : vector<1x8x8xbf16> to vector<8x8xbf16>
    %cst_185 = arith.constant dense<0.000000e+00> : vector<60x8xf32>
    %209 = tpu.matmul %206, %208, %cst_185 {dimension_numbers = #tpu.dot_dimension_numbers<[1], [0], [0], [1], [0, 0, 1, 1], [], []>} : vector<60x8xbf16>, vector<8x8xbf16>, vector<60x8xf32> -> vector<60x8xf32>
    %210 = arith.addf %204, %209 : vector<60x8xf32>
    %c144_186 = arith.constant 144 : index
    %c0_187 = arith.constant 0 : index
    %211 = vector.load %arg7[%c144_186, %c0_187] : memref<222x8xf32, #tpu.memory_space<vmem>>, vector<60x8xf32>
    %212 = arith.truncf %211 : vector<60x8xf32> to vector<60x8xbf16>
    %c3_188 = arith.constant 3 : index
    %c0_189 = arith.constant 0 : index
    %c0_190 = arith.constant 0 : index
    %213 = vector.load %arg4[%c3_188, %c0_189, %c0_190] : memref<9x8x8xbf16, #tpu.memory_space<vmem>>, vector<1x8x8xbf16>
    %214 = vector.shape_cast %213 : vector<1x8x8xbf16> to vector<8x8xbf16>
    %cst_191 = arith.constant dense<0.000000e+00> : vector<60x8xf32>
    %215 = tpu.matmul %212, %214, %cst_191 {dimension_numbers = #tpu.dot_dimension_numbers<[1], [0], [0], [1], [0, 0, 1, 1], [], []>} : vector<60x8xbf16>, vector<8x8xbf16>, vector<60x8xf32> -> vector<60x8xf32>
    %216 = arith.addf %210, %215 : vector<60x8xf32>
    %c145_192 = arith.constant 145 : index
    %c0_193 = arith.constant 0 : index
    %217 = vector.load %arg7[%c145_192, %c0_193] : memref<222x8xf32, #tpu.memory_space<vmem>>, vector<60x8xf32>
    %218 = arith.truncf %217 : vector<60x8xf32> to vector<60x8xbf16>
    %c4_194 = arith.constant 4 : index
    %c0_195 = arith.constant 0 : index
    %c0_196 = arith.constant 0 : index
    %219 = vector.load %arg4[%c4_194, %c0_195, %c0_196] : memref<9x8x8xbf16, #tpu.memory_space<vmem>>, vector<1x8x8xbf16>
    %220 = vector.shape_cast %219 : vector<1x8x8xbf16> to vector<8x8xbf16>
    %cst_197 = arith.constant dense<0.000000e+00> : vector<60x8xf32>
    %221 = tpu.matmul %218, %220, %cst_197 {dimension_numbers = #tpu.dot_dimension_numbers<[1], [0], [0], [1], [0, 0, 1, 1], [], []>} : vector<60x8xbf16>, vector<8x8xbf16>, vector<60x8xf32> -> vector<60x8xf32>
    %222 = arith.addf %216, %221 : vector<60x8xf32>
    %c146_198 = arith.constant 146 : index
    %c0_199 = arith.constant 0 : index
    %223 = vector.load %arg7[%c146_198, %c0_199] : memref<222x8xf32, #tpu.memory_space<vmem>>, vector<60x8xf32>
    %224 = arith.truncf %223 : vector<60x8xf32> to vector<60x8xbf16>
    %c5_200 = arith.constant 5 : index
    %c0_201 = arith.constant 0 : index
    %c0_202 = arith.constant 0 : index
    %225 = vector.load %arg4[%c5_200, %c0_201, %c0_202] : memref<9x8x8xbf16, #tpu.memory_space<vmem>>, vector<1x8x8xbf16>
    %226 = vector.shape_cast %225 : vector<1x8x8xbf16> to vector<8x8xbf16>
    %cst_203 = arith.constant dense<0.000000e+00> : vector<60x8xf32>
    %227 = tpu.matmul %224, %226, %cst_203 {dimension_numbers = #tpu.dot_dimension_numbers<[1], [0], [0], [1], [0, 0, 1, 1], [], []>} : vector<60x8xbf16>, vector<8x8xbf16>, vector<60x8xf32> -> vector<60x8xf32>
    %228 = arith.addf %222, %227 : vector<60x8xf32>
    %c160_204 = arith.constant 160 : index
    %c0_205 = arith.constant 0 : index
    %229 = vector.load %arg7[%c160_204, %c0_205] : memref<222x8xf32, #tpu.memory_space<vmem>>, vector<60x8xf32>
    %230 = arith.truncf %229 : vector<60x8xf32> to vector<60x8xbf16>
    %c6_206 = arith.constant 6 : index
    %c0_207 = arith.constant 0 : index
    %c0_208 = arith.constant 0 : index
    %231 = vector.load %arg4[%c6_206, %c0_207, %c0_208] : memref<9x8x8xbf16, #tpu.memory_space<vmem>>, vector<1x8x8xbf16>
    %232 = vector.shape_cast %231 : vector<1x8x8xbf16> to vector<8x8xbf16>
    %cst_209 = arith.constant dense<0.000000e+00> : vector<60x8xf32>
    %233 = tpu.matmul %230, %232, %cst_209 {dimension_numbers = #tpu.dot_dimension_numbers<[1], [0], [0], [1], [0, 0, 1, 1], [], []>} : vector<60x8xbf16>, vector<8x8xbf16>, vector<60x8xf32> -> vector<60x8xf32>
    %234 = arith.addf %228, %233 : vector<60x8xf32>
    %c161_210 = arith.constant 161 : index
    %c0_211 = arith.constant 0 : index
    %235 = vector.load %arg7[%c161_210, %c0_211] : memref<222x8xf32, #tpu.memory_space<vmem>>, vector<60x8xf32>
    %236 = arith.truncf %235 : vector<60x8xf32> to vector<60x8xbf16>
    %c7_212 = arith.constant 7 : index
    %c0_213 = arith.constant 0 : index
    %c0_214 = arith.constant 0 : index
    %237 = vector.load %arg4[%c7_212, %c0_213, %c0_214] : memref<9x8x8xbf16, #tpu.memory_space<vmem>>, vector<1x8x8xbf16>
    %238 = vector.shape_cast %237 : vector<1x8x8xbf16> to vector<8x8xbf16>
    %cst_215 = arith.constant dense<0.000000e+00> : vector<60x8xf32>
    %239 = tpu.matmul %236, %238, %cst_215 {dimension_numbers = #tpu.dot_dimension_numbers<[1], [0], [0], [1], [0, 0, 1, 1], [], []>} : vector<60x8xbf16>, vector<8x8xbf16>, vector<60x8xf32> -> vector<60x8xf32>
    %240 = arith.addf %234, %239 : vector<60x8xf32>
    %c162_216 = arith.constant 162 : index
    %c0_217 = arith.constant 0 : index
    %241 = vector.load %arg7[%c162_216, %c0_217] : memref<222x8xf32, #tpu.memory_space<vmem>>, vector<60x8xf32>
    %242 = arith.truncf %241 : vector<60x8xf32> to vector<60x8xbf16>
    %c8_218 = arith.constant 8 : index
    %c0_219 = arith.constant 0 : index
    %c0_220 = arith.constant 0 : index
    %243 = vector.load %arg4[%c8_218, %c0_219, %c0_220] : memref<9x8x8xbf16, #tpu.memory_space<vmem>>, vector<1x8x8xbf16>
    %244 = vector.shape_cast %243 : vector<1x8x8xbf16> to vector<8x8xbf16>
    %cst_221 = arith.constant dense<0.000000e+00> : vector<60x8xf32>
    %245 = tpu.matmul %242, %244, %cst_221 {dimension_numbers = #tpu.dot_dimension_numbers<[1], [0], [0], [1], [0, 0, 1, 1], [], []>} : vector<60x8xbf16>, vector<8x8xbf16>, vector<60x8xf32> -> vector<60x8xf32>
    %246 = arith.addf %240, %245 : vector<60x8xf32>
    %247 = vector.broadcast %135 : vector<1x8xf32> to vector<60x8xf32>
    %248 = arith.addf %246, %247 : vector<60x8xf32>
    %cst_222 = arith.constant 0.000000e+00 : f32
    %249 = vector.broadcast %cst_222 : f32 to vector<60x8xf32>
    %250 = arith.maximumf %248, %249 : vector<60x8xf32>
    %c128_223 = arith.constant 128 : index
    %c0_224 = arith.constant 0 : index
    %251 = vector.load %arg8[%c128_223, %c0_224] : memref<188x8xf32, #tpu.memory_space<vmem>>, vector<60x8xf32>
    tpu.vector_store %arg8[%c128_223, %c0_224], %250 {strides = array<i32>} : memref<188x8xf32, #tpu.memory_space<vmem>>, vector<60x8xf32>,
    %c0_225 = arith.constant 0 : index
    %c0_226 = arith.constant 0 : index
    %252 = tpu.strided_load %arg8[%c0_225, %c0_226] {strides = array<i32: 2, 1>} : memref<188x8xf32, #tpu.memory_space<vmem>>, vector<6x8xf32>
    %c1_227 = arith.constant 1 : index
    %c0_228 = arith.constant 0 : index
    %253 = tpu.strided_load %arg8[%c1_227, %c0_228] {strides = array<i32: 2, 1>} : memref<188x8xf32, #tpu.memory_space<vmem>>, vector<6x8xf32>
    %c16_229 = arith.constant 16 : index
    %c0_230 = arith.constant 0 : index
    %254 = tpu.strided_load %arg8[%c16_229, %c0_230] {strides = array<i32: 2, 1>} : memref<188x8xf32, #tpu.memory_space<vmem>>, vector<6x8xf32>
    %c17_231 = arith.constant 17 : index
    %c0_232 = arith.constant 0 : index
    %255 = tpu.strided_load %arg8[%c17_231, %c0_232] {strides = array<i32: 2, 1>} : memref<188x8xf32, #tpu.memory_space<vmem>>, vector<6x8xf32>
    %256 = arith.maximumf %252, %253 : vector<6x8xf32>
    %257 = arith.maximumf %254, %255 : vector<6x8xf32>
    %258 = arith.maximumf %256, %257 : vector<6x8xf32>
    %c0_233 = arith.constant 0 : index
    %c0_234 = arith.constant 0 : index
    %c0_235 = arith.constant 0 : index
    %c0_236 = arith.constant 0 : index
    %259 = vector.load %arg6[%c0_233, %c0_234, %c0_235, %c0_236] : memref<2x6x6x8xf32, #tpu.memory_space<vmem>>, vector<1x1x6x8xf32>
    %260 = vector.shape_cast %259 : vector<1x1x6x8xf32> to vector<6x8xf32>
    %261 = vector.shape_cast %258 : vector<6x8xf32> to vector<1x1x6x8xf32>
    tpu.vector_store %arg6[%c0_233, %c0_234, %c0_235, %c0_236], %261 {strides = array<i32>} : memref<2x6x6x8xf32, #tpu.memory_space<vmem>>, vector<1x1x6x8xf32>,
    %c32_237 = arith.constant 32 : index
    %c0_238 = arith.constant 0 : index
    %262 = tpu.strided_load %arg8[%c32_237, %c0_238] {strides = array<i32: 2, 1>} : memref<188x8xf32, #tpu.memory_space<vmem>>, vector<6x8xf32>
    %c33_239 = arith.constant 33 : index
    %c0_240 = arith.constant 0 : index
    %263 = tpu.strided_load %arg8[%c33_239, %c0_240] {strides = array<i32: 2, 1>} : memref<188x8xf32, #tpu.memory_space<vmem>>, vector<6x8xf32>
    %c48 = arith.constant 48 : index
    %c0_241 = arith.constant 0 : index
    %264 = tpu.strided_load %arg8[%c48, %c0_241] {strides = array<i32: 2, 1>} : memref<188x8xf32, #tpu.memory_space<vmem>>, vector<6x8xf32>
    %c49 = arith.constant 49 : index
    %c0_242 = arith.constant 0 : index
    %265 = tpu.strided_load %arg8[%c49, %c0_242] {strides = array<i32: 2, 1>} : memref<188x8xf32, #tpu.memory_space<vmem>>, vector<6x8xf32>
    %266 = arith.maximumf %262, %263 : vector<6x8xf32>
    %267 = arith.maximumf %264, %265 : vector<6x8xf32>
    %268 = arith.maximumf %266, %267 : vector<6x8xf32>
    %c0_243 = arith.constant 0 : index
    %c1_244 = arith.constant 1 : index
    %c0_245 = arith.constant 0 : index
    %c0_246 = arith.constant 0 : index
    %269 = vector.load %arg6[%c0_243, %c1_244, %c0_245, %c0_246] : memref<2x6x6x8xf32, #tpu.memory_space<vmem>>, vector<1x1x6x8xf32>
    %270 = vector.shape_cast %269 : vector<1x1x6x8xf32> to vector<6x8xf32>
    %271 = vector.shape_cast %268 : vector<6x8xf32> to vector<1x1x6x8xf32>
    tpu.vector_store %arg6[%c0_243, %c1_244, %c0_245, %c0_246], %271 {strides = array<i32>} : memref<2x6x6x8xf32, #tpu.memory_space<vmem>>, vector<1x1x6x8xf32>,
    %c64 = arith.constant 64 : index
    %c0_247 = arith.constant 0 : index
    %272 = tpu.strided_load %arg8[%c64, %c0_247] {strides = array<i32: 2, 1>} : memref<188x8xf32, #tpu.memory_space<vmem>>, vector<6x8xf32>
    %c65 = arith.constant 65 : index
    %c0_248 = arith.constant 0 : index
    %273 = tpu.strided_load %arg8[%c65, %c0_248] {strides = array<i32: 2, 1>} : memref<188x8xf32, #tpu.memory_space<vmem>>, vector<6x8xf32>
    %c80 = arith.constant 80 : index
    %c0_249 = arith.constant 0 : index
    %274 = tpu.strided_load %arg8[%c80, %c0_249] {strides = array<i32: 2, 1>} : memref<188x8xf32, #tpu.memory_space<vmem>>, vector<6x8xf32>
    %c81 = arith.constant 81 : index
    %c0_250 = arith.constant 0 : index
    %275 = tpu.strided_load %arg8[%c81, %c0_250] {strides = array<i32: 2, 1>} : memref<188x8xf32, #tpu.memory_space<vmem>>, vector<6x8xf32>
    %276 = arith.maximumf %272, %273 : vector<6x8xf32>
    %277 = arith.maximumf %274, %275 : vector<6x8xf32>
    %278 = arith.maximumf %276, %277 : vector<6x8xf32>
    %c0_251 = arith.constant 0 : index
    %c2_252 = arith.constant 2 : index
    %c0_253 = arith.constant 0 : index
    %c0_254 = arith.constant 0 : index
    %279 = vector.load %arg6[%c0_251, %c2_252, %c0_253, %c0_254] : memref<2x6x6x8xf32, #tpu.memory_space<vmem>>, vector<1x1x6x8xf32>
    %280 = vector.shape_cast %279 : vector<1x1x6x8xf32> to vector<6x8xf32>
    %281 = vector.shape_cast %278 : vector<6x8xf32> to vector<1x1x6x8xf32>
    tpu.vector_store %arg6[%c0_251, %c2_252, %c0_253, %c0_254], %281 {strides = array<i32>} : memref<2x6x6x8xf32, #tpu.memory_space<vmem>>, vector<1x1x6x8xf32>,
    %c96 = arith.constant 96 : index
    %c0_255 = arith.constant 0 : index
    %282 = tpu.strided_load %arg8[%c96, %c0_255] {strides = array<i32: 2, 1>} : memref<188x8xf32, #tpu.memory_space<vmem>>, vector<6x8xf32>
    %c97 = arith.constant 97 : index
    %c0_256 = arith.constant 0 : index
    %283 = tpu.strided_load %arg8[%c97, %c0_256] {strides = array<i32: 2, 1>} : memref<188x8xf32, #tpu.memory_space<vmem>>, vector<6x8xf32>
    %c112 = arith.constant 112 : index
    %c0_257 = arith.constant 0 : index
    %284 = tpu.strided_load %arg8[%c112, %c0_257] {strides = array<i32: 2, 1>} : memref<188x8xf32, #tpu.memory_space<vmem>>, vector<6x8xf32>
    %c113 = arith.constant 113 : index
    %c0_258 = arith.constant 0 : index
    %285 = tpu.strided_load %arg8[%c113, %c0_258] {strides = array<i32: 2, 1>} : memref<188x8xf32, #tpu.memory_space<vmem>>, vector<6x8xf32>
    %286 = arith.maximumf %282, %283 : vector<6x8xf32>
    %287 = arith.maximumf %284, %285 : vector<6x8xf32>
    %288 = arith.maximumf %286, %287 : vector<6x8xf32>
    %c0_259 = arith.constant 0 : index
    %c3_260 = arith.constant 3 : index
    %c0_261 = arith.constant 0 : index
    %c0_262 = arith.constant 0 : index
    %289 = vector.load %arg6[%c0_259, %c3_260, %c0_261, %c0_262] : memref<2x6x6x8xf32, #tpu.memory_space<vmem>>, vector<1x1x6x8xf32>
    %290 = vector.shape_cast %289 : vector<1x1x6x8xf32> to vector<6x8xf32>
    %291 = vector.shape_cast %288 : vector<6x8xf32> to vector<1x1x6x8xf32>
    tpu.vector_store %arg6[%c0_259, %c3_260, %c0_261, %c0_262], %291 {strides = array<i32>} : memref<2x6x6x8xf32, #tpu.memory_space<vmem>>, vector<1x1x6x8xf32>,
    %c128_263 = arith.constant 128 : index
    %c0_264 = arith.constant 0 : index
    %292 = tpu.strided_load %arg8[%c128_263, %c0_264] {strides = array<i32: 2, 1>} : memref<188x8xf32, #tpu.memory_space<vmem>>, vector<6x8xf32>
    %c129_265 = arith.constant 129 : index
    %c0_266 = arith.constant 0 : index
    %293 = tpu.strided_load %arg8[%c129_265, %c0_266] {strides = array<i32: 2, 1>} : memref<188x8xf32, #tpu.memory_space<vmem>>, vector<6x8xf32>
    %c144_267 = arith.constant 144 : index
    %c0_268 = arith.constant 0 : index
    %294 = tpu.strided_load %arg8[%c144_267, %c0_268] {strides = array<i32: 2, 1>} : memref<188x8xf32, #tpu.memory_space<vmem>>, vector<6x8xf32>
    %c145_269 = arith.constant 145 : index
    %c0_270 = arith.constant 0 : index
    %295 = tpu.strided_load %arg8[%c145_269, %c0_270] {strides = array<i32: 2, 1>} : memref<188x8xf32, #tpu.memory_space<vmem>>, vector<6x8xf32>
    %296 = arith.maximumf %292, %293 : vector<6x8xf32>
    %297 = arith.maximumf %294, %295 : vector<6x8xf32>
    %298 = arith.maximumf %296, %297 : vector<6x8xf32>
    %c0_271 = arith.constant 0 : index
    %c4_272 = arith.constant 4 : index
    %c0_273 = arith.constant 0 : index
    %c0_274 = arith.constant 0 : index
    %299 = vector.load %arg6[%c0_271, %c4_272, %c0_273, %c0_274] : memref<2x6x6x8xf32, #tpu.memory_space<vmem>>, vector<1x1x6x8xf32>
    %300 = vector.shape_cast %299 : vector<1x1x6x8xf32> to vector<6x8xf32>
    %301 = vector.shape_cast %298 : vector<6x8xf32> to vector<1x1x6x8xf32>
    tpu.vector_store %arg6[%c0_271, %c4_272, %c0_273, %c0_274], %301 {strides = array<i32>} : memref<2x6x6x8xf32, #tpu.memory_space<vmem>>, vector<1x1x6x8xf32>,
    %c160_275 = arith.constant 160 : index
    %c0_276 = arith.constant 0 : index
    %302 = tpu.strided_load %arg8[%c160_275, %c0_276] {strides = array<i32: 2, 1>} : memref<188x8xf32, #tpu.memory_space<vmem>>, vector<6x8xf32>
    %c161_277 = arith.constant 161 : index
    %c0_278 = arith.constant 0 : index
    %303 = tpu.strided_load %arg8[%c161_277, %c0_278] {strides = array<i32: 2, 1>} : memref<188x8xf32, #tpu.memory_space<vmem>>, vector<6x8xf32>
    %c176 = arith.constant 176 : index
    %c0_279 = arith.constant 0 : index
    %304 = tpu.strided_load %arg8[%c176, %c0_279] {strides = array<i32: 2, 1>} : memref<188x8xf32, #tpu.memory_space<vmem>>, vector<6x8xf32>
    %c177 = arith.constant 177 : index
    %c0_280 = arith.constant 0 : index
    %305 = tpu.strided_load %arg8[%c177, %c0_280] {strides = array<i32: 2, 1>} : memref<188x8xf32, #tpu.memory_space<vmem>>, vector<6x8xf32>
    %306 = arith.maximumf %302, %303 : vector<6x8xf32>
    %307 = arith.maximumf %304, %305 : vector<6x8xf32>
    %308 = arith.maximumf %306, %307 : vector<6x8xf32>
    %c0_281 = arith.constant 0 : index
    %c5_282 = arith.constant 5 : index
    %c0_283 = arith.constant 0 : index
    %c0_284 = arith.constant 0 : index
    %309 = vector.load %arg6[%c0_281, %c5_282, %c0_283, %c0_284] : memref<2x6x6x8xf32, #tpu.memory_space<vmem>>, vector<1x1x6x8xf32>
    %310 = vector.shape_cast %309 : vector<1x1x6x8xf32> to vector<6x8xf32>
    %311 = vector.shape_cast %308 : vector<6x8xf32> to vector<1x1x6x8xf32>
    tpu.vector_store %arg6[%c0_281, %c5_282, %c0_283, %c0_284], %311 {strides = array<i32>} : memref<2x6x6x8xf32, #tpu.memory_space<vmem>>, vector<1x1x6x8xf32>,
    %c0_285 = arith.constant 0 : index
    %c0_286 = arith.constant 0 : index
    %312 = vector.load %arg3[%c0_285, %c0_286] : memref<1x8xf32, #tpu.memory_space<vmem>>, vector<1x8xf32>
    %c1_287 = arith.constant 1 : index
    %c0_288 = arith.constant 0 : index
    %c0_289 = arith.constant 0 : index
    %313 = vector.load %arg1[%c1_287, %c0_288, %c0_289] : memref<2x256x8xf32, #tpu.memory_space<vmem>>, vector<1x128x8xf32>
    %314 = vector.shape_cast %313 : vector<1x128x8xf32> to vector<128x8xf32>
    %315 = arith.truncf %314 : vector<128x8xf32> to vector<128x8xbf16>
    %c0_290 = arith.constant 0 : index
    %c0_291 = arith.constant 0 : index
    %c0_292 = arith.constant 0 : index
    %316 = vector.load %arg2[%c0_290, %c0_291, %c0_292] : memref<9x8x8xbf16, #tpu.memory_space<vmem>>, vector<1x8x8xbf16>
    %317 = vector.shape_cast %316 : vector<1x8x8xbf16> to vector<8x8xbf16>
    %cst_293 = arith.constant dense<0.000000e+00> : vector<128x8xf32>
    %318 = tpu.matmul %315, %317, %cst_293 {dimension_numbers = #tpu.dot_dimension_numbers<[1], [0], [0], [1], [0, 0, 1, 1], [], []>} : vector<128x8xbf16>, vector<8x8xbf16>, vector<128x8xf32> -> vector<128x8xf32>
    %c1_294 = arith.constant 1 : index
    %c1_295 = arith.constant 1 : index
    %c0_296 = arith.constant 0 : index
    %319 = vector.load %arg1[%c1_294, %c1_295, %c0_296] : memref<2x256x8xf32, #tpu.memory_space<vmem>>, vector<1x128x8xf32>
    %320 = vector.shape_cast %319 : vector<1x128x8xf32> to vector<128x8xf32>
    %321 = arith.truncf %320 : vector<128x8xf32> to vector<128x8xbf16>
    %c1_297 = arith.constant 1 : index
    %c0_298 = arith.constant 0 : index
    %c0_299 = arith.constant 0 : index
    %322 = vector.load %arg2[%c1_297, %c0_298, %c0_299] : memref<9x8x8xbf16, #tpu.memory_space<vmem>>, vector<1x8x8xbf16>
    %323 = vector.shape_cast %322 : vector<1x8x8xbf16> to vector<8x8xbf16>
    %cst_300 = arith.constant dense<0.000000e+00> : vector<128x8xf32>
    %324 = tpu.matmul %321, %323, %cst_300 {dimension_numbers = #tpu.dot_dimension_numbers<[1], [0], [0], [1], [0, 0, 1, 1], [], []>} : vector<128x8xbf16>, vector<8x8xbf16>, vector<128x8xf32> -> vector<128x8xf32>
    %325 = arith.addf %318, %324 : vector<128x8xf32>
    %c1_301 = arith.constant 1 : index
    %c2_302 = arith.constant 2 : index
    %c0_303 = arith.constant 0 : index
    %326 = vector.load %arg1[%c1_301, %c2_302, %c0_303] : memref<2x256x8xf32, #tpu.memory_space<vmem>>, vector<1x128x8xf32>
    %327 = vector.shape_cast %326 : vector<1x128x8xf32> to vector<128x8xf32>
    %328 = arith.truncf %327 : vector<128x8xf32> to vector<128x8xbf16>
    %c2_304 = arith.constant 2 : index
    %c0_305 = arith.constant 0 : index
    %c0_306 = arith.constant 0 : index
    %329 = vector.load %arg2[%c2_304, %c0_305, %c0_306] : memref<9x8x8xbf16, #tpu.memory_space<vmem>>, vector<1x8x8xbf16>
    %330 = vector.shape_cast %329 : vector<1x8x8xbf16> to vector<8x8xbf16>
    %cst_307 = arith.constant dense<0.000000e+00> : vector<128x8xf32>
    %331 = tpu.matmul %328, %330, %cst_307 {dimension_numbers = #tpu.dot_dimension_numbers<[1], [0], [0], [1], [0, 0, 1, 1], [], []>} : vector<128x8xbf16>, vector<8x8xbf16>, vector<128x8xf32> -> vector<128x8xf32>
    %332 = arith.addf %325, %331 : vector<128x8xf32>
    %c1_308 = arith.constant 1 : index
    %c16_309 = arith.constant 16 : index
    %c0_310 = arith.constant 0 : index
    %333 = vector.load %arg1[%c1_308, %c16_309, %c0_310] : memref<2x256x8xf32, #tpu.memory_space<vmem>>, vector<1x128x8xf32>
    %334 = vector.shape_cast %333 : vector<1x128x8xf32> to vector<128x8xf32>
    %335 = arith.truncf %334 : vector<128x8xf32> to vector<128x8xbf16>
    %c3_311 = arith.constant 3 : index
    %c0_312 = arith.constant 0 : index
    %c0_313 = arith.constant 0 : index
    %336 = vector.load %arg2[%c3_311, %c0_312, %c0_313] : memref<9x8x8xbf16, #tpu.memory_space<vmem>>, vector<1x8x8xbf16>
    %337 = vector.shape_cast %336 : vector<1x8x8xbf16> to vector<8x8xbf16>
    %cst_314 = arith.constant dense<0.000000e+00> : vector<128x8xf32>
    %338 = tpu.matmul %335, %337, %cst_314 {dimension_numbers = #tpu.dot_dimension_numbers<[1], [0], [0], [1], [0, 0, 1, 1], [], []>} : vector<128x8xbf16>, vector<8x8xbf16>, vector<128x8xf32> -> vector<128x8xf32>
    %339 = arith.addf %332, %338 : vector<128x8xf32>
    %c1_315 = arith.constant 1 : index
    %c17_316 = arith.constant 17 : index
    %c0_317 = arith.constant 0 : index
    %340 = vector.load %arg1[%c1_315, %c17_316, %c0_317] : memref<2x256x8xf32, #tpu.memory_space<vmem>>, vector<1x128x8xf32>
    %341 = vector.shape_cast %340 : vector<1x128x8xf32> to vector<128x8xf32>
    %342 = arith.truncf %341 : vector<128x8xf32> to vector<128x8xbf16>
    %c4_318 = arith.constant 4 : index
    %c0_319 = arith.constant 0 : index
    %c0_320 = arith.constant 0 : index
    %343 = vector.load %arg2[%c4_318, %c0_319, %c0_320] : memref<9x8x8xbf16, #tpu.memory_space<vmem>>, vector<1x8x8xbf16>
    %344 = vector.shape_cast %343 : vector<1x8x8xbf16> to vector<8x8xbf16>
    %cst_321 = arith.constant dense<0.000000e+00> : vector<128x8xf32>
    %345 = tpu.matmul %342, %344, %cst_321 {dimension_numbers = #tpu.dot_dimension_numbers<[1], [0], [0], [1], [0, 0, 1, 1], [], []>} : vector<128x8xbf16>, vector<8x8xbf16>, vector<128x8xf32> -> vector<128x8xf32>
    %346 = arith.addf %339, %345 : vector<128x8xf32>
    %c1_322 = arith.constant 1 : index
    %c18_323 = arith.constant 18 : index
    %c0_324 = arith.constant 0 : index
    %347 = vector.load %arg1[%c1_322, %c18_323, %c0_324] : memref<2x256x8xf32, #tpu.memory_space<vmem>>, vector<1x128x8xf32>
    %348 = vector.shape_cast %347 : vector<1x128x8xf32> to vector<128x8xf32>
    %349 = arith.truncf %348 : vector<128x8xf32> to vector<128x8xbf16>
    %c5_325 = arith.constant 5 : index
    %c0_326 = arith.constant 0 : index
    %c0_327 = arith.constant 0 : index
    %350 = vector.load %arg2[%c5_325, %c0_326, %c0_327] : memref<9x8x8xbf16, #tpu.memory_space<vmem>>, vector<1x8x8xbf16>
    %351 = vector.shape_cast %350 : vector<1x8x8xbf16> to vector<8x8xbf16>
    %cst_328 = arith.constant dense<0.000000e+00> : vector<128x8xf32>
    %352 = tpu.matmul %349, %351, %cst_328 {dimension_numbers = #tpu.dot_dimension_numbers<[1], [0], [0], [1], [0, 0, 1, 1], [], []>} : vector<128x8xbf16>, vector<8x8xbf16>, vector<128x8xf32> -> vector<128x8xf32>
    %353 = arith.addf %346, %352 : vector<128x8xf32>
    %c1_329 = arith.constant 1 : index
    %c32_330 = arith.constant 32 : index
    %c0_331 = arith.constant 0 : index
    %354 = vector.load %arg1[%c1_329, %c32_330, %c0_331] : memref<2x256x8xf32, #tpu.memory_space<vmem>>, vector<1x128x8xf32>
    %355 = vector.shape_cast %354 : vector<1x128x8xf32> to vector<128x8xf32>
    %356 = arith.truncf %355 : vector<128x8xf32> to vector<128x8xbf16>
    %c6_332 = arith.constant 6 : index
    %c0_333 = arith.constant 0 : index
    %c0_334 = arith.constant 0 : index
    %357 = vector.load %arg2[%c6_332, %c0_333, %c0_334] : memref<9x8x8xbf16, #tpu.memory_space<vmem>>, vector<1x8x8xbf16>
    %358 = vector.shape_cast %357 : vector<1x8x8xbf16> to vector<8x8xbf16>
    %cst_335 = arith.constant dense<0.000000e+00> : vector<128x8xf32>
    %359 = tpu.matmul %356, %358, %cst_335 {dimension_numbers = #tpu.dot_dimension_numbers<[1], [0], [0], [1], [0, 0, 1, 1], [], []>} : vector<128x8xbf16>, vector<8x8xbf16>, vector<128x8xf32> -> vector<128x8xf32>
    %360 = arith.addf %353, %359 : vector<128x8xf32>
    %c1_336 = arith.constant 1 : index
    %c33_337 = arith.constant 33 : index
    %c0_338 = arith.constant 0 : index
    %361 = vector.load %arg1[%c1_336, %c33_337, %c0_338] : memref<2x256x8xf32, #tpu.memory_space<vmem>>, vector<1x128x8xf32>
    %362 = vector.shape_cast %361 : vector<1x128x8xf32> to vector<128x8xf32>
    %363 = arith.truncf %362 : vector<128x8xf32> to vector<128x8xbf16>
    %c7_339 = arith.constant 7 : index
    %c0_340 = arith.constant 0 : index
    %c0_341 = arith.constant 0 : index
    %364 = vector.load %arg2[%c7_339, %c0_340, %c0_341] : memref<9x8x8xbf16, #tpu.memory_space<vmem>>, vector<1x8x8xbf16>
    %365 = vector.shape_cast %364 : vector<1x8x8xbf16> to vector<8x8xbf16>
    %cst_342 = arith.constant dense<0.000000e+00> : vector<128x8xf32>
    %366 = tpu.matmul %363, %365, %cst_342 {dimension_numbers = #tpu.dot_dimension_numbers<[1], [0], [0], [1], [0, 0, 1, 1], [], []>} : vector<128x8xbf16>, vector<8x8xbf16>, vector<128x8xf32> -> vector<128x8xf32>
    %367 = arith.addf %360, %366 : vector<128x8xf32>
    %c1_343 = arith.constant 1 : index
    %c34_344 = arith.constant 34 : index
    %c0_345 = arith.constant 0 : index
    %368 = vector.load %arg1[%c1_343, %c34_344, %c0_345] : memref<2x256x8xf32, #tpu.memory_space<vmem>>, vector<1x128x8xf32>
    %369 = vector.shape_cast %368 : vector<1x128x8xf32> to vector<128x8xf32>
    %370 = arith.truncf %369 : vector<128x8xf32> to vector<128x8xbf16>
    %c8_346 = arith.constant 8 : index
    %c0_347 = arith.constant 0 : index
    %c0_348 = arith.constant 0 : index
    %371 = vector.load %arg2[%c8_346, %c0_347, %c0_348] : memref<9x8x8xbf16, #tpu.memory_space<vmem>>, vector<1x8x8xbf16>
    %372 = vector.shape_cast %371 : vector<1x8x8xbf16> to vector<8x8xbf16>
    %cst_349 = arith.constant dense<0.000000e+00> : vector<128x8xf32>
    %373 = tpu.matmul %370, %372, %cst_349 {dimension_numbers = #tpu.dot_dimension_numbers<[1], [0], [0], [1], [0, 0, 1, 1], [], []>} : vector<128x8xbf16>, vector<8x8xbf16>, vector<128x8xf32> -> vector<128x8xf32>
    %374 = arith.addf %367, %373 : vector<128x8xf32>
    %375 = vector.broadcast %312 : vector<1x8xf32> to vector<128x8xf32>
    %376 = arith.addf %374, %375 : vector<128x8xf32>
    %cst_350 = arith.constant 0.000000e+00 : f32
    %377 = vector.broadcast %cst_350 : f32 to vector<128x8xf32>
    %378 = arith.maximumf %376, %377 : vector<128x8xf32>
    %c0_351 = arith.constant 0 : index
    %c0_352 = arith.constant 0 : index
    %379 = vector.load %arg7[%c0_351, %c0_352] : memref<222x8xf32, #tpu.memory_space<vmem>>, vector<128x8xf32>
    tpu.vector_store %arg7[%c0_351, %c0_352], %378 {strides = array<i32>} : memref<222x8xf32, #tpu.memory_space<vmem>>, vector<128x8xf32>,
    %c1_353 = arith.constant 1 : index
    %c128_354 = arith.constant 128 : index
    %c0_355 = arith.constant 0 : index
    %380 = vector.load %arg1[%c1_353, %c128_354, %c0_355] : memref<2x256x8xf32, #tpu.memory_space<vmem>>, vector<1x94x8xf32>
    %381 = vector.shape_cast %380 : vector<1x94x8xf32> to vector<94x8xf32>
    %382 = arith.truncf %381 : vector<94x8xf32> to vector<94x8xbf16>
    %c0_356 = arith.constant 0 : index
    %c0_357 = arith.constant 0 : index
    %c0_358 = arith.constant 0 : index
    %383 = vector.load %arg2[%c0_356, %c0_357, %c0_358] : memref<9x8x8xbf16, #tpu.memory_space<vmem>>, vector<1x8x8xbf16>
    %384 = vector.shape_cast %383 : vector<1x8x8xbf16> to vector<8x8xbf16>
    %cst_359 = arith.constant dense<0.000000e+00> : vector<94x8xf32>
    %385 = tpu.matmul %382, %384, %cst_359 {dimension_numbers = #tpu.dot_dimension_numbers<[1], [0], [0], [1], [0, 0, 1, 1], [], []>} : vector<94x8xbf16>, vector<8x8xbf16>, vector<94x8xf32> -> vector<94x8xf32>
    %c1_360 = arith.constant 1 : index
    %c129_361 = arith.constant 129 : index
    %c0_362 = arith.constant 0 : index
    %386 = vector.load %arg1[%c1_360, %c129_361, %c0_362] : memref<2x256x8xf32, #tpu.memory_space<vmem>>, vector<1x94x8xf32>
    %387 = vector.shape_cast %386 : vector<1x94x8xf32> to vector<94x8xf32>
    %388 = arith.truncf %387 : vector<94x8xf32> to vector<94x8xbf16>
    %c1_363 = arith.constant 1 : index
    %c0_364 = arith.constant 0 : index
    %c0_365 = arith.constant 0 : index
    %389 = vector.load %arg2[%c1_363, %c0_364, %c0_365] : memref<9x8x8xbf16, #tpu.memory_space<vmem>>, vector<1x8x8xbf16>
    %390 = vector.shape_cast %389 : vector<1x8x8xbf16> to vector<8x8xbf16>
    %cst_366 = arith.constant dense<0.000000e+00> : vector<94x8xf32>
    %391 = tpu.matmul %388, %390, %cst_366 {dimension_numbers = #tpu.dot_dimension_numbers<[1], [0], [0], [1], [0, 0, 1, 1], [], []>} : vector<94x8xbf16>, vector<8x8xbf16>, vector<94x8xf32> -> vector<94x8xf32>
    %392 = arith.addf %385, %391 : vector<94x8xf32>
    %c1_367 = arith.constant 1 : index
    %c130_368 = arith.constant 130 : index
    %c0_369 = arith.constant 0 : index
    %393 = vector.load %arg1[%c1_367, %c130_368, %c0_369] : memref<2x256x8xf32, #tpu.memory_space<vmem>>, vector<1x94x8xf32>
    %394 = vector.shape_cast %393 : vector<1x94x8xf32> to vector<94x8xf32>
    %395 = arith.truncf %394 : vector<94x8xf32> to vector<94x8xbf16>
    %c2_370 = arith.constant 2 : index
    %c0_371 = arith.constant 0 : index
    %c0_372 = arith.constant 0 : index
    %396 = vector.load %arg2[%c2_370, %c0_371, %c0_372] : memref<9x8x8xbf16, #tpu.memory_space<vmem>>, vector<1x8x8xbf16>
    %397 = vector.shape_cast %396 : vector<1x8x8xbf16> to vector<8x8xbf16>
    %cst_373 = arith.constant dense<0.000000e+00> : vector<94x8xf32>
    %398 = tpu.matmul %395, %397, %cst_373 {dimension_numbers = #tpu.dot_dimension_numbers<[1], [0], [0], [1], [0, 0, 1, 1], [], []>} : vector<94x8xbf16>, vector<8x8xbf16>, vector<94x8xf32> -> vector<94x8xf32>
    %399 = arith.addf %392, %398 : vector<94x8xf32>
    %c1_374 = arith.constant 1 : index
    %c144_375 = arith.constant 144 : index
    %c0_376 = arith.constant 0 : index
    %400 = vector.load %arg1[%c1_374, %c144_375, %c0_376] : memref<2x256x8xf32, #tpu.memory_space<vmem>>, vector<1x94x8xf32>
    %401 = vector.shape_cast %400 : vector<1x94x8xf32> to vector<94x8xf32>
    %402 = arith.truncf %401 : vector<94x8xf32> to vector<94x8xbf16>
    %c3_377 = arith.constant 3 : index
    %c0_378 = arith.constant 0 : index
    %c0_379 = arith.constant 0 : index
    %403 = vector.load %arg2[%c3_377, %c0_378, %c0_379] : memref<9x8x8xbf16, #tpu.memory_space<vmem>>, vector<1x8x8xbf16>
    %404 = vector.shape_cast %403 : vector<1x8x8xbf16> to vector<8x8xbf16>
    %cst_380 = arith.constant dense<0.000000e+00> : vector<94x8xf32>
    %405 = tpu.matmul %402, %404, %cst_380 {dimension_numbers = #tpu.dot_dimension_numbers<[1], [0], [0], [1], [0, 0, 1, 1], [], []>} : vector<94x8xbf16>, vector<8x8xbf16>, vector<94x8xf32> -> vector<94x8xf32>
    %406 = arith.addf %399, %405 : vector<94x8xf32>
    %c1_381 = arith.constant 1 : index
    %c145_382 = arith.constant 145 : index
    %c0_383 = arith.constant 0 : index
    %407 = vector.load %arg1[%c1_381, %c145_382, %c0_383] : memref<2x256x8xf32, #tpu.memory_space<vmem>>, vector<1x94x8xf32>
    %408 = vector.shape_cast %407 : vector<1x94x8xf32> to vector<94x8xf32>
    %409 = arith.truncf %408 : vector<94x8xf32> to vector<94x8xbf16>
    %c4_384 = arith.constant 4 : index
    %c0_385 = arith.constant 0 : index
    %c0_386 = arith.constant 0 : index
    %410 = vector.load %arg2[%c4_384, %c0_385, %c0_386] : memref<9x8x8xbf16, #tpu.memory_space<vmem>>, vector<1x8x8xbf16>
    %411 = vector.shape_cast %410 : vector<1x8x8xbf16> to vector<8x8xbf16>
    %cst_387 = arith.constant dense<0.000000e+00> : vector<94x8xf32>
    %412 = tpu.matmul %409, %411, %cst_387 {dimension_numbers = #tpu.dot_dimension_numbers<[1], [0], [0], [1], [0, 0, 1, 1], [], []>} : vector<94x8xbf16>, vector<8x8xbf16>, vector<94x8xf32> -> vector<94x8xf32>
    %413 = arith.addf %406, %412 : vector<94x8xf32>
    %c1_388 = arith.constant 1 : index
    %c146_389 = arith.constant 146 : index
    %c0_390 = arith.constant 0 : index
    %414 = vector.load %arg1[%c1_388, %c146_389, %c0_390] : memref<2x256x8xf32, #tpu.memory_space<vmem>>, vector<1x94x8xf32>
    %415 = vector.shape_cast %414 : vector<1x94x8xf32> to vector<94x8xf32>
    %416 = arith.truncf %415 : vector<94x8xf32> to vector<94x8xbf16>
    %c5_391 = arith.constant 5 : index
    %c0_392 = arith.constant 0 : index
    %c0_393 = arith.constant 0 : index
    %417 = vector.load %arg2[%c5_391, %c0_392, %c0_393] : memref<9x8x8xbf16, #tpu.memory_space<vmem>>, vector<1x8x8xbf16>
    %418 = vector.shape_cast %417 : vector<1x8x8xbf16> to vector<8x8xbf16>
    %cst_394 = arith.constant dense<0.000000e+00> : vector<94x8xf32>
    %419 = tpu.matmul %416, %418, %cst_394 {dimension_numbers = #tpu.dot_dimension_numbers<[1], [0], [0], [1], [0, 0, 1, 1], [], []>} : vector<94x8xbf16>, vector<8x8xbf16>, vector<94x8xf32> -> vector<94x8xf32>
    %420 = arith.addf %413, %419 : vector<94x8xf32>
    %c1_395 = arith.constant 1 : index
    %c160_396 = arith.constant 160 : index
    %c0_397 = arith.constant 0 : index
    %421 = vector.load %arg1[%c1_395, %c160_396, %c0_397] : memref<2x256x8xf32, #tpu.memory_space<vmem>>, vector<1x94x8xf32>
    %422 = vector.shape_cast %421 : vector<1x94x8xf32> to vector<94x8xf32>
    %423 = arith.truncf %422 : vector<94x8xf32> to vector<94x8xbf16>
    %c6_398 = arith.constant 6 : index
    %c0_399 = arith.constant 0 : index
    %c0_400 = arith.constant 0 : index
    %424 = vector.load %arg2[%c6_398, %c0_399, %c0_400] : memref<9x8x8xbf16, #tpu.memory_space<vmem>>, vector<1x8x8xbf16>
    %425 = vector.shape_cast %424 : vector<1x8x8xbf16> to vector<8x8xbf16>
    %cst_401 = arith.constant dense<0.000000e+00> : vector<94x8xf32>
    %426 = tpu.matmul %423, %425, %cst_401 {dimension_numbers = #tpu.dot_dimension_numbers<[1], [0], [0], [1], [0, 0, 1, 1], [], []>} : vector<94x8xbf16>, vector<8x8xbf16>, vector<94x8xf32> -> vector<94x8xf32>
    %427 = arith.addf %420, %426 : vector<94x8xf32>
    %c1_402 = arith.constant 1 : index
    %c161_403 = arith.constant 161 : index
    %c0_404 = arith.constant 0 : index
    %428 = vector.load %arg1[%c1_402, %c161_403, %c0_404] : memref<2x256x8xf32, #tpu.memory_space<vmem>>, vector<1x94x8xf32>
    %429 = vector.shape_cast %428 : vector<1x94x8xf32> to vector<94x8xf32>
    %430 = arith.truncf %429 : vector<94x8xf32> to vector<94x8xbf16>
    %c7_405 = arith.constant 7 : index
    %c0_406 = arith.constant 0 : index
    %c0_407 = arith.constant 0 : index
    %431 = vector.load %arg2[%c7_405, %c0_406, %c0_407] : memref<9x8x8xbf16, #tpu.memory_space<vmem>>, vector<1x8x8xbf16>
    %432 = vector.shape_cast %431 : vector<1x8x8xbf16> to vector<8x8xbf16>
    %cst_408 = arith.constant dense<0.000000e+00> : vector<94x8xf32>
    %433 = tpu.matmul %430, %432, %cst_408 {dimension_numbers = #tpu.dot_dimension_numbers<[1], [0], [0], [1], [0, 0, 1, 1], [], []>} : vector<94x8xbf16>, vector<8x8xbf16>, vector<94x8xf32> -> vector<94x8xf32>
    %434 = arith.addf %427, %433 : vector<94x8xf32>
    %c1_409 = arith.constant 1 : index
    %c162_410 = arith.constant 162 : index
    %c0_411 = arith.constant 0 : index
    %435 = vector.load %arg1[%c1_409, %c162_410, %c0_411] : memref<2x256x8xf32, #tpu.memory_space<vmem>>, vector<1x94x8xf32>
    %436 = vector.shape_cast %435 : vector<1x94x8xf32> to vector<94x8xf32>
    %437 = arith.truncf %436 : vector<94x8xf32> to vector<94x8xbf16>
    %c8_412 = arith.constant 8 : index
    %c0_413 = arith.constant 0 : index
    %c0_414 = arith.constant 0 : index
    %438 = vector.load %arg2[%c8_412, %c0_413, %c0_414] : memref<9x8x8xbf16, #tpu.memory_space<vmem>>, vector<1x8x8xbf16>
    %439 = vector.shape_cast %438 : vector<1x8x8xbf16> to vector<8x8xbf16>
    %cst_415 = arith.constant dense<0.000000e+00> : vector<94x8xf32>
    %440 = tpu.matmul %437, %439, %cst_415 {dimension_numbers = #tpu.dot_dimension_numbers<[1], [0], [0], [1], [0, 0, 1, 1], [], []>} : vector<94x8xbf16>, vector<8x8xbf16>, vector<94x8xf32> -> vector<94x8xf32>
    %441 = arith.addf %434, %440 : vector<94x8xf32>
    %442 = vector.broadcast %312 : vector<1x8xf32> to vector<94x8xf32>
    %443 = arith.addf %441, %442 : vector<94x8xf32>
    %cst_416 = arith.constant 0.000000e+00 : f32
    %444 = vector.broadcast %cst_416 : f32 to vector<94x8xf32>
    %445 = arith.maximumf %443, %444 : vector<94x8xf32>
    %c128_417 = arith.constant 128 : index
    %c0_418 = arith.constant 0 : index
    %446 = vector.load %arg7[%c128_417, %c0_418] : memref<222x8xf32, #tpu.memory_space<vmem>>, vector<94x8xf32>
    tpu.vector_store %arg7[%c128_417, %c0_418], %445 {strides = array<i32>} : memref<222x8xf32, #tpu.memory_space<vmem>>, vector<94x8xf32>,
    %c0_419 = arith.constant 0 : index
    %c0_420 = arith.constant 0 : index
    %447 = vector.load %arg5[%c0_419, %c0_420] : memref<1x8xf32, #tpu.memory_space<vmem>>, vector<1x8xf32>
    %c0_421 = arith.constant 0 : index
    %c0_422 = arith.constant 0 : index
    %448 = vector.load %arg7[%c0_421, %c0_422] : memref<222x8xf32, #tpu.memory_space<vmem>>, vector<128x8xf32>
    %449 = arith.truncf %448 : vector<128x8xf32> to vector<128x8xbf16>
    %c0_423 = arith.constant 0 : index
    %c0_424 = arith.constant 0 : index
    %c0_425 = arith.constant 0 : index
    %450 = vector.load %arg4[%c0_423, %c0_424, %c0_425] : memref<9x8x8xbf16, #tpu.memory_space<vmem>>, vector<1x8x8xbf16>
    %451 = vector.shape_cast %450 : vector<1x8x8xbf16> to vector<8x8xbf16>
    %cst_426 = arith.constant dense<0.000000e+00> : vector<128x8xf32>
    %452 = tpu.matmul %449, %451, %cst_426 {dimension_numbers = #tpu.dot_dimension_numbers<[1], [0], [0], [1], [0, 0, 1, 1], [], []>} : vector<128x8xbf16>, vector<8x8xbf16>, vector<128x8xf32> -> vector<128x8xf32>
    %c1_427 = arith.constant 1 : index
    %c0_428 = arith.constant 0 : index
    %453 = vector.load %arg7[%c1_427, %c0_428] : memref<222x8xf32, #tpu.memory_space<vmem>>, vector<128x8xf32>
    %454 = arith.truncf %453 : vector<128x8xf32> to vector<128x8xbf16>
    %c1_429 = arith.constant 1 : index
    %c0_430 = arith.constant 0 : index
    %c0_431 = arith.constant 0 : index
    %455 = vector.load %arg4[%c1_429, %c0_430, %c0_431] : memref<9x8x8xbf16, #tpu.memory_space<vmem>>, vector<1x8x8xbf16>
    %456 = vector.shape_cast %455 : vector<1x8x8xbf16> to vector<8x8xbf16>
    %cst_432 = arith.constant dense<0.000000e+00> : vector<128x8xf32>
    %457 = tpu.matmul %454, %456, %cst_432 {dimension_numbers = #tpu.dot_dimension_numbers<[1], [0], [0], [1], [0, 0, 1, 1], [], []>} : vector<128x8xbf16>, vector<8x8xbf16>, vector<128x8xf32> -> vector<128x8xf32>
    %458 = arith.addf %452, %457 : vector<128x8xf32>
    %c2_433 = arith.constant 2 : index
    %c0_434 = arith.constant 0 : index
    %459 = vector.load %arg7[%c2_433, %c0_434] : memref<222x8xf32, #tpu.memory_space<vmem>>, vector<128x8xf32>
    %460 = arith.truncf %459 : vector<128x8xf32> to vector<128x8xbf16>
    %c2_435 = arith.constant 2 : index
    %c0_436 = arith.constant 0 : index
    %c0_437 = arith.constant 0 : index
    %461 = vector.load %arg4[%c2_435, %c0_436, %c0_437] : memref<9x8x8xbf16, #tpu.memory_space<vmem>>, vector<1x8x8xbf16>
    %462 = vector.shape_cast %461 : vector<1x8x8xbf16> to vector<8x8xbf16>
    %cst_438 = arith.constant dense<0.000000e+00> : vector<128x8xf32>
    %463 = tpu.matmul %460, %462, %cst_438 {dimension_numbers = #tpu.dot_dimension_numbers<[1], [0], [0], [1], [0, 0, 1, 1], [], []>} : vector<128x8xbf16>, vector<8x8xbf16>, vector<128x8xf32> -> vector<128x8xf32>
    %464 = arith.addf %458, %463 : vector<128x8xf32>
    %c16_439 = arith.constant 16 : index
    %c0_440 = arith.constant 0 : index
    %465 = vector.load %arg7[%c16_439, %c0_440] : memref<222x8xf32, #tpu.memory_space<vmem>>, vector<128x8xf32>
    %466 = arith.truncf %465 : vector<128x8xf32> to vector<128x8xbf16>
    %c3_441 = arith.constant 3 : index
    %c0_442 = arith.constant 0 : index
    %c0_443 = arith.constant 0 : index
    %467 = vector.load %arg4[%c3_441, %c0_442, %c0_443] : memref<9x8x8xbf16, #tpu.memory_space<vmem>>, vector<1x8x8xbf16>
    %468 = vector.shape_cast %467 : vector<1x8x8xbf16> to vector<8x8xbf16>
    %cst_444 = arith.constant dense<0.000000e+00> : vector<128x8xf32>
    %469 = tpu.matmul %466, %468, %cst_444 {dimension_numbers = #tpu.dot_dimension_numbers<[1], [0], [0], [1], [0, 0, 1, 1], [], []>} : vector<128x8xbf16>, vector<8x8xbf16>, vector<128x8xf32> -> vector<128x8xf32>
    %470 = arith.addf %464, %469 : vector<128x8xf32>
    %c17_445 = arith.constant 17 : index
    %c0_446 = arith.constant 0 : index
    %471 = vector.load %arg7[%c17_445, %c0_446] : memref<222x8xf32, #tpu.memory_space<vmem>>, vector<128x8xf32>
    %472 = arith.truncf %471 : vector<128x8xf32> to vector<128x8xbf16>
    %c4_447 = arith.constant 4 : index
    %c0_448 = arith.constant 0 : index
    %c0_449 = arith.constant 0 : index
    %473 = vector.load %arg4[%c4_447, %c0_448, %c0_449] : memref<9x8x8xbf16, #tpu.memory_space<vmem>>, vector<1x8x8xbf16>
    %474 = vector.shape_cast %473 : vector<1x8x8xbf16> to vector<8x8xbf16>
    %cst_450 = arith.constant dense<0.000000e+00> : vector<128x8xf32>
    %475 = tpu.matmul %472, %474, %cst_450 {dimension_numbers = #tpu.dot_dimension_numbers<[1], [0], [0], [1], [0, 0, 1, 1], [], []>} : vector<128x8xbf16>, vector<8x8xbf16>, vector<128x8xf32> -> vector<128x8xf32>
    %476 = arith.addf %470, %475 : vector<128x8xf32>
    %c18_451 = arith.constant 18 : index
    %c0_452 = arith.constant 0 : index
    %477 = vector.load %arg7[%c18_451, %c0_452] : memref<222x8xf32, #tpu.memory_space<vmem>>, vector<128x8xf32>
    %478 = arith.truncf %477 : vector<128x8xf32> to vector<128x8xbf16>
    %c5_453 = arith.constant 5 : index
    %c0_454 = arith.constant 0 : index
    %c0_455 = arith.constant 0 : index
    %479 = vector.load %arg4[%c5_453, %c0_454, %c0_455] : memref<9x8x8xbf16, #tpu.memory_space<vmem>>, vector<1x8x8xbf16>
    %480 = vector.shape_cast %479 : vector<1x8x8xbf16> to vector<8x8xbf16>
    %cst_456 = arith.constant dense<0.000000e+00> : vector<128x8xf32>
    %481 = tpu.matmul %478, %480, %cst_456 {dimension_numbers = #tpu.dot_dimension_numbers<[1], [0], [0], [1], [0, 0, 1, 1], [], []>} : vector<128x8xbf16>, vector<8x8xbf16>, vector<128x8xf32> -> vector<128x8xf32>
    %482 = arith.addf %476, %481 : vector<128x8xf32>
    %c32_457 = arith.constant 32 : index
    %c0_458 = arith.constant 0 : index
    %483 = vector.load %arg7[%c32_457, %c0_458] : memref<222x8xf32, #tpu.memory_space<vmem>>, vector<128x8xf32>
    %484 = arith.truncf %483 : vector<128x8xf32> to vector<128x8xbf16>
    %c6_459 = arith.constant 6 : index
    %c0_460 = arith.constant 0 : index
    %c0_461 = arith.constant 0 : index
    %485 = vector.load %arg4[%c6_459, %c0_460, %c0_461] : memref<9x8x8xbf16, #tpu.memory_space<vmem>>, vector<1x8x8xbf16>
    %486 = vector.shape_cast %485 : vector<1x8x8xbf16> to vector<8x8xbf16>
    %cst_462 = arith.constant dense<0.000000e+00> : vector<128x8xf32>
    %487 = tpu.matmul %484, %486, %cst_462 {dimension_numbers = #tpu.dot_dimension_numbers<[1], [0], [0], [1], [0, 0, 1, 1], [], []>} : vector<128x8xbf16>, vector<8x8xbf16>, vector<128x8xf32> -> vector<128x8xf32>
    %488 = arith.addf %482, %487 : vector<128x8xf32>
    %c33_463 = arith.constant 33 : index
    %c0_464 = arith.constant 0 : index
    %489 = vector.load %arg7[%c33_463, %c0_464] : memref<222x8xf32, #tpu.memory_space<vmem>>, vector<128x8xf32>
    %490 = arith.truncf %489 : vector<128x8xf32> to vector<128x8xbf16>
    %c7_465 = arith.constant 7 : index
    %c0_466 = arith.constant 0 : index
    %c0_467 = arith.constant 0 : index
    %491 = vector.load %arg4[%c7_465, %c0_466, %c0_467] : memref<9x8x8xbf16, #tpu.memory_space<vmem>>, vector<1x8x8xbf16>
    %492 = vector.shape_cast %491 : vector<1x8x8xbf16> to vector<8x8xbf16>
    %cst_468 = arith.constant dense<0.000000e+00> : vector<128x8xf32>
    %493 = tpu.matmul %490, %492, %cst_468 {dimension_numbers = #tpu.dot_dimension_numbers<[1], [0], [0], [1], [0, 0, 1, 1], [], []>} : vector<128x8xbf16>, vector<8x8xbf16>, vector<128x8xf32> -> vector<128x8xf32>
    %494 = arith.addf %488, %493 : vector<128x8xf32>
    %c34_469 = arith.constant 34 : index
    %c0_470 = arith.constant 0 : index
    %495 = vector.load %arg7[%c34_469, %c0_470] : memref<222x8xf32, #tpu.memory_space<vmem>>, vector<128x8xf32>
    %496 = arith.truncf %495 : vector<128x8xf32> to vector<128x8xbf16>
    %c8_471 = arith.constant 8 : index
    %c0_472 = arith.constant 0 : index
    %c0_473 = arith.constant 0 : index
    %497 = vector.load %arg4[%c8_471, %c0_472, %c0_473] : memref<9x8x8xbf16, #tpu.memory_space<vmem>>, vector<1x8x8xbf16>
    %498 = vector.shape_cast %497 : vector<1x8x8xbf16> to vector<8x8xbf16>
    %cst_474 = arith.constant dense<0.000000e+00> : vector<128x8xf32>
    %499 = tpu.matmul %496, %498, %cst_474 {dimension_numbers = #tpu.dot_dimension_numbers<[1], [0], [0], [1], [0, 0, 1, 1], [], []>} : vector<128x8xbf16>, vector<8x8xbf16>, vector<128x8xf32> -> vector<128x8xf32>
    %500 = arith.addf %494, %499 : vector<128x8xf32>
    %501 = vector.broadcast %447 : vector<1x8xf32> to vector<128x8xf32>
    %502 = arith.addf %500, %501 : vector<128x8xf32>
    %cst_475 = arith.constant 0.000000e+00 : f32
    %503 = vector.broadcast %cst_475 : f32 to vector<128x8xf32>
    %504 = arith.maximumf %502, %503 : vector<128x8xf32>
    %c0_476 = arith.constant 0 : index
    %c0_477 = arith.constant 0 : index
    %505 = vector.load %arg8[%c0_476, %c0_477] : memref<188x8xf32, #tpu.memory_space<vmem>>, vector<128x8xf32>
    tpu.vector_store %arg8[%c0_476, %c0_477], %504 {strides = array<i32>} : memref<188x8xf32, #tpu.memory_space<vmem>>, vector<128x8xf32>,
    %c128_478 = arith.constant 128 : index
    %c0_479 = arith.constant 0 : index
    %506 = vector.load %arg7[%c128_478, %c0_479] : memref<222x8xf32, #tpu.memory_space<vmem>>, vector<60x8xf32>
    %507 = arith.truncf %506 : vector<60x8xf32> to vector<60x8xbf16>
    %c0_480 = arith.constant 0 : index
    %c0_481 = arith.constant 0 : index
    %c0_482 = arith.constant 0 : index
    %508 = vector.load %arg4[%c0_480, %c0_481, %c0_482] : memref<9x8x8xbf16, #tpu.memory_space<vmem>>, vector<1x8x8xbf16>
    %509 = vector.shape_cast %508 : vector<1x8x8xbf16> to vector<8x8xbf16>
    %cst_483 = arith.constant dense<0.000000e+00> : vector<60x8xf32>
    %510 = tpu.matmul %507, %509, %cst_483 {dimension_numbers = #tpu.dot_dimension_numbers<[1], [0], [0], [1], [0, 0, 1, 1], [], []>} : vector<60x8xbf16>, vector<8x8xbf16>, vector<60x8xf32> -> vector<60x8xf32>
    %c129_484 = arith.constant 129 : index
    %c0_485 = arith.constant 0 : index
    %511 = vector.load %arg7[%c129_484, %c0_485] : memref<222x8xf32, #tpu.memory_space<vmem>>, vector<60x8xf32>
    %512 = arith.truncf %511 : vector<60x8xf32> to vector<60x8xbf16>
    %c1_486 = arith.constant 1 : index
    %c0_487 = arith.constant 0 : index
    %c0_488 = arith.constant 0 : index
    %513 = vector.load %arg4[%c1_486, %c0_487, %c0_488] : memref<9x8x8xbf16, #tpu.memory_space<vmem>>, vector<1x8x8xbf16>
    %514 = vector.shape_cast %513 : vector<1x8x8xbf16> to vector<8x8xbf16>
    %cst_489 = arith.constant dense<0.000000e+00> : vector<60x8xf32>
    %515 = tpu.matmul %512, %514, %cst_489 {dimension_numbers = #tpu.dot_dimension_numbers<[1], [0], [0], [1], [0, 0, 1, 1], [], []>} : vector<60x8xbf16>, vector<8x8xbf16>, vector<60x8xf32> -> vector<60x8xf32>
    %516 = arith.addf %510, %515 : vector<60x8xf32>
    %c130_490 = arith.constant 130 : index
    %c0_491 = arith.constant 0 : index
    %517 = vector.load %arg7[%c130_490, %c0_491] : memref<222x8xf32, #tpu.memory_space<vmem>>, vector<60x8xf32>
    %518 = arith.truncf %517 : vector<60x8xf32> to vector<60x8xbf16>
    %c2_492 = arith.constant 2 : index
    %c0_493 = arith.constant 0 : index
    %c0_494 = arith.constant 0 : index
    %519 = vector.load %arg4[%c2_492, %c0_493, %c0_494] : memref<9x8x8xbf16, #tpu.memory_space<vmem>>, vector<1x8x8xbf16>
    %520 = vector.shape_cast %519 : vector<1x8x8xbf16> to vector<8x8xbf16>
    %cst_495 = arith.constant dense<0.000000e+00> : vector<60x8xf32>
    %521 = tpu.matmul %518, %520, %cst_495 {dimension_numbers = #tpu.dot_dimension_numbers<[1], [0], [0], [1], [0, 0, 1, 1], [], []>} : vector<60x8xbf16>, vector<8x8xbf16>, vector<60x8xf32> -> vector<60x8xf32>
    %522 = arith.addf %516, %521 : vector<60x8xf32>
    %c144_496 = arith.constant 144 : index
    %c0_497 = arith.constant 0 : index
    %523 = vector.load %arg7[%c144_496, %c0_497] : memref<222x8xf32, #tpu.memory_space<vmem>>, vector<60x8xf32>
    %524 = arith.truncf %523 : vector<60x8xf32> to vector<60x8xbf16>
    %c3_498 = arith.constant 3 : index
    %c0_499 = arith.constant 0 : index
    %c0_500 = arith.constant 0 : index
    %525 = vector.load %arg4[%c3_498, %c0_499, %c0_500] : memref<9x8x8xbf16, #tpu.memory_space<vmem>>, vector<1x8x8xbf16>
    %526 = vector.shape_cast %525 : vector<1x8x8xbf16> to vector<8x8xbf16>
    %cst_501 = arith.constant dense<0.000000e+00> : vector<60x8xf32>
    %527 = tpu.matmul %524, %526, %cst_501 {dimension_numbers = #tpu.dot_dimension_numbers<[1], [0], [0], [1], [0, 0, 1, 1], [], []>} : vector<60x8xbf16>, vector<8x8xbf16>, vector<60x8xf32> -> vector<60x8xf32>
    %528 = arith.addf %522, %527 : vector<60x8xf32>
    %c145_502 = arith.constant 145 : index
    %c0_503 = arith.constant 0 : index
    %529 = vector.load %arg7[%c145_502, %c0_503] : memref<222x8xf32, #tpu.memory_space<vmem>>, vector<60x8xf32>
    %530 = arith.truncf %529 : vector<60x8xf32> to vector<60x8xbf16>
    %c4_504 = arith.constant 4 : index
    %c0_505 = arith.constant 0 : index
    %c0_506 = arith.constant 0 : index
    %531 = vector.load %arg4[%c4_504, %c0_505, %c0_506] : memref<9x8x8xbf16, #tpu.memory_space<vmem>>, vector<1x8x8xbf16>
    %532 = vector.shape_cast %531 : vector<1x8x8xbf16> to vector<8x8xbf16>
    %cst_507 = arith.constant dense<0.000000e+00> : vector<60x8xf32>
    %533 = tpu.matmul %530, %532, %cst_507 {dimension_numbers = #tpu.dot_dimension_numbers<[1], [0], [0], [1], [0, 0, 1, 1], [], []>} : vector<60x8xbf16>, vector<8x8xbf16>, vector<60x8xf32> -> vector<60x8xf32>
    %534 = arith.addf %528, %533 : vector<60x8xf32>
    %c146_508 = arith.constant 146 : index
    %c0_509 = arith.constant 0 : index
    %535 = vector.load %arg7[%c146_508, %c0_509] : memref<222x8xf32, #tpu.memory_space<vmem>>, vector<60x8xf32>
    %536 = arith.truncf %535 : vector<60x8xf32> to vector<60x8xbf16>
    %c5_510 = arith.constant 5 : index
    %c0_511 = arith.constant 0 : index
    %c0_512 = arith.constant 0 : index
    %537 = vector.load %arg4[%c5_510, %c0_511, %c0_512] : memref<9x8x8xbf16, #tpu.memory_space<vmem>>, vector<1x8x8xbf16>
    %538 = vector.shape_cast %537 : vector<1x8x8xbf16> to vector<8x8xbf16>
    %cst_513 = arith.constant dense<0.000000e+00> : vector<60x8xf32>
    %539 = tpu.matmul %536, %538, %cst_513 {dimension_numbers = #tpu.dot_dimension_numbers<[1], [0], [0], [1], [0, 0, 1, 1], [], []>} : vector<60x8xbf16>, vector<8x8xbf16>, vector<60x8xf32> -> vector<60x8xf32>
    %540 = arith.addf %534, %539 : vector<60x8xf32>
    %c160_514 = arith.constant 160 : index
    %c0_515 = arith.constant 0 : index
    %541 = vector.load %arg7[%c160_514, %c0_515] : memref<222x8xf32, #tpu.memory_space<vmem>>, vector<60x8xf32>
    %542 = arith.truncf %541 : vector<60x8xf32> to vector<60x8xbf16>
    %c6_516 = arith.constant 6 : index
    %c0_517 = arith.constant 0 : index
    %c0_518 = arith.constant 0 : index
    %543 = vector.load %arg4[%c6_516, %c0_517, %c0_518] : memref<9x8x8xbf16, #tpu.memory_space<vmem>>, vector<1x8x8xbf16>
    %544 = vector.shape_cast %543 : vector<1x8x8xbf16> to vector<8x8xbf16>
    %cst_519 = arith.constant dense<0.000000e+00> : vector<60x8xf32>
    %545 = tpu.matmul %542, %544, %cst_519 {dimension_numbers = #tpu.dot_dimension_numbers<[1], [0], [0], [1], [0, 0, 1, 1], [], []>} : vector<60x8xbf16>, vector<8x8xbf16>, vector<60x8xf32> -> vector<60x8xf32>
    %546 = arith.addf %540, %545 : vector<60x8xf32>
    %c161_520 = arith.constant 161 : index
    %c0_521 = arith.constant 0 : index
    %547 = vector.load %arg7[%c161_520, %c0_521] : memref<222x8xf32, #tpu.memory_space<vmem>>, vector<60x8xf32>
    %548 = arith.truncf %547 : vector<60x8xf32> to vector<60x8xbf16>
    %c7_522 = arith.constant 7 : index
    %c0_523 = arith.constant 0 : index
    %c0_524 = arith.constant 0 : index
    %549 = vector.load %arg4[%c7_522, %c0_523, %c0_524] : memref<9x8x8xbf16, #tpu.memory_space<vmem>>, vector<1x8x8xbf16>
    %550 = vector.shape_cast %549 : vector<1x8x8xbf16> to vector<8x8xbf16>
    %cst_525 = arith.constant dense<0.000000e+00> : vector<60x8xf32>
    %551 = tpu.matmul %548, %550, %cst_525 {dimension_numbers = #tpu.dot_dimension_numbers<[1], [0], [0], [1], [0, 0, 1, 1], [], []>} : vector<60x8xbf16>, vector<8x8xbf16>, vector<60x8xf32> -> vector<60x8xf32>
    %552 = arith.addf %546, %551 : vector<60x8xf32>
    %c162_526 = arith.constant 162 : index
    %c0_527 = arith.constant 0 : index
    %553 = vector.load %arg7[%c162_526, %c0_527] : memref<222x8xf32, #tpu.memory_space<vmem>>, vector<60x8xf32>
    %554 = arith.truncf %553 : vector<60x8xf32> to vector<60x8xbf16>
    %c8_528 = arith.constant 8 : index
    %c0_529 = arith.constant 0 : index
    %c0_530 = arith.constant 0 : index
    %555 = vector.load %arg4[%c8_528, %c0_529, %c0_530] : memref<9x8x8xbf16, #tpu.memory_space<vmem>>, vector<1x8x8xbf16>
    %556 = vector.shape_cast %555 : vector<1x8x8xbf16> to vector<8x8xbf16>
    %cst_531 = arith.constant dense<0.000000e+00> : vector<60x8xf32>
    %557 = tpu.matmul %554, %556, %cst_531 {dimension_numbers = #tpu.dot_dimension_numbers<[1], [0], [0], [1], [0, 0, 1, 1], [], []>} : vector<60x8xbf16>, vector<8x8xbf16>, vector<60x8xf32> -> vector<60x8xf32>
    %558 = arith.addf %552, %557 : vector<60x8xf32>
    %559 = vector.broadcast %447 : vector<1x8xf32> to vector<60x8xf32>
    %560 = arith.addf %558, %559 : vector<60x8xf32>
    %cst_532 = arith.constant 0.000000e+00 : f32
    %561 = vector.broadcast %cst_532 : f32 to vector<60x8xf32>
    %562 = arith.maximumf %560, %561 : vector<60x8xf32>
    %c128_533 = arith.constant 128 : index
    %c0_534 = arith.constant 0 : index
    %563 = vector.load %arg8[%c128_533, %c0_534] : memref<188x8xf32, #tpu.memory_space<vmem>>, vector<60x8xf32>
    tpu.vector_store %arg8[%c128_533, %c0_534], %562 {strides = array<i32>} : memref<188x8xf32, #tpu.memory_space<vmem>>, vector<60x8xf32>,
    %c0_535 = arith.constant 0 : index
    %c0_536 = arith.constant 0 : index
    %564 = tpu.strided_load %arg8[%c0_535, %c0_536] {strides = array<i32: 2, 1>} : memref<188x8xf32, #tpu.memory_space<vmem>>, vector<6x8xf32>
    %c1_537 = arith.constant 1 : index
    %c0_538 = arith.constant 0 : index
    %565 = tpu.strided_load %arg8[%c1_537, %c0_538] {strides = array<i32: 2, 1>} : memref<188x8xf32, #tpu.memory_space<vmem>>, vector<6x8xf32>
    %c16_539 = arith.constant 16 : index
    %c0_540 = arith.constant 0 : index
    %566 = tpu.strided_load %arg8[%c16_539, %c0_540] {strides = array<i32: 2, 1>} : memref<188x8xf32, #tpu.memory_space<vmem>>, vector<6x8xf32>
    %c17_541 = arith.constant 17 : index
    %c0_542 = arith.constant 0 : index
    %567 = tpu.strided_load %arg8[%c17_541, %c0_542] {strides = array<i32: 2, 1>} : memref<188x8xf32, #tpu.memory_space<vmem>>, vector<6x8xf32>
    %568 = arith.maximumf %564, %565 : vector<6x8xf32>
    %569 = arith.maximumf %566, %567 : vector<6x8xf32>
    %570 = arith.maximumf %568, %569 : vector<6x8xf32>
    %c1_543 = arith.constant 1 : index
    %c0_544 = arith.constant 0 : index
    %c0_545 = arith.constant 0 : index
    %c0_546 = arith.constant 0 : index
    %571 = vector.load %arg6[%c1_543, %c0_544, %c0_545, %c0_546] : memref<2x6x6x8xf32, #tpu.memory_space<vmem>>, vector<1x1x6x8xf32>
    %572 = vector.shape_cast %571 : vector<1x1x6x8xf32> to vector<6x8xf32>
    %573 = vector.shape_cast %570 : vector<6x8xf32> to vector<1x1x6x8xf32>
    tpu.vector_store %arg6[%c1_543, %c0_544, %c0_545, %c0_546], %573 {strides = array<i32>} : memref<2x6x6x8xf32, #tpu.memory_space<vmem>>, vector<1x1x6x8xf32>,
    %c32_547 = arith.constant 32 : index
    %c0_548 = arith.constant 0 : index
    %574 = tpu.strided_load %arg8[%c32_547, %c0_548] {strides = array<i32: 2, 1>} : memref<188x8xf32, #tpu.memory_space<vmem>>, vector<6x8xf32>
    %c33_549 = arith.constant 33 : index
    %c0_550 = arith.constant 0 : index
    %575 = tpu.strided_load %arg8[%c33_549, %c0_550] {strides = array<i32: 2, 1>} : memref<188x8xf32, #tpu.memory_space<vmem>>, vector<6x8xf32>
    %c48_551 = arith.constant 48 : index
    %c0_552 = arith.constant 0 : index
    %576 = tpu.strided_load %arg8[%c48_551, %c0_552] {strides = array<i32: 2, 1>} : memref<188x8xf32, #tpu.memory_space<vmem>>, vector<6x8xf32>
    %c49_553 = arith.constant 49 : index
    %c0_554 = arith.constant 0 : index
    %577 = tpu.strided_load %arg8[%c49_553, %c0_554] {strides = array<i32: 2, 1>} : memref<188x8xf32, #tpu.memory_space<vmem>>, vector<6x8xf32>
    %578 = arith.maximumf %574, %575 : vector<6x8xf32>
    %579 = arith.maximumf %576, %577 : vector<6x8xf32>
    %580 = arith.maximumf %578, %579 : vector<6x8xf32>
    %c1_555 = arith.constant 1 : index
    %c1_556 = arith.constant 1 : index
    %c0_557 = arith.constant 0 : index
    %c0_558 = arith.constant 0 : index
    %581 = vector.load %arg6[%c1_555, %c1_556, %c0_557, %c0_558] : memref<2x6x6x8xf32, #tpu.memory_space<vmem>>, vector<1x1x6x8xf32>
    %582 = vector.shape_cast %581 : vector<1x1x6x8xf32> to vector<6x8xf32>
    %583 = vector.shape_cast %580 : vector<6x8xf32> to vector<1x1x6x8xf32>
    tpu.vector_store %arg6[%c1_555, %c1_556, %c0_557, %c0_558], %583 {strides = array<i32>} : memref<2x6x6x8xf32, #tpu.memory_space<vmem>>, vector<1x1x6x8xf32>,
    %c64_559 = arith.constant 64 : index
    %c0_560 = arith.constant 0 : index
    %584 = tpu.strided_load %arg8[%c64_559, %c0_560] {strides = array<i32: 2, 1>} : memref<188x8xf32, #tpu.memory_space<vmem>>, vector<6x8xf32>
    %c65_561 = arith.constant 65 : index
    %c0_562 = arith.constant 0 : index
    %585 = tpu.strided_load %arg8[%c65_561, %c0_562] {strides = array<i32: 2, 1>} : memref<188x8xf32, #tpu.memory_space<vmem>>, vector<6x8xf32>
    %c80_563 = arith.constant 80 : index
    %c0_564 = arith.constant 0 : index
    %586 = tpu.strided_load %arg8[%c80_563, %c0_564] {strides = array<i32: 2, 1>} : memref<188x8xf32, #tpu.memory_space<vmem>>, vector<6x8xf32>
    %c81_565 = arith.constant 81 : index
    %c0_566 = arith.constant 0 : index
    %587 = tpu.strided_load %arg8[%c81_565, %c0_566] {strides = array<i32: 2, 1>} : memref<188x8xf32, #tpu.memory_space<vmem>>, vector<6x8xf32>
    %588 = arith.maximumf %584, %585 : vector<6x8xf32>
    %589 = arith.maximumf %586, %587 : vector<6x8xf32>
    %590 = arith.maximumf %588, %589 : vector<6x8xf32>
    %c1_567 = arith.constant 1 : index
    %c2_568 = arith.constant 2 : index
    %c0_569 = arith.constant 0 : index
    %c0_570 = arith.constant 0 : index
    %591 = vector.load %arg6[%c1_567, %c2_568, %c0_569, %c0_570] : memref<2x6x6x8xf32, #tpu.memory_space<vmem>>, vector<1x1x6x8xf32>
    %592 = vector.shape_cast %591 : vector<1x1x6x8xf32> to vector<6x8xf32>
    %593 = vector.shape_cast %590 : vector<6x8xf32> to vector<1x1x6x8xf32>
    tpu.vector_store %arg6[%c1_567, %c2_568, %c0_569, %c0_570], %593 {strides = array<i32>} : memref<2x6x6x8xf32, #tpu.memory_space<vmem>>, vector<1x1x6x8xf32>,
    %c96_571 = arith.constant 96 : index
    %c0_572 = arith.constant 0 : index
    %594 = tpu.strided_load %arg8[%c96_571, %c0_572] {strides = array<i32: 2, 1>} : memref<188x8xf32, #tpu.memory_space<vmem>>, vector<6x8xf32>
    %c97_573 = arith.constant 97 : index
    %c0_574 = arith.constant 0 : index
    %595 = tpu.strided_load %arg8[%c97_573, %c0_574] {strides = array<i32: 2, 1>} : memref<188x8xf32, #tpu.memory_space<vmem>>, vector<6x8xf32>
    %c112_575 = arith.constant 112 : index
    %c0_576 = arith.constant 0 : index
    %596 = tpu.strided_load %arg8[%c112_575, %c0_576] {strides = array<i32: 2, 1>} : memref<188x8xf32, #tpu.memory_space<vmem>>, vector<6x8xf32>
    %c113_577 = arith.constant 113 : index
    %c0_578 = arith.constant 0 : index
    %597 = tpu.strided_load %arg8[%c113_577, %c0_578] {strides = array<i32: 2, 1>} : memref<188x8xf32, #tpu.memory_space<vmem>>, vector<6x8xf32>
    %598 = arith.maximumf %594, %595 : vector<6x8xf32>
    %599 = arith.maximumf %596, %597 : vector<6x8xf32>
    %600 = arith.maximumf %598, %599 : vector<6x8xf32>
    %c1_579 = arith.constant 1 : index
    %c3_580 = arith.constant 3 : index
    %c0_581 = arith.constant 0 : index
    %c0_582 = arith.constant 0 : index
    %601 = vector.load %arg6[%c1_579, %c3_580, %c0_581, %c0_582] : memref<2x6x6x8xf32, #tpu.memory_space<vmem>>, vector<1x1x6x8xf32>
    %602 = vector.shape_cast %601 : vector<1x1x6x8xf32> to vector<6x8xf32>
    %603 = vector.shape_cast %600 : vector<6x8xf32> to vector<1x1x6x8xf32>
    tpu.vector_store %arg6[%c1_579, %c3_580, %c0_581, %c0_582], %603 {strides = array<i32>} : memref<2x6x6x8xf32, #tpu.memory_space<vmem>>, vector<1x1x6x8xf32>,
    %c128_583 = arith.constant 128 : index
    %c0_584 = arith.constant 0 : index
    %604 = tpu.strided_load %arg8[%c128_583, %c0_584] {strides = array<i32: 2, 1>} : memref<188x8xf32, #tpu.memory_space<vmem>>, vector<6x8xf32>
    %c129_585 = arith.constant 129 : index
    %c0_586 = arith.constant 0 : index
    %605 = tpu.strided_load %arg8[%c129_585, %c0_586] {strides = array<i32: 2, 1>} : memref<188x8xf32, #tpu.memory_space<vmem>>, vector<6x8xf32>
    %c144_587 = arith.constant 144 : index
    %c0_588 = arith.constant 0 : index
    %606 = tpu.strided_load %arg8[%c144_587, %c0_588] {strides = array<i32: 2, 1>} : memref<188x8xf32, #tpu.memory_space<vmem>>, vector<6x8xf32>
    %c145_589 = arith.constant 145 : index
    %c0_590 = arith.constant 0 : index
    %607 = tpu.strided_load %arg8[%c145_589, %c0_590] {strides = array<i32: 2, 1>} : memref<188x8xf32, #tpu.memory_space<vmem>>, vector<6x8xf32>
    %608 = arith.maximumf %604, %605 : vector<6x8xf32>
    %609 = arith.maximumf %606, %607 : vector<6x8xf32>
    %610 = arith.maximumf %608, %609 : vector<6x8xf32>
    %c1_591 = arith.constant 1 : index
    %c4_592 = arith.constant 4 : index
    %c0_593 = arith.constant 0 : index
    %c0_594 = arith.constant 0 : index
    %611 = vector.load %arg6[%c1_591, %c4_592, %c0_593, %c0_594] : memref<2x6x6x8xf32, #tpu.memory_space<vmem>>, vector<1x1x6x8xf32>
    %612 = vector.shape_cast %611 : vector<1x1x6x8xf32> to vector<6x8xf32>
    %613 = vector.shape_cast %610 : vector<6x8xf32> to vector<1x1x6x8xf32>
    tpu.vector_store %arg6[%c1_591, %c4_592, %c0_593, %c0_594], %613 {strides = array<i32>} : memref<2x6x6x8xf32, #tpu.memory_space<vmem>>, vector<1x1x6x8xf32>,
    %c160_595 = arith.constant 160 : index
    %c0_596 = arith.constant 0 : index
    %614 = tpu.strided_load %arg8[%c160_595, %c0_596] {strides = array<i32: 2, 1>} : memref<188x8xf32, #tpu.memory_space<vmem>>, vector<6x8xf32>
    %c161_597 = arith.constant 161 : index
    %c0_598 = arith.constant 0 : index
    %615 = tpu.strided_load %arg8[%c161_597, %c0_598] {strides = array<i32: 2, 1>} : memref<188x8xf32, #tpu.memory_space<vmem>>, vector<6x8xf32>
    %c176_599 = arith.constant 176 : index
    %c0_600 = arith.constant 0 : index
    %616 = tpu.strided_load %arg8[%c176_599, %c0_600] {strides = array<i32: 2, 1>} : memref<188x8xf32, #tpu.memory_space<vmem>>, vector<6x8xf32>
    %c177_601 = arith.constant 177 : index
    %c0_602 = arith.constant 0 : index
    %617 = tpu.strided_load %arg8[%c177_601, %c0_602] {strides = array<i32: 2, 1>} : memref<188x8xf32, #tpu.memory_space<vmem>>, vector<6x8xf32>
    %618 = arith.maximumf %614, %615 : vector<6x8xf32>
    %619 = arith.maximumf %616, %617 : vector<6x8xf32>
    %620 = arith.maximumf %618, %619 : vector<6x8xf32>
    %c1_603 = arith.constant 1 : index
    %c5_604 = arith.constant 5 : index
    %c0_605 = arith.constant 0 : index
    %c0_606 = arith.constant 0 : index
    %621 = vector.load %arg6[%c1_603, %c5_604, %c0_605, %c0_606] : memref<2x6x6x8xf32, #tpu.memory_space<vmem>>, vector<1x1x6x8xf32>
    %622 = vector.shape_cast %621 : vector<1x1x6x8xf32> to vector<6x8xf32>
    %623 = vector.shape_cast %620 : vector<6x8xf32> to vector<1x1x6x8xf32>
    tpu.vector_store %arg6[%c1_603, %c5_604, %c0_605, %c0_606], %623 {strides = array<i32>} : memref<2x6x6x8xf32, #tpu.memory_space<vmem>>, vector<1x1x6x8xf32>,
    return
  }
  func.func @transform_0(%arg0: i32) -> (i32, i32, i32) {
    %c0_i32 = arith.constant 0 : i32
    %c0_i32_0 = arith.constant 0 : i32
    %c0_i32_1 = arith.constant 0 : i32
    return %arg0, %c0_i32, %c0_i32_0 : i32, i32, i32
  }
  func.func @transform_1(%arg0: i32) -> (i32, i32, i32) {
    %c0_i32 = arith.constant 0 : i32
    %c0_i32_0 = arith.constant 0 : i32
    %c0_i32_1 = arith.constant 0 : i32
    %c0_i32_2 = arith.constant 0 : i32
    return %c0_i32, %c0_i32_0, %c0_i32_1 : i32, i32, i32
  }
  func.func @transform_2(%arg0: i32) -> (i32, i32) {
    %c0_i32 = arith.constant 0 : i32
    %c0_i32_0 = arith.constant 0 : i32
    %c0_i32_1 = arith.constant 0 : i32
    return %c0_i32, %c0_i32_0 : i32, i32
  }
  func.func @transform_3(%arg0: i32) -> (i32, i32, i32) {
    %c0_i32 = arith.constant 0 : i32
    %c0_i32_0 = arith.constant 0 : i32
    %c0_i32_1 = arith.constant 0 : i32
    %c0_i32_2 = arith.constant 0 : i32
    return %c0_i32, %c0_i32_0, %c0_i32_1 : i32, i32, i32
  }
  func.func @transform_4(%arg0: i32) -> (i32, i32) {
    %c0_i32 = arith.constant 0 : i32
    %c0_i32_0 = arith.constant 0 : i32
    %c0_i32_1 = arith.constant 0 : i32
    return %c0_i32, %c0_i32_0 : i32, i32
  }
  func.func @transform_5(%arg0: i32) -> (i32, i32, i32, i32) {
    %c0_i32 = arith.constant 0 : i32
    %c0_i32_0 = arith.constant 0 : i32
    %c0_i32_1 = arith.constant 0 : i32
    %c0_i32_2 = arith.constant 0 : i32
    return %arg0, %c0_i32, %c0_i32_0, %c0_i32_1 : i32, i32, i32, i32
  }
}

module attributes {stable_mosaic.version = 11 : i64} {
  func.func @kernel(%arg0: i32, %arg1: memref<2x36x8xf32, #tpu.memory_space<vmem>>, %arg2: memref<9x8x16xbf16, #tpu.memory_space<vmem>>, %arg3: memref<1x16xf32, #tpu.memory_space<vmem>>, %arg4: memref<9x16x16xbf16, #tpu.memory_space<vmem>>, %arg5: memref<1x16xf32, #tpu.memory_space<vmem>>, %arg6: memref<2x1x1x16xf32, #tpu.memory_space<vmem>>, %arg7: memref<22x16xf32, #tpu.memory_space<vmem>>, %arg8: memref<8x16xf32, #tpu.memory_space<vmem>>) attributes {dimension_semantics = [#tpu.dimension_semantics<parallel>], iteration_bounds = array<i64: 1>, scalar_prefetch = 0 : i64, scratch_operands = 2 : i64, tpu.core_type = #tpu.core_type<tc>, window_params = [{transform_indices = @transform_0, window_bounds = array<i64: 2, 36, 8>}, {pipeline_mode = #tpu.pipeline_mode<synchronous>, transform_indices = @transform_1, window_bounds = array<i64: 9, 8, 16>}, {pipeline_mode = #tpu.pipeline_mode<synchronous>, transform_indices = @transform_2, window_bounds = array<i64: 1, 16>}, {pipeline_mode = #tpu.pipeline_mode<synchronous>, transform_indices = @transform_3, window_bounds = array<i64: 9, 16, 16>}, {pipeline_mode = #tpu.pipeline_mode<synchronous>, transform_indices = @transform_4, window_bounds = array<i64: 1, 16>}, {transform_indices = @transform_5, window_bounds = array<i64: 2, 1, 1, 16>}]} {
    %c0 = arith.constant 0 : index
    %c0_0 = arith.constant 0 : index
    %0 = vector.load %arg3[%c0, %c0_0] : memref<1x16xf32, #tpu.memory_space<vmem>>, vector<1x16xf32>
    %c0_1 = arith.constant 0 : index
    %c0_2 = arith.constant 0 : index
    %c0_3 = arith.constant 0 : index
    %1 = vector.load %arg1[%c0_1, %c0_2, %c0_3] : memref<2x36x8xf32, #tpu.memory_space<vmem>>, vector<1x22x8xf32>
    %2 = vector.shape_cast %1 : vector<1x22x8xf32> to vector<22x8xf32>
    %3 = arith.truncf %2 : vector<22x8xf32> to vector<22x8xbf16>
    %c0_4 = arith.constant 0 : index
    %c0_5 = arith.constant 0 : index
    %c0_6 = arith.constant 0 : index
    %4 = vector.load %arg2[%c0_4, %c0_5, %c0_6] : memref<9x8x16xbf16, #tpu.memory_space<vmem>>, vector<1x8x16xbf16>
    %5 = vector.shape_cast %4 : vector<1x8x16xbf16> to vector<8x16xbf16>
    %cst = arith.constant dense<0.000000e+00> : vector<22x16xf32>
    %6 = tpu.matmul %3, %5, %cst {dimension_numbers = #tpu.dot_dimension_numbers<[1], [0], [0], [1], [0, 0, 1, 1], [], []>} : vector<22x8xbf16>, vector<8x16xbf16>, vector<22x16xf32> -> vector<22x16xf32>
    %c0_7 = arith.constant 0 : index
    %c1 = arith.constant 1 : index
    %c0_8 = arith.constant 0 : index
    %7 = vector.load %arg1[%c0_7, %c1, %c0_8] : memref<2x36x8xf32, #tpu.memory_space<vmem>>, vector<1x22x8xf32>
    %8 = vector.shape_cast %7 : vector<1x22x8xf32> to vector<22x8xf32>
    %9 = arith.truncf %8 : vector<22x8xf32> to vector<22x8xbf16>
    %c1_9 = arith.constant 1 : index
    %c0_10 = arith.constant 0 : index
    %c0_11 = arith.constant 0 : index
    %10 = vector.load %arg2[%c1_9, %c0_10, %c0_11] : memref<9x8x16xbf16, #tpu.memory_space<vmem>>, vector<1x8x16xbf16>
    %11 = vector.shape_cast %10 : vector<1x8x16xbf16> to vector<8x16xbf16>
    %cst_12 = arith.constant dense<0.000000e+00> : vector<22x16xf32>
    %12 = tpu.matmul %9, %11, %cst_12 {dimension_numbers = #tpu.dot_dimension_numbers<[1], [0], [0], [1], [0, 0, 1, 1], [], []>} : vector<22x8xbf16>, vector<8x16xbf16>, vector<22x16xf32> -> vector<22x16xf32>
    %13 = arith.addf %6, %12 : vector<22x16xf32>
    %c0_13 = arith.constant 0 : index
    %c2 = arith.constant 2 : index
    %c0_14 = arith.constant 0 : index
    %14 = vector.load %arg1[%c0_13, %c2, %c0_14] : memref<2x36x8xf32, #tpu.memory_space<vmem>>, vector<1x22x8xf32>
    %15 = vector.shape_cast %14 : vector<1x22x8xf32> to vector<22x8xf32>
    %16 = arith.truncf %15 : vector<22x8xf32> to vector<22x8xbf16>
    %c2_15 = arith.constant 2 : index
    %c0_16 = arith.constant 0 : index
    %c0_17 = arith.constant 0 : index
    %17 = vector.load %arg2[%c2_15, %c0_16, %c0_17] : memref<9x8x16xbf16, #tpu.memory_space<vmem>>, vector<1x8x16xbf16>
    %18 = vector.shape_cast %17 : vector<1x8x16xbf16> to vector<8x16xbf16>
    %cst_18 = arith.constant dense<0.000000e+00> : vector<22x16xf32>
    %19 = tpu.matmul %16, %18, %cst_18 {dimension_numbers = #tpu.dot_dimension_numbers<[1], [0], [0], [1], [0, 0, 1, 1], [], []>} : vector<22x8xbf16>, vector<8x16xbf16>, vector<22x16xf32> -> vector<22x16xf32>
    %20 = arith.addf %13, %19 : vector<22x16xf32>
    %c0_19 = arith.constant 0 : index
    %c6 = arith.constant 6 : index
    %c0_20 = arith.constant 0 : index
    %21 = vector.load %arg1[%c0_19, %c6, %c0_20] : memref<2x36x8xf32, #tpu.memory_space<vmem>>, vector<1x22x8xf32>
    %22 = vector.shape_cast %21 : vector<1x22x8xf32> to vector<22x8xf32>
    %23 = arith.truncf %22 : vector<22x8xf32> to vector<22x8xbf16>
    %c3 = arith.constant 3 : index
    %c0_21 = arith.constant 0 : index
    %c0_22 = arith.constant 0 : index
    %24 = vector.load %arg2[%c3, %c0_21, %c0_22] : memref<9x8x16xbf16, #tpu.memory_space<vmem>>, vector<1x8x16xbf16>
    %25 = vector.shape_cast %24 : vector<1x8x16xbf16> to vector<8x16xbf16>
    %cst_23 = arith.constant dense<0.000000e+00> : vector<22x16xf32>
    %26 = tpu.matmul %23, %25, %cst_23 {dimension_numbers = #tpu.dot_dimension_numbers<[1], [0], [0], [1], [0, 0, 1, 1], [], []>} : vector<22x8xbf16>, vector<8x16xbf16>, vector<22x16xf32> -> vector<22x16xf32>
    %27 = arith.addf %20, %26 : vector<22x16xf32>
    %c0_24 = arith.constant 0 : index
    %c7 = arith.constant 7 : index
    %c0_25 = arith.constant 0 : index
    %28 = vector.load %arg1[%c0_24, %c7, %c0_25] : memref<2x36x8xf32, #tpu.memory_space<vmem>>, vector<1x22x8xf32>
    %29 = vector.shape_cast %28 : vector<1x22x8xf32> to vector<22x8xf32>
    %30 = arith.truncf %29 : vector<22x8xf32> to vector<22x8xbf16>
    %c4 = arith.constant 4 : index
    %c0_26 = arith.constant 0 : index
    %c0_27 = arith.constant 0 : index
    %31 = vector.load %arg2[%c4, %c0_26, %c0_27] : memref<9x8x16xbf16, #tpu.memory_space<vmem>>, vector<1x8x16xbf16>
    %32 = vector.shape_cast %31 : vector<1x8x16xbf16> to vector<8x16xbf16>
    %cst_28 = arith.constant dense<0.000000e+00> : vector<22x16xf32>
    %33 = tpu.matmul %30, %32, %cst_28 {dimension_numbers = #tpu.dot_dimension_numbers<[1], [0], [0], [1], [0, 0, 1, 1], [], []>} : vector<22x8xbf16>, vector<8x16xbf16>, vector<22x16xf32> -> vector<22x16xf32>
    %34 = arith.addf %27, %33 : vector<22x16xf32>
    %c0_29 = arith.constant 0 : index
    %c8 = arith.constant 8 : index
    %c0_30 = arith.constant 0 : index
    %35 = vector.load %arg1[%c0_29, %c8, %c0_30] : memref<2x36x8xf32, #tpu.memory_space<vmem>>, vector<1x22x8xf32>
    %36 = vector.shape_cast %35 : vector<1x22x8xf32> to vector<22x8xf32>
    %37 = arith.truncf %36 : vector<22x8xf32> to vector<22x8xbf16>
    %c5 = arith.constant 5 : index
    %c0_31 = arith.constant 0 : index
    %c0_32 = arith.constant 0 : index
    %38 = vector.load %arg2[%c5, %c0_31, %c0_32] : memref<9x8x16xbf16, #tpu.memory_space<vmem>>, vector<1x8x16xbf16>
    %39 = vector.shape_cast %38 : vector<1x8x16xbf16> to vector<8x16xbf16>
    %cst_33 = arith.constant dense<0.000000e+00> : vector<22x16xf32>
    %40 = tpu.matmul %37, %39, %cst_33 {dimension_numbers = #tpu.dot_dimension_numbers<[1], [0], [0], [1], [0, 0, 1, 1], [], []>} : vector<22x8xbf16>, vector<8x16xbf16>, vector<22x16xf32> -> vector<22x16xf32>
    %41 = arith.addf %34, %40 : vector<22x16xf32>
    %c0_34 = arith.constant 0 : index
    %c12 = arith.constant 12 : index
    %c0_35 = arith.constant 0 : index
    %42 = vector.load %arg1[%c0_34, %c12, %c0_35] : memref<2x36x8xf32, #tpu.memory_space<vmem>>, vector<1x22x8xf32>
    %43 = vector.shape_cast %42 : vector<1x22x8xf32> to vector<22x8xf32>
    %44 = arith.truncf %43 : vector<22x8xf32> to vector<22x8xbf16>
    %c6_36 = arith.constant 6 : index
    %c0_37 = arith.constant 0 : index
    %c0_38 = arith.constant 0 : index
    %45 = vector.load %arg2[%c6_36, %c0_37, %c0_38] : memref<9x8x16xbf16, #tpu.memory_space<vmem>>, vector<1x8x16xbf16>
    %46 = vector.shape_cast %45 : vector<1x8x16xbf16> to vector<8x16xbf16>
    %cst_39 = arith.constant dense<0.000000e+00> : vector<22x16xf32>
    %47 = tpu.matmul %44, %46, %cst_39 {dimension_numbers = #tpu.dot_dimension_numbers<[1], [0], [0], [1], [0, 0, 1, 1], [], []>} : vector<22x8xbf16>, vector<8x16xbf16>, vector<22x16xf32> -> vector<22x16xf32>
    %48 = arith.addf %41, %47 : vector<22x16xf32>
    %c0_40 = arith.constant 0 : index
    %c13 = arith.constant 13 : index
    %c0_41 = arith.constant 0 : index
    %49 = vector.load %arg1[%c0_40, %c13, %c0_41] : memref<2x36x8xf32, #tpu.memory_space<vmem>>, vector<1x22x8xf32>
    %50 = vector.shape_cast %49 : vector<1x22x8xf32> to vector<22x8xf32>
    %51 = arith.truncf %50 : vector<22x8xf32> to vector<22x8xbf16>
    %c7_42 = arith.constant 7 : index
    %c0_43 = arith.constant 0 : index
    %c0_44 = arith.constant 0 : index
    %52 = vector.load %arg2[%c7_42, %c0_43, %c0_44] : memref<9x8x16xbf16, #tpu.memory_space<vmem>>, vector<1x8x16xbf16>
    %53 = vector.shape_cast %52 : vector<1x8x16xbf16> to vector<8x16xbf16>
    %cst_45 = arith.constant dense<0.000000e+00> : vector<22x16xf32>
    %54 = tpu.matmul %51, %53, %cst_45 {dimension_numbers = #tpu.dot_dimension_numbers<[1], [0], [0], [1], [0, 0, 1, 1], [], []>} : vector<22x8xbf16>, vector<8x16xbf16>, vector<22x16xf32> -> vector<22x16xf32>
    %55 = arith.addf %48, %54 : vector<22x16xf32>
    %c0_46 = arith.constant 0 : index
    %c14 = arith.constant 14 : index
    %c0_47 = arith.constant 0 : index
    %56 = vector.load %arg1[%c0_46, %c14, %c0_47] : memref<2x36x8xf32, #tpu.memory_space<vmem>>, vector<1x22x8xf32>
    %57 = vector.shape_cast %56 : vector<1x22x8xf32> to vector<22x8xf32>
    %58 = arith.truncf %57 : vector<22x8xf32> to vector<22x8xbf16>
    %c8_48 = arith.constant 8 : index
    %c0_49 = arith.constant 0 : index
    %c0_50 = arith.constant 0 : index
    %59 = vector.load %arg2[%c8_48, %c0_49, %c0_50] : memref<9x8x16xbf16, #tpu.memory_space<vmem>>, vector<1x8x16xbf16>
    %60 = vector.shape_cast %59 : vector<1x8x16xbf16> to vector<8x16xbf16>
    %cst_51 = arith.constant dense<0.000000e+00> : vector<22x16xf32>
    %61 = tpu.matmul %58, %60, %cst_51 {dimension_numbers = #tpu.dot_dimension_numbers<[1], [0], [0], [1], [0, 0, 1, 1], [], []>} : vector<22x8xbf16>, vector<8x16xbf16>, vector<22x16xf32> -> vector<22x16xf32>
    %62 = arith.addf %55, %61 : vector<22x16xf32>
    %63 = vector.broadcast %0 : vector<1x16xf32> to vector<22x16xf32>
    %64 = arith.addf %62, %63 : vector<22x16xf32>
    %cst_52 = arith.constant 0.000000e+00 : f32
    %65 = vector.broadcast %cst_52 : f32 to vector<22x16xf32>
    %66 = arith.maximumf %64, %65 : vector<22x16xf32>
    %c0_53 = arith.constant 0 : index
    %c0_54 = arith.constant 0 : index
    %67 = vector.load %arg7[%c0_53, %c0_54] : memref<22x16xf32, #tpu.memory_space<vmem>>, vector<22x16xf32>
    tpu.vector_store %arg7[%c0_53, %c0_54], %66 {strides = array<i32>} : memref<22x16xf32, #tpu.memory_space<vmem>>, vector<22x16xf32>,
    %c0_55 = arith.constant 0 : index
    %c0_56 = arith.constant 0 : index
    %68 = vector.load %arg5[%c0_55, %c0_56] : memref<1x16xf32, #tpu.memory_space<vmem>>, vector<1x16xf32>
    %c0_57 = arith.constant 0 : index
    %c0_58 = arith.constant 0 : index
    %69 = vector.load %arg7[%c0_57, %c0_58] : memref<22x16xf32, #tpu.memory_space<vmem>>, vector<8x16xf32>
    %70 = arith.truncf %69 : vector<8x16xf32> to vector<8x16xbf16>
    %c0_59 = arith.constant 0 : index
    %c0_60 = arith.constant 0 : index
    %c0_61 = arith.constant 0 : index
    %71 = vector.load %arg4[%c0_59, %c0_60, %c0_61] : memref<9x16x16xbf16, #tpu.memory_space<vmem>>, vector<1x16x16xbf16>
    %72 = vector.shape_cast %71 : vector<1x16x16xbf16> to vector<16x16xbf16>
    %cst_62 = arith.constant dense<0.000000e+00> : vector<8x16xf32>
    %73 = tpu.matmul %70, %72, %cst_62 {dimension_numbers = #tpu.dot_dimension_numbers<[1], [0], [0], [1], [0, 0, 1, 1], [], []>} : vector<8x16xbf16>, vector<16x16xbf16>, vector<8x16xf32> -> vector<8x16xf32>
    %c1_63 = arith.constant 1 : index
    %c0_64 = arith.constant 0 : index
    %74 = vector.load %arg7[%c1_63, %c0_64] : memref<22x16xf32, #tpu.memory_space<vmem>>, vector<8x16xf32>
    %75 = arith.truncf %74 : vector<8x16xf32> to vector<8x16xbf16>
    %c1_65 = arith.constant 1 : index
    %c0_66 = arith.constant 0 : index
    %c0_67 = arith.constant 0 : index
    %76 = vector.load %arg4[%c1_65, %c0_66, %c0_67] : memref<9x16x16xbf16, #tpu.memory_space<vmem>>, vector<1x16x16xbf16>
    %77 = vector.shape_cast %76 : vector<1x16x16xbf16> to vector<16x16xbf16>
    %cst_68 = arith.constant dense<0.000000e+00> : vector<8x16xf32>
    %78 = tpu.matmul %75, %77, %cst_68 {dimension_numbers = #tpu.dot_dimension_numbers<[1], [0], [0], [1], [0, 0, 1, 1], [], []>} : vector<8x16xbf16>, vector<16x16xbf16>, vector<8x16xf32> -> vector<8x16xf32>
    %79 = arith.addf %73, %78 : vector<8x16xf32>
    %c2_69 = arith.constant 2 : index
    %c0_70 = arith.constant 0 : index
    %80 = vector.load %arg7[%c2_69, %c0_70] : memref<22x16xf32, #tpu.memory_space<vmem>>, vector<8x16xf32>
    %81 = arith.truncf %80 : vector<8x16xf32> to vector<8x16xbf16>
    %c2_71 = arith.constant 2 : index
    %c0_72 = arith.constant 0 : index
    %c0_73 = arith.constant 0 : index
    %82 = vector.load %arg4[%c2_71, %c0_72, %c0_73] : memref<9x16x16xbf16, #tpu.memory_space<vmem>>, vector<1x16x16xbf16>
    %83 = vector.shape_cast %82 : vector<1x16x16xbf16> to vector<16x16xbf16>
    %cst_74 = arith.constant dense<0.000000e+00> : vector<8x16xf32>
    %84 = tpu.matmul %81, %83, %cst_74 {dimension_numbers = #tpu.dot_dimension_numbers<[1], [0], [0], [1], [0, 0, 1, 1], [], []>} : vector<8x16xbf16>, vector<16x16xbf16>, vector<8x16xf32> -> vector<8x16xf32>
    %85 = arith.addf %79, %84 : vector<8x16xf32>
    %c6_75 = arith.constant 6 : index
    %c0_76 = arith.constant 0 : index
    %86 = vector.load %arg7[%c6_75, %c0_76] : memref<22x16xf32, #tpu.memory_space<vmem>>, vector<8x16xf32>
    %87 = arith.truncf %86 : vector<8x16xf32> to vector<8x16xbf16>
    %c3_77 = arith.constant 3 : index
    %c0_78 = arith.constant 0 : index
    %c0_79 = arith.constant 0 : index
    %88 = vector.load %arg4[%c3_77, %c0_78, %c0_79] : memref<9x16x16xbf16, #tpu.memory_space<vmem>>, vector<1x16x16xbf16>
    %89 = vector.shape_cast %88 : vector<1x16x16xbf16> to vector<16x16xbf16>
    %cst_80 = arith.constant dense<0.000000e+00> : vector<8x16xf32>
    %90 = tpu.matmul %87, %89, %cst_80 {dimension_numbers = #tpu.dot_dimension_numbers<[1], [0], [0], [1], [0, 0, 1, 1], [], []>} : vector<8x16xbf16>, vector<16x16xbf16>, vector<8x16xf32> -> vector<8x16xf32>
    %91 = arith.addf %85, %90 : vector<8x16xf32>
    %c7_81 = arith.constant 7 : index
    %c0_82 = arith.constant 0 : index
    %92 = vector.load %arg7[%c7_81, %c0_82] : memref<22x16xf32, #tpu.memory_space<vmem>>, vector<8x16xf32>
    %93 = arith.truncf %92 : vector<8x16xf32> to vector<8x16xbf16>
    %c4_83 = arith.constant 4 : index
    %c0_84 = arith.constant 0 : index
    %c0_85 = arith.constant 0 : index
    %94 = vector.load %arg4[%c4_83, %c0_84, %c0_85] : memref<9x16x16xbf16, #tpu.memory_space<vmem>>, vector<1x16x16xbf16>
    %95 = vector.shape_cast %94 : vector<1x16x16xbf16> to vector<16x16xbf16>
    %cst_86 = arith.constant dense<0.000000e+00> : vector<8x16xf32>
    %96 = tpu.matmul %93, %95, %cst_86 {dimension_numbers = #tpu.dot_dimension_numbers<[1], [0], [0], [1], [0, 0, 1, 1], [], []>} : vector<8x16xbf16>, vector<16x16xbf16>, vector<8x16xf32> -> vector<8x16xf32>
    %97 = arith.addf %91, %96 : vector<8x16xf32>
    %c8_87 = arith.constant 8 : index
    %c0_88 = arith.constant 0 : index
    %98 = vector.load %arg7[%c8_87, %c0_88] : memref<22x16xf32, #tpu.memory_space<vmem>>, vector<8x16xf32>
    %99 = arith.truncf %98 : vector<8x16xf32> to vector<8x16xbf16>
    %c5_89 = arith.constant 5 : index
    %c0_90 = arith.constant 0 : index
    %c0_91 = arith.constant 0 : index
    %100 = vector.load %arg4[%c5_89, %c0_90, %c0_91] : memref<9x16x16xbf16, #tpu.memory_space<vmem>>, vector<1x16x16xbf16>
    %101 = vector.shape_cast %100 : vector<1x16x16xbf16> to vector<16x16xbf16>
    %cst_92 = arith.constant dense<0.000000e+00> : vector<8x16xf32>
    %102 = tpu.matmul %99, %101, %cst_92 {dimension_numbers = #tpu.dot_dimension_numbers<[1], [0], [0], [1], [0, 0, 1, 1], [], []>} : vector<8x16xbf16>, vector<16x16xbf16>, vector<8x16xf32> -> vector<8x16xf32>
    %103 = arith.addf %97, %102 : vector<8x16xf32>
    %c12_93 = arith.constant 12 : index
    %c0_94 = arith.constant 0 : index
    %104 = vector.load %arg7[%c12_93, %c0_94] : memref<22x16xf32, #tpu.memory_space<vmem>>, vector<8x16xf32>
    %105 = arith.truncf %104 : vector<8x16xf32> to vector<8x16xbf16>
    %c6_95 = arith.constant 6 : index
    %c0_96 = arith.constant 0 : index
    %c0_97 = arith.constant 0 : index
    %106 = vector.load %arg4[%c6_95, %c0_96, %c0_97] : memref<9x16x16xbf16, #tpu.memory_space<vmem>>, vector<1x16x16xbf16>
    %107 = vector.shape_cast %106 : vector<1x16x16xbf16> to vector<16x16xbf16>
    %cst_98 = arith.constant dense<0.000000e+00> : vector<8x16xf32>
    %108 = tpu.matmul %105, %107, %cst_98 {dimension_numbers = #tpu.dot_dimension_numbers<[1], [0], [0], [1], [0, 0, 1, 1], [], []>} : vector<8x16xbf16>, vector<16x16xbf16>, vector<8x16xf32> -> vector<8x16xf32>
    %109 = arith.addf %103, %108 : vector<8x16xf32>
    %c13_99 = arith.constant 13 : index
    %c0_100 = arith.constant 0 : index
    %110 = vector.load %arg7[%c13_99, %c0_100] : memref<22x16xf32, #tpu.memory_space<vmem>>, vector<8x16xf32>
    %111 = arith.truncf %110 : vector<8x16xf32> to vector<8x16xbf16>
    %c7_101 = arith.constant 7 : index
    %c0_102 = arith.constant 0 : index
    %c0_103 = arith.constant 0 : index
    %112 = vector.load %arg4[%c7_101, %c0_102, %c0_103] : memref<9x16x16xbf16, #tpu.memory_space<vmem>>, vector<1x16x16xbf16>
    %113 = vector.shape_cast %112 : vector<1x16x16xbf16> to vector<16x16xbf16>
    %cst_104 = arith.constant dense<0.000000e+00> : vector<8x16xf32>
    %114 = tpu.matmul %111, %113, %cst_104 {dimension_numbers = #tpu.dot_dimension_numbers<[1], [0], [0], [1], [0, 0, 1, 1], [], []>} : vector<8x16xbf16>, vector<16x16xbf16>, vector<8x16xf32> -> vector<8x16xf32>
    %115 = arith.addf %109, %114 : vector<8x16xf32>
    %c14_105 = arith.constant 14 : index
    %c0_106 = arith.constant 0 : index
    %116 = vector.load %arg7[%c14_105, %c0_106] : memref<22x16xf32, #tpu.memory_space<vmem>>, vector<8x16xf32>
    %117 = arith.truncf %116 : vector<8x16xf32> to vector<8x16xbf16>
    %c8_107 = arith.constant 8 : index
    %c0_108 = arith.constant 0 : index
    %c0_109 = arith.constant 0 : index
    %118 = vector.load %arg4[%c8_107, %c0_108, %c0_109] : memref<9x16x16xbf16, #tpu.memory_space<vmem>>, vector<1x16x16xbf16>
    %119 = vector.shape_cast %118 : vector<1x16x16xbf16> to vector<16x16xbf16>
    %cst_110 = arith.constant dense<0.000000e+00> : vector<8x16xf32>
    %120 = tpu.matmul %117, %119, %cst_110 {dimension_numbers = #tpu.dot_dimension_numbers<[1], [0], [0], [1], [0, 0, 1, 1], [], []>} : vector<8x16xbf16>, vector<16x16xbf16>, vector<8x16xf32> -> vector<8x16xf32>
    %121 = arith.addf %115, %120 : vector<8x16xf32>
    %122 = vector.broadcast %68 : vector<1x16xf32> to vector<8x16xf32>
    %123 = arith.addf %121, %122 : vector<8x16xf32>
    %cst_111 = arith.constant 0.000000e+00 : f32
    %124 = vector.broadcast %cst_111 : f32 to vector<8x16xf32>
    %125 = arith.maximumf %123, %124 : vector<8x16xf32>
    %c0_112 = arith.constant 0 : index
    %c0_113 = arith.constant 0 : index
    %126 = vector.load %arg8[%c0_112, %c0_113] : memref<8x16xf32, #tpu.memory_space<vmem>>, vector<8x16xf32>
    tpu.vector_store %arg8[%c0_112, %c0_113], %125 {strides = array<i32>} : memref<8x16xf32, #tpu.memory_space<vmem>>, vector<8x16xf32>,
    %c0_114 = arith.constant 0 : index
    %c0_115 = arith.constant 0 : index
    %127 = tpu.strided_load %arg8[%c0_114, %c0_115] {strides = array<i32: 2, 1>} : memref<8x16xf32, #tpu.memory_space<vmem>>, vector<1x16xf32>
    %c1_116 = arith.constant 1 : index
    %c0_117 = arith.constant 0 : index
    %128 = tpu.strided_load %arg8[%c1_116, %c0_117] {strides = array<i32: 2, 1>} : memref<8x16xf32, #tpu.memory_space<vmem>>, vector<1x16xf32>
    %c6_118 = arith.constant 6 : index
    %c0_119 = arith.constant 0 : index
    %129 = tpu.strided_load %arg8[%c6_118, %c0_119] {strides = array<i32: 2, 1>} : memref<8x16xf32, #tpu.memory_space<vmem>>, vector<1x16xf32>
    %c7_120 = arith.constant 7 : index
    %c0_121 = arith.constant 0 : index
    %130 = tpu.strided_load %arg8[%c7_120, %c0_121] {strides = array<i32: 2, 1>} : memref<8x16xf32, #tpu.memory_space<vmem>>, vector<1x16xf32>
    %131 = arith.maximumf %127, %128 : vector<1x16xf32>
    %132 = arith.maximumf %129, %130 : vector<1x16xf32>
    %133 = arith.maximumf %131, %132 : vector<1x16xf32>
    %c0_122 = arith.constant 0 : index
    %c0_123 = arith.constant 0 : index
    %c0_124 = arith.constant 0 : index
    %c0_125 = arith.constant 0 : index
    %134 = vector.load %arg6[%c0_122, %c0_123, %c0_124, %c0_125] : memref<2x1x1x16xf32, #tpu.memory_space<vmem>>, vector<1x1x1x16xf32>
    %135 = vector.shape_cast %134 : vector<1x1x1x16xf32> to vector<1x16xf32>
    %136 = vector.shape_cast %133 : vector<1x16xf32> to vector<1x1x1x16xf32>
    tpu.vector_store %arg6[%c0_122, %c0_123, %c0_124, %c0_125], %136 {strides = array<i32>} : memref<2x1x1x16xf32, #tpu.memory_space<vmem>>, vector<1x1x1x16xf32>,
    %c0_126 = arith.constant 0 : index
    %c0_127 = arith.constant 0 : index
    %137 = vector.load %arg3[%c0_126, %c0_127] : memref<1x16xf32, #tpu.memory_space<vmem>>, vector<1x16xf32>
    %c1_128 = arith.constant 1 : index
    %c0_129 = arith.constant 0 : index
    %c0_130 = arith.constant 0 : index
    %138 = vector.load %arg1[%c1_128, %c0_129, %c0_130] : memref<2x36x8xf32, #tpu.memory_space<vmem>>, vector<1x22x8xf32>
    %139 = vector.shape_cast %138 : vector<1x22x8xf32> to vector<22x8xf32>
    %140 = arith.truncf %139 : vector<22x8xf32> to vector<22x8xbf16>
    %c0_131 = arith.constant 0 : index
    %c0_132 = arith.constant 0 : index
    %c0_133 = arith.constant 0 : index
    %141 = vector.load %arg2[%c0_131, %c0_132, %c0_133] : memref<9x8x16xbf16, #tpu.memory_space<vmem>>, vector<1x8x16xbf16>
    %142 = vector.shape_cast %141 : vector<1x8x16xbf16> to vector<8x16xbf16>
    %cst_134 = arith.constant dense<0.000000e+00> : vector<22x16xf32>
    %143 = tpu.matmul %140, %142, %cst_134 {dimension_numbers = #tpu.dot_dimension_numbers<[1], [0], [0], [1], [0, 0, 1, 1], [], []>} : vector<22x8xbf16>, vector<8x16xbf16>, vector<22x16xf32> -> vector<22x16xf32>
    %c1_135 = arith.constant 1 : index
    %c1_136 = arith.constant 1 : index
    %c0_137 = arith.constant 0 : index
    %144 = vector.load %arg1[%c1_135, %c1_136, %c0_137] : memref<2x36x8xf32, #tpu.memory_space<vmem>>, vector<1x22x8xf32>
    %145 = vector.shape_cast %144 : vector<1x22x8xf32> to vector<22x8xf32>
    %146 = arith.truncf %145 : vector<22x8xf32> to vector<22x8xbf16>
    %c1_138 = arith.constant 1 : index
    %c0_139 = arith.constant 0 : index
    %c0_140 = arith.constant 0 : index
    %147 = vector.load %arg2[%c1_138, %c0_139, %c0_140] : memref<9x8x16xbf16, #tpu.memory_space<vmem>>, vector<1x8x16xbf16>
    %148 = vector.shape_cast %147 : vector<1x8x16xbf16> to vector<8x16xbf16>
    %cst_141 = arith.constant dense<0.000000e+00> : vector<22x16xf32>
    %149 = tpu.matmul %146, %148, %cst_141 {dimension_numbers = #tpu.dot_dimension_numbers<[1], [0], [0], [1], [0, 0, 1, 1], [], []>} : vector<22x8xbf16>, vector<8x16xbf16>, vector<22x16xf32> -> vector<22x16xf32>
    %150 = arith.addf %143, %149 : vector<22x16xf32>
    %c1_142 = arith.constant 1 : index
    %c2_143 = arith.constant 2 : index
    %c0_144 = arith.constant 0 : index
    %151 = vector.load %arg1[%c1_142, %c2_143, %c0_144] : memref<2x36x8xf32, #tpu.memory_space<vmem>>, vector<1x22x8xf32>
    %152 = vector.shape_cast %151 : vector<1x22x8xf32> to vector<22x8xf32>
    %153 = arith.truncf %152 : vector<22x8xf32> to vector<22x8xbf16>
    %c2_145 = arith.constant 2 : index
    %c0_146 = arith.constant 0 : index
    %c0_147 = arith.constant 0 : index
    %154 = vector.load %arg2[%c2_145, %c0_146, %c0_147] : memref<9x8x16xbf16, #tpu.memory_space<vmem>>, vector<1x8x16xbf16>
    %155 = vector.shape_cast %154 : vector<1x8x16xbf16> to vector<8x16xbf16>
    %cst_148 = arith.constant dense<0.000000e+00> : vector<22x16xf32>
    %156 = tpu.matmul %153, %155, %cst_148 {dimension_numbers = #tpu.dot_dimension_numbers<[1], [0], [0], [1], [0, 0, 1, 1], [], []>} : vector<22x8xbf16>, vector<8x16xbf16>, vector<22x16xf32> -> vector<22x16xf32>
    %157 = arith.addf %150, %156 : vector<22x16xf32>
    %c1_149 = arith.constant 1 : index
    %c6_150 = arith.constant 6 : index
    %c0_151 = arith.constant 0 : index
    %158 = vector.load %arg1[%c1_149, %c6_150, %c0_151] : memref<2x36x8xf32, #tpu.memory_space<vmem>>, vector<1x22x8xf32>
    %159 = vector.shape_cast %158 : vector<1x22x8xf32> to vector<22x8xf32>
    %160 = arith.truncf %159 : vector<22x8xf32> to vector<22x8xbf16>
    %c3_152 = arith.constant 3 : index
    %c0_153 = arith.constant 0 : index
    %c0_154 = arith.constant 0 : index
    %161 = vector.load %arg2[%c3_152, %c0_153, %c0_154] : memref<9x8x16xbf16, #tpu.memory_space<vmem>>, vector<1x8x16xbf16>
    %162 = vector.shape_cast %161 : vector<1x8x16xbf16> to vector<8x16xbf16>
    %cst_155 = arith.constant dense<0.000000e+00> : vector<22x16xf32>
    %163 = tpu.matmul %160, %162, %cst_155 {dimension_numbers = #tpu.dot_dimension_numbers<[1], [0], [0], [1], [0, 0, 1, 1], [], []>} : vector<22x8xbf16>, vector<8x16xbf16>, vector<22x16xf32> -> vector<22x16xf32>
    %164 = arith.addf %157, %163 : vector<22x16xf32>
    %c1_156 = arith.constant 1 : index
    %c7_157 = arith.constant 7 : index
    %c0_158 = arith.constant 0 : index
    %165 = vector.load %arg1[%c1_156, %c7_157, %c0_158] : memref<2x36x8xf32, #tpu.memory_space<vmem>>, vector<1x22x8xf32>
    %166 = vector.shape_cast %165 : vector<1x22x8xf32> to vector<22x8xf32>
    %167 = arith.truncf %166 : vector<22x8xf32> to vector<22x8xbf16>
    %c4_159 = arith.constant 4 : index
    %c0_160 = arith.constant 0 : index
    %c0_161 = arith.constant 0 : index
    %168 = vector.load %arg2[%c4_159, %c0_160, %c0_161] : memref<9x8x16xbf16, #tpu.memory_space<vmem>>, vector<1x8x16xbf16>
    %169 = vector.shape_cast %168 : vector<1x8x16xbf16> to vector<8x16xbf16>
    %cst_162 = arith.constant dense<0.000000e+00> : vector<22x16xf32>
    %170 = tpu.matmul %167, %169, %cst_162 {dimension_numbers = #tpu.dot_dimension_numbers<[1], [0], [0], [1], [0, 0, 1, 1], [], []>} : vector<22x8xbf16>, vector<8x16xbf16>, vector<22x16xf32> -> vector<22x16xf32>
    %171 = arith.addf %164, %170 : vector<22x16xf32>
    %c1_163 = arith.constant 1 : index
    %c8_164 = arith.constant 8 : index
    %c0_165 = arith.constant 0 : index
    %172 = vector.load %arg1[%c1_163, %c8_164, %c0_165] : memref<2x36x8xf32, #tpu.memory_space<vmem>>, vector<1x22x8xf32>
    %173 = vector.shape_cast %172 : vector<1x22x8xf32> to vector<22x8xf32>
    %174 = arith.truncf %173 : vector<22x8xf32> to vector<22x8xbf16>
    %c5_166 = arith.constant 5 : index
    %c0_167 = arith.constant 0 : index
    %c0_168 = arith.constant 0 : index
    %175 = vector.load %arg2[%c5_166, %c0_167, %c0_168] : memref<9x8x16xbf16, #tpu.memory_space<vmem>>, vector<1x8x16xbf16>
    %176 = vector.shape_cast %175 : vector<1x8x16xbf16> to vector<8x16xbf16>
    %cst_169 = arith.constant dense<0.000000e+00> : vector<22x16xf32>
    %177 = tpu.matmul %174, %176, %cst_169 {dimension_numbers = #tpu.dot_dimension_numbers<[1], [0], [0], [1], [0, 0, 1, 1], [], []>} : vector<22x8xbf16>, vector<8x16xbf16>, vector<22x16xf32> -> vector<22x16xf32>
    %178 = arith.addf %171, %177 : vector<22x16xf32>
    %c1_170 = arith.constant 1 : index
    %c12_171 = arith.constant 12 : index
    %c0_172 = arith.constant 0 : index
    %179 = vector.load %arg1[%c1_170, %c12_171, %c0_172] : memref<2x36x8xf32, #tpu.memory_space<vmem>>, vector<1x22x8xf32>
    %180 = vector.shape_cast %179 : vector<1x22x8xf32> to vector<22x8xf32>
    %181 = arith.truncf %180 : vector<22x8xf32> to vector<22x8xbf16>
    %c6_173 = arith.constant 6 : index
    %c0_174 = arith.constant 0 : index
    %c0_175 = arith.constant 0 : index
    %182 = vector.load %arg2[%c6_173, %c0_174, %c0_175] : memref<9x8x16xbf16, #tpu.memory_space<vmem>>, vector<1x8x16xbf16>
    %183 = vector.shape_cast %182 : vector<1x8x16xbf16> to vector<8x16xbf16>
    %cst_176 = arith.constant dense<0.000000e+00> : vector<22x16xf32>
    %184 = tpu.matmul %181, %183, %cst_176 {dimension_numbers = #tpu.dot_dimension_numbers<[1], [0], [0], [1], [0, 0, 1, 1], [], []>} : vector<22x8xbf16>, vector<8x16xbf16>, vector<22x16xf32> -> vector<22x16xf32>
    %185 = arith.addf %178, %184 : vector<22x16xf32>
    %c1_177 = arith.constant 1 : index
    %c13_178 = arith.constant 13 : index
    %c0_179 = arith.constant 0 : index
    %186 = vector.load %arg1[%c1_177, %c13_178, %c0_179] : memref<2x36x8xf32, #tpu.memory_space<vmem>>, vector<1x22x8xf32>
    %187 = vector.shape_cast %186 : vector<1x22x8xf32> to vector<22x8xf32>
    %188 = arith.truncf %187 : vector<22x8xf32> to vector<22x8xbf16>
    %c7_180 = arith.constant 7 : index
    %c0_181 = arith.constant 0 : index
    %c0_182 = arith.constant 0 : index
    %189 = vector.load %arg2[%c7_180, %c0_181, %c0_182] : memref<9x8x16xbf16, #tpu.memory_space<vmem>>, vector<1x8x16xbf16>
    %190 = vector.shape_cast %189 : vector<1x8x16xbf16> to vector<8x16xbf16>
    %cst_183 = arith.constant dense<0.000000e+00> : vector<22x16xf32>
    %191 = tpu.matmul %188, %190, %cst_183 {dimension_numbers = #tpu.dot_dimension_numbers<[1], [0], [0], [1], [0, 0, 1, 1], [], []>} : vector<22x8xbf16>, vector<8x16xbf16>, vector<22x16xf32> -> vector<22x16xf32>
    %192 = arith.addf %185, %191 : vector<22x16xf32>
    %c1_184 = arith.constant 1 : index
    %c14_185 = arith.constant 14 : index
    %c0_186 = arith.constant 0 : index
    %193 = vector.load %arg1[%c1_184, %c14_185, %c0_186] : memref<2x36x8xf32, #tpu.memory_space<vmem>>, vector<1x22x8xf32>
    %194 = vector.shape_cast %193 : vector<1x22x8xf32> to vector<22x8xf32>
    %195 = arith.truncf %194 : vector<22x8xf32> to vector<22x8xbf16>
    %c8_187 = arith.constant 8 : index
    %c0_188 = arith.constant 0 : index
    %c0_189 = arith.constant 0 : index
    %196 = vector.load %arg2[%c8_187, %c0_188, %c0_189] : memref<9x8x16xbf16, #tpu.memory_space<vmem>>, vector<1x8x16xbf16>
    %197 = vector.shape_cast %196 : vector<1x8x16xbf16> to vector<8x16xbf16>
    %cst_190 = arith.constant dense<0.000000e+00> : vector<22x16xf32>
    %198 = tpu.matmul %195, %197, %cst_190 {dimension_numbers = #tpu.dot_dimension_numbers<[1], [0], [0], [1], [0, 0, 1, 1], [], []>} : vector<22x8xbf16>, vector<8x16xbf16>, vector<22x16xf32> -> vector<22x16xf32>
    %199 = arith.addf %192, %198 : vector<22x16xf32>
    %200 = vector.broadcast %137 : vector<1x16xf32> to vector<22x16xf32>
    %201 = arith.addf %199, %200 : vector<22x16xf32>
    %cst_191 = arith.constant 0.000000e+00 : f32
    %202 = vector.broadcast %cst_191 : f32 to vector<22x16xf32>
    %203 = arith.maximumf %201, %202 : vector<22x16xf32>
    %c0_192 = arith.constant 0 : index
    %c0_193 = arith.constant 0 : index
    %204 = vector.load %arg7[%c0_192, %c0_193] : memref<22x16xf32, #tpu.memory_space<vmem>>, vector<22x16xf32>
    tpu.vector_store %arg7[%c0_192, %c0_193], %203 {strides = array<i32>} : memref<22x16xf32, #tpu.memory_space<vmem>>, vector<22x16xf32>,
    %c0_194 = arith.constant 0 : index
    %c0_195 = arith.constant 0 : index
    %205 = vector.load %arg5[%c0_194, %c0_195] : memref<1x16xf32, #tpu.memory_space<vmem>>, vector<1x16xf32>
    %c0_196 = arith.constant 0 : index
    %c0_197 = arith.constant 0 : index
    %206 = vector.load %arg7[%c0_196, %c0_197] : memref<22x16xf32, #tpu.memory_space<vmem>>, vector<8x16xf32>
    %207 = arith.truncf %206 : vector<8x16xf32> to vector<8x16xbf16>
    %c0_198 = arith.constant 0 : index
    %c0_199 = arith.constant 0 : index
    %c0_200 = arith.constant 0 : index
    %208 = vector.load %arg4[%c0_198, %c0_199, %c0_200] : memref<9x16x16xbf16, #tpu.memory_space<vmem>>, vector<1x16x16xbf16>
    %209 = vector.shape_cast %208 : vector<1x16x16xbf16> to vector<16x16xbf16>
    %cst_201 = arith.constant dense<0.000000e+00> : vector<8x16xf32>
    %210 = tpu.matmul %207, %209, %cst_201 {dimension_numbers = #tpu.dot_dimension_numbers<[1], [0], [0], [1], [0, 0, 1, 1], [], []>} : vector<8x16xbf16>, vector<16x16xbf16>, vector<8x16xf32> -> vector<8x16xf32>
    %c1_202 = arith.constant 1 : index
    %c0_203 = arith.constant 0 : index
    %211 = vector.load %arg7[%c1_202, %c0_203] : memref<22x16xf32, #tpu.memory_space<vmem>>, vector<8x16xf32>
    %212 = arith.truncf %211 : vector<8x16xf32> to vector<8x16xbf16>
    %c1_204 = arith.constant 1 : index
    %c0_205 = arith.constant 0 : index
    %c0_206 = arith.constant 0 : index
    %213 = vector.load %arg4[%c1_204, %c0_205, %c0_206] : memref<9x16x16xbf16, #tpu.memory_space<vmem>>, vector<1x16x16xbf16>
    %214 = vector.shape_cast %213 : vector<1x16x16xbf16> to vector<16x16xbf16>
    %cst_207 = arith.constant dense<0.000000e+00> : vector<8x16xf32>
    %215 = tpu.matmul %212, %214, %cst_207 {dimension_numbers = #tpu.dot_dimension_numbers<[1], [0], [0], [1], [0, 0, 1, 1], [], []>} : vector<8x16xbf16>, vector<16x16xbf16>, vector<8x16xf32> -> vector<8x16xf32>
    %216 = arith.addf %210, %215 : vector<8x16xf32>
    %c2_208 = arith.constant 2 : index
    %c0_209 = arith.constant 0 : index
    %217 = vector.load %arg7[%c2_208, %c0_209] : memref<22x16xf32, #tpu.memory_space<vmem>>, vector<8x16xf32>
    %218 = arith.truncf %217 : vector<8x16xf32> to vector<8x16xbf16>
    %c2_210 = arith.constant 2 : index
    %c0_211 = arith.constant 0 : index
    %c0_212 = arith.constant 0 : index
    %219 = vector.load %arg4[%c2_210, %c0_211, %c0_212] : memref<9x16x16xbf16, #tpu.memory_space<vmem>>, vector<1x16x16xbf16>
    %220 = vector.shape_cast %219 : vector<1x16x16xbf16> to vector<16x16xbf16>
    %cst_213 = arith.constant dense<0.000000e+00> : vector<8x16xf32>
    %221 = tpu.matmul %218, %220, %cst_213 {dimension_numbers = #tpu.dot_dimension_numbers<[1], [0], [0], [1], [0, 0, 1, 1], [], []>} : vector<8x16xbf16>, vector<16x16xbf16>, vector<8x16xf32> -> vector<8x16xf32>
    %222 = arith.addf %216, %221 : vector<8x16xf32>
    %c6_214 = arith.constant 6 : index
    %c0_215 = arith.constant 0 : index
    %223 = vector.load %arg7[%c6_214, %c0_215] : memref<22x16xf32, #tpu.memory_space<vmem>>, vector<8x16xf32>
    %224 = arith.truncf %223 : vector<8x16xf32> to vector<8x16xbf16>
    %c3_216 = arith.constant 3 : index
    %c0_217 = arith.constant 0 : index
    %c0_218 = arith.constant 0 : index
    %225 = vector.load %arg4[%c3_216, %c0_217, %c0_218] : memref<9x16x16xbf16, #tpu.memory_space<vmem>>, vector<1x16x16xbf16>
    %226 = vector.shape_cast %225 : vector<1x16x16xbf16> to vector<16x16xbf16>
    %cst_219 = arith.constant dense<0.000000e+00> : vector<8x16xf32>
    %227 = tpu.matmul %224, %226, %cst_219 {dimension_numbers = #tpu.dot_dimension_numbers<[1], [0], [0], [1], [0, 0, 1, 1], [], []>} : vector<8x16xbf16>, vector<16x16xbf16>, vector<8x16xf32> -> vector<8x16xf32>
    %228 = arith.addf %222, %227 : vector<8x16xf32>
    %c7_220 = arith.constant 7 : index
    %c0_221 = arith.constant 0 : index
    %229 = vector.load %arg7[%c7_220, %c0_221] : memref<22x16xf32, #tpu.memory_space<vmem>>, vector<8x16xf32>
    %230 = arith.truncf %229 : vector<8x16xf32> to vector<8x16xbf16>
    %c4_222 = arith.constant 4 : index
    %c0_223 = arith.constant 0 : index
    %c0_224 = arith.constant 0 : index
    %231 = vector.load %arg4[%c4_222, %c0_223, %c0_224] : memref<9x16x16xbf16, #tpu.memory_space<vmem>>, vector<1x16x16xbf16>
    %232 = vector.shape_cast %231 : vector<1x16x16xbf16> to vector<16x16xbf16>
    %cst_225 = arith.constant dense<0.000000e+00> : vector<8x16xf32>
    %233 = tpu.matmul %230, %232, %cst_225 {dimension_numbers = #tpu.dot_dimension_numbers<[1], [0], [0], [1], [0, 0, 1, 1], [], []>} : vector<8x16xbf16>, vector<16x16xbf16>, vector<8x16xf32> -> vector<8x16xf32>
    %234 = arith.addf %228, %233 : vector<8x16xf32>
    %c8_226 = arith.constant 8 : index
    %c0_227 = arith.constant 0 : index
    %235 = vector.load %arg7[%c8_226, %c0_227] : memref<22x16xf32, #tpu.memory_space<vmem>>, vector<8x16xf32>
    %236 = arith.truncf %235 : vector<8x16xf32> to vector<8x16xbf16>
    %c5_228 = arith.constant 5 : index
    %c0_229 = arith.constant 0 : index
    %c0_230 = arith.constant 0 : index
    %237 = vector.load %arg4[%c5_228, %c0_229, %c0_230] : memref<9x16x16xbf16, #tpu.memory_space<vmem>>, vector<1x16x16xbf16>
    %238 = vector.shape_cast %237 : vector<1x16x16xbf16> to vector<16x16xbf16>
    %cst_231 = arith.constant dense<0.000000e+00> : vector<8x16xf32>
    %239 = tpu.matmul %236, %238, %cst_231 {dimension_numbers = #tpu.dot_dimension_numbers<[1], [0], [0], [1], [0, 0, 1, 1], [], []>} : vector<8x16xbf16>, vector<16x16xbf16>, vector<8x16xf32> -> vector<8x16xf32>
    %240 = arith.addf %234, %239 : vector<8x16xf32>
    %c12_232 = arith.constant 12 : index
    %c0_233 = arith.constant 0 : index
    %241 = vector.load %arg7[%c12_232, %c0_233] : memref<22x16xf32, #tpu.memory_space<vmem>>, vector<8x16xf32>
    %242 = arith.truncf %241 : vector<8x16xf32> to vector<8x16xbf16>
    %c6_234 = arith.constant 6 : index
    %c0_235 = arith.constant 0 : index
    %c0_236 = arith.constant 0 : index
    %243 = vector.load %arg4[%c6_234, %c0_235, %c0_236] : memref<9x16x16xbf16, #tpu.memory_space<vmem>>, vector<1x16x16xbf16>
    %244 = vector.shape_cast %243 : vector<1x16x16xbf16> to vector<16x16xbf16>
    %cst_237 = arith.constant dense<0.000000e+00> : vector<8x16xf32>
    %245 = tpu.matmul %242, %244, %cst_237 {dimension_numbers = #tpu.dot_dimension_numbers<[1], [0], [0], [1], [0, 0, 1, 1], [], []>} : vector<8x16xbf16>, vector<16x16xbf16>, vector<8x16xf32> -> vector<8x16xf32>
    %246 = arith.addf %240, %245 : vector<8x16xf32>
    %c13_238 = arith.constant 13 : index
    %c0_239 = arith.constant 0 : index
    %247 = vector.load %arg7[%c13_238, %c0_239] : memref<22x16xf32, #tpu.memory_space<vmem>>, vector<8x16xf32>
    %248 = arith.truncf %247 : vector<8x16xf32> to vector<8x16xbf16>
    %c7_240 = arith.constant 7 : index
    %c0_241 = arith.constant 0 : index
    %c0_242 = arith.constant 0 : index
    %249 = vector.load %arg4[%c7_240, %c0_241, %c0_242] : memref<9x16x16xbf16, #tpu.memory_space<vmem>>, vector<1x16x16xbf16>
    %250 = vector.shape_cast %249 : vector<1x16x16xbf16> to vector<16x16xbf16>
    %cst_243 = arith.constant dense<0.000000e+00> : vector<8x16xf32>
    %251 = tpu.matmul %248, %250, %cst_243 {dimension_numbers = #tpu.dot_dimension_numbers<[1], [0], [0], [1], [0, 0, 1, 1], [], []>} : vector<8x16xbf16>, vector<16x16xbf16>, vector<8x16xf32> -> vector<8x16xf32>
    %252 = arith.addf %246, %251 : vector<8x16xf32>
    %c14_244 = arith.constant 14 : index
    %c0_245 = arith.constant 0 : index
    %253 = vector.load %arg7[%c14_244, %c0_245] : memref<22x16xf32, #tpu.memory_space<vmem>>, vector<8x16xf32>
    %254 = arith.truncf %253 : vector<8x16xf32> to vector<8x16xbf16>
    %c8_246 = arith.constant 8 : index
    %c0_247 = arith.constant 0 : index
    %c0_248 = arith.constant 0 : index
    %255 = vector.load %arg4[%c8_246, %c0_247, %c0_248] : memref<9x16x16xbf16, #tpu.memory_space<vmem>>, vector<1x16x16xbf16>
    %256 = vector.shape_cast %255 : vector<1x16x16xbf16> to vector<16x16xbf16>
    %cst_249 = arith.constant dense<0.000000e+00> : vector<8x16xf32>
    %257 = tpu.matmul %254, %256, %cst_249 {dimension_numbers = #tpu.dot_dimension_numbers<[1], [0], [0], [1], [0, 0, 1, 1], [], []>} : vector<8x16xbf16>, vector<16x16xbf16>, vector<8x16xf32> -> vector<8x16xf32>
    %258 = arith.addf %252, %257 : vector<8x16xf32>
    %259 = vector.broadcast %205 : vector<1x16xf32> to vector<8x16xf32>
    %260 = arith.addf %258, %259 : vector<8x16xf32>
    %cst_250 = arith.constant 0.000000e+00 : f32
    %261 = vector.broadcast %cst_250 : f32 to vector<8x16xf32>
    %262 = arith.maximumf %260, %261 : vector<8x16xf32>
    %c0_251 = arith.constant 0 : index
    %c0_252 = arith.constant 0 : index
    %263 = vector.load %arg8[%c0_251, %c0_252] : memref<8x16xf32, #tpu.memory_space<vmem>>, vector<8x16xf32>
    tpu.vector_store %arg8[%c0_251, %c0_252], %262 {strides = array<i32>} : memref<8x16xf32, #tpu.memory_space<vmem>>, vector<8x16xf32>,
    %c0_253 = arith.constant 0 : index
    %c0_254 = arith.constant 0 : index
    %264 = tpu.strided_load %arg8[%c0_253, %c0_254] {strides = array<i32: 2, 1>} : memref<8x16xf32, #tpu.memory_space<vmem>>, vector<1x16xf32>
    %c1_255 = arith.constant 1 : index
    %c0_256 = arith.constant 0 : index
    %265 = tpu.strided_load %arg8[%c1_255, %c0_256] {strides = array<i32: 2, 1>} : memref<8x16xf32, #tpu.memory_space<vmem>>, vector<1x16xf32>
    %c6_257 = arith.constant 6 : index
    %c0_258 = arith.constant 0 : index
    %266 = tpu.strided_load %arg8[%c6_257, %c0_258] {strides = array<i32: 2, 1>} : memref<8x16xf32, #tpu.memory_space<vmem>>, vector<1x16xf32>
    %c7_259 = arith.constant 7 : index
    %c0_260 = arith.constant 0 : index
    %267 = tpu.strided_load %arg8[%c7_259, %c0_260] {strides = array<i32: 2, 1>} : memref<8x16xf32, #tpu.memory_space<vmem>>, vector<1x16xf32>
    %268 = arith.maximumf %264, %265 : vector<1x16xf32>
    %269 = arith.maximumf %266, %267 : vector<1x16xf32>
    %270 = arith.maximumf %268, %269 : vector<1x16xf32>
    %c1_261 = arith.constant 1 : index
    %c0_262 = arith.constant 0 : index
    %c0_263 = arith.constant 0 : index
    %c0_264 = arith.constant 0 : index
    %271 = vector.load %arg6[%c1_261, %c0_262, %c0_263, %c0_264] : memref<2x1x1x16xf32, #tpu.memory_space<vmem>>, vector<1x1x1x16xf32>
    %272 = vector.shape_cast %271 : vector<1x1x1x16xf32> to vector<1x16xf32>
    %273 = vector.shape_cast %270 : vector<1x16xf32> to vector<1x1x1x16xf32>
    tpu.vector_store %arg6[%c1_261, %c0_262, %c0_263, %c0_264], %273 {strides = array<i32>} : memref<2x1x1x16xf32, #tpu.memory_space<vmem>>, vector<1x1x1x16xf32>,
    return
  }
  func.func @transform_0(%arg0: i32) -> (i32, i32, i32) {
    %c0_i32 = arith.constant 0 : i32
    %c0_i32_0 = arith.constant 0 : i32
    %c0_i32_1 = arith.constant 0 : i32
    return %arg0, %c0_i32, %c0_i32_0 : i32, i32, i32
  }
  func.func @transform_1(%arg0: i32) -> (i32, i32, i32) {
    %c0_i32 = arith.constant 0 : i32
    %c0_i32_0 = arith.constant 0 : i32
    %c0_i32_1 = arith.constant 0 : i32
    %c0_i32_2 = arith.constant 0 : i32
    return %c0_i32, %c0_i32_0, %c0_i32_1 : i32, i32, i32
  }
  func.func @transform_2(%arg0: i32) -> (i32, i32) {
    %c0_i32 = arith.constant 0 : i32
    %c0_i32_0 = arith.constant 0 : i32
    %c0_i32_1 = arith.constant 0 : i32
    return %c0_i32, %c0_i32_0 : i32, i32
  }
  func.func @transform_3(%arg0: i32) -> (i32, i32, i32) {
    %c0_i32 = arith.constant 0 : i32
    %c0_i32_0 = arith.constant 0 : i32
    %c0_i32_1 = arith.constant 0 : i32
    %c0_i32_2 = arith.constant 0 : i32
    return %c0_i32, %c0_i32_0, %c0_i32_1 : i32, i32, i32
  }
  func.func @transform_4(%arg0: i32) -> (i32, i32) {
    %c0_i32 = arith.constant 0 : i32
    %c0_i32_0 = arith.constant 0 : i32
    %c0_i32_1 = arith.constant 0 : i32
    return %c0_i32, %c0_i32_0 : i32, i32
  }
  func.func @transform_5(%arg0: i32) -> (i32, i32, i32, i32) {
    %c0_i32 = arith.constant 0 : i32
    %c0_i32_0 = arith.constant 0 : i32
    %c0_i32_1 = arith.constant 0 : i32
    %c0_i32_2 = arith.constant 0 : i32
    return %arg0, %c0_i32, %c0_i32_0, %c0_i32_1 : i32, i32, i32, i32
  }
}

</mosaic_0001>

<bundles_post_ra>
// kernel: forward.3
= control target key start
LH: loop header
LB: loop body
LE: loop exit
PB: predicated region body
PF: predicated region fallthrough
CT: control target
= control target key end

     0   :  { %vm43_vm0 = vcmask 1043456   ;;  %vm36_vm1 = vcmask 64512   ;;  %s3279_s0 = inlined_call_operand.vmem [shape: f32[2,36,8], index: 0, kind: input, shape index: {}]   ;;  %s3280_s1 = inlined_call_operand.vmem [shape: bf16[9,8,16], index: 1, kind: input, shape index: {}]   ;;  %s3281_s2 = inlined_call_operand.vmem [shape: f32[1,16], index: 2, kind: input, shape index: {}]   ;;  %s3282_s3 = inlined_call_operand.vmem [shape: bf16[9,16,16], index: 3, kind: input, shape index: {}]   ;;  %s3283_s4 = inlined_call_operand.vmem [shape: f32[1,16], index: 4, kind: input, shape index: {}]   ;;  %s3284_s5 = inlined_call_operand.hbm [shape: f32[2,1,1,16], index: 5, kind: output, shape index: {}]  }
   0x1   :  { %v2276_v0 = vld [vmem:[%s3280_s1 + $0x4] sm:$0xf]  ;;  %v28_v1 = vld [vmem:[%s3280_s1] sm:$0xf]  ;;  %v30_v5 = vld [vmem:[%s3279_s0 + $0x9] sm:$0xff] }
   0x2   :  { %v29_v2 = vld [vmem:[%s3279_s0 + $0x1] sm:$0xff]  ;;  %2733 = vmatprep.subr.msk.bf16.mxu0 %vm43_vm0, %v2276_v0  ;;  %2734 = vmatprep.subr.msk.bf16.mxu1 %vm43_vm0, %v28_v1  ;;  %v45_v3 = vsel %vm43_vm0, %v2276_v0, 0  ;;  %v102_v4 = vsel %vm43_vm0, %v28_v1, 0  ;;  %v31_v10 = vld [vmem:[%s3279_s0 + $0x11] sm:$0x3f] }
   0x3   :  { %v23_v6 = vld [vmem:[%s3279_s0] sm:$0xff]  ;;  %v24_v7 = vld [vmem:[%s3279_s0 + $0x8] sm:$0xff]  ;;  %2518 = vmatpush3.bf16.msra.mxu0 %v45_v3  ;;  %2524 = vmatpush3.bf16.msra.mxu1 %v102_v4  ;;  %v32_v8 = vpack.c.bf16 %v30_v5, %v29_v2  ;;  %v25_v11 = vld [vmem:[%s3279_s0 + $0x10] sm:$0x3f]  ;;  %v33_v13 = vpack.c.bf16 %v31_v10, %v31_v10 }
   0x4   :  { %v26_v9 = vpack.c.bf16 %v24_v7, %v23_v6  ;;  %v2281_v12 = vld [vmem:[%s3280_s1 + $0x8] sm:$0xf]  ;;  %v27_v14 = vpack.c.bf16 %v25_v11, %v25_v11  ;;  %v2284_v16 = vld [vmem:[%s3280_s1 + $0xc] sm:$0xf]  ;;  %v2287_v22 = vld [vmem:[%s3280_s1 + $0x10] sm:$0xf] }
   0x5   :  { %2735 = vmatprep.subr.msk.bf16.mxu0 %vm43_vm0, %v2281_v12  ;;  %v166_v15 = vsel %vm43_vm0, %v2281_v12, 0  ;;  %v152_v17 = vld [vmem:[%s3279_s0 + $0x2] sm:$0xff]  ;;  %v153_v18 = vld [vmem:[%s3279_s0 + $0xa] sm:$0xff]  ;;  %2519 = vmatprep.mubr.msk.bf16.mxu0 %vm36_vm1, %v32_v8  ;;  %v233_v20 = vsel %vm43_vm0, %v2284_v16, 0  ;;  %v154_v24 = vld [vmem:[%s3279_s0 + $0x12] sm:$0x3f] }
   0x6   :  { %2525 = vmatprep.mubr.msk.bf16.mxu1 %vm36_vm1, %v26_v9  ;;  %v155_v19 = vpack.c.bf16 %v153_v18, %v152_v17  ;;  %v219_v21 = vld [vmem:[%s3279_s0 + $0x6] sm:$0xff]  ;;  %2520 = vmatmul.mubr.msk.bf16.vlgmr.msra.gmra.mrb[0].mxu0 %vm36_vm1, %v33_v13  ;;  %v2889_v23 = vld [vmem:[%s3279_s0 + $0xe] sm:$0xff]  ;;  %v221_v26 = vld [vmem:[%s3279_s0 + $0x16] sm:$0x3f]  ;;  %v156_v32 = vpack.c.bf16 %v154_v24, %v154_v24  ;;  %v300_v35 = vsel %vm43_vm0, %v2287_v22, 0 }
   0x7   :  { %2526 = vmatmul.mubr.msk.bf16.vlgmr.msra.gmra.mrb[0].mxu1 %vm36_vm1, %v27_v14  ;;  %2530 = vmatpush3.bf16.msra.mxu0 %v166_v15  ;;  %v222_v25 = vpack.c.bf16 %v2889_v23, %v219_v21  ;;  %v2290_v27 = vld [vmem:[%s3280_s1 + $0x14] sm:$0xf]  ;;  %v286_v28 = vld [vmem:[%s3279_s0 + $0x7] sm:$0xff]  ;;  %v2293_v30 = vld [vmem:[%s3280_s1 + $0x18] sm:$0xf]  ;;  %v223_v33 = vpack.c.bf16 %v221_v26, %v221_v26 }
   0x8   :  { %2736 = vmatprep.subr.msk.bf16.mxu1 %vm43_vm0, %v2284_v16  ;;  %2531 = vmatprep.mubr.msk.bf16.mxu0 %vm36_vm1, %v155_v19  ;;  %v287_v29 = vld [vmem:[%s3279_s0 + $0xf] sm:$0xff]  ;;  %v2296_v31 = vld [vmem:[%s3280_s1 + $0x1c] sm:$0xf]  ;;  %v367_v37 = vsel %vm43_vm0, %v2290_v27, 0  ;;  %v434_v38 = vsel %vm43_vm0, %v2293_v30, 0 }
   0x9   :  { %2536 = vmatpush3.bf16.msra.mxu1 %v233_v20  ;;  %2737 = vmatprep.subr.msk.bf16.mxu0 %vm43_vm0, %v2287_v22  ;;  %v354_v34 = vld [vmem:[%s3279_s0 + $0x10] sm:$0xff]  ;;  %v289_v36 = vpack.c.bf16 %v287_v29, %v286_v28  ;;  %v501_v39 = vsel %vm43_vm0, %v2296_v31, 0  ;;  %v355_v42 = vld [vmem:[%s3279_s0 + $0x18] sm:$0x3f]  ;;  %v2299_v50 = vld [vmem:[%s3280_s1 + $0x20] sm:$0xf] }
   0xa   :  { %2537 = vmatprep.mubr.msk.bf16.mxu1 %vm36_vm1, %v222_v25  ;;  %2738 = vmatprep.subr.msk.bf16.mxu1 %vm43_vm0, %v2290_v27  ;;  %v288_v40 = vld [vmem:[%s3279_s0 + $0x17] sm:$0x3f]  ;;  %v356_v41 = vpack.c.bf16 %v354_v34, %v24_v7  ;;  %v420_v43 = vld [vmem:[%s3279_s0 + $0xc] sm:$0xff]  ;;  %v357_v48 = vpack.c.bf16 %v355_v42, %v355_v42  ;;  %v489_v53 = vld [vmem:[%s3279_s0 + $0x1d] sm:$0x3f] }
   0xb   :  { %v421_v44 = vld [vmem:[%s3279_s0 + $0x14] sm:$0xff]  ;;  %v290_v47 = vpack.c.bf16 %v288_v40, %v288_v40  ;;  %v422_v51 = vld [vmem:[%s3279_s0 + $0x1c] sm:$0x3f] }
   0xc   :  { %v487_v45 = vld [vmem:[%s3279_s0 + $0xd] sm:$0xff]  ;;  %v488_v46 = vld [vmem:[%s3279_s0 + $0x15] sm:$0xff]  ;;  %v423_v49 = vpack.c.bf16 %v421_v44, %v420_v43 }
   0xd   :  { %v490_v52 = vpack.c.bf16 %v488_v46, %v487_v45  ;;  %v555_v54 = vld [vmem:[%s3279_s0 + $0x16] sm:$0xff] }
   0xe   :  { %2532 = vmatmul.mubr.msk.bf16.vlgmr.msra.gmra.mrb[4].mxu0 %vm36_vm1, %v156_v32 }
   0xf   :  { %2538 = vmatmul.mubr.msk.bf16.vlgmr.msra.gmra.mrb[4].mxu1 %vm36_vm1, %v223_v33  ;;  %2542 = vmatpush3.bf16.msra.mxu0 %v300_v35 }
  0x10   :  { %2543 = vmatprep.mubr.msk.bf16.mxu0 %vm36_vm1, %v289_v36  ;;  %2548 = vmatpush3.bf16.msra.mxu1 %v367_v37 }
  0x11   :  { %2739 = vmatprep.subr.msk.bf16.mxu0 %vm43_vm0, %v2293_v30  ;;  %2549 = vmatprep.mubr.msk.bf16.mxu1 %vm36_vm1, %v356_v41 }
  0x12   :  { %2740 = vmatprep.subr.msk.bf16.mxu1 %vm43_vm0, %v2296_v31 }
  0x16   :  { %2544 = vmatmul.mubr.msk.bf16.vlgmr.msra.gmra.mrb[8].mxu0 %vm36_vm1, %v290_v47 }
  0x17   :  { %2550 = vmatmul.mubr.msk.bf16.vlgmr.msra.gmra.mrb[8].mxu1 %vm36_vm1, %v357_v48  ;;  %2554 = vmatpush3.bf16.msra.mxu0 %v434_v38 }
  0x18   :  { %2555 = vmatprep.mubr.msk.bf16.mxu0 %vm36_vm1, %v423_v49  ;;  %2560 = vmatpush3.bf16.msra.mxu1 %v501_v39 }
  0x19   :  { %2741 = vmatprep.subr.msk.bf16.mxu0 %vm43_vm0, %v2299_v50 }
  0x1a   :  { %10 = vsyncpa [#allocation5], 0  ;;  %2561 = vmatprep.mubr.msk.bf16.mxu1 %vm36_vm1, %v490_v52  ;;  %v424_v55 = vpack.c.bf16 %v422_v51, %v422_v51  ;;  %v491_v56 = vpack.c.bf16 %v489_v53, %v489_v53  ;;  %v557_v57 = vpack.c.bf16 %v555_v54, %v2889_v23  ;;  %v568_v58 = vsel %vm43_vm0, %v2299_v50, 0  ;;  %v556_v59 = vld [vmem:[%s3279_s0 + $0x1e] sm:$0x3f]  ;;  %v2756_v61 = vld [vmem:[%s3282_s3 + $0x8] sm:$0xff]  }
  0x1b   :  { %v558_v60 = vpack.c.bf16 %v556_v59, %v556_v59  ;;  %v2757_v62 = vld [vmem:[%s3282_s3] sm:$0xff]   ;;  %v2798_v63 = vmov 0.0   ;;  %vm2799_vm2 = vmmov 0   ;;  %vm636_vm3 = vcmask 128000  }
  0x1c   :  { %2571 = vmatprep.subr.bf16.mxu1 %v2798_v63  ;;  %v2992_v53 = vld [vmem:[%s3281_s2] ss:$0 sm:$0xff]  ;;  %vm633_vm4 = vcmask 130048   ;;  %vm1150_vm5 = vcmask 122880  }
  0x1e   :  { %2556 = vmatmul.mubr.msk.bf16.vlgmr.msra.gmra.mrb[12].mxu0 %vm36_vm1, %v424_v55 }
  0x1f   :  { %2562 = vmatmul.mubr.msk.bf16.vlgmr.msra.gmra.mrb[12].mxu1 %vm36_vm1, %v491_v56  ;;  %2566 = vmatpush3.bf16.msra.mxu0 %v568_v58 }
  0x20   :  { %2567 = vmatprep.mubr.msk.bf16.mxu0 %vm36_vm1, %v557_v57  ;;  %2577 = vmatprep.subr.bf16.mxu0 %v2798_v63 }
  0x21   :  { %2572 = vmatpush3.bf16.msra.mxu1 %v2756_v61  ;;  %2573 = vmatprep.mubr.msk.bf16.mxu1 %vm2799_vm2, %v2798_v63 }
  0x22   :  { %2583 = vmatprep.subr.bf16.mxu1 %v2798_v63 }
  0x26   :  { %2568 = vmatmul.mubr.msk.bf16.vlgmr.msra.gmra.mrb[16].mxu0 %vm36_vm1, %v558_v60 }
  0x27   :  { %2578 = vmatpush3.bf16.msra.mxu0 %v2757_v62  ;;  %2579 = vmatprep.mubr.msk.bf16.mxu0 %vm2799_vm2, %v2798_v63 }
  0x28   :  { %2589 = vmatprep.subr.bf16.mxu0 %v2798_v63 }
  0xd9   :  { %v2521_v0 = vpop.f32.mrb[0].mxu0 }
  0xda   :  { %v2527_v1 = vpop.f32.mrb[0].mxu1  ;;  %v81_v3 = vpop.f32.mrb[1].mxu0 }
  0xdb   :  { %v147_v2 = vadd.f32 %v2527_v1, %v2521_v0  ;;  %v138_v4 = vpop.f32.mrb[1].mxu1  ;;  %v2522_v6 = vpop.f32.mrb[2].mxu0 }
  0xdc   :  { %v139_v5 = vadd.f32 %v138_v4, %v81_v3  ;;  %v2528_v7 = vpop.f32.mrb[2].mxu1  ;;  %v84_v8 = vpop.f32.mrb[3].mxu0 }
  0xdd   :  { %v141_v9 = vpop.f32.mrb[3].mxu1 }
  0xde   :  { %v142_v10 = vadd.f32 %v141_v9, %v84_v8  ;;  %v2758_v8 = vld [vmem:[%s3282_s3 + $0x10] sm:$0xff]  }
  0xe1   :  { %v2533_v11 = vpop.f32.mrb[4].mxu0 }
  0xe2   :  { %v2539_v12 = vpop.f32.mrb[4].mxu1  ;;  %v218_v13 = vadd.f32 %v2533_v11, %v147_v2  ;;  %v202_v14 = vpop.f32.mrb[5].mxu0 }
  0xe3   :  { %v269_v15 = vpop.f32.mrb[5].mxu1  ;;  %v216_v16 = vadd.f32 %v202_v14, %v139_v5  ;;  %v2534_v17 = vpop.f32.mrb[6].mxu0  ;;  %v2759_v5 = vld [vmem:[%s3282_s3 + $0x18] sm:$0xff]   ;;  %v2760_v14 = vld [vmem:[%s3282_s3 + $0x20] sm:$0xff]  }
  0xe4   :  { %v2540_v18 = vpop.f32.mrb[6].mxu1  ;;  %v285_v19 = vadd.f32 %v2539_v12, %v218_v13  ;;  %v205_v20 = vpop.f32.mrb[7].mxu0  ;;  %v2761_v12 = vld [vmem:[%s3282_s3 + $0x28] sm:$0xff]  }
  0xe5   :  { %v272_v21 = vpop.f32.mrb[7].mxu1  ;;  %v217_v22 = vadd.f32 %v205_v20, %v142_v10  ;;  %v283_v23 = vadd.f32 %v269_v15, %v216_v16  ;;  %v2763_v18 = vld [vmem:[%s3282_s3 + $0x38] sm:$0xff]   ;;  %v2762_v20 = vld [vmem:[%s3282_s3 + $0x30] sm:$0xff]  }
  0xe7   :  { %v284_v24 = vadd.f32 %v272_v21, %v217_v22  ;;  %v2344_v21 = vld [vmem:[%s3280_s1 + $0x4] sm:$0xf] }
  0xe9   :  { %v2545_v25 = vpop.f32.mrb[8].mxu0 }
  0xea   :  { %v2551_v26 = vpop.f32.mrb[8].mxu1  ;;  %v352_v27 = vadd.f32 %v2545_v25, %v285_v19  ;;  %v336_v28 = vpop.f32.mrb[9].mxu0 }
  0xeb   :  { %v403_v29 = vpop.f32.mrb[9].mxu1  ;;  %v350_v30 = vadd.f32 %v336_v28, %v283_v23  ;;  %v2546_v31 = vpop.f32.mrb[10].mxu0  ;;  %v2341_v23 = vld [vmem:[%s3279_s0 + $0x29] sm:$0xff] }
  0xec   :  { %v2552_v32 = vpop.f32.mrb[10].mxu1  ;;  %v419_v33 = vadd.f32 %v2551_v26, %v352_v27  ;;  %v339_v34 = vpop.f32.mrb[11].mxu0  ;;  %v2352_v31 = vld [vmem:[%s3280_s1 + $0x8] sm:$0xf] }
  0xed   :  { %v406_v35 = vpop.f32.mrb[11].mxu1  ;;  %v351_v36 = vadd.f32 %v339_v34, %v284_v24  ;;  %v417_v37 = vadd.f32 %v403_v29, %v350_v30  ;;  %v2342_v24 = vld [vmem:[%s3279_s0 + $0x31] sm:$0xff]  ;;  %v1173_v29 = vsel %vm43_vm0, %v2344_v21, 0  ;;  %v2764_v30 = vld [vmem:[%s3282_s3 + $0x40] sm:$0xff]  }
  0xee   :  { %v1163_v27 = vpack.c.bf16 %v2342_v24, %v2341_v23  ;;  %v1159_v34 = vld [vmem:[%s3280_s1] sm:$0xf]  ;;  %v2387_v24 = vld [vmem:[%s3279_s0 + $0x46] sm:$0x3f] }
  0xef   :  { %v418_v38 = vadd.f32 %v406_v35, %v351_v36  ;;  %v2349_v35 = vld [vmem:[%s3279_s0 + $0x2a] sm:$0xff]  ;;  %v2350_v36 = vld [vmem:[%s3279_s0 + $0x32] sm:$0xff] }
  0xf1   :  { %v2557_v39 = vpop.f32.mrb[12].mxu0 }
  0xf2   :  { %v2563_v40 = vpop.f32.mrb[12].mxu1  ;;  %v486_v41 = vadd.f32 %v2557_v39, %v419_v33  ;;  %v470_v42 = vpop.f32.mrb[13].mxu0  ;;  %v2343_v33 = vld [vmem:[%s3279_s0 + $0x39] sm:$0x3f]  ;;  %v2339_v39 = vld [vmem:[%s3279_s0 + $0x30] sm:$0xff] }
  0xf3   :  { %v537_v43 = vpop.f32.mrb[13].mxu1  ;;  %v484_v44 = vadd.f32 %v470_v42, %v417_v37  ;;  %v2558_v45 = vpop.f32.mrb[14].mxu0  ;;  %v1164_v37 = vpack.c.bf16 %v2343_v33, %v2343_v33  ;;  %v1293_v42 = vsel %vm43_vm0, %v2352_v31, 0 }
  0xf4   :  { %v2564_v46 = vpop.f32.mrb[14].mxu1  ;;  %v553_v47 = vadd.f32 %v2563_v40, %v486_v41  ;;  %v473_v48 = vpop.f32.mrb[15].mxu0  ;;  %v1283_v41 = vpack.c.bf16 %v2350_v36, %v2349_v35 }
  0xf5   :  { %v540_v49 = vpop.f32.mrb[15].mxu1  ;;  %v485_v50 = vadd.f32 %v473_v48, %v418_v38  ;;  %v551_v51 = vadd.f32 %v537_v43, %v484_v44  ;;  %v2338_v38 = vld [vmem:[%s3279_s0 + $0x28] sm:$0xff]  ;;  %v2364_v44 = vld [vmem:[%s3280_s1 + $0x10] sm:$0xf]  ;;  %v1230_v46 = vsel %vm43_vm0, %v1159_v34, 0 }
  0xf6   :  { %v1157_v43 = vpack.c.bf16 %v2339_v39, %v2338_v38  ;;  %v2358_v48 = vld [vmem:[%s3280_s1 + $0xc] sm:$0xf] }
  0xf7   :  { %v552_v52 = vadd.f32 %v540_v49, %v485_v50  ;;  %v2361_v49 = vld [vmem:[%s3279_s0 + $0x2f] sm:$0xff]  ;;  %v2362_v50 = vld [vmem:[%s3279_s0 + $0x37] sm:$0xff] }
  0xf9   :  { %v2569_v54 = vpop.f32.mrb[16].mxu0 }
  0xfa   :  { %v620_v55 = vadd.f32 %v2569_v54, %v553_v47  ;;  %v604_v56 = vpop.f32.mrb[17].mxu0  ;;  %v2351_v47 = vld [vmem:[%s3279_s0 + $0x3a] sm:$0x3f]  ;;  %v2355_v54 = vld [vmem:[%s3279_s0 + $0x2e] sm:$0xff] }
  0xfb   :  { %v618_v57 = vadd.f32 %v604_v56, %v551_v51  ;;  %v2570_v58 = vpop.f32.mrb[18].mxu0  ;;  %v2340_v51 = vld [vmem:[%s3279_s0 + $0x38] sm:$0x3f]  ;;  %v1415_v56 = vpack.c.bf16 %v2362_v50, %v2361_v49 }
  0xfc   :  { %v629_v59 = vadd.f32 %v2992_v53, %v620_v55  ;;  %v607_v60 = vpop.f32.mrb[19].mxu0  ;;  %v2356_v55 = vld [vmem:[%s3279_s0 + $0x36] sm:$0xff]  ;;  %v1425_v58 = vsel %vm43_vm0, %v2364_v44, 0 }
  0xfd   :  { %v627_v61 = vadd.f32 %v2992_v53, %v618_v57  ;;  %v619_v62 = vadd.f32 %v607_v60, %v552_v52  ;;  %v1284_v52 = vpack.c.bf16 %v2351_v47, %v2351_v47  ;;  %v1158_v57 = vpack.c.bf16 %v2340_v51, %v2340_v51  ;;  %v2376_v60 = vld [vmem:[%s3280_s1 + $0x18] sm:$0xf] }
  0xfe   :  { %v632_v0 = vmax.f32 %v629_v59, 0.0  ;;  %v1349_v59 = vpack.c.bf16 %v2356_v55, %v2355_v54 }
  0xff   :  { %v630_v1 = vmax.f32 %v627_v61, 0.0  ;;  %v628_v2 = vadd.f32 %v2992_v53, %v619_v62  ;;  %v1359_v61 = vsel %vm43_vm0, %v2358_v48, 0  ;;  %v2363_v62 = vld [vmem:[%s3279_s0 + $0x3f] sm:$0x3f] }
 0x100   :  { %637 = vst.msk [vmem:[#allocation2 + $0x10] sm:$0x3f] %vm636_vm3, %v632_v0  ;;  %v2370_v0 = vld [vmem:[%s3280_s1 + $0x14] sm:$0xf] }
 0x101   :  { %634 = vst.msk [vmem:[#allocation2] sm:$0xff] %vm633_vm4, %v630_v1  ;;  %v631_v3 = vmax.f32 %v628_v2, 0.0  ;;  %v2373_v1 = vld [vmem:[%s3279_s0 + $0x34] sm:$0xff]  ;;  %v2374_v2 = vld [vmem:[%s3279_s0 + $0x3c] sm:$0xff] }
 0x103   :  { %635 = vst.msk [vmem:[#allocation2 + $0x8] sm:$0xff] %vm633_vm4, %v631_v3  ;;  %v2357_v3 = vld [vmem:[%s3279_s0 + $0x3e] sm:$0x3f] }
 0x108   :  { %v639_v4 = vld [vmem:[#allocation2] sm:$0xff] }
 0x109   :  { %v640_v6 = vpack.c.bf16 %v639_v4, %v639_v4  ;;  %v1416_v4 = vpack.c.bf16 %v2363_v62, %v2363_v62 }
 0x10a   :  { %v643_v7 = vld [vmem:[#allocation2 + $0x1] sm:$0xff]  ;;  %v1021_v25 = vld [vmem:[#allocation2 + $0xd] sm:$0xff] }
 0x10b   :  { %2580 = vmatmul.mubr.msk.bf16.vlgmr.msra.gmra.mrb[20].mxu0 %vm633_vm4, %v640_v6  ;;  %v644_v9 = vpack.c.bf16 %v643_v7, %v643_v7  ;;  %v801_v10 = vld [vmem:[#allocation2 + $0x6] sm:$0xff]  ;;  %v1022_v28 = vpack.c.bf16 %v1021_v25, %v1021_v25  ;;  %v1076_v40 = vld [vmem:[#allocation2 + $0xe] sm:$0xff]  ;;  %v1547_v6 = vpack.c.bf16 %v2374_v2, %v2373_v1  ;;  %v1350_v7 = vpack.c.bf16 %v2357_v3, %v2357_v3 }
 0x10c   :  { %2590 = vmatpush3.bf16.msra.mxu0 %v2759_v5  ;;  %2591 = vmatprep.mubr.msk.bf16.mxu0 %vm2799_vm2, %v2798_v63  ;;  %v746_v11 = vld [vmem:[#allocation2 + $0x2] sm:$0xff]  ;;  %v802_v13 = vpack.c.bf16 %v801_v10, %v801_v10  ;;  %v966_v26 = vld [vmem:[#allocation2 + $0xc] sm:$0xff]  ;;  %v1077_v45 = vpack.c.bf16 %v1076_v40, %v1076_v40  ;;  %v2368_v5 = vld [vmem:[%s3279_s0 + $0x38] sm:$0xff] }
 0x10d   :  { %2574 = vmatmul.mubr.msk.bf16.vlgmr.msra.gmra.mrb[16].mxu1 %vm633_vm4, %v644_v9  ;;  %2601 = vmatprep.subr.bf16.mxu0 %v2798_v63  ;;  %v747_v15 = vpack.c.bf16 %v746_v11, %v746_v11  ;;  %v911_v16 = vld [vmem:[#allocation2 + $0x8] sm:$0xff]  ;;  %v967_v32 = vpack.c.bf16 %v966_v26, %v966_v26  ;;  %v1481_v9 = vpack.c.bf16 %v2368_v5, %v2339_v39  ;;  %v2388_v10 = vld [vmem:[%s3280_s1 + $0x20] sm:$0xf]  ;;  %v1491_v11 = vsel %vm43_vm0, %v2370_v0, 0 }
 0x10e   :  { %2584 = vmatpush3.bf16.msra.mxu1 %v2758_v8  ;;  %2585 = vmatprep.mubr.msk.bf16.mxu1 %vm2799_vm2, %v2798_v63  ;;  %v856_v17 = vld [vmem:[#allocation2 + $0x7] sm:$0xff]  ;;  %v912_v19 = vpack.c.bf16 %v911_v16, %v911_v16  ;;  %v1557_v8 = vsel %vm43_vm0, %v2376_v60, 0  ;;  %v1680_v26 = vpack.c.bf16 %v2387_v24, %v2387_v24 }
 0x10f   :  { %2595 = vmatprep.subr.bf16.mxu1 %v2798_v63  ;;  %v857_v22 = vpack.c.bf16 %v856_v17, %v856_v17  ;;  %v2379_v17 = vld [vmem:[%s3279_s0 + $0x35] sm:$0xff]  ;;  %v2381_v25 = vld [vmem:[%s3279_s0 + $0x45] sm:$0x3f] }
 0x113   :  { %2592 = vmatmul.mubr.msk.bf16.vlgmr.msra.gmra.mrb[24].mxu0 %vm633_vm4, %v802_v13  ;;  %v2382_v13 = vld [vmem:[%s3280_s1 + $0x1c] sm:$0xf] }
 0x114   :  { %2602 = vmatpush3.bf16.msra.mxu0 %v2761_v12  ;;  %2603 = vmatprep.mubr.msk.bf16.mxu0 %vm2799_vm2, %v2798_v63  ;;  %v2375_v12 = vld [vmem:[%s3279_s0 + $0x44] sm:$0x3f]  ;;  %v1623_v23 = vsel %vm43_vm0, %v2382_v13, 0 }
 0x115   :  { %2586 = vmatmul.mubr.msk.bf16.vlgmr.msra.gmra.mrb[20].mxu1 %vm633_vm4, %v747_v15  ;;  %2613 = vmatprep.subr.bf16.mxu0 %v2798_v63  ;;  %v2369_v15 = vld [vmem:[%s3279_s0 + $0x40] sm:$0x3f]  ;;  %v1548_v16 = vpack.c.bf16 %v2375_v12, %v2375_v12 }
 0x116   :  { %2596 = vmatpush3.bf16.msra.mxu1 %v2760_v14  ;;  %2597 = vmatprep.mubr.msk.bf16.mxu1 %vm2799_vm2, %v2798_v63  ;;  %v2386_v14 = vld [vmem:[%s3279_s0 + $0x3e] sm:$0xff] }
 0x117   :  { %2607 = vmatprep.subr.bf16.mxu1 %v2798_v63 }
 0x11b   :  { %2604 = vmatmul.mubr.msk.bf16.vlgmr.msra.gmra.mrb[28].mxu0 %vm633_vm4, %v912_v19  ;;  %v1679_v19 = vpack.c.bf16 %v2386_v14, %v2356_v55 }
 0x11c   :  { %2614 = vmatpush3.bf16.msra.mxu0 %v2763_v18  ;;  %2615 = vmatprep.mubr.msk.bf16.mxu0 %vm2799_vm2, %v2798_v63  ;;  %v2380_v18 = vld [vmem:[%s3279_s0 + $0x3d] sm:$0xff] }
 0x11d   :  { %2598 = vmatmul.mubr.msk.bf16.vlgmr.msra.gmra.mrb[24].mxu1 %vm633_vm4, %v857_v22  ;;  %2742 = vmatprep.subr.msk.bf16.mxu0 %vm43_vm0, %v2344_v21  ;;  %v1689_v21 = vsel %vm43_vm0, %v2388_v10, 0  ;;  %v1613_v22 = vpack.c.bf16 %v2380_v18, %v2379_v17 }
 0x11e   :  { %2608 = vmatpush3.bf16.msra.mxu1 %v2762_v20  ;;  %2609 = vmatprep.mubr.msk.bf16.mxu1 %vm2799_vm2, %v2798_v63  ;;  %v1482_v20 = vpack.c.bf16 %v2369_v15, %v2369_v15 }
 0x11f   :  { %2619 = vmatprep.subr.bf16.mxu1 %v2798_v63 }
 0x123   :  { %2616 = vmatmul.mubr.msk.bf16.vlgmr.msra.gmra.mrb[32].mxu0 %vm633_vm4, %v1022_v28  ;;  %v2765_v28 = vld [vmem:[%s3282_s3 + $0x8] sm:$0xff]  }
 0x124   :  { %2626 = vmatpush3.bf16.msra.mxu0 %v1173_v29  ;;  %2627 = vmatprep.mubr.msk.bf16.mxu0 %vm36_vm1, %v1163_v27  ;;  %v1614_v27 = vpack.c.bf16 %v2381_v25, %v2381_v25  ;;  %v2766_v29 = vld [vmem:[%s3282_s3] sm:$0xff]  }
 0x125   :  { %2610 = vmatmul.mubr.msk.bf16.vlgmr.msra.gmra.mrb[28].mxu1 %vm633_vm4, %v967_v32  ;;  %2744 = vmatprep.subr.msk.bf16.mxu0 %vm43_vm0, %v2352_v31 }
 0x126   :  { %2620 = vmatpush3.bf16.msra.mxu1 %v2764_v30  ;;  %2621 = vmatprep.mubr.msk.bf16.mxu1 %vm2799_vm2, %v2798_v63 }
 0x127   :  { %2743 = vmatprep.subr.msk.bf16.mxu1 %vm43_vm0, %v1159_v34 }
 0x12b   :  { %2628 = vmatmul.mubr.msk.bf16.vlgmr.msra.gmra.mrb[36].mxu0 %vm36_vm1, %v1164_v37 }
 0x12c   :  { %2638 = vmatpush3.bf16.msra.mxu0 %v1293_v42  ;;  %2639 = vmatprep.mubr.msk.bf16.mxu0 %vm36_vm1, %v1283_v41 }
 0x12d   :  { %2622 = vmatmul.mubr.msk.bf16.vlgmr.msra.gmra.mrb[32].mxu1 %vm633_vm4, %v1077_v45  ;;  %2746 = vmatprep.subr.msk.bf16.mxu0 %vm43_vm0, %v2364_v44 }
 0x12e   :  { %2632 = vmatpush3.bf16.msra.mxu1 %v1230_v46  ;;  %2633 = vmatprep.mubr.msk.bf16.mxu1 %vm36_vm1, %v1157_v43 }
 0x12f   :  { %2745 = vmatprep.subr.msk.bf16.mxu1 %vm43_vm0, %v2358_v48 }
 0x133   :  { %2640 = vmatmul.mubr.msk.bf16.vlgmr.msra.gmra.mrb[40].mxu0 %vm36_vm1, %v1284_v52 }
 0x134   :  { %2650 = vmatpush3.bf16.msra.mxu0 %v1425_v58  ;;  %2651 = vmatprep.mubr.msk.bf16.mxu0 %vm36_vm1, %v1415_v56 }
 0x135   :  { %2634 = vmatmul.mubr.msk.bf16.vlgmr.msra.gmra.mrb[36].mxu1 %vm36_vm1, %v1158_v57  ;;  %2748 = vmatprep.subr.msk.bf16.mxu0 %vm43_vm0, %v2376_v60 }
 0x136   :  { %2644 = vmatpush3.bf16.msra.mxu1 %v1359_v61  ;;  %2645 = vmatprep.mubr.msk.bf16.mxu1 %vm36_vm1, %v1349_v59 }
 0x137   :  { %2747 = vmatprep.subr.msk.bf16.mxu1 %vm43_vm0, %v2370_v0 }
 0x13b   :  { %2652 = vmatmul.mubr.msk.bf16.vlgmr.msra.gmra.mrb[44].mxu0 %vm36_vm1, %v1416_v4 }
 0x13c   :  { %2662 = vmatpush3.bf16.msra.mxu0 %v1557_v8  ;;  %2663 = vmatprep.mubr.msk.bf16.mxu0 %vm36_vm1, %v1547_v6 }
 0x13d   :  { %2646 = vmatmul.mubr.msk.bf16.vlgmr.msra.gmra.mrb[40].mxu1 %vm36_vm1, %v1350_v7  ;;  %2750 = vmatprep.subr.msk.bf16.mxu0 %vm43_vm0, %v2388_v10 }
 0x13e   :  { %2656 = vmatpush3.bf16.msra.mxu1 %v1491_v11  ;;  %2657 = vmatprep.mubr.msk.bf16.mxu1 %vm36_vm1, %v1481_v9  ;;  %v3204_v9 = vld [vmem:[%s3283_s4] ss:$0 sm:$0xff] }
 0x13f   :  { %2749 = vmatprep.subr.msk.bf16.mxu1 %vm43_vm0, %v2382_v13 }
 0x143   :  { %2664 = vmatmul.mubr.msk.bf16.vlgmr.msra.gmra.mrb[48].mxu0 %vm36_vm1, %v1548_v16 }
 0x144   :  { %2674 = vmatpush3.bf16.msra.mxu0 %v1689_v21  ;;  %2675 = vmatprep.mubr.msk.bf16.mxu0 %vm36_vm1, %v1679_v19 }
 0x145   :  { %2658 = vmatmul.mubr.msk.bf16.vlgmr.msra.gmra.mrb[44].mxu1 %vm36_vm1, %v1482_v20  ;;  %2685 = vmatprep.subr.bf16.mxu0 %v2798_v63 }
 0x146   :  { %2668 = vmatpush3.bf16.msra.mxu1 %v1623_v23  ;;  %2669 = vmatprep.mubr.msk.bf16.mxu1 %vm36_vm1, %v1613_v22 }
 0x147   :  { %2679 = vmatprep.subr.bf16.mxu1 %v2798_v63 }
 0x14b   :  { %2676 = vmatmul.mubr.msk.bf16.vlgmr.msra.gmra.mrb[52].mxu0 %vm36_vm1, %v1680_v26 }
 0x14c   :  { %2687 = vmatprep.mubr.msk.bf16.mxu0 %vm2799_vm2, %v2798_v63  ;;  %2686 = vmatpush3.bf16.msra.mxu0 %v2766_v29 }
 0x14d   :  { %2670 = vmatmul.mubr.msk.bf16.vlgmr.msra.gmra.mrb[48].mxu1 %vm36_vm1, %v1614_v27  ;;  %2697 = vmatprep.subr.bf16.mxu0 %v2798_v63 }
 0x14e   :  { %2681 = vmatprep.mubr.msk.bf16.mxu1 %vm2799_vm2, %v2798_v63  ;;  %2680 = vmatpush3.bf16.msra.mxu1 %v2765_v28 }
 0x14f   :  { %2691 = vmatprep.subr.bf16.mxu1 %v2798_v63 }
 0x1de   :  { %v740_v30 = vpop.f32.mrb[20].mxu0 }
 0x1df   :  { %v2581_v31 = vpop.f32.mrb[21].mxu0 }
 0x1e0   :  { %v691_v32 = vpop.f32.mrb[16].mxu1  ;;  %v743_v33 = vpop.f32.mrb[22].mxu0 }
 0x1e1   :  { %v741_v34 = vadd.f32 %v740_v30, %v691_v32  ;;  %v2575_v35 = vpop.f32.mrb[17].mxu1  ;;  %v2582_v36 = vpop.f32.mrb[23].mxu0 }
 0x1e2   :  { %v694_v37 = vpop.f32.mrb[18].mxu1 }
 0x1e3   :  { %v2576_v38 = vpop.f32.mrb[19].mxu1 }
 0x1e6   :  { %v849_v39 = vpop.f32.mrb[24].mxu0 }
 0x1e7   :  { %v2593_v40 = vpop.f32.mrb[25].mxu0 }
 0x1e8   :  { %v794_v41 = vpop.f32.mrb[20].mxu1  ;;  %v852_v42 = vpop.f32.mrb[26].mxu0 }
 0x1e9   :  { %v800_v43 = vadd.f32 %v794_v41, %v741_v34  ;;  %v2587_v44 = vpop.f32.mrb[21].mxu1  ;;  %v2594_v45 = vpop.f32.mrb[27].mxu0 }
 0x1ea   :  { %v797_v46 = vpop.f32.mrb[22].mxu1 }
 0x1eb   :  { %v2588_v47 = vpop.f32.mrb[23].mxu1  ;;  %v855_v48 = vadd.f32 %v849_v39, %v800_v43 }
 0x1ee   :  { %v959_v49 = vpop.f32.mrb[28].mxu0 }
 0x1ef   :  { %v2605_v50 = vpop.f32.mrb[29].mxu0 }
 0x1f0   :  { %v904_v51 = vpop.f32.mrb[24].mxu1  ;;  %v962_v52 = vpop.f32.mrb[30].mxu0 }
 0x1f1   :  { %v910_v54 = vadd.f32 %v904_v51, %v855_v48  ;;  %v2599_v55 = vpop.f32.mrb[25].mxu1  ;;  %v2606_v56 = vpop.f32.mrb[31].mxu0 }
 0x1f2   :  { %v907_v57 = vpop.f32.mrb[26].mxu1 }
 0x1f3   :  { %v2600_v58 = vpop.f32.mrb[27].mxu1  ;;  %v965_v59 = vadd.f32 %v959_v49, %v910_v54 }
 0x1f6   :  { %v1069_v60 = vpop.f32.mrb[32].mxu0 }
 0x1f7   :  { %v2617_v61 = vpop.f32.mrb[33].mxu0 }
 0x1f8   :  { %v1014_v62 = vpop.f32.mrb[28].mxu1  ;;  %v1072_v0 = vpop.f32.mrb[34].mxu0 }
 0x1f9   :  { %v1020_v1 = vadd.f32 %v1014_v62, %v965_v59  ;;  %v2611_v2 = vpop.f32.mrb[29].mxu1  ;;  %v2618_v3 = vpop.f32.mrb[35].mxu0 }
 0x1fa   :  { %v1017_v4 = vpop.f32.mrb[30].mxu1 }
 0x1fb   :  { %v2612_v5 = vpop.f32.mrb[31].mxu1  ;;  %v1075_v6 = vadd.f32 %v1069_v60, %v1020_v1 }
 0x1fe   :  { %v2629_v7 = vpop.f32.mrb[36].mxu0 }
 0x1ff   :  { %v1209_v8 = vpop.f32.mrb[37].mxu0 }
 0x200   :  { %v1124_v10 = vpop.f32.mrb[32].mxu1  ;;  %v2630_v11 = vpop.f32.mrb[38].mxu0 }
 0x201   :  { %v1130_v12 = vadd.f32 %v1124_v10, %v1075_v6  ;;  %v2623_v13 = vpop.f32.mrb[33].mxu1  ;;  %v1212_v14 = vpop.f32.mrb[39].mxu0 }
 0x202   :  { %v1127_v15 = vpop.f32.mrb[34].mxu1 }
 0x203   :  { %v1137_v16 = vadd.f32 %v3204_v9, %v1130_v12  ;;  %v2624_v17 = vpop.f32.mrb[35].mxu1 }
 0x205   :  { %v1138_v18 = vmax.f32 %v1137_v16, 0.0 }
 0x206   :  { %v2641_v19 = vpop.f32.mrb[40].mxu0 }
 0x207   :  { %1139 = vst.msk [vmem:[#allocation3] sm:$0xff] %vm633_vm4, %v1138_v18  ;;  %v1329_v20 = vpop.f32.mrb[41].mxu0 }
 0x208   :  { %v2635_v21 = vpop.f32.mrb[36].mxu1  ;;  %v2642_v22 = vpop.f32.mrb[42].mxu0 }
 0x209   :  { %v1275_v23 = vadd.f32 %v2635_v21, %v2629_v7  ;;  %v1266_v24 = vpop.f32.mrb[37].mxu1  ;;  %v1332_v25 = vpop.f32.mrb[43].mxu0 }
 0x20a   :  { %v1267_v26 = vadd.f32 %v1266_v24, %v1209_v8  ;;  %v2636_v27 = vpop.f32.mrb[38].mxu1 }
 0x20b   :  { %v1345_v28 = vadd.f32 %v2641_v19, %v1275_v23  ;;  %v1269_v29 = vpop.f32.mrb[39].mxu1 }
 0x20c   :  { %v1343_v30 = vadd.f32 %v1329_v20, %v1267_v26  ;;  %v1270_v31 = vadd.f32 %v1269_v29, %v1212_v14 }
 0x20e   :  { %v1344_v32 = vadd.f32 %v1332_v25, %v1270_v31  ;;  %v2653_v33 = vpop.f32.mrb[44].mxu0  ;;  %v1140_v34 = vld [vmem:[#allocation3] ss:$2 sm:$0x1]  ;;  %v2767_v31 = vld [vmem:[%s3282_s3 + $0x10] sm:$0xff]  }
 0x20f   :  { %v1461_v35 = vpop.f32.mrb[45].mxu0  ;;  %v1142_v36 = vld [vmem:[#allocation3 + $0x1] ss:$2 sm:$0x1] }
 0x210   :  { %v2647_v37 = vpop.f32.mrb[40].mxu1  ;;  %v2654_v38 = vpop.f32.mrb[46].mxu0  ;;  %v1144_v39 = vld [vmem:[#allocation3 + $0x6] ss:$2 sm:$0x1]  ;;  %v1147_v40 = vmax.f32 %v1140_v34, %v1142_v36  ;;  %v2770_v34 = vld [vmem:[%s3282_s3 + $0x28] sm:$0xff]  }
 0x211   :  { %v1411_v41 = vadd.f32 %v2647_v37, %v1345_v28  ;;  %v1395_v42 = vpop.f32.mrb[41].mxu1  ;;  %v1464_v43 = vpop.f32.mrb[47].mxu0  ;;  %v1146_v44 = vld [vmem:[#allocation3 + $0x7] ss:$2 sm:$0x1]  ;;  %v2769_v36 = vld [vmem:[%s3282_s3 + $0x20] sm:$0xff]  }
 0x212   :  { %v1409_v45 = vadd.f32 %v1395_v42, %v1343_v30  ;;  %v2648_v46 = vpop.f32.mrb[42].mxu1  ;;  %v1148_v47 = vmax.f32 %v1144_v39, %v1146_v44  ;;  %v2768_v28 = vld [vmem:[%s3282_s3 + $0x18] sm:$0xff]   ;;  %v2771_v42 = vld [vmem:[%s3282_s3 + $0x30] sm:$0xff]  }
 0x213   :  { %v1477_v48 = vadd.f32 %v2653_v33, %v1411_v41  ;;  %v1398_v49 = vpop.f32.mrb[43].mxu1 }
 0x214   :  { %v1475_v50 = vadd.f32 %v1461_v35, %v1409_v45  ;;  %v1410_v51 = vadd.f32 %v1398_v49, %v1344_v32  ;;  %v1149_v52 = vmax.f32 %v1147_v40, %v1148_v47  ;;  %v2772_v40 = vld [vmem:[%s3282_s3 + $0x38] sm:$0xff]   ;;  %v2773_v47 = vld [vmem:[%s3282_s3 + $0x40] sm:$0xff]   ;;  %s2800_s3 = smov [#allocation4]  }
 0x215   :  { %s2265_s12 = sshll.u32 %s2800_s3, 4  ;;  %s2266_s12 = int_to_ptr.vmem [resolvable:$true] %s2265_s12 }
 0x216   :  { %v1476_v54 = vadd.f32 %v1464_v43, %v1410_v51  ;;  %v2665_v55 = vpop.f32.mrb[48].mxu0  ;;  %1151 = vst.msk [vmem:[#allocation4] sm:$0x1] %vm1150_vm5, %v1149_v52  ;;  %s2774_s13 = scalar_lea.vmem %s2266_s12, 32  ;;  %p2779_p1 = scmp.lt.s32.totalorder %s2266_s12, %s2266_s12 }
 0x217   :  { %v1593_v56 = vpop.f32.mrb[49].mxu0  ;;  %p2775_p0 = scmp.ne.s32.totalorder %s2266_s12, %s2774_s13  ;;  %p2780_p2 = scmp.lt.s32.totalorder %s2774_s13, %s2774_s13 }
 0x218   :  { %v2659_v57 = vpop.f32.mrb[44].mxu1  ;;  %v2666_v58 = vpop.f32.mrb[50].mxu0 }
 0x219   :  { %v1543_v59 = vadd.f32 %v2659_v57, %v1477_v48  ;;  %v1527_v60 = vpop.f32.mrb[45].mxu1  ;;  %v1596_v61 = vpop.f32.mrb[51].mxu0  ;;  %p2781_p3 = por %p2780_p2, %p2779_p1 }
 0x21a   :  { %v1541_v62 = vadd.f32 %v1527_v60, %v1475_v50  ;;  %v2660_v0 = vpop.f32.mrb[46].mxu1 }
 0x21b   :  { %v1609_v1 = vadd.f32 %v2665_v55, %v1543_v59  ;;  %v1530_v2 = vpop.f32.mrb[47].mxu1  ;;  %p2782_p4 = pnand %p2781_p3, %p2775_p0 }
 0x21c   :  { %v1607_v3 = vadd.f32 %v1593_v56, %v1541_v62  ;;  %v1542_v4 = vadd.f32 %v1530_v2, %v1476_v54 }
 0x21e   :  { %v1608_v5 = vadd.f32 %v1596_v61, %v1542_v4  ;;  %v2677_v6 = vpop.f32.mrb[52].mxu0 }
 0x21f   :  { %v1725_v7 = vpop.f32.mrb[53].mxu0 }
 0x220   :  { %v2671_v8 = vpop.f32.mrb[48].mxu1  ;;  %v2678_v10 = vpop.f32.mrb[54].mxu0 }
 0x221   :  { %v1675_v11 = vadd.f32 %v2671_v8, %v1609_v1  ;;  %v1659_v12 = vpop.f32.mrb[49].mxu1  ;;  %v1728_v13 = vpop.f32.mrb[55].mxu0 }
 0x222   :  { %v1673_v14 = vadd.f32 %v1659_v12, %v1607_v3  ;;  %v2672_v15 = vpop.f32.mrb[50].mxu1 }
 0x223   :  { %v1741_v16 = vadd.f32 %v2677_v6, %v1675_v11  ;;  %v1662_v17 = vpop.f32.mrb[51].mxu1 }
 0x224   :  { %v1739_v18 = vadd.f32 %v1725_v7, %v1673_v14  ;;  %v1674_v19 = vadd.f32 %v1662_v17, %v1608_v5 }
 0x225   :  { %v1750_v20 = vadd.f32 %v2992_v53, %v1741_v16 }
 0x226   :  { %v1748_v21 = vadd.f32 %v2992_v53, %v1739_v18  ;;  %v1740_v22 = vadd.f32 %v1728_v13, %v1674_v19 }
 0x227   :  { %v1753_v23 = vmax.f32 %v1750_v20, 0.0 }
 0x228   :  { %v1751_v24 = vmax.f32 %v1748_v21, 0.0  ;;  %v1749_v25 = vadd.f32 %v2992_v53, %v1740_v22 }
 0x229   :  { %1756 = vst.msk [vmem:[#allocation2 + $0x10] sm:$0x3f] %vm636_vm3, %v1753_v23 }
 0x22a   :  { %1754 = vst.msk [vmem:[#allocation2] sm:$0xff] %vm633_vm4, %v1751_v24  ;;  %v1752_v26 = vmax.f32 %v1749_v25, 0.0 }
 0x22c   :  { %1755 = vst.msk [vmem:[#allocation2 + $0x8] sm:$0xff] %vm633_vm4, %v1752_v26 }
 0x231   :  { %v1758_v27 = vld [vmem:[#allocation2] sm:$0xff] }
 0x232   :  { %v1759_v29 = vpack.c.bf16 %v1758_v27, %v1758_v27 }
 0x233   :  { %v1762_v30 = vld [vmem:[#allocation2 + $0x1] sm:$0xff]  ;;  %v2134_v44 = vld [vmem:[#allocation2 + $0xd] sm:$0xff] }
 0x234   :  { %2688 = vmatmul.mubr.msk.bf16.vlgmr.msra.gmra.mrb[56].mxu0 %vm633_vm4, %v1759_v29  ;;  %v1763_v53 = vpack.c.bf16 %v1762_v30, %v1762_v30  ;;  %v1918_v32 = vld [vmem:[#allocation2 + $0x6] sm:$0xff]  ;;  %v2135_v46 = vpack.c.bf16 %v2134_v44, %v2134_v44  ;;  %v2188_v49 = vld [vmem:[#allocation2 + $0xe] sm:$0xff] }
 0x235   :  { %2698 = vmatpush3.bf16.msra.mxu0 %v2768_v28  ;;  %2699 = vmatprep.mubr.msk.bf16.mxu0 %vm2799_vm2, %v2798_v63  ;;  %v1864_v33 = vld [vmem:[#allocation2 + $0x2] sm:$0xff]  ;;  %v1919_v35 = vpack.c.bf16 %v1918_v32, %v1918_v32  ;;  %v2080_v45 = vld [vmem:[#allocation2 + $0xc] sm:$0xff]  ;;  %v2189_v50 = vpack.c.bf16 %v2188_v49, %v2188_v49 }
 0x236   :  { %2682 = vmatmul.mubr.msk.bf16.vlgmr.msra.gmra.mrb[52].mxu1 %vm633_vm4, %v1763_v53  ;;  %2709 = vmatprep.subr.bf16.mxu0 %v2798_v63  ;;  %v1865_v37 = vpack.c.bf16 %v1864_v33, %v1864_v33  ;;  %v2026_v38 = vld [vmem:[#allocation2 + $0x8] sm:$0xff]  ;;  %v2081_v48 = vpack.c.bf16 %v2080_v45, %v2080_v45 }
 0x237   :  { %2692 = vmatpush3.bf16.msra.mxu1 %v2767_v31  ;;  %2693 = vmatprep.mubr.msk.bf16.mxu1 %vm2799_vm2, %v2798_v63  ;;  %v1972_v39 = vld [vmem:[#allocation2 + $0x7] sm:$0xff]  ;;  %v2027_v41 = vpack.c.bf16 %v2026_v38, %v2026_v38 }
 0x238   :  { %2703 = vmatprep.subr.bf16.mxu1 %v2798_v63  ;;  %v1973_v43 = vpack.c.bf16 %v1972_v39, %v1972_v39 }
 0x23c   :  { %2700 = vmatmul.mubr.msk.bf16.vlgmr.msra.gmra.mrb[60].mxu0 %vm633_vm4, %v1919_v35 }
 0x23d   :  { %2710 = vmatpush3.bf16.msra.mxu0 %v2770_v34  ;;  %2711 = vmatprep.mubr.msk.bf16.mxu0 %vm2799_vm2, %v2798_v63 }
 0x23e   :  { %2694 = vmatmul.mubr.msk.bf16.vlgmr.msra.gmra.mrb[56].mxu1 %vm633_vm4, %v1865_v37  ;;  %2721 = vmatprep.subr.bf16.mxu0 %v2798_v63 }
 0x23f   :  { %2704 = vmatpush3.bf16.msra.mxu1 %v2769_v36  ;;  %2705 = vmatprep.mubr.msk.bf16.mxu1 %vm2799_vm2, %v2798_v63 }
 0x240   :  { %2715 = vmatprep.subr.bf16.mxu1 %v2798_v63 }
 0x244   :  { %2712 = vmatmul.mubr.msk.bf16.vlgmr.msra.gmra.mrb[64].mxu0 %vm633_vm4, %v2027_v41 }
 0x245   :  { %2722 = vmatpush3.bf16.msra.mxu0 %v2772_v40  ;;  %2723 = vmatprep.mubr.msk.bf16.mxu0 %vm2799_vm2, %v2798_v63 }
 0x246   :  { %2706 = vmatmul.mubr.msk.bf16.vlgmr.msra.gmra.mrb[60].mxu1 %vm633_vm4, %v1973_v43 }
 0x247   :  { %2716 = vmatpush3.bf16.msra.mxu1 %v2771_v42  ;;  %2717 = vmatprep.mubr.msk.bf16.mxu1 %vm2799_vm2, %v2798_v63 }
 0x248   :  { %2727 = vmatprep.subr.bf16.mxu1 %v2798_v63 }
 0x24c   :  { %2724 = vmatmul.mubr.msk.bf16.vlgmr.msra.gmra.mrb[68].mxu0 %vm633_vm4, %v2135_v46 }
 0x24e   :  { %2718 = vmatmul.mubr.msk.bf16.vlgmr.msra.gmra.mrb[64].mxu1 %vm633_vm4, %v2081_v48 }
 0x24f   :  { %2728 = vmatpush3.bf16.msra.mxu1 %v2773_v47  ;;  %2729 = vmatprep.mubr.msk.bf16.mxu1 %vm2799_vm2, %v2798_v63 }
 0x256   :  { %2730 = vmatmul.mubr.msk.bf16.vlgmr.msra.gmra.mrb[68].mxu1 %vm633_vm4, %v2189_v50 }
 0x307   :  { %v1858_v51 = vpop.f32.mrb[56].mxu0 }
 0x308   :  { %v2689_v52 = vpop.f32.mrb[57].mxu0 }
 0x309   :  { %v1809_v54 = vpop.f32.mrb[52].mxu1  ;;  %v1861_v55 = vpop.f32.mrb[58].mxu0 }
 0x30a   :  { %v1859_v56 = vadd.f32 %v1858_v51, %v1809_v54  ;;  %v2683_v57 = vpop.f32.mrb[53].mxu1  ;;  %v2690_v58 = vpop.f32.mrb[59].mxu0 }
 0x30b   :  { %v1812_v59 = vpop.f32.mrb[54].mxu1 }
 0x30c   :  { %v2684_v60 = vpop.f32.mrb[55].mxu1 }
 0x30f   :  { %v1965_v61 = vpop.f32.mrb[60].mxu0 }
 0x310   :  { %v2701_v62 = vpop.f32.mrb[61].mxu0 }
 0x311   :  { %v1911_v0 = vpop.f32.mrb[56].mxu1  ;;  %v1968_v1 = vpop.f32.mrb[62].mxu0 }
 0x312   :  { %v1917_v2 = vadd.f32 %v1911_v0, %v1859_v56  ;;  %v2695_v3 = vpop.f32.mrb[57].mxu1  ;;  %v2702_v63 = vpop.f32.mrb[63].mxu0 }
 0x313   :  { %v1914_v4 = vpop.f32.mrb[58].mxu1 }
 0x314   :  { %v2696_v5 = vpop.f32.mrb[59].mxu1  ;;  %v1971_v6 = vadd.f32 %v1965_v61, %v1917_v2 }
 0x317   :  { %v2073_v7 = vpop.f32.mrb[64].mxu0 }
 0x318   :  { %v2713_v8 = vpop.f32.mrb[65].mxu0 }
 0x319   :  { %v2019_v10 = vpop.f32.mrb[60].mxu1  ;;  %v2076_v11 = vpop.f32.mrb[66].mxu0 }
 0x31a   :  { %v2025_v12 = vadd.f32 %v2019_v10, %v1971_v6  ;;  %v2707_v13 = vpop.f32.mrb[61].mxu1  ;;  %v2714_v14 = vpop.f32.mrb[67].mxu0 }
 0x31b   :  { %v2022_v15 = vpop.f32.mrb[62].mxu1 }
 0x31c   :  { %v2708_v16 = vpop.f32.mrb[63].mxu1  ;;  %v2079_v17 = vadd.f32 %v2073_v7, %v2025_v12 }
 0x31f   :  { %v2181_v18 = vpop.f32.mrb[68].mxu0 }
 0x320   :  { %v2725_v19 = vpop.f32.mrb[69].mxu0 }
 0x321   :  { %v2127_v20 = vpop.f32.mrb[64].mxu1  ;;  %v2184_v21 = vpop.f32.mrb[70].mxu0 }
 0x322   :  { %v2133_v22 = vadd.f32 %v2127_v20, %v2079_v17  ;;  %v2719_v23 = vpop.f32.mrb[65].mxu1  ;;  %v2726_v24 = vpop.f32.mrb[71].mxu0 }
 0x323   :  { %v2130_v25 = vpop.f32.mrb[66].mxu1 }
 0x324   :  { %v2720_v26 = vpop.f32.mrb[67].mxu1  ;;  %v2187_v27 = vadd.f32 %v2181_v18, %v2133_v22 }
 0x329   :  { %v2235_v28 = vpop.f32.mrb[68].mxu1 }
 0x32a   :  { %v2241_v29 = vadd.f32 %v2235_v28, %v2187_v27  ;;  %v2731_v30 = vpop.f32.mrb[69].mxu1 }
 0x32b   :  { %v2238_v31 = vpop.f32.mrb[70].mxu1 }
 0x32c   :  { %v2248_v53 = vadd.f32 %v3204_v9, %v2241_v29  ;;  %v2732_v32 = vpop.f32.mrb[71].mxu1 }
 0x32e   :  { %v2249_v33 = vmax.f32 %v2248_v53, 0.0 }
 0x330   :  { %2250 = vst.msk [vmem:[#allocation3] sm:$0xff] %vm633_vm4, %v2249_v33 }
 0x337   :  { %v2251_v34 = vld [vmem:[#allocation3] ss:$2 sm:$0x1]  ;;  %v2252_v35 = vld [vmem:[#allocation3 + $0x1] ss:$2 sm:$0x1] }
 0x338   :  { %v2253_v36 = vld [vmem:[#allocation3 + $0x6] ss:$2 sm:$0x1]  ;;  %v2254_v37 = vld [vmem:[#allocation3 + $0x7] ss:$2 sm:$0x1]  ;;  %v2255_v38 = vmax.f32 %v2251_v34, %v2252_v35 }
 0x339   :  { %v2256_v39 = vmax.f32 %v2253_v36, %v2254_v37 }
 0x33b   :  { %v2257_v40 = vmax.f32 %v2255_v38, %v2256_v39 }
 0x33d   :  { %2259 = vst.msk [vmem:[#allocation4 + $0x1] sm:$0x1] %vm1150_vm5, %v2257_v40 }
 0x33e   :  { %2785 = shalt.err (!%p2782_p4)
}
 0x33f   :  { %s2786_s15 = scalar_lea.hbm %s3284_s5, 32 }
 0x340   :  { %p2787_p5 = scmp.ne.s32.totalorder %s3284_s5, %s2786_s15  ;;  %p2790_p6 = scmp.lt.u32.totalorder %s2786_s15, %s3284_s5 }
 0x342   :  { %p2792_p7 = pnand %p2790_p6, %p2787_p5 }
 0x344   :  { %2795 = shalt.err (!%p2792_p7)
}
 0x345   :  { %s2801_s19 = smov 16   ;;  %s2802_s20 = smov 1  }
 0x346   :  { %2271 = dma.vmem_to_hbm [thread:$0]  %s2266_s12, 32, %s3284_s5, [#allocation5], %s2801_s19, %s2801_s19, %s2802_s20  }
 0x347   :  { %2796 = dma.done.wait [#allocation5], 32  }
 0x348   :  { %2797 = vsyncadd [#allocation5], 4294967264 }
 0x349   :  { %2275 = vsyncpa [#allocation5], 1 }

// kernel: forward.2
= control target key start
LH: loop header
LB: loop body
LE: loop exit
PB: predicated region body
PF: predicated region fallthrough
CT: control target
= control target key end

     0   :  { %vm98_vm0 = vcmask 1043456   ;;  %vm73_vm1 = vcmask 64512   ;;  %vm2747_vm2 = vcmask 62464   ;;  %vm5181_vm3 = vcmask 60416   ;;  %s16321_s1 = inlined_call_operand.vmem [shape: bf16[9,8,8], index: 1, kind: input, shape index: {}]   ;;  %s16322_s0 = inlined_call_operand.vmem [shape: f32[2,256,8], index: 0, kind: input, shape index: {}]   ;;  %s16323_s3 = inlined_call_operand.vmem [shape: bf16[9,8,8], index: 3, kind: input, shape index: {}]   ;;  %s16324_s2 = inlined_call_operand.vmem [shape: f32[1,8], index: 2, kind: input, shape index: {}]   ;;  %s16325_s4 = inlined_call_operand.vmem [shape: f32[1,8], index: 4, kind: input, shape index: {}]   ;;  %s16326_s5 = inlined_call_operand.vmem [shape: f32[2,6,6,8], index: 5, kind: output, shape index: {}]  }
   0x1   :  { %v10460_v0 = vld [vmem:[%s16321_s1 + $0x4] sm:$0xf]  ;;  %v10477_v1 = vld [vmem:[%s16321_s1 + $0x8] sm:$0xf]  ;;  %v49_v10 = vld [vmem:[%s16322_s0 + $0x11] sm:$0xff] }
   0x2   :  { %v47_v2 = vld [vmem:[%s16322_s0 + $0x1] sm:$0xff]  ;;  %13713 = vmatprep.subr.msk.bf16.mxu1 %vm98_vm0, %v10460_v0  ;;  %13715 = vmatprep.subr.msk.bf16.mxu0 %vm98_vm0, %v10477_v1  ;;  %v100_v3 = vsel %vm98_vm0, %v10460_v0, 0  ;;  %v13829_v4 = vsel %vm98_vm0, %v10477_v1, 0  ;;  %v48_v5 = vld [vmem:[%s16322_s0 + $0x9] sm:$0xff]  ;;  %v50_v11 = vld [vmem:[%s16322_s0 + $0x19] sm:$0xff] }
   0x3   :  { %v323_v6 = vld [vmem:[%s16322_s0 + $0x2] sm:$0xff]  ;;  %v324_v7 = vld [vmem:[%s16322_s0 + $0xa] sm:$0xff]  ;;  %11800 = vmatpush3.bf16.msra.mxu1 %v100_v3  ;;  %11836 = vmatpush3.bf16.msra.mxu0 %v13829_v4  ;;  %v63_v8 = vpack.c.bf16 %v48_v5, %v47_v2  ;;  %v13850_v13 = vpack.c.bf16 %v50_v11, %v49_v10  ;;  %v325_v14 = vld [vmem:[%s16322_s0 + $0x12] sm:$0xff] }
   0x4   :  { %v339_v9 = vpack.c.bf16 %v324_v7, %v323_v6  ;;  %v46_v12 = vld [vmem:[%s16321_s1] sm:$0xf]  ;;  %v52_v19 = vld [vmem:[%s16322_s0 + $0x29] sm:$0xff]  ;;  %v53_v24 = vld [vmem:[%s16322_s0 + $0x31] sm:$0xff] }
   0x5   :  { %13714 = vmatprep.subr.msk.bf16.mxu1 %vm98_vm0, %v46_v12  ;;  %v326_v15 = vld [vmem:[%s16322_s0 + $0x1a] sm:$0xff]  ;;  %v224_v16 = vsel %vm98_vm0, %v46_v12, 0  ;;  %11801 = vmatprep.mubr.msk.bf16.mxu1 %vm73_vm1, %v63_v8  ;;  %v327_v20 = vld [vmem:[%s16322_s0 + $0x22] sm:$0xff]  ;;  %v328_v21 = vld [vmem:[%s16322_s0 + $0x2a] sm:$0xff] }
   0x6   :  { %v51_v17 = vld [vmem:[%s16322_s0 + $0x21] sm:$0xff]  ;;  %11837 = vmatprep.mubr.msk.bf16.mxu0 %vm73_vm1, %v339_v9  ;;  %v13865_v18 = vpack.c.bf16 %v326_v15, %v325_v14  ;;  %11802 = vmatmul.mubr.msk.bf16.vlgmr.msra.gmra.mrb[0].mxu1 %vm73_vm1, %v13850_v13  ;;  %v13880_v23 = vpack.c.bf16 %v328_v21, %v327_v20  ;;  %v54_v25 = vld [vmem:[%s16322_s0 + $0x39] sm:$0xff]  ;;  %v56_v29 = vld [vmem:[%s16322_s0 + $0x49] sm:$0xff] }
   0x7   :  { %v13878_v22 = vpack.c.bf16 %v52_v19, %v51_v17  ;;  %11818 = vmatpush3.bf16.msra.mxu1 %v224_v16  ;;  %v329_v26 = vld [vmem:[%s16322_s0 + $0x32] sm:$0xff]  ;;  %v330_v27 = vld [vmem:[%s16322_s0 + $0x3a] sm:$0xff]  ;;  %v331_v30 = vld [vmem:[%s16322_s0 + $0x42] sm:$0xff]  ;;  %v13913_v32 = vpack.c.bf16 %v54_v25, %v53_v24 }
   0x8   :  { %11838 = vmatmul.mubr.msk.bf16.vlgmr.msra.gmra.mrb[0].mxu0 %vm73_vm1, %v13865_v18  ;;  %v55_v28 = vld [vmem:[%s16322_s0 + $0x41] sm:$0xff]  ;;  %v332_v31 = vld [vmem:[%s16322_s0 + $0x4a] sm:$0xff]  ;;  %13716 = vmatprep.subr.msk.bf16.mxu1 %vm98_vm0, %v10477_v1  ;;  %v13918_v34 = vpack.c.bf16 %v330_v27, %v329_v26  ;;  %v58_v39 = vld [vmem:[%s16322_s0 + $0x59] sm:$0xff] }
   0x9   :  { %11805 = vmatprep.mubr.msk.bf16.mxu1 %vm73_vm1, %v13878_v22  ;;  %11841 = vmatprep.mubr.msk.bf16.mxu0 %vm73_vm1, %v13880_v23  ;;  %v10486_v33 = vld [vmem:[%s16321_s1 + $0xc] sm:$0xf]  ;;  %v13920_v35 = vpack.c.bf16 %v56_v29, %v55_v28  ;;  %v13924_v37 = vpack.c.bf16 %v332_v31, %v331_v30  ;;  %v57_v38 = vld [vmem:[%s16322_s0 + $0x51] sm:$0xff]  ;;  %v334_v41 = vld [vmem:[%s16322_s0 + $0x5a] sm:$0xff] }
   0xa   :  { %13717 = vmatprep.subr.msk.bf16.mxu0 %vm98_vm0, %v10486_v33  ;;  %v540_v36 = vsel %vm98_vm0, %v10486_v33, 0  ;;  %v333_v40 = vld [vmem:[%s16322_s0 + $0x52] sm:$0xff]  ;;  %v59_v42 = vld [vmem:[%s16322_s0 + $0x61] sm:$0xff]  ;;  %v60_v43 = vld [vmem:[%s16322_s0 + $0x69] sm:$0xff]  ;;  %v13961_v47 = vpack.c.bf16 %v58_v39, %v57_v38 }
   0xb   :  { %11854 = vmatpush3.bf16.msra.mxu0 %v540_v36  ;;  %v489_v44 = vld [vmem:[%s16322_s0 + $0x10] sm:$0xff]  ;;  %v490_v45 = vld [vmem:[%s16322_s0 + $0x18] sm:$0xff]  ;;  %v13964_v48 = vpack.c.bf16 %v334_v41, %v333_v40  ;;  %v13966_v49 = vpack.c.bf16 %v60_v43, %v59_v42  ;;  %v491_v53 = vld [vmem:[%s16322_s0 + $0x20] sm:$0xff] }
   0xc   :  { %v10495_v46 = vld [vmem:[%s16321_s1 + $0x10] sm:$0xf]  ;;  %v505_v50 = vpack.c.bf16 %v490_v45, %v489_v44  ;;  %v62_v52 = vld [vmem:[%s16322_s0 + $0x79] sm:$0xff]  ;;  %v492_v54 = vld [vmem:[%s16322_s0 + $0x28] sm:$0xff] }
   0xd   :  { %13718 = vmatprep.subr.msk.bf16.mxu0 %vm98_vm0, %v10495_v46  ;;  %v61_v51 = vld [vmem:[%s16322_s0 + $0x71] sm:$0xff]  ;;  %v22_v55 = vld [vmem:[%s16322_s0] sm:$0xff]  ;;  %v23_v56 = vld [vmem:[%s16322_s0 + $0x8] sm:$0xff]  ;;  %v14001_v60 = vpack.c.bf16 %v492_v54, %v491_v53  ;;  %v706_v63 = vsel %vm98_vm0, %v10495_v46, 0 }
   0xe   :  { %11806 = vmatmul.mubr.msk.bf16.gmra.mrb[4].mxu1 %vm73_vm1, %v13913_v32  ;;  %v493_v57 = vld [vmem:[%s16322_s0 + $0x30] sm:$0xff]  ;;  %v494_v58 = vld [vmem:[%s16322_s0 + $0x38] sm:$0xff]  ;;  %v13999_v59 = vpack.c.bf16 %v62_v52, %v61_v51  ;;  %v38_v61 = vpack.c.bf16 %v23_v56, %v22_v55  ;;  %v495_v1 = vld [vmem:[%s16322_s0 + $0x40] sm:$0xff] }
   0xf   :  { %11809 = vmatprep.mubr.msk.bf16.mxu1 %vm73_vm1, %v13920_v35  ;;  %v14003_v62 = vpack.c.bf16 %v494_v58, %v493_v57  ;;  %v10504_v0 = vld [vmem:[%s16321_s1 + $0x14] sm:$0xf]  ;;  %v496_v2 = vld [vmem:[%s16322_s0 + $0x48] sm:$0xff]  ;;  %v498_v5 = vld [vmem:[%s16322_s0 + $0x58] sm:$0xff] }
  0x10   :  { %11842 = vmatmul.mubr.msk.bf16.gmra.mrb[4].mxu0 %vm73_vm1, %v13918_v34  ;;  %v497_v3 = vld [vmem:[%s16322_s0 + $0x50] sm:$0xff]  ;;  %v14029_v6 = vpack.c.bf16 %v496_v2, %v495_v1  ;;  %v10541_v8 = vld [vmem:[%s16321_s1 + $0x4] sm:$0xf]  ;;  %v500_v10 = vld [vmem:[%s16322_s0 + $0x68] sm:$0xff]  ;;  %v872_v24 = vsel %vm98_vm0, %v10504_v0, 0 }
  0x11   :  { %11845 = vmatprep.mubr.msk.bf16.mxu0 %vm73_vm1, %v13924_v37  ;;  %v14031_v7 = vpack.c.bf16 %v498_v5, %v497_v3  ;;  %v499_v9 = vld [vmem:[%s16322_s0 + $0x60] sm:$0xff]  ;;  %v501_v11 = vld [vmem:[%s16322_s0 + $0x70] sm:$0xff]  ;;  %v504_v16 = vld [vmem:[%s16322_s0 + $0x88] sm:$0xff]  ;;  %v1596_v31 = vsel %vm98_vm0, %v10541_v8, 0 }
  0x12   :  { %v14057_v12 = vpack.c.bf16 %v500_v10, %v499_v9  ;;  %v503_v15 = vld [vmem:[%s16322_s0 + $0x80] sm:$0xff]  ;;  %v336_v20 = vld [vmem:[%s16322_s0 + $0x6a] sm:$0xff]  ;;  %v10513_v25 = vld [vmem:[%s16321_s1 + $0x18] sm:$0xf] }
  0x13   :  { %v14075_v17 = vpack.c.bf16 %v504_v16, %v503_v15  ;;  %v335_v19 = vld [vmem:[%s16322_s0 + $0x62] sm:$0xff]  ;;  %v338_v26 = vld [vmem:[%s16322_s0 + $0x7a] sm:$0xff]  ;;  %v1560_v36 = vld [vmem:[%s16322_s0 + $0x91] sm:$0xff]  ;;  %v1038_v56 = vsel %vm98_vm0, %v10513_v25, 0 }
  0x14   :  { %v14091_v21 = vpack.c.bf16 %v336_v20, %v335_v19  ;;  %v1558_v27 = vld [vmem:[%s16322_s0 + $0x81] sm:$0xff]  ;;  %v1559_v28 = vld [vmem:[%s16322_s0 + $0x89] sm:$0xff]  ;;  %v1561_v38 = vld [vmem:[%s16322_s0 + $0x99] sm:$0xff] }
  0x15   :  { %v14122_v30 = vpack.c.bf16 %v1559_v28, %v1558_v27  ;;  %v1557_v33 = vld [vmem:[%s16321_s1] sm:$0xf]  ;;  %v1563_v40 = vld [vmem:[%s16322_s0 + $0xa9] sm:$0xff]  ;;  %v14147_v41 = vpack.c.bf16 %v1561_v38, %v1560_v36  ;;  %v1564_v45 = vld [vmem:[%s16322_s0 + $0xb1] sm:$0xff] }
  0x16   :  { %11810 = vmatmul.mubr.msk.bf16.gmra.mrb[8].mxu1 %vm73_vm1, %v13961_v47  ;;  %v1562_v39 = vld [vmem:[%s16322_s0 + $0xa1] sm:$0xff]  ;;  %v1698_v43 = vsel %vm98_vm0, %v1557_v33, 0  ;;  %v1565_v46 = vld [vmem:[%s16322_s0 + $0xb9] sm:$0xff]  ;;  %v1567_v51 = vld [vmem:[%s16322_s0 + $0xc9] sm:$0xff] }
  0x17   :  { %11813 = vmatprep.mubr.msk.bf16.mxu1 %vm73_vm1, %v13966_v49  ;;  %v14151_v42 = vpack.c.bf16 %v1563_v40, %v1562_v39  ;;  %v10554_v44 = vld [vmem:[%s16321_s1 + $0x8] sm:$0xf]  ;;  %v14176_v52 = vpack.c.bf16 %v1565_v46, %v1564_v45  ;;  %v14191_v54 = vld [vmem:[%s16322_s0 + $0xd1] sm:$0xff]  ;;  %v1569_v55 = vld [vmem:[%s16322_s0 + $0xd9] sm:$0x3f] }
  0x18   :  { %11846 = vmatmul.mubr.msk.bf16.gmra.mrb[8].mxu0 %vm73_vm1, %v13964_v48  ;;  %v1575_v57 = vpack.c.bf16 %v1569_v55, %v14191_v54  ;;  %v1541_v58 = vld [vmem:[%s16322_s0 + $0x90] sm:$0xff]  ;;  %v1819_v3 = vsel %vm98_vm0, %v10554_v44, 0  ;;  %v10561_v5 = vld [vmem:[%s16321_s1 + $0xc] sm:$0xf]  ;;  %v1546_v9 = vld [vmem:[%s16322_s0 + $0xb8] sm:$0xff] }
  0x19   :  { %11855 = vmatprep.mubr.msk.bf16.mxu0 %vm73_vm1, %v505_v50  ;;  %v1547_v10 = vld [vmem:[%s16322_s0 + $0xc0] sm:$0xff]  ;;  %v836_v19 = vld [vmem:[%s16322_s0 + $0x8a] sm:$0xff]  ;;  %v1952_v39 = vsel %vm98_vm0, %v10561_v5, 0 }
  0x1a   :  { %v835_v16 = vld [vmem:[%s16322_s0 + $0x82] sm:$0xff]  ;;  %v1784_v27 = vld [vmem:[%s16322_s0 + $0x9a] sm:$0xff]  ;;  %v10568_v40 = vld [vmem:[%s16321_s1 + $0x10] sm:$0xf] }
  0x1b   :  { %v14266_v20 = vpack.c.bf16 %v836_v19, %v835_v16  ;;  %v1785_v28 = vld [vmem:[%s16322_s0 + $0xa2] sm:$0xff] }
  0x1c   :  { %v10531_v36 = vld [vmem:[%s16321_s1 + $0x20] sm:$0xf] }
  0x1d   :  { %v1370_v55 = vsel %vm98_vm0, %v10531_v36, 0 }
  0x1e   :  { %11814 = vmatmul.mubr.msk.bf16.gmra.mrb[12].mxu1 %vm73_vm1, %v13999_v59 }
  0x1f   :  { %11819 = vmatprep.mubr.msk.bf16.mxu1 %vm73_vm1, %v38_v61  ;;  %v1542_v61 = vld [vmem:[%s16322_s0 + $0x98] sm:$0xff] }
  0x20   :  { %11856 = vmatmul.mubr.msk.bf16.vlgmr.msra.gmra.mrb[0].mxu0 %vm73_vm1, %v14001_v60  ;;  %v14221_v1 = vpack.c.bf16 %v1542_v61, %v1541_v58  ;;  %v10596_v61 = vld [vmem:[%s16321_s1 + $0x20] sm:$0xf] }
  0x21   :  { %11859 = vmatprep.mubr.msk.bf16.mxu0 %vm73_vm1, %v14003_v62  ;;  %11872 = vmatpush3.bf16.msra.mxu0 %v706_v63  ;;  %v1543_v63 = vld [vmem:[%s16322_s0 + $0xa0] sm:$0xff] }
  0x22   :  { %13719 = vmatprep.subr.msk.bf16.mxu0 %vm98_vm0, %v10504_v0  ;;  %v1544_v0 = vld [vmem:[%s16322_s0 + $0xa8] sm:$0xff] }
  0x23   :  { %v14225_v2 = vpack.c.bf16 %v1544_v0, %v1543_v63  ;;  %v2322_v63 = vld [vmem:[%s16322_s0 + $0xe8] sm:$0xff] }
  0x26   :  { %11820 = vmatmul.mubr.msk.bf16.vlgmr.msra.gmra.mrb[0].mxu1 %vm73_vm1, %v505_v50  ;;  %v1566_v50 = vld [vmem:[%s16322_s0 + $0xc1] sm:$0xff] }
  0x27   :  { %12880 = vmatpush3.bf16.msra.mxu1 %v13829_v4  ;;  %11823 = vmatprep.mubr.msk.bf16.mxu1 %vm73_vm1, %v14001_v60  ;;  %v502_v4 = vld [vmem:[%s16322_s0 + $0x78] sm:$0xff]  ;;  %v14180_v53 = vpack.c.bf16 %v1567_v51, %v1566_v50 }
  0x28   :  { %11860 = vmatmul.mubr.msk.bf16.gmra.mrb[4].mxu0 %vm73_vm1, %v14029_v6  ;;  %13723 = vmatprep.subr.msk.bf16.mxu1 %vm98_vm0, %v10541_v8  ;;  %v14059_v14 = vpack.c.bf16 %v502_v4, %v501_v11  ;;  %v1545_v8 = vld [vmem:[%s16322_s0 + $0xb0] sm:$0xff]  ;;  %v1548_v11 = vld [vmem:[%s16322_s0 + $0xc8] sm:$0xff]  ;;  %v1792_v51 = vld [vmem:[%s16322_s0 + $0xda] sm:$0x3f] }
  0x29   :  { %11863 = vmatprep.mubr.msk.bf16.mxu0 %vm73_vm1, %v14031_v7  ;;  %v14250_v4 = vpack.c.bf16 %v1546_v9, %v1545_v8  ;;  %v14254_v15 = vpack.c.bf16 %v1548_v11, %v1547_v10  ;;  %v1791_v50 = vld [vmem:[%s16322_s0 + $0xd2] sm:$0xff] }
  0x2e   :  { %11824 = vmatmul.mubr.msk.bf16.gmra.mrb[4].mxu1 %vm73_vm1, %v14003_v62 }
  0x2f   :  { %11827 = vmatprep.mubr.msk.bf16.mxu1 %vm73_vm1, %v14029_v6 }
  0x30   :  { %11864 = vmatmul.mubr.msk.bf16.gmra.mrb[8].mxu0 %vm73_vm1, %v14057_v12 }
  0x31   :  { %11867 = vmatprep.mubr.msk.bf16.mxu0 %vm73_vm1, %v14059_v14 }
  0x36   :  { %11828 = vmatmul.mubr.msk.bf16.gmra.mrb[8].mxu1 %vm73_vm1, %v14031_v7 }
  0x37   :  { %11831 = vmatprep.mubr.msk.bf16.mxu1 %vm73_vm1, %v14057_v12 }
  0x38   :  { %11868 = vmatmul.mubr.msk.bf16.gmra.mrb[12].mxu0 %vm73_vm1, %v14075_v17 }
  0x39   :  { %11873 = vmatprep.mubr.msk.bf16.mxu0 %vm73_vm1, %v13850_v13  ;;  %v337_v13 = vld [vmem:[%s16322_s0 + $0x72] sm:$0xff] }
  0x3a   :  { %v14118_v29 = vpack.c.bf16 %v338_v26, %v337_v13  ;;  %v1783_v26 = vld [vmem:[%s16322_s0 + $0x92] sm:$0xff] }
  0x3e   :  { %11832 = vmatmul.mubr.msk.bf16.gmra.mrb[12].mxu1 %vm73_vm1, %v14059_v14 }
  0x3f   :  { %11849 = vmatprep.mubr.msk.bf16.mxu1 %vm73_vm1, %v14091_v21 }
  0x40   :  { %11874 = vmatmul.mubr.msk.bf16.vlgmr.msra.gmra.mrb[0].mxu0 %vm73_vm1, %v13878_v22 }
  0x41   :  { %11877 = vmatprep.mubr.msk.bf16.mxu0 %vm73_vm1, %v13913_v32  ;;  %11890 = vmatpush3.bf16.msra.mxu0 %v872_v24  ;;  %v1549_v24 = vld [vmem:[%s16322_s0 + $0xd0] sm:$0xff] }
  0x42   :  { %13720 = vmatprep.subr.msk.bf16.mxu0 %vm98_vm0, %v10513_v25  ;;  %v1550_v25 = vld [vmem:[%s16322_s0 + $0xd8] sm:$0x3f] }
  0x43   :  { %v1556_v13 = vpack.c.bf16 %v1550_v25, %v1549_v24 }
  0x48   :  { %11878 = vmatmul.mubr.msk.bf16.gmra.mrb[4].mxu0 %vm73_vm1, %v13920_v35 }
  0x49   :  { %11881 = vmatprep.mubr.msk.bf16.mxu0 %vm73_vm1, %v13961_v47 }
  0x4a   :  { %11850 = vmatmul.mubr.msk.bf16.vlgmr.msra.gmra.mrb[12].mxu1 %vm73_vm1, %v14118_v29 }
  0x4b   :  { %11962 = vmatpush3.bf16.msra.mxu1 %v1596_v31  ;;  %11963 = vmatprep.mubr.msk.bf16.mxu1 %vm73_vm1, %v14122_v30 }
  0x4c   :  { %13724 = vmatprep.subr.msk.bf16.mxu1 %vm98_vm0, %v1557_v33  ;;  %v14296_v33 = vpack.c.bf16 %v1784_v27, %v1783_v26 }
  0x50   :  { %11882 = vmatmul.mubr.msk.bf16.gmra.mrb[8].mxu0 %vm73_vm1, %v13966_v49 }
  0x51   :  { %11885 = vmatprep.mubr.msk.bf16.mxu0 %vm73_vm1, %v13999_v59 }
  0x52   :  { %11964 = vmatmul.mubr.msk.bf16.vlgmr.msra.gmra.mrb[16].mxu1 %vm73_vm1, %v14147_v41 }
  0x53   :  { %11976 = vmatpush3.bf16.msra.mxu1 %v1698_v43  ;;  %11967 = vmatprep.mubr.msk.bf16.mxu1 %vm73_vm1, %v14151_v42  ;;  %v1789_v43 = vld [vmem:[%s16322_s0 + $0xc2] sm:$0xff] }
  0x54   :  { %13725 = vmatprep.subr.msk.bf16.mxu1 %vm98_vm0, %v10554_v44  ;;  %v1790_v44 = vld [vmem:[%s16322_s0 + $0xca] sm:$0xff] }
  0x55   :  { %v14333_v46 = vpack.c.bf16 %v1790_v44, %v1789_v43  ;;  %v14552_v44 = vld [vmem:[%s16323_s3] sm:$0xf] }
  0x58   :  { %11886 = vmatmul.mubr.msk.bf16.gmra.mrb[12].mxu0 %vm73_vm1, %v14122_v30 }
  0x59   :  { %11891 = vmatprep.mubr.msk.bf16.mxu0 %vm73_vm1, %v13865_v18  ;;  %v10522_v18 = vld [vmem:[%s16321_s1 + $0x1c] sm:$0xf] }
  0x5a   :  { %11968 = vmatmul.mubr.msk.bf16.gmra.mrb[20].mxu1 %vm73_vm1, %v14176_v52  ;;  %v1204_v31 = vsel %vm98_vm0, %v10522_v18, 0 }
  0x5b   :  { %11971 = vmatprep.mubr.msk.bf16.mxu1 %vm73_vm1, %v14180_v53 }
  0x60   :  { %11892 = vmatmul.mubr.msk.bf16.vlgmr.msra.gmra.mrb[0].mxu0 %vm73_vm1, %v13880_v23 }
  0x61   :  { %11895 = vmatprep.mubr.msk.bf16.mxu0 %vm73_vm1, %v13918_v34  ;;  %11908 = vmatpush3.bf16.msra.mxu0 %v1038_v56  ;;  %v1924_v56 = vld [vmem:[%s16322_s0 + $0xe0] sm:$0xff] }
  0x62   :  { %13721 = vmatprep.subr.msk.bf16.mxu0 %vm98_vm0, %v10522_v18  ;;  %11972 = vmatmul.mubr.msk.bf16.gmra.mrb[24].mxu1 %vm73_vm1, %v1575_v57  ;;  %v1925_v57 = vld [vmem:[%s16322_s0 + $0xe8] sm:$0x3f]  ;;  %v2329_v0 = vpack.c.bf16 %v2322_v63, %v1924_v56 }
  0x63   :  { %11977 = vmatprep.mubr.msk.bf16.mxu1 %vm73_vm1, %v14075_v17  ;;  %v1931_v18 = vpack.c.bf16 %v1925_v57, %v1924_v56 }
  0x68   :  { %11896 = vmatmul.mubr.msk.bf16.gmra.mrb[4].mxu0 %vm73_vm1, %v13924_v37 }
  0x69   :  { %11899 = vmatprep.mubr.msk.bf16.mxu0 %vm73_vm1, %v13964_v48 }
  0x6a   :  { %11978 = vmatmul.mubr.msk.bf16.vlgmr.msra.gmra.mrb[16].mxu1 %vm73_vm1, %v14221_v1 }
  0x6b   :  { %11990 = vmatpush3.bf16.msra.mxu1 %v1819_v3  ;;  %11981 = vmatprep.mubr.msk.bf16.mxu1 %vm73_vm1, %v14225_v2 }
  0x6c   :  { %13726 = vmatprep.subr.msk.bf16.mxu1 %vm98_vm0, %v10561_v5  ;;  %v2617_v5 = vsel %vm98_vm0, %v10596_v61, 0 }
  0x70   :  { %11900 = vmatmul.mubr.msk.bf16.gmra.mrb[8].mxu0 %vm73_vm1, %v14091_v21 }
  0x71   :  { %11903 = vmatprep.mubr.msk.bf16.mxu0 %vm73_vm1, %v14118_v29 }
  0x72   :  { %11982 = vmatmul.mubr.msk.bf16.gmra.mrb[20].mxu1 %vm73_vm1, %v14250_v4 }
  0x73   :  { %11985 = vmatprep.mubr.msk.bf16.mxu1 %vm73_vm1, %v14254_v15 }
  0x78   :  { %11904 = vmatmul.mubr.msk.bf16.gmra.mrb[12].mxu0 %vm73_vm1, %v14266_v20 }
  0x79   :  { %11909 = vmatprep.mubr.msk.bf16.mxu0 %vm73_vm1, %v14001_v60  ;;  %v1786_v60 = vld [vmem:[%s16322_s0 + $0xaa] sm:$0xff] }
  0x7a   :  { %11986 = vmatmul.mubr.msk.bf16.gmra.mrb[24].mxu1 %vm73_vm1, %v1556_v13  ;;  %v14303_v38 = vpack.c.bf16 %v1786_v60, %v1785_v28  ;;  %v2588_v28 = vld [vmem:[%s16322_s0 + $0xea] sm:$0xff] }
  0x7b   :  { %11991 = vmatprep.mubr.msk.bf16.mxu1 %vm73_vm1, %v14266_v20 }
  0x80   :  { %11910 = vmatmul.mubr.msk.bf16.vlgmr.msra.gmra.mrb[0].mxu0 %vm73_vm1, %v14003_v62  ;;  %v1787_v62 = vld [vmem:[%s16322_s0 + $0xb2] sm:$0xff] }
  0x81   :  { %11913 = vmatprep.mubr.msk.bf16.mxu0 %vm73_vm1, %v14029_v6  ;;  %11926 = vmatpush3.bf16.msra.mxu0 %v1204_v31  ;;  %v1788_v6 = vld [vmem:[%s16322_s0 + $0xba] sm:$0xff]  ;;  %v2589_v31 = vld [vmem:[%s16322_s0 + $0xf2] sm:$0xff] }
  0x82   :  { %13722 = vmatprep.subr.msk.bf16.mxu0 %vm98_vm0, %v10531_v36  ;;  %11992 = vmatmul.mubr.msk.bf16.vlgmr.msra.gmra.mrb[16].mxu1 %vm73_vm1, %v14296_v33  ;;  %v14329_v45 = vpack.c.bf16 %v1788_v6, %v1787_v62  ;;  %v10603_v6 = vld [vmem:[%s16323_s3 + $0x4] sm:$0xf] }
  0x83   :  { %12004 = vmatpush3.bf16.msra.mxu1 %v1952_v39  ;;  %11995 = vmatprep.mubr.msk.bf16.mxu1 %vm73_vm1, %v14303_v38  ;;  %v2826_v43 = vsel %vm98_vm0, %v10603_v6, 0 }
  0x84   :  { %13727 = vmatprep.subr.msk.bf16.mxu1 %vm98_vm0, %v10568_v40 }
  0x88   :  { %11914 = vmatmul.mubr.msk.bf16.gmra.mrb[4].mxu0 %vm73_vm1, %v14031_v7  ;;  %v1798_v7 = vpack.c.bf16 %v1792_v51, %v1791_v50  ;;  %v14571_v51 = vld [vmem:[%s16324_s2] ss:$0 sm:$0xff] }
  0x89   :  { %11917 = vmatprep.mubr.msk.bf16.mxu0 %vm73_vm1, %v14057_v12  ;;  %v2085_v12 = vsel %vm98_vm0, %v10568_v40, 0 }
  0x8a   :  { %11996 = vmatmul.mubr.msk.bf16.gmra.mrb[20].mxu1 %vm73_vm1, %v14329_v45 }
  0x8b   :  { %11999 = vmatprep.mubr.msk.bf16.mxu1 %vm73_vm1, %v14333_v46 }
  0x90   :  { %11918 = vmatmul.mubr.msk.bf16.gmra.mrb[8].mxu0 %vm73_vm1, %v14059_v14  ;;  %v10575_v14 = vld [vmem:[%s16321_s1 + $0x14] sm:$0xf] }
  0x91   :  { %11921 = vmatprep.mubr.msk.bf16.mxu0 %vm73_vm1, %v14075_v17  ;;  %v1923_v17 = vld [vmem:[%s16322_s0 + $0xd8] sm:$0xff] }
  0x92   :  { %12000 = vmatmul.mubr.msk.bf16.gmra.mrb[24].mxu1 %vm73_vm1, %v1798_v7 }
  0x93   :  { %12005 = vmatprep.mubr.msk.bf16.mxu1 %vm73_vm1, %v14221_v1 }
  0x98   :  { %11922 = vmatmul.mubr.msk.bf16.gmra.mrb[12].mxu0 %vm73_vm1, %v14221_v1  ;;  %v2323_v1 = vld [vmem:[%s16322_s0 + $0xf0] sm:$0xff] }
  0x99   :  { %11927 = vmatprep.mubr.msk.bf16.mxu0 %vm73_vm1, %v13878_v22  ;;  %v1930_v22 = vpack.c.bf16 %v1923_v17, %v1549_v24 }
  0x9a   :  { %12006 = vmatmul.mubr.msk.bf16.vlgmr.msra.gmra.mrb[16].mxu1 %vm73_vm1, %v14225_v2 }
  0x9b   :  { %12018 = vmatpush3.bf16.msra.mxu1 %v2085_v12  ;;  %12009 = vmatprep.mubr.msk.bf16.mxu1 %vm73_vm1, %v14250_v4 }
  0x9c   :  { %13728 = vmatprep.subr.msk.bf16.mxu1 %vm98_vm0, %v10575_v14 }
  0xa0   :  { %11928 = vmatmul.mubr.msk.bf16.vlgmr.msra.gmra.mrb[0].mxu0 %vm73_vm1, %v13913_v32  ;;  %v2218_v32 = vsel %vm98_vm0, %v10575_v14, 0 }
  0xa1   :  { %11931 = vmatprep.mubr.msk.bf16.mxu0 %vm73_vm1, %v13920_v35  ;;  %11944 = vmatpush3.bf16.msra.mxu0 %v1370_v55  ;;  %v10582_v35 = vld [vmem:[%s16321_s1 + $0x18] sm:$0xf] }
  0xa2   :  { %12010 = vmatmul.mubr.msk.bf16.gmra.mrb[20].mxu1 %vm73_vm1, %v14254_v15 }
  0xa3   :  { %12013 = vmatprep.mubr.msk.bf16.mxu1 %vm73_vm1, %v1930_v22 }
  0xa8   :  { %11932 = vmatmul.mubr.msk.bf16.gmra.mrb[4].mxu0 %vm73_vm1, %v13961_v47  ;;  %v2056_v47 = vld [vmem:[%s16322_s0 + $0xd9] sm:$0xff] }
  0xa9   :  { %11935 = vmatprep.mubr.msk.bf16.mxu0 %vm73_vm1, %v13966_v49  ;;  %v2063_v49 = vpack.c.bf16 %v2056_v47, %v14191_v54 }
  0xaa   :  { %12014 = vmatmul.mubr.msk.bf16.gmra.mrb[24].mxu1 %vm73_vm1, %v1931_v18 }
  0xab   :  { %12019 = vmatprep.mubr.msk.bf16.mxu1 %vm73_vm1, %v14147_v41 }
  0xb0   :  { %11936 = vmatmul.mubr.msk.bf16.gmra.mrb[8].mxu0 %vm73_vm1, %v13999_v59  ;;  %v2057_v59 = vld [vmem:[%s16322_s0 + $0xe1] sm:$0xff] }
  0xb1   :  { %11939 = vmatprep.mubr.msk.bf16.mxu0 %vm73_vm1, %v14122_v30  ;;  %v2058_v30 = vld [vmem:[%s16322_s0 + $0xe9] sm:$0x3f] }
  0xb2   :  { %12020 = vmatmul.mubr.msk.bf16.vlgmr.msra.gmra.mrb[16].mxu1 %vm73_vm1, %v14151_v42  ;;  %v2064_v58 = vpack.c.bf16 %v2058_v30, %v2057_v59 }
  0xb3   :  { %12032 = vmatpush3.bf16.msra.mxu1 %v2218_v32  ;;  %12023 = vmatprep.mubr.msk.bf16.mxu1 %vm73_vm1, %v14176_v52 }
  0xb4   :  { %13729 = vmatprep.subr.msk.bf16.mxu1 %vm98_vm0, %v10582_v35 }
  0xb8   :  { %11940 = vmatmul.mubr.msk.bf16.gmra.mrb[12].mxu0 %vm73_vm1, %v14147_v41  ;;  %v2191_v41 = vld [vmem:[%s16322_s0 + $0xea] sm:$0x3f] }
  0xb9   :  { %11945 = vmatprep.mubr.msk.bf16.mxu0 %vm73_vm1, %v13880_v23  ;;  %v2351_v23 = vsel %vm98_vm0, %v10582_v35, 0 }
  0xba   :  { %12024 = vmatmul.mubr.msk.bf16.gmra.mrb[20].mxu1 %vm73_vm1, %v14180_v53 }
  0xbb   :  { %12027 = vmatprep.mubr.msk.bf16.mxu1 %vm73_vm1, %v2063_v49 }
  0xc0   :  { %11946 = vmatmul.mubr.msk.bf16.vlgmr.msra.gmra.mrb[0].mxu0 %vm73_vm1, %v13918_v34  ;;  %v10589_v34 = vld [vmem:[%s16321_s1 + $0x1c] sm:$0xf] }
  0xc1   :  { %11949 = vmatprep.mubr.msk.bf16.mxu0 %vm73_vm1, %v13924_v37  ;;  %v2189_v37 = vld [vmem:[%s16322_s0 + $0xda] sm:$0xff] }
  0xc2   :  { %12028 = vmatmul.mubr.msk.bf16.gmra.mrb[24].mxu1 %vm73_vm1, %v2064_v58 }
  0xc3   :  { %12033 = vmatprep.mubr.msk.bf16.mxu1 %vm73_vm1, %v14296_v33 }
  0xc8   :  { %11950 = vmatmul.mubr.msk.bf16.gmra.mrb[4].mxu0 %vm73_vm1, %v13964_v48  ;;  %v2196_v48 = vpack.c.bf16 %v2189_v37, %v1791_v50  ;;  %v14564_v50 = vld [vmem:[%s16323_s3] sm:$0xf] }
  0xc9   :  { %11953 = vmatprep.mubr.msk.bf16.mxu0 %vm73_vm1, %v14091_v21  ;;  %v2190_v21 = vld [vmem:[%s16322_s0 + $0xe2] sm:$0xff] }
  0xca   :  { %12034 = vmatmul.mubr.msk.bf16.vlgmr.msra.gmra.mrb[16].mxu1 %vm73_vm1, %v14303_v38  ;;  %v2197_v54 = vpack.c.bf16 %v2191_v41, %v2190_v21  ;;  %v2595_v60 = vpack.c.bf16 %v2588_v28, %v2190_v21 }
  0xcb   :  { %12046 = vmatpush3.bf16.msra.mxu1 %v2351_v23  ;;  %12037 = vmatprep.mubr.msk.bf16.mxu1 %vm73_vm1, %v14329_v45 }
  0xcc   :  { %13730 = vmatprep.subr.msk.bf16.mxu1 %vm98_vm0, %v10589_v34 }
  0xd0   :  { %11954 = vmatmul.mubr.msk.bf16.gmra.mrb[8].mxu0 %vm73_vm1, %v14118_v29  ;;  %v2484_v29 = vsel %vm98_vm0, %v10589_v34, 0 }
  0xd1   :  { %11957 = vmatprep.mubr.msk.bf16.mxu0 %vm73_vm1, %v14266_v20 }
  0xd2   :  { %12038 = vmatmul.mubr.msk.bf16.gmra.mrb[20].mxu1 %vm73_vm1, %v14333_v46 }
  0xd3   :  { %12041 = vmatprep.mubr.msk.bf16.mxu1 %vm73_vm1, %v2196_v48 }
  0xd8   :  { %11958 = vmatmul.mubr.msk.bf16.gmra.mrb[12].mxu0 %vm73_vm1, %v14296_v33  ;;  %v2590_v33 = vld [vmem:[%s16322_s0 + $0xfa] sm:$0x3f] }
  0xd9   :  { %v2596_v39 = vpack.c.bf16 %v2590_v33, %v2589_v31 }
  0xda   :  { %12042 = vmatmul.mubr.msk.bf16.gmra.mrb[24].mxu1 %vm73_vm1, %v2197_v54 }
  0xdb   :  { %12047 = vmatprep.mubr.msk.bf16.mxu1 %vm73_vm1, %v14225_v2  ;;  %v2324_v2 = vld [vmem:[%s16322_s0 + $0xf8] sm:$0x3f] }
  0xdc   :  { %v2330_v3 = vpack.c.bf16 %v2324_v2, %v2323_v1 }
  0xe2   :  { %12048 = vmatmul.mubr.msk.bf16.vlgmr.msra.gmra.mrb[16].mxu1 %vm73_vm1, %v14250_v4  ;;  %v2455_v4 = vld [vmem:[%s16322_s0 + $0xe9] sm:$0xff] }
  0xe3   :  { %12060 = vmatpush3.bf16.msra.mxu1 %v2484_v29  ;;  %12051 = vmatprep.mubr.msk.bf16.mxu1 %vm73_vm1, %v14254_v15  ;;  %v2462_v15 = vpack.c.bf16 %v2455_v4, %v2057_v59 }
  0xe4   :  { %13731 = vmatprep.subr.msk.bf16.mxu1 %vm98_vm0, %v10596_v61 }
  0xea   :  { %12052 = vmatmul.mubr.msk.bf16.gmra.mrb[20].mxu1 %vm73_vm1, %v1930_v22 }
  0xeb   :  { %12055 = vmatprep.mubr.msk.bf16.mxu1 %vm73_vm1, %v2329_v0 }
  0xf2   :  { %12056 = vmatmul.mubr.msk.bf16.gmra.mrb[24].mxu1 %vm73_vm1, %v2330_v3 }
  0xf3   :  { %12061 = vmatprep.mubr.msk.bf16.mxu1 %vm73_vm1, %v14151_v42 }
  0xf9   :  { %v11821_v8 = vpop.f32.mrb[0].mxu1 }
  0xfa   :  { %v260_v9 = vpop.f32.mrb[1].mxu1  ;;  %12062 = vmatmul.mubr.msk.bf16.vlgmr.msra.gmra.mrb[16].mxu1 %vm73_vm1, %v14176_v52  ;;  %v2456_v52 = vld [vmem:[%s16322_s0 + $0xf1] sm:$0xff] }
  0xfb   :  { %v11822_v10 = vpop.f32.mrb[2].mxu1  ;;  %12074 = vmatpush3.bf16.msra.mxu1 %v2617_v5  ;;  %12065 = vmatprep.mubr.msk.bf16.mxu1 %vm73_vm1, %v14180_v53  ;;  %v2457_v53 = vld [vmem:[%s16322_s0 + $0xf9] sm:$0x3f] }
  0xfc   :  { %v263_v11 = vpop.f32.mrb[3].mxu1  ;;  %v2463_v24 = vpack.c.bf16 %v2457_v53, %v2456_v52  ;;  %13732 = vmatprep.subr.msk.bf16.mxu1 %vm98_vm0, %v10603_v6 }
 0x101   :  { %v14493_v16 = vpop.f32.mrb[4].mxu1 }
 0x102   :  { %v14495_v42 = vpop.f32.mrb[5].mxu1  ;;  %12066 = vmatmul.mubr.msk.bf16.gmra.mrb[20].mxu1 %vm73_vm1, %v2063_v49 }
 0x103   :  { %v14498_v19 = vpop.f32.mrb[6].mxu1  ;;  %12069 = vmatprep.mubr.msk.bf16.mxu1 %vm73_vm1, %v2462_v15 }
 0x104   :  { %v14507_v20 = vpop.f32.mrb[7].mxu1 }
 0x109   :  { %v14509_v25 = vpop.f32.mrb[8].mxu1 }
 0x10a   :  { %v14511_v13 = vpop.f32.mrb[9].mxu1  ;;  %12070 = vmatmul.mubr.msk.bf16.gmra.mrb[24].mxu1 %vm73_vm1, %v2463_v24 }
 0x10b   :  { %v14514_v26 = vpop.f32.mrb[10].mxu1  ;;  %12075 = vmatprep.mubr.msk.bf16.mxu1 %vm73_vm1, %v14303_v38 }
 0x10c   :  { %v14518_v27 = vpop.f32.mrb[11].mxu1 }
 0x112   :  { %12076 = vmatmul.mubr.msk.bf16.vlgmr.msra.gmra.mrb[16].mxu1 %vm73_vm1, %v14329_v45  ;;  %v10684_v45 = vld [vmem:[%s16323_s3 + $0x4] sm:$0xf] }
 0x113   :  { %12079 = vmatprep.mubr.msk.bf16.mxu1 %vm73_vm1, %v14333_v46  ;;  %12088 = vmatpush3.bf16.msra.mxu1 %v2826_v43  ;;  %v4304_v46 = vsel %vm98_vm0, %v10684_v45, 0 }
 0x114   :  { %13733 = vmatprep.subr.msk.bf16.mxu1 %vm98_vm0, %v14552_v44  ;;  %13741 = vmatprep.subr.msk.bf16.mxu0 %vm98_vm0, %v10684_v45 }
 0x115   :  { %12250 = vmatpush3.bf16.msra.mxu0 %v4304_v46 }
 0x116   :  { %13742 = vmatprep.subr.msk.bf16.mxu0 %vm98_vm0, %v14564_v50 }
 0x11a   :  { %12080 = vmatmul.mubr.msk.bf16.gmra.mrb[20].mxu1 %vm73_vm1, %v2196_v48 }
 0x11b   :  { %12083 = vmatprep.mubr.msk.bf16.mxu1 %vm73_vm1, %v2595_v60 }
 0x11d   :  { %v14535_v36 = vpop.f32.mrb[12].mxu1 }
 0x11e   :  { %v14537_v38 = vpop.f32.mrb[13].mxu1 }
 0x11f   :  { %v14539_v40 = vpop.f32.mrb[14].mxu1 }
 0x120   :  { %v14541_v62 = vpop.f32.mrb[15].mxu1 }
 0x122   :  { %12084 = vmatmul.mubr.msk.bf16.gmra.mrb[24].mxu1 %vm73_vm1, %v2596_v39 }
 0x193   :  { %v11947_v7 = vpop.f32.mrb[0].mxu0 }
 0x194   :  { %v12881_v12 = vadd.f32 %v11947_v7, %v11821_v8  ;;  %v1406_v14 = vpop.f32.mrb[1].mxu0 }
 0x195   :  { %v12882_v17 = vadd.f32 %v1406_v14, %v260_v9  ;;  %v11948_v55 = vpop.f32.mrb[2].mxu0 }
 0x196   :  { %v1493_v22 = vadd.f32 %v12881_v12, %v14571_v51  ;;  %v12883_v56 = vadd.f32 %v11948_v55, %v11822_v10  ;;  %v1409_v57 = vpop.f32.mrb[3].mxu0 }
 0x197   :  { %v1491_v18 = vadd.f32 %v12882_v17, %v14571_v51  ;;  %v12884_v32 = vadd.f32 %v1409_v57, %v263_v11  ;;  %v14613_v17 = vld [vmem:[%s16323_s3 + $0x8] sm:$0xf] }
 0x198   :  { %v1509_v35 = vmax.f32 %v1493_v22, 0.0  ;;  %v1494_v47 = vadd.f32 %v12883_v56, %v14571_v51 }
 0x199   :  { %v1507_v49 = vmax.f32 %v1491_v18, 0.0  ;;  %v1492_v59 = vadd.f32 %v12884_v32, %v14571_v51 }
 0x19a   :  { %1525 = vst.msk [vmem:[#allocation2 + $0x10] sm:$0xff] %vm73_vm1, %v1509_v35  ;;  %v1510_v30 = vmax.f32 %v1494_v47, 0.0 }
 0x19b   :  { %1523 = vst.msk [vmem:[#allocation2] sm:$0xff] %vm73_vm1, %v1507_v49  ;;  %v1508_v58 = vmax.f32 %v1492_v59, 0.0  ;;  %v11951_v23 = vpop.f32.mrb[4].mxu0 }
 0x19c   :  { %1526 = vst.msk [vmem:[#allocation2 + $0x18] sm:$0xff] %vm73_vm1, %v1510_v30  ;;  %v12885_v34 = vadd.f32 %v11951_v23, %v14493_v16  ;;  %v1422_v37 = vpop.f32.mrb[5].mxu0 }
 0x19d   :  { %1524 = vst.msk [vmem:[#allocation2 + $0x8] sm:$0xff] %vm73_vm1, %v1508_v58  ;;  %v12886_v48 = vadd.f32 %v1422_v37, %v14495_v42  ;;  %v11952_v21 = vpop.f32.mrb[6].mxu0 }
 0x19e   :  { %v1497_v41 = vadd.f32 %v12885_v34, %v14571_v51  ;;  %v12887_v54 = vadd.f32 %v11952_v21, %v14498_v19  ;;  %v1425_v29 = vpop.f32.mrb[7].mxu0 }
 0x19f   :  { %v1495_v61 = vadd.f32 %v12886_v48, %v14571_v51  ;;  %v12888_v63 = vadd.f32 %v1425_v29, %v14507_v20 }
 0x1a0   :  { %v1513_v0 = vmax.f32 %v1497_v41, 0.0  ;;  %v1498_v1 = vadd.f32 %v12887_v54, %v14571_v51 }
 0x1a1   :  { %v1511_v2 = vmax.f32 %v1495_v61, 0.0  ;;  %v1496_v3 = vadd.f32 %v12888_v63, %v14571_v51 }
 0x1a2   :  { %1529 = vst.msk [vmem:[#allocation2 + $0x30] sm:$0xff] %vm73_vm1, %v1513_v0  ;;  %v1514_v5 = vmax.f32 %v1498_v1, 0.0 }
 0x1a3   :  { %1527 = vst.msk [vmem:[#allocation2 + $0x20] sm:$0xff] %vm73_vm1, %v1511_v2  ;;  %v1512_v8 = vmax.f32 %v1496_v3, 0.0  ;;  %v11955_v9 = vpop.f32.mrb[8].mxu0  ;;  %v2777_v39 = vld [vmem:[#allocation2 + $0x11] sm:$0xff] }
 0x1a4   :  { %1530 = vst.msk [vmem:[#allocation2 + $0x38] sm:$0xff] %vm73_vm1, %v1514_v5  ;;  %v12889_v10 = vadd.f32 %v11955_v9, %v14509_v25  ;;  %v1438_v11 = vpop.f32.mrb[9].mxu0  ;;  %v2775_v4 = vld [vmem:[#allocation2 + $0x1] sm:$0xff]  ;;  %v2776_v15 = vld [vmem:[#allocation2 + $0x9] sm:$0xff] }
 0x1a5   :  { %1528 = vst.msk [vmem:[#allocation2 + $0x28] sm:$0xff] %vm73_vm1, %v1512_v8  ;;  %v12890_v16 = vadd.f32 %v1438_v11, %v14511_v13  ;;  %v11956_v42 = vpop.f32.mrb[10].mxu0  ;;  %v2791_v19 = vpack.c.bf16 %v2776_v15, %v2775_v4 }
 0x1a6   :  { %v1501_v52 = vadd.f32 %v12889_v10, %v14571_v51  ;;  %v12891_v53 = vadd.f32 %v11956_v42, %v14514_v26  ;;  %v1441_v20 = vpop.f32.mrb[11].mxu0 }
 0x1a7   :  { %v1499_v24 = vadd.f32 %v12890_v16, %v14571_v51  ;;  %v12892_v28 = vadd.f32 %v1441_v20, %v14518_v27  ;;  %12089 = vmatprep.mubr.msk.bf16.mxu1 %vm73_vm1, %v2791_v19  ;;  %v2950_v27 = vsel %vm98_vm0, %v14552_v44, 0 }
 0x1a8   :  { %v1517_v25 = vmax.f32 %v1501_v52, 0.0  ;;  %v1502_v60 = vadd.f32 %v12891_v53, %v14571_v51 }
 0x1a9   :  { %v1515_v31 = vmax.f32 %v1499_v24, 0.0  ;;  %v1500_v33 = vadd.f32 %v12892_v28, %v14571_v51 }
 0x1aa   :  { %1533 = vst.msk [vmem:[#allocation2 + $0x50] sm:$0xff] %vm73_vm1, %v1517_v25  ;;  %v1518_v13 = vmax.f32 %v1502_v60, 0.0  ;;  %v2778_v6 = vld [vmem:[#allocation2 + $0x19] sm:$0xff] }
 0x1ab   :  { %1531 = vst.msk [vmem:[#allocation2 + $0x40] sm:$0xff] %vm73_vm1, %v1515_v31  ;;  %v1516_v26 = vmax.f32 %v1500_v33, 0.0  ;;  %v11959_v43 = vpop.f32.mrb[12].mxu0  ;;  %v14604_v45 = vpack.c.bf16 %v2778_v6, %v2777_v39  ;;  %v2781_v59 = vld [vmem:[#allocation2 + $0x31] sm:$0xff]  ;;  %v2751_v31 = vld [vmem:[#allocation2 + $0x8] sm:$0xff] }
 0x1ac   :  { %1534 = vst.msk [vmem:[#allocation2 + $0x58] sm:$0xff] %vm73_vm1, %v1518_v13  ;;  %v12893_v46 = vadd.f32 %v11959_v43, %v14535_v36  ;;  %v1454_v7 = vpop.f32.mrb[13].mxu0  ;;  %v2779_v12 = vld [vmem:[#allocation2 + $0x21] sm:$0xff]  ;;  %v2780_v14 = vld [vmem:[#allocation2 + $0x29] sm:$0xff] }
 0x1ad   :  { %1532 = vst.msk [vmem:[#allocation2 + $0x48] sm:$0xff] %vm73_vm1, %v1516_v26  ;;  %v12894_v55 = vadd.f32 %v1454_v7, %v14537_v38  ;;  %v11960_v22 = vpop.f32.mrb[14].mxu0  ;;  %12090 = vmatmul.mubr.msk.bf16.vlgmr.msra.gmra.mrb[28].mxu1 %vm73_vm1, %v14604_v45  ;;  %v14619_v44 = vpack.c.bf16 %v2780_v14, %v2779_v12  ;;  %v2750_v43 = vld [vmem:[#allocation2] sm:$0xff] }
 0x1ae   :  { %v1505_v36 = vadd.f32 %v12893_v46, %v14571_v51  ;;  %v12895_v56 = vadd.f32 %v11960_v22, %v14539_v40  ;;  %v1457_v57 = vpop.f32.mrb[15].mxu0  ;;  %12106 = vmatpush3.bf16.msra.mxu1 %v2950_v27  ;;  %v2766_v27 = vpack.c.bf16 %v2751_v31, %v2750_v43 }
 0x1af   :  { %v1503_v18 = vadd.f32 %v12894_v55, %v14571_v51  ;;  %v12896_v32 = vadd.f32 %v1457_v57, %v14541_v62  ;;  %12093 = vmatprep.mubr.msk.bf16.mxu1 %vm73_vm1, %v14619_v44  ;;  %13734 = vmatprep.subr.msk.bf16.mxu1 %vm98_vm0, %v14613_v17 }
 0x1b0   :  { %v1521_v38 = vmax.f32 %v1505_v36, 0.0  ;;  %v1506_v35 = vadd.f32 %v12895_v56, %v14571_v51 }
 0x1b1   :  { %v1519_v47 = vmax.f32 %v1503_v18, 0.0  ;;  %v1504_v49 = vadd.f32 %v12896_v32, %v14571_v51 }
 0x1b2   :  { %1537 = vst.msk [vmem:[#allocation2 + $0x70] sm:$0xff] %vm73_vm1, %v1521_v38  ;;  %v1522_v40 = vmax.f32 %v1506_v35, 0.0  ;;  %v2782_v30 = vld [vmem:[#allocation2 + $0x39] sm:$0xff] }
 0x1b3   :  { %1535 = vst.msk [vmem:[#allocation2 + $0x60] sm:$0xff] %vm73_vm1, %v1519_v47  ;;  %v1520_v62 = vmax.f32 %v1504_v49, 0.0  ;;  %v14633_v58 = vpack.c.bf16 %v2782_v30, %v2781_v59  ;;  %v2785_v48 = vld [vmem:[#allocation2 + $0x51] sm:$0xff]  ;;  %v2755_v49 = vld [vmem:[#allocation2 + $0x28] sm:$0xff] }
 0x1b4   :  { %1538 = vst.msk [vmem:[#allocation2 + $0x78] sm:$0xff] %vm73_vm1, %v1522_v40  ;;  %v2783_v23 = vld [vmem:[#allocation2 + $0x41] sm:$0xff]  ;;  %v2784_v34 = vld [vmem:[#allocation2 + $0x49] sm:$0xff]  ;;  %v2753_v38 = vld [vmem:[#allocation2 + $0x18] sm:$0xff] }
 0x1b5   :  { %1536 = vst.msk [vmem:[#allocation2 + $0x68] sm:$0xff] %vm73_vm1, %v1520_v62  ;;  %12094 = vmatmul.mubr.msk.bf16.gmra.mrb[32].mxu1 %vm73_vm1, %v14633_v58  ;;  %v14639_v37 = vpack.c.bf16 %v2784_v34, %v2783_v23  ;;  %v2752_v59 = vld [vmem:[#allocation2 + $0x10] sm:$0xff] }
 0x1b6   :  { %v14682_v34 = vpack.c.bf16 %v2753_v38, %v2752_v59  ;;  %v3053_v59 = vld [vmem:[#allocation2 + $0x22] sm:$0xff] }
 0x1b7   :  { %12097 = vmatprep.mubr.msk.bf16.mxu1 %vm73_vm1, %v14639_v37 }
 0x1ba   :  { %v2786_v21 = vld [vmem:[#allocation2 + $0x59] sm:$0xff] }
 0x1bb   :  { %v14643_v41 = vpack.c.bf16 %v2786_v21, %v2785_v48  ;;  %v2789_v13 = vld [vmem:[#allocation2 + $0x71] sm:$0xff]  ;;  %v2754_v21 = vld [vmem:[#allocation2 + $0x20] sm:$0xff] }
 0x1bc   :  { %v2787_v54 = vld [vmem:[#allocation2 + $0x61] sm:$0xff]  ;;  %v2788_v29 = vld [vmem:[#allocation2 + $0x69] sm:$0xff] }
 0x1bd   :  { %12098 = vmatmul.mubr.msk.bf16.gmra.mrb[36].mxu1 %vm73_vm1, %v14643_v41  ;;  %v14647_v61 = vpack.c.bf16 %v2788_v29, %v2787_v54  ;;  %v3100_v54 = vsel %vm98_vm0, %v14613_v17, 0  ;;  %v10693_v17 = vld [vmem:[%s16323_s3 + $0x8] sm:$0xf] }
 0x1be   :  { %v4477_v43 = vsel %vm98_vm0, %v10693_v17, 0 }
 0x1bf   :  { %12101 = vmatprep.mubr.msk.bf16.mxu1 %vm73_vm1, %v14647_v61 }
 0x1e5   :  { %v12077_v63 = vpop.f32.mrb[16].mxu1 }
 0x1e6   :  { %v2714_v0 = vadd.f32 %v12077_v63, %v14571_v51  ;;  %v2653_v1 = vpop.f32.mrb[17].mxu1 }
 0x1e7   :  { %v2712_v2 = vadd.f32 %v14571_v51, %v2653_v1  ;;  %v12078_v3 = vpop.f32.mrb[18].mxu1 }
 0x1e8   :  { %v2726_v5 = vmax.f32 %v2714_v0, 0.0  ;;  %v2715_v8 = vadd.f32 %v12078_v3, %v14571_v51  ;;  %v2656_v9 = vpop.f32.mrb[19].mxu1  ;;  %v4384_v0 = vsel %vm98_vm0, %v14564_v50, 0  ;;  %v2757_v50 = vld [vmem:[#allocation2 + $0x38] sm:$0xff] }
 0x1e9   :  { %v2724_v10 = vmax.f32 %v2712_v2, 0.0  ;;  %v2713_v11 = vadd.f32 %v14571_v51, %v2656_v9  ;;  %v14706_v2 = vld [vmem:[%s16323_s3 + $0xc] sm:$0xf] }
 0x1ea   :  { %2738 = vst.msk [vmem:[#allocation2 + $0x90] sm:$0xff] %vm73_vm1, %v2726_v5  ;;  %v2727_v4 = vmax.f32 %v2715_v8, 0.0  ;;  %v2759_v8 = vld [vmem:[#allocation2 + $0x48] sm:$0xff] }
 0x1eb   :  { %2736 = vst.msk [vmem:[#allocation2 + $0x80] sm:$0xff] %vm73_vm1, %v2724_v10  ;;  %v2725_v15 = vmax.f32 %v2713_v11, 0.0  ;;  %v2756_v10 = vld [vmem:[#allocation2 + $0x30] sm:$0xff] }
 0x1ec   :  { %2739 = vst.msk [vmem:[#allocation2 + $0x98] sm:$0xff] %vm73_vm1, %v2727_v4  ;;  %v14717_v11 = vpack.c.bf16 %v2757_v50, %v2756_v10 }
 0x1ed   :  { %2737 = vst.msk [vmem:[#allocation2 + $0x88] sm:$0xff] %vm73_vm1, %v2725_v15  ;;  %v12081_v16 = vpop.f32.mrb[20].mxu1  ;;  %v2758_v15 = vld [vmem:[#allocation2 + $0x40] sm:$0xff] }
 0x1ee   :  { %v2718_v42 = vadd.f32 %v12081_v16, %v14571_v51  ;;  %v2669_v19 = vpop.f32.mrb[21].mxu1 }
 0x1ef   :  { %v2716_v52 = vadd.f32 %v14571_v51, %v2669_v19  ;;  %v12082_v53 = vpop.f32.mrb[22].mxu1 }
 0x1f0   :  { %v2730_v20 = vmax.f32 %v2718_v42, 0.0  ;;  %v2719_v24 = vadd.f32 %v12082_v53, %v14571_v51  ;;  %v2672_v28 = vpop.f32.mrb[23].mxu1  ;;  %v14720_v42 = vpack.c.bf16 %v2759_v8, %v2758_v15  ;;  %v3056_v8 = vld [vmem:[#allocation2 + $0x3a] sm:$0xff]  ;;  %v3058_v15 = vld [vmem:[#allocation2 + $0x4a] sm:$0xff] }
 0x1f1   :  { %v2728_v25 = vmax.f32 %v2716_v52, 0.0  ;;  %v2717_v60 = vadd.f32 %v14571_v51, %v2672_v28  ;;  %v2761_v52 = vld [vmem:[#allocation2 + $0x58] sm:$0xff]  ;;  %v2760_v28 = vld [vmem:[#allocation2 + $0x50] sm:$0xff] }
 0x1f2   :  { %2742 = vst.msk [vmem:[#allocation2 + $0xb0] sm:$0xff] %vm73_vm1, %v2730_v20  ;;  %v2731_v33 = vmax.f32 %v2719_v24, 0.0  ;;  %v2790_v39 = vld [vmem:[#allocation2 + $0x79] sm:$0xff]  ;;  %v2763_v20 = vld [vmem:[#allocation2 + $0x68] sm:$0xff] }
 0x1f3   :  { %2740 = vst.msk [vmem:[#allocation2 + $0xa0] sm:$0xff] %vm73_vm1, %v2728_v25  ;;  %v2729_v6 = vmax.f32 %v2717_v60, 0.0  ;;  %v14665_v26 = vpack.c.bf16 %v2790_v39, %v2789_v13  ;;  %v4280_v30 = vld [vmem:[#allocation2 + $0x91] sm:$0xff]  ;;  %v4265_v16 = vld [vmem:[#allocation2 + $0x80] sm:$0xff]  ;;  %v14731_v60 = vpack.c.bf16 %v2761_v52, %v2760_v28 }
 0x1f4   :  { %2743 = vst.msk [vmem:[#allocation2 + $0xb8] sm:$0xff] %vm73_vm1, %v2731_v33  ;;  %v4278_v46 = vld [vmem:[#allocation2 + $0x81] sm:$0xff]  ;;  %v4279_v7 = vld [vmem:[#allocation2 + $0x89] sm:$0xff]  ;;  %v4268_v53 = vld [vmem:[#allocation2 + $0x98] sm:$0xff] }
 0x1f5   :  { %2741 = vst.msk [vmem:[#allocation2 + $0xa8] sm:$0xff] %vm73_vm1, %v2729_v6  ;;  %v12085_v12 = vpop.f32.mrb[24].mxu1  ;;  %12102 = vmatmul.mubr.msk.bf16.gmra.mrb[40].mxu1 %vm73_vm1, %v14665_v26  ;;  %v14671_v14 = vpack.c.bf16 %v4279_v7, %v4278_v46  ;;  %v4266_v9 = vld [vmem:[#allocation2 + $0x88] sm:$0xff]  ;;  %v4267_v25 = vld [vmem:[#allocation2 + $0x90] sm:$0xff]  ;;  %v2762_v33 = vld [vmem:[#allocation2 + $0x60] sm:$0xff] }
 0x1f6   :  { %v2722_v55 = vadd.f32 %v12085_v12, %v14571_v51  ;;  %v2685_v22 = vpop.f32.mrb[25].mxu1  ;;  %12107 = vmatprep.mubr.msk.bf16.mxu1 %vm73_vm1, %v2766_v27  ;;  %v14722_v19 = vpack.c.bf16 %v4266_v9, %v4265_v16  ;;  %v14733_v31 = vpack.c.bf16 %v4268_v53, %v4267_v25  ;;  %v14735_v39 = vpack.c.bf16 %v2763_v20, %v2762_v33  ;;  %v10698_v27 = vld [vmem:[%s16323_s3 + $0xc] sm:$0xf]  ;;  %v2765_v46 = vld [vmem:[#allocation2 + $0x78] sm:$0xff]  ;;  %v3049_v12 = vld [vmem:[#allocation2 + $0x2] sm:$0xff] }
 0x1f7   :  { %v2720_v36 = vadd.f32 %v14571_v51, %v2685_v22  ;;  %v12086_v56 = vpop.f32.mrb[26].mxu1  ;;  %12251 = vmatprep.mubr.msk.bf16.mxu0 %vm73_vm1, %v14671_v14  ;;  %v4451_v22 = vld [vmem:[#allocation2 + $0x82] sm:$0xff]  ;;  %v3055_v16 = vld [vmem:[#allocation2 + $0x32] sm:$0xff]  ;;  %v3062_v25 = vld [vmem:[#allocation2 + $0x6a] sm:$0xff] }
 0x1f8   :  { %v2734_v57 = vmax.f32 %v2722_v55, 0.0  ;;  %v2723_v18 = vadd.f32 %v12086_v56, %v14571_v51  ;;  %v2688_v32 = vpop.f32.mrb[27].mxu1  ;;  %v3050_v55 = vld [vmem:[#allocation2 + $0xa] sm:$0xff]  ;;  %v14789_v52 = vpack.c.bf16 %v3056_v8, %v3055_v16  ;;  %v3061_v28 = vld [vmem:[#allocation2 + $0x62] sm:$0xff] }
 0x1f9   :  { %v2732_v35 = vmax.f32 %v2720_v36, 0.0  ;;  %v2721_v47 = vadd.f32 %v14571_v51, %v2688_v32  ;;  %v14689_v51 = vpack.c.bf16 %v2755_v49, %v2754_v21  ;;  %v4452_v36 = vld [vmem:[#allocation2 + $0x8a] sm:$0xff]  ;;  %v3065_v38 = vpack.c.bf16 %v3050_v55, %v3049_v12  ;;  %v10708_v12 = vld [vmem:[%s16323_s3 + $0x14] sm:$0xf]  ;;  %v3064_v55 = vld [vmem:[#allocation2 + $0x7a] sm:$0xff] }
 0x1fa   :  { %2746 = vst.msk [vmem:[#allocation2 + $0xd0] sm:$0xff] %vm73_vm1, %v2734_v57  ;;  %v2735_v40 = vmax.f32 %v2723_v18, 0.0  ;;  %v4281_v62 = vld [vmem:[#allocation2 + $0x99] sm:$0xff]  ;;  %v2764_v56 = vld [vmem:[#allocation2 + $0x70] sm:$0xff] }
 0x1fb   :  { %2744 = vst.msk [vmem:[#allocation2 + $0xc0] sm:$0xff] %vm73_vm1, %v2732_v35  ;;  %v2733_v23 = vmax.f32 %v2721_v47, 0.0  ;;  %v14684_v48 = vpack.c.bf16 %v4281_v62, %v4280_v30  ;;  %v14712_v3 = vld [vmem:[#allocation2 + $0xb1] sm:$0xff]  ;;  %v4285_v5 = vld [vmem:[#allocation2 + $0xb9] sm:$0xf]  ;;  %v4269_v13 = vld [vmem:[#allocation2 + $0xa0] sm:$0xff]  ;;  %v14752_v18 = vpack.c.bf16 %v2765_v46, %v2764_v56  ;;  %v14754_v35 = vpack.c.bf16 %v4452_v36, %v4451_v22 }
 0x1fc   :  { %2748 = vst.msk [vmem:[#allocation2 + $0xd8] sm:$0x3f] %vm2747_vm2, %v2735_v40  ;;  %v4282_v29 = vld [vmem:[#allocation2 + $0xa1] sm:$0xff]  ;;  %v4283_v63 = vld [vmem:[#allocation2 + $0xa9] sm:$0xff]  ;;  %v4289_v4 = vpack.c.bf16 %v4285_v5, %v14712_v3  ;;  %v4272_v7 = vld [vmem:[#allocation2 + $0xb8] sm:$0xf] }
 0x1fd   :  { %2745 = vst.msk [vmem:[#allocation2 + $0xc8] sm:$0xff] %vm73_vm1, %v2733_v23  ;;  %12108 = vmatmul.mubr.msk.bf16.vlgmr.msra.gmra.mrb[28].mxu1 %vm73_vm1, %v14682_v34  ;;  %12252 = vmatmul.mubr.msk.bf16.vlgmr.msra.gmra.mrb[16].mxu0 %vm73_vm1, %v14684_v48  ;;  %v14698_v1 = vpack.c.bf16 %v4283_v63, %v4282_v29  ;;  %v4270_v24 = vld [vmem:[#allocation2 + $0xa8] sm:$0xff]  ;;  %v4271_v57 = vld [vmem:[#allocation2 + $0xb0] sm:$0xff]  ;;  %v3052_v47 = vld [vmem:[#allocation2 + $0x1a] sm:$0xff]  ;;  %v3266_v63 = vsel %vm98_vm0, %v14706_v2, 0 }
 0x1fe   :  { %12111 = vmatprep.mubr.msk.bf16.mxu1 %vm73_vm1, %v14689_v51  ;;  %12124 = vmatpush3.bf16.msra.mxu1 %v3100_v54  ;;  %v14737_v6 = vpack.c.bf16 %v4270_v24, %v4269_v13  ;;  %v4276_v32 = vpack.c.bf16 %v4272_v7, %v4271_v57  ;;  %v4454_v49 = vld [vmem:[#allocation2 + $0x9a] sm:$0xff]  ;;  %v3051_v40 = vld [vmem:[#allocation2 + $0x12] sm:$0xff]  ;;  %v3054_v30 = vld [vmem:[#allocation2 + $0x2a] sm:$0xff] }
 0x1ff   :  { %12255 = vmatprep.mubr.msk.bf16.mxu0 %vm73_vm1, %v14698_v1  ;;  %12260 = vmatpush3.bf16.msra.mxu0 %v4384_v0  ;;  %v4453_v62 = vld [vmem:[#allocation2 + $0x92] sm:$0xff]  ;;  %v4455_v23 = vld [vmem:[#allocation2 + $0xa2] sm:$0xff]  ;;  %v4456_v21 = vld [vmem:[#allocation2 + $0xaa] sm:$0xff]  ;;  %v14762_v54 = vpack.c.bf16 %v3052_v47, %v3051_v40  ;;  %v14768_v0 = vpack.c.bf16 %v3054_v30, %v3053_v59 }
 0x200   :  { %13743 = vmatprep.subr.msk.bf16.mxu0 %vm98_vm0, %v10693_v17  ;;  %13735 = vmatprep.subr.msk.bf16.mxu1 %vm98_vm0, %v14706_v2  ;;  %v14764_v29 = vpack.c.bf16 %v4454_v49, %v4453_v62  ;;  %v4578_v17 = vsel %vm98_vm0, %v10698_v27, 0  ;;  %v14775_v50 = vpack.c.bf16 %v4456_v21, %v4455_v23  ;;  %v10703_v5 = vld [vmem:[%s16323_s3 + $0x10] sm:$0xf]  ;;  %v4458_v10 = vld [vmem:[#allocation2 + $0xba] sm:$0xf]  ;;  %v4780_v49 = vsel %vm98_vm0, %v10708_v12, 0 }
 0x201   :  { %v10638_v2 = vld [vmem:[%s16323_s3 + $0x10] sm:$0xf]  ;;  %v3060_v24 = vld [vmem:[#allocation2 + $0x5a] sm:$0xff]  ;;  %v4679_v7 = vsel %vm98_vm0, %v10703_v5, 0  ;;  %v10647_v59 = vld [vmem:[%s16323_s3 + $0x14] sm:$0xf] }
 0x202   :  { %v4457_v9 = vld [vmem:[#allocation2 + $0xb2] sm:$0xff]  ;;  %v4558_v56 = vld [vmem:[#allocation2 + $0xc0] sm:$0xff]  ;;  %v3432_v47 = vsel %vm98_vm0, %v10638_v2, 0 }
 0x203   :  { %v4462_v53 = vpack.c.bf16 %v4458_v10, %v4457_v9  ;;  %v4557_v33 = vld [vmem:[#allocation2 + $0xb8] sm:$0xff]  ;;  %v3598_v10 = vsel %vm98_vm0, %v10647_v59, 0  ;;  %v10723_v16 = vld [vmem:[%s16323_s3 + $0x20] sm:$0xf] }
 0x204   :  { %v3059_v13 = vld [vmem:[#allocation2 + $0x52] sm:$0xff]  ;;  %v4562_v46 = vpack.c.bf16 %v4557_v33, %v4271_v57  ;;  %v4559_v22 = vld [vmem:[#allocation2 + $0xc8] sm:$0xf]  ;;  %v4759_v23 = vld [vmem:[#allocation2 + $0xba] sm:$0xff] }
 0x205   :  { %12112 = vmatmul.mubr.msk.bf16.gmra.mrb[32].mxu1 %vm73_vm1, %v14717_v11  ;;  %12256 = vmatmul.mubr.msk.bf16.gmra.mrb[20].mxu0 %vm73_vm1, %v4289_v4  ;;  %v3057_v4 = vld [vmem:[#allocation2 + $0x42] sm:$0xff]  ;;  %v3063_v36 = vld [vmem:[#allocation2 + $0x72] sm:$0xff]  ;;  %v4764_v21 = vpack.c.bf16 %v4759_v23, %v4457_v9 }
 0x206   :  { %12115 = vmatprep.mubr.msk.bf16.mxu1 %vm73_vm1, %v14720_v42  ;;  %12261 = vmatprep.mubr.msk.bf16.mxu0 %vm73_vm1, %v14722_v19  ;;  %v14791_v20 = vpack.c.bf16 %v3058_v15, %v3057_v4  ;;  %v14816_v57 = vpack.c.bf16 %v3064_v55, %v3063_v36  ;;  %v4659_v30 = vld [vmem:[#allocation2 + $0xc1] sm:$0xff]  ;;  %v4660_v62 = vld [vmem:[#allocation2 + $0xc9] sm:$0xf]  ;;  %v5064_v55 = vld [vmem:[#allocation2 + $0xda] sm:$0xf] }
 0x207   :  { %v4860_v9 = vld [vmem:[#allocation2 + $0xc8] sm:$0xff] }
 0x208   :  { %v4865_v15 = vpack.c.bf16 %v4860_v9, %v4558_v56  ;;  %v10758_v23 = vld [vmem:[%s16322_s0 + $0x149] sm:$0xff] }
 0x20d   :  { %12116 = vmatmul.mubr.msk.bf16.gmra.mrb[36].mxu1 %vm73_vm1, %v14731_v60  ;;  %12262 = vmatmul.mubr.msk.bf16.vlgmr.msra.gmra.mrb[16].mxu0 %vm73_vm1, %v14733_v31 }
 0x20e   :  { %12119 = vmatprep.mubr.msk.bf16.mxu1 %vm73_vm1, %v14735_v39  ;;  %12265 = vmatprep.mubr.msk.bf16.mxu0 %vm73_vm1, %v14737_v6 }
 0x20f   :  { %12270 = vmatpush3.bf16.msra.mxu0 %v4477_v43  ;;  %v14800_v43 = vpack.c.bf16 %v3060_v24, %v3059_v13 }
 0x210   :  { %13744 = vmatprep.subr.msk.bf16.mxu0 %vm98_vm0, %v10698_v27  ;;  %v14802_v27 = vpack.c.bf16 %v3062_v25, %v3061_v28  ;;  %v5083_v28 = vsel %vm98_vm0, %v10723_v16, 0 }
 0x215   :  { %12120 = vmatmul.mubr.msk.bf16.gmra.mrb[40].mxu1 %vm73_vm1, %v14752_v18  ;;  %12266 = vmatmul.mubr.msk.bf16.gmra.mrb[20].mxu0 %vm73_vm1, %v4276_v32  ;;  %v4563_v32 = vpack.c.bf16 %v4559_v22, %v4558_v56  ;;  %v10751_v56 = vld [vmem:[%s16322_s0 + $0x111] sm:$0xff] }
 0x216   :  { %12125 = vmatprep.mubr.msk.bf16.mxu1 %vm73_vm1, %v3065_v38  ;;  %12271 = vmatprep.mubr.msk.bf16.mxu0 %vm73_vm1, %v14754_v35  ;;  %v4658_v38 = vld [vmem:[#allocation2 + $0xb9] sm:$0xff] }
 0x217   :  { %v4663_v40 = vpack.c.bf16 %v4658_v38, %v14712_v3  ;;  %v4664_v3 = vpack.c.bf16 %v4660_v62, %v4659_v30  ;;  %v10753_v38 = vld [vmem:[%s16322_s0 + $0x121] sm:$0xff]  ;;  %v10756_v62 = vld [vmem:[%s16322_s0 + $0x139] sm:$0xff] }
 0x21d   :  { %12126 = vmatmul.mubr.msk.bf16.vlgmr.msra.gmra.mrb[28].mxu1 %vm73_vm1, %v14762_v54  ;;  %12272 = vmatmul.mubr.msk.bf16.vlgmr.msra.gmra.mrb[16].mxu0 %vm73_vm1, %v14764_v29 }
 0x21e   :  { %12129 = vmatprep.mubr.msk.bf16.mxu1 %vm73_vm1, %v14768_v0  ;;  %12142 = vmatpush3.bf16.msra.mxu1 %v3266_v63 }
 0x21f   :  { %12275 = vmatprep.mubr.msk.bf16.mxu0 %vm73_vm1, %v14775_v50  ;;  %12280 = vmatpush3.bf16.msra.mxu0 %v4578_v17  ;;  %v10718_v17 = vld [vmem:[%s16323_s3 + $0x1c] sm:$0xf] }
 0x220   :  { %13745 = vmatprep.subr.msk.bf16.mxu0 %vm98_vm0, %v10703_v5  ;;  %13736 = vmatprep.subr.msk.bf16.mxu1 %vm98_vm0, %v10638_v2  ;;  %v4760_v5 = vld [vmem:[#allocation2 + $0xc2] sm:$0xff]  ;;  %v4761_v2 = vld [vmem:[#allocation2 + $0xca] sm:$0xf]  ;;  %v4982_v4 = vsel %vm98_vm0, %v10718_v17, 0 }
 0x221   :  { %v4765_v8 = vpack.c.bf16 %v4761_v2, %v4760_v5  ;;  %v10761_v2 = vld [vmem:[%s16322_s0 + $0x161] sm:$0xff] }
 0x225   :  { %12130 = vmatmul.mubr.msk.bf16.gmra.mrb[32].mxu1 %vm73_vm1, %v14789_v52  ;;  %12276 = vmatmul.mubr.msk.bf16.gmra.mrb[20].mxu0 %vm73_vm1, %v4462_v53 }
 0x226   :  { %12133 = vmatprep.mubr.msk.bf16.mxu1 %vm73_vm1, %v14791_v20  ;;  %12281 = vmatprep.mubr.msk.bf16.mxu0 %vm73_vm1, %v14733_v31 }
 0x22d   :  { %12134 = vmatmul.mubr.msk.bf16.gmra.mrb[36].mxu1 %vm73_vm1, %v14800_v43  ;;  %12282 = vmatmul.mubr.msk.bf16.vlgmr.msra.gmra.mrb[16].mxu0 %vm73_vm1, %v14737_v6 }
 0x22e   :  { %12137 = vmatprep.mubr.msk.bf16.mxu1 %vm73_vm1, %v14802_v27  ;;  %12285 = vmatprep.mubr.msk.bf16.mxu0 %vm73_vm1, %v4562_v46 }
 0x22f   :  { %12290 = vmatpush3.bf16.msra.mxu0 %v4679_v7  ;;  %v10750_v7 = vld [vmem:[%s16322_s0 + $0x109] sm:$0xff] }
 0x230   :  { %13746 = vmatprep.subr.msk.bf16.mxu0 %vm98_vm0, %v10708_v12  ;;  %v5063_v12 = vld [vmem:[#allocation2 + $0xd2] sm:$0xff] }
 0x231   :  { %v5068_v36 = vpack.c.bf16 %v5064_v55, %v5063_v12  ;;  %v3883_v55 = vld [vmem:[#allocation2 + $0x41] sm:$0xff] }
 0x235   :  { %12138 = vmatmul.mubr.msk.bf16.gmra.mrb[40].mxu1 %vm73_vm1, %v14816_v57  ;;  %12286 = vmatmul.mubr.msk.bf16.gmra.mrb[20].mxu0 %vm73_vm1, %v4563_v32  ;;  %v10752_v32 = vld [vmem:[%s16322_s0 + $0x119] sm:$0xff] }
 0x236   :  { %12143 = vmatprep.mubr.msk.bf16.mxu1 %vm73_vm1, %v14682_v34  ;;  %12291 = vmatprep.mubr.msk.bf16.mxu0 %vm73_vm1, %v14684_v48  ;;  %v10713_v34 = vld [vmem:[%s16323_s3 + $0x18] sm:$0xf] }
 0x237   :  { %v4881_v63 = vsel %vm98_vm0, %v10713_v34, 0 }
 0x23d   :  { %12144 = vmatmul.mubr.msk.bf16.vlgmr.msra.gmra.mrb[28].mxu1 %vm73_vm1, %v14689_v51  ;;  %12292 = vmatmul.mubr.msk.bf16.vlgmr.msra.gmra.mrb[16].mxu0 %vm73_vm1, %v14698_v1 }
 0x23e   :  { %12147 = vmatprep.mubr.msk.bf16.mxu1 %vm73_vm1, %v14717_v11  ;;  %12160 = vmatpush3.bf16.msra.mxu1 %v3432_v47  ;;  %v10754_v47 = vld [vmem:[%s16322_s0 + $0x129] sm:$0xff] }
 0x23f   :  { %12295 = vmatprep.mubr.msk.bf16.mxu0 %vm73_vm1, %v4663_v40  ;;  %12300 = vmatpush3.bf16.msra.mxu0 %v4780_v49  ;;  %v14950_v49 = vpack.c.bf16 %v10752_v32, %v10751_v56 }
 0x240   :  { %13747 = vmatprep.subr.msk.bf16.mxu0 %vm98_vm0, %v10713_v34  ;;  %13737 = vmatprep.subr.msk.bf16.mxu1 %vm98_vm0, %v10647_v59  ;;  %v10798_v59 = vld [vmem:[%s16321_s1 + $0x8] sm:$0xf] }
 0x245   :  { %12148 = vmatmul.mubr.msk.bf16.gmra.mrb[32].mxu1 %vm73_vm1, %v14720_v42  ;;  %12296 = vmatmul.mubr.msk.bf16.gmra.mrb[20].mxu0 %vm73_vm1, %v4664_v3  ;;  %v10757_v3 = vld [vmem:[%s16322_s0 + $0x141] sm:$0xff] }
 0x246   :  { %12151 = vmatprep.mubr.msk.bf16.mxu1 %vm73_vm1, %v14731_v60  ;;  %12301 = vmatprep.mubr.msk.bf16.mxu0 %vm73_vm1, %v14764_v29 }
 0x24d   :  { %12152 = vmatmul.mubr.msk.bf16.gmra.mrb[36].mxu1 %vm73_vm1, %v14735_v39  ;;  %12302 = vmatmul.mubr.msk.bf16.vlgmr.msra.gmra.mrb[16].mxu0 %vm73_vm1, %v14775_v50 }
 0x24e   :  { %12155 = vmatprep.mubr.msk.bf16.mxu1 %vm73_vm1, %v14752_v18  ;;  %12305 = vmatprep.mubr.msk.bf16.mxu0 %vm73_vm1, %v4764_v21 }
 0x24f   :  { %12310 = vmatpush3.bf16.msra.mxu0 %v4881_v63  ;;  %v14981_v63 = vpack.c.bf16 %v10758_v23, %v10757_v3  ;;  %v10783_v3 = vld [vmem:[%s16322_s0 + $0x10a] sm:$0xff]  ;;  %v3886_v23 = vld [vmem:[#allocation2 + $0x59] sm:$0xff] }
 0x250   :  { %13748 = vmatprep.subr.msk.bf16.mxu0 %vm98_vm0, %v10718_v17  ;;  %v10759_v17 = vld [vmem:[%s16322_s0 + $0x151] sm:$0xff] }
 0x255   :  { %12156 = vmatmul.mubr.msk.bf16.gmra.mrb[40].mxu1 %vm73_vm1, %v14722_v19  ;;  %12306 = vmatmul.mubr.msk.bf16.gmra.mrb[20].mxu0 %vm73_vm1, %v4765_v8  ;;  %v10762_v8 = vld [vmem:[%s16322_s0 + $0x169] sm:$0xff] }
 0x256   :  { %12161 = vmatprep.mubr.msk.bf16.mxu1 %vm73_vm1, %v14604_v45  ;;  %12311 = vmatprep.mubr.msk.bf16.mxu0 %vm73_vm1, %v14737_v6  ;;  %v10656_v45 = vld [vmem:[%s16323_s3 + $0x18] sm:$0xf] }
 0x257   :  { %v4862_v6 = vld [vmem:[#allocation2 + $0xd8] sm:$0xf] }
 0x25d   :  { %12162 = vmatmul.mubr.msk.bf16.vlgmr.msra.gmra.mrb[28].mxu1 %vm73_vm1, %v14619_v44  ;;  %12312 = vmatmul.mubr.msk.bf16.vlgmr.msra.gmra.mrb[16].mxu0 %vm73_vm1, %v4562_v46  ;;  %v4861_v44 = vld [vmem:[#allocation2 + $0xd0] sm:$0xff]  ;;  %v10665_v46 = vld [vmem:[%s16323_s3 + $0x1c] sm:$0xf] }
 0x25e   :  { %12165 = vmatprep.mubr.msk.bf16.mxu1 %vm73_vm1, %v14633_v58  ;;  %12178 = vmatpush3.bf16.msra.mxu1 %v3598_v10  ;;  %v4866_v53 = vpack.c.bf16 %v4862_v6, %v4861_v44  ;;  %v4961_v58 = vld [vmem:[#allocation2 + $0xc9] sm:$0xff]  ;;  %v3930_v9 = vsel %vm98_vm0, %v10665_v46, 0  ;;  %v15006_v10 = vpack.c.bf16 %v10762_v8, %v10761_v2  ;;  %v3885_v8 = vld [vmem:[#allocation2 + $0x51] sm:$0xff] }
 0x25f   :  { %12315 = vmatprep.mubr.msk.bf16.mxu0 %vm73_vm1, %v4865_v15  ;;  %12320 = vmatpush3.bf16.msra.mxu0 %v4982_v4  ;;  %v4966_v24 = vpack.c.bf16 %v4961_v58, %v4659_v30  ;;  %v10755_v30 = vld [vmem:[%s16322_s0 + $0x131] sm:$0xff]  ;;  %v10674_v4 = vld [vmem:[%s16323_s3 + $0x20] sm:$0xf]  ;;  %v10738_v58 = vld [vmem:[%s16322_s0 + $0x128] sm:$0xff] }
 0x260   :  { %13749 = vmatprep.subr.msk.bf16.mxu0 %vm98_vm0, %v10723_v16  ;;  %13738 = vmatprep.subr.msk.bf16.mxu1 %vm98_vm0, %v10656_v45  ;;  %v10763_v15 = vld [vmem:[%s16322_s0 + $0x171] sm:$0xff]  ;;  %v10764_v16 = vld [vmem:[%s16322_s0 + $0x179] sm:$0xff]  ;;  %v4096_v32 = vsel %vm98_vm0, %v10674_v4, 0  ;;  %v3888_v2 = vld [vmem:[#allocation2 + $0x69] sm:$0xff] }
 0x261   :  { %v10735_v44 = vld [vmem:[%s16322_s0 + $0x110] sm:$0xff] }
 0x265   :  { %12166 = vmatmul.mubr.msk.bf16.gmra.mrb[32].mxu1 %vm73_vm1, %v14639_v37  ;;  %12316 = vmatmul.mubr.msk.bf16.gmra.mrb[20].mxu0 %vm73_vm1, %v4866_v53  ;;  %v10765_v37 = vld [vmem:[%s16321_s1 + $0x4] sm:$0xf]  ;;  %v10736_v53 = vld [vmem:[%s16322_s0 + $0x118] sm:$0xff] }
 0x266   :  { %12169 = vmatprep.mubr.msk.bf16.mxu1 %vm73_vm1, %v14643_v41  ;;  %12321 = vmatprep.mubr.msk.bf16.mxu0 %vm73_vm1, %v14698_v1  ;;  %v4962_v41 = vld [vmem:[#allocation2 + $0xd1] sm:$0xff]  ;;  %v4963_v1 = vld [vmem:[#allocation2 + $0xd9] sm:$0xf]  ;;  %v5336_v33 = vsel %vm98_vm0, %v10765_v37, 0 }
 0x267   :  { %v4967_v25 = vpack.c.bf16 %v4963_v1, %v4962_v41  ;;  %v10739_v41 = vld [vmem:[%s16322_s0 + $0x130] sm:$0xff]  ;;  %v10741_v1 = vld [vmem:[%s16322_s0 + $0x140] sm:$0xff] }
 0x26d   :  { %12170 = vmatmul.mubr.msk.bf16.gmra.mrb[36].mxu1 %vm73_vm1, %v14647_v61  ;;  %12322 = vmatmul.mubr.msk.bf16.vlgmr.msra.gmra.mrb[16].mxu0 %vm73_vm1, %v4663_v40  ;;  %v5062_v61 = vld [vmem:[#allocation2 + $0xca] sm:$0xff]  ;;  %v14952_v40 = vpack.c.bf16 %v10754_v47, %v10753_v38 }
 0x26e   :  { %12173 = vmatprep.mubr.msk.bf16.mxu1 %vm73_vm1, %v14665_v26  ;;  %12325 = vmatprep.mubr.msk.bf16.mxu0 %vm73_vm1, %v4966_v24  ;;  %v3764_v26 = vsel %vm98_vm0, %v10656_v45, 0  ;;  %v5067_v13 = vpack.c.bf16 %v5062_v61, %v4760_v5  ;;  %v10760_v5 = vld [vmem:[%s16322_s0 + $0x159] sm:$0xff]  ;;  %v15032_v45 = vpack.c.bf16 %v10764_v16, %v10763_v15  ;;  %v15053_v24 = vpack.c.bf16 %v10736_v53, %v10735_v44  ;;  %v3879_v61 = vld [vmem:[#allocation2 + $0x21] sm:$0xff] }
 0x26f   :  { %12330 = vmatpush3.bf16.msra.mxu0 %v5083_v28  ;;  %v5609_v28 = vsel %vm98_vm0, %v10798_v59, 0  ;;  %v10784_v16 = vld [vmem:[%s16322_s0 + $0x112] sm:$0xff] }
 0x270   :  { %13750 = vmatprep.subr.msk.bf16.mxu0 %vm98_vm0, %v10765_v37  ;;  %v15065_v37 = vld [vmem:[%s16321_s1 + $0xc] sm:$0xf]  ;;  %v3890_v44 = vld [vmem:[#allocation2 + $0x79] sm:$0xff] }
 0x275   :  { %12174 = vmatmul.mubr.msk.bf16.gmra.mrb[40].mxu1 %vm73_vm1, %v14671_v14  ;;  %12326 = vmatmul.mubr.msk.bf16.gmra.mrb[20].mxu0 %vm73_vm1, %v4967_v25  ;;  %v10742_v25 = vld [vmem:[%s16322_s0 + $0x148] sm:$0xff] }
 0x276   :  { %12179 = vmatprep.mubr.msk.bf16.mxu1 %vm73_vm1, %v14762_v54  ;;  %12331 = vmatprep.mubr.msk.bf16.mxu0 %vm73_vm1, %v14775_v50  ;;  %v5285_v54 = vld [vmem:[%s16321_s1] sm:$0xf] }
 0x277   :  { %v10749_v50 = vld [vmem:[%s16322_s0 + $0x101] sm:$0xff]  ;;  %v5460_v34 = vsel %vm98_vm0, %v5285_v54, 0 }
 0x278   :  { %v5302_v22 = vpack.c.bf16 %v10750_v7, %v10749_v50  ;;  %v3882_v50 = vld [vmem:[#allocation2 + $0x39] sm:$0xff]  ;;  %v10746_v7 = vld [vmem:[%s16322_s0 + $0x168] sm:$0xff] }
 0x27d   :  { %12180 = vmatmul.mubr.msk.bf16.vlgmr.msra.gmra.mrb[28].mxu1 %vm73_vm1, %v14768_v0  ;;  %12332 = vmatmul.mubr.msk.bf16.vlgmr.msra.gmra.mrb[16].mxu0 %vm73_vm1, %v4764_v21  ;;  %v14979_v21 = vpack.c.bf16 %v10756_v62, %v10755_v30  ;;  %v10748_v30 = vld [vmem:[%s16322_s0 + $0x178] sm:$0xff]  ;;  %v10782_v62 = vld [vmem:[%s16322_s0 + $0x102] sm:$0xff] }
 0x27e   :  { %12183 = vmatprep.mubr.msk.bf16.mxu1 %vm73_vm1, %v14789_v52  ;;  %12196 = vmatpush3.bf16.msra.mxu1 %v3764_v26  ;;  %v3880_v26 = vld [vmem:[#allocation2 + $0x29] sm:$0xff] }
 0x27f   :  { %12335 = vmatprep.mubr.msk.bf16.mxu0 %vm73_vm1, %v5067_v13  ;;  %12340 = vmatpush3.bf16.msra.mxu0 %v5336_v33  ;;  %v15087_v33 = vpack.c.bf16 %v10742_v25, %v10741_v1  ;;  %v3895_v13 = vpack.c.bf16 %v3880_v26, %v3879_v61  ;;  %v10788_v1 = vld [vmem:[%s16322_s0 + $0x132] sm:$0xff]  ;;  %v10790_v25 = vld [vmem:[%s16322_s0 + $0x142] sm:$0xff]  ;;  %v10791_v61 = vld [vmem:[%s16322_s0 + $0x14a] sm:$0xff] }
 0x280   :  { %13739 = vmatprep.subr.msk.bf16.mxu1 %vm98_vm0, %v10665_v46  ;;  %13751 = vmatprep.subr.msk.bf16.mxu0 %vm98_vm0, %v5285_v54  ;;  %v10743_v46 = vld [vmem:[%s16322_s0 + $0x150] sm:$0xff]  ;;  %v10744_v54 = vld [vmem:[%s16322_s0 + $0x158] sm:$0xff]  ;;  %v15185_v26 = vpack.c.bf16 %v10791_v61, %v10790_v25  ;;  %v10967_v25 = vld [vmem:[%s16322_s0 + $0x1c8] sm:$0xff] }
 0x281   :  { %v15108_v12 = vpack.c.bf16 %v10744_v54, %v10743_v46  ;;  %v10793_v46 = vld [vmem:[%s16322_s0 + $0x15a] sm:$0xff]  ;;  %v10795_v54 = vld [vmem:[%s16322_s0 + $0x16a] sm:$0xff] }
 0x285   :  { %12184 = vmatmul.mubr.msk.bf16.gmra.mrb[32].mxu1 %vm73_vm1, %v14791_v20  ;;  %12336 = vmatmul.mubr.msk.bf16.gmra.mrb[20].mxu0 %vm73_vm1, %v5068_v36  ;;  %v3881_v36 = vld [vmem:[#allocation2 + $0x31] sm:$0xff] }
 0x286   :  { %12187 = vmatprep.mubr.msk.bf16.mxu1 %vm73_vm1, %v14800_v43  ;;  %12341 = vmatprep.mubr.msk.bf16.mxu0 %vm73_vm1, %v5302_v22  ;;  %v3884_v22 = vld [vmem:[#allocation2 + $0x49] sm:$0xff]  ;;  %v3896_v56 = vpack.c.bf16 %v3882_v50, %v3881_v36  ;;  %v10973_v36 = vld [vmem:[%s16322_s0 + $0x199] sm:$0xff] }
 0x287   :  { %v3897_v47 = vpack.c.bf16 %v3884_v22, %v3883_v55  ;;  %v10796_v55 = vld [vmem:[%s16322_s0 + $0x172] sm:$0xff]  ;;  %v10797_v22 = vld [vmem:[%s16322_s0 + $0x17a] sm:$0xff] }
 0x28d   :  { %12188 = vmatmul.mubr.msk.bf16.gmra.mrb[36].mxu1 %vm73_vm1, %v14802_v27  ;;  %12342 = vmatmul.mubr.msk.bf16.vlgmr.msra.gmra.mrb[24].mxu0 %vm73_vm1, %v14950_v49 }
 0x28e   :  { %12191 = vmatprep.mubr.msk.bf16.mxu1 %vm73_vm1, %v14816_v57  ;;  %12345 = vmatprep.mubr.msk.bf16.mxu0 %vm73_vm1, %v14952_v40 }
 0x28f   :  { %12358 = vmatpush3.bf16.msra.mxu0 %v5460_v34  ;;  %v10982_v34 = vld [vmem:[%s16321_s1 + $0x4] sm:$0xf] }
 0x290   :  { %13752 = vmatprep.subr.msk.bf16.mxu0 %vm98_vm0, %v10798_v59  ;;  %v10747_v59 = vld [vmem:[%s16322_s0 + $0x170] sm:$0xff]  ;;  %v6825_v50 = vsel %vm98_vm0, %v10982_v34, 0 }
 0x295   :  { %12192 = vmatmul.mubr.msk.bf16.gmra.mrb[40].mxu1 %vm73_vm1, %v14754_v35  ;;  %12346 = vmatmul.mubr.msk.bf16.gmra.mrb[28].mxu0 %vm73_vm1, %v14979_v21 }
 0x296   :  { %12197 = vmatprep.mubr.msk.bf16.mxu1 %vm73_vm1, %v14689_v51  ;;  %12349 = vmatprep.mubr.msk.bf16.mxu0 %vm73_vm1, %v14981_v63  ;;  %v15003_v51 = vpack.c.bf16 %v10760_v5, %v10759_v17  ;;  %v15135_v17 = vpack.c.bf16 %v10748_v30, %v10747_v59  ;;  %v3887_v5 = vld [vmem:[#allocation2 + $0x61] sm:$0xff] }
 0x297   :  { %v3899_v15 = vpack.c.bf16 %v3888_v2, %v3887_v5  ;;  %v11007_v59 = vld [vmem:[%s16321_s1 + $0x8] sm:$0xf]  ;;  %v10821_v30 = vld [vmem:[%s16322_s0 + $0x180] sm:$0xff] }
 0x298   :  { %v10978_v5 = vld [vmem:[%s16322_s0 + $0x1c1] sm:$0xff]  ;;  %v10979_v2 = vld [vmem:[%s16322_s0 + $0x1c9] sm:$0xff] }
 0x29d   :  { %12198 = vmatmul.mubr.msk.bf16.vlgmr.msra.gmra.mrb[28].mxu1 %vm73_vm1, %v14717_v11  ;;  %12350 = vmatmul.mubr.msk.bf16.gmra.mrb[32].mxu0 %vm73_vm1, %v15003_v51  ;;  %v10733_v11 = vld [vmem:[%s16322_s0 + $0x100] sm:$0xff] }
 0x29e   :  { %12201 = vmatprep.mubr.msk.bf16.mxu1 %vm73_vm1, %v14720_v42  ;;  %12214 = vmatpush3.bf16.msra.mxu1 %v3930_v9  ;;  %v10734_v42 = vld [vmem:[%s16322_s0 + $0x108] sm:$0xff]  ;;  %v5575_v9 = vpack.c.bf16 %v10783_v3, %v10782_v62  ;;  %v10976_v3 = vld [vmem:[%s16322_s0 + $0x1b1] sm:$0xff] }
 0x29f   :  { %12353 = vmatprep.mubr.msk.bf16.mxu0 %vm73_vm1, %v15006_v10  ;;  %13740 = vmatprep.subr.msk.bf16.mxu1 %vm98_vm0, %v10674_v4  ;;  %v5277_v6 = vpack.c.bf16 %v10734_v42, %v10733_v11  ;;  %v3898_v4 = vpack.c.bf16 %v3886_v23, %v3885_v8  ;;  %v10785_v11 = vld [vmem:[%s16322_s0 + $0x11a] sm:$0xff]  ;;  %v10786_v42 = vld [vmem:[%s16322_s0 + $0x122] sm:$0xff] }
 0x2a0   :  { %v15154_v53 = vpack.c.bf16 %v10785_v11, %v10784_v16  ;;  %v10822_v62 = vld [vmem:[%s16322_s0 + $0x188] sm:$0xff]  ;;  %v10977_v23 = vld [vmem:[%s16322_s0 + $0x1b9] sm:$0xff] }
 0x2a1   :  { %v15316_v8 = vpack.c.bf16 %v10822_v62, %v10821_v30  ;;  %v10981_v16 = vld [vmem:[%s16322_s0 + $0x1d9] sm:$0x3f] }
 0x2a2   :  { %v15486_v62 = vld [vmem:[%s16322_s0 + $0x1d2] sm:$0xff] }
 0x2a5   :  { %12202 = vmatmul.mubr.msk.bf16.gmra.mrb[32].mxu1 %vm73_vm1, %v14731_v60  ;;  %12354 = vmatmul.mubr.msk.bf16.gmra.mrb[36].mxu0 %vm73_vm1, %v15032_v45  ;;  %v10737_v60 = vld [vmem:[%s16322_s0 + $0x120] sm:$0xff] }
 0x2a6   :  { %12205 = vmatprep.mubr.msk.bf16.mxu1 %vm73_vm1, %v14735_v39  ;;  %12359 = vmatprep.mubr.msk.bf16.mxu0 %vm73_vm1, %v5277_v6  ;;  %v15055_v39 = vpack.c.bf16 %v10738_v58, %v10737_v60  ;;  %v10787_v6 = vld [vmem:[%s16322_s0 + $0x12a] sm:$0xff] }
 0x2a7   :  { %v3889_v60 = vld [vmem:[#allocation2 + $0x71] sm:$0xff]  ;;  %v15156_v58 = vpack.c.bf16 %v10787_v6, %v10786_v42 }
 0x2a8   :  { %v10960_v6 = vld [vmem:[%s16322_s0 + $0x190] sm:$0xff] }
 0x2ad   :  { %12206 = vmatmul.mubr.msk.bf16.gmra.mrb[36].mxu1 %vm73_vm1, %v14752_v18  ;;  %12360 = vmatmul.mubr.msk.bf16.vlgmr.msra.gmra.mrb[24].mxu0 %vm73_vm1, %v15053_v24  ;;  %v10740_v18 = vld [vmem:[%s16322_s0 + $0x138] sm:$0xff] }
 0x2ae   :  { %12209 = vmatprep.mubr.msk.bf16.mxu1 %vm73_vm1, %v14722_v19  ;;  %12363 = vmatprep.mubr.msk.bf16.mxu0 %vm73_vm1, %v15055_v39  ;;  %v15085_v19 = vpack.c.bf16 %v10740_v18, %v10739_v41  ;;  %v5774_v41 = vsel %vm98_vm0, %v15065_v37, 0  ;;  %v10848_v18 = vld [vmem:[%s16321_s1 + $0x10] sm:$0xf] }
 0x2af   :  { %12376 = vmatpush3.bf16.msra.mxu0 %v5609_v28  ;;  %v3900_v28 = vpack.c.bf16 %v3890_v44, %v3889_v60  ;;  %v10962_v44 = vld [vmem:[%s16322_s0 + $0x1a0] sm:$0xff] }
 0x2b0   :  { %13753 = vmatprep.subr.msk.bf16.mxu0 %vm98_vm0, %v15065_v37  ;;  %v10789_v37 = vld [vmem:[%s16322_s0 + $0x13a] sm:$0xff] }
 0x2b5   :  { %12210 = vmatmul.mubr.msk.bf16.gmra.mrb[40].mxu1 %vm73_vm1, %v14733_v31  ;;  %12364 = vmatmul.mubr.msk.bf16.gmra.mrb[28].mxu0 %vm73_vm1, %v15085_v19  ;;  %v10745_v31 = vld [vmem:[%s16322_s0 + $0x160] sm:$0xff] }
 0x2b6   :  { %12215 = vmatprep.mubr.msk.bf16.mxu1 %vm73_vm1, %v3895_v13  ;;  %12367 = vmatprep.mubr.msk.bf16.mxu0 %vm73_vm1, %v15087_v33  ;;  %v15111_v38 = vpack.c.bf16 %v10746_v7, %v10745_v31  ;;  %v10792_v13 = vld [vmem:[%s16322_s0 + $0x152] sm:$0xff]  ;;  %v6786_v7 = vld [vmem:[%s16321_s1] sm:$0xf] }
 0x2bd   :  { %12216 = vmatmul.mubr.msk.bf16.vlgmr.msra.gmra.mrb[28].mxu1 %vm73_vm1, %v3896_v56  ;;  %12368 = vmatmul.mubr.msk.bf16.gmra.mrb[32].mxu0 %vm73_vm1, %v15108_v12  ;;  %v10975_v56 = vld [vmem:[%s16322_s0 + $0x1a9] sm:$0xff] }
 0x2be   :  { %12219 = vmatprep.mubr.msk.bf16.mxu1 %vm73_vm1, %v3897_v47  ;;  %12232 = vmatpush3.bf16.msra.mxu1 %v4096_v32  ;;  %v6927_v47 = vsel %vm98_vm0, %v6786_v7, 0 }
 0x2bf   :  { %12371 = vmatprep.mubr.msk.bf16.mxu0 %vm73_vm1, %v15111_v38  ;;  %13759 = vmatprep.subr.msk.bf16.mxu1 %vm98_vm0, %v10982_v34 }
 0x2c5   :  { %12220 = vmatmul.mubr.msk.bf16.gmra.mrb[32].mxu1 %vm73_vm1, %v3898_v4  ;;  %12372 = vmatmul.mubr.msk.bf16.gmra.mrb[36].mxu0 %vm73_vm1, %v15135_v17  ;;  %v15320_v4 = vpack.c.bf16 %v10979_v2, %v10978_v5  ;;  %v11064_v2 = vld [vmem:[%s16321_s1 + $0x14] sm:$0xf] }
 0x2c6   :  { %12223 = vmatprep.mubr.msk.bf16.mxu1 %vm73_vm1, %v3899_v15  ;;  %12377 = vmatprep.mubr.msk.bf16.mxu0 %vm73_vm1, %v5575_v9  ;;  %v15318_v9 = vpack.c.bf16 %v10977_v23, %v10976_v3  ;;  %v15333_v15 = vld [vmem:[%s16322_s0 + $0x1d1] sm:$0xff]  ;;  %v11006_v3 = vld [vmem:[%s16322_s0 + $0x1da] sm:$0x3f] }
 0x2c7   :  { %v6804_v11 = vpack.c.bf16 %v10981_v16, %v15333_v15  ;;  %v7027_v23 = vpack.c.bf16 %v11006_v3, %v15486_v62  ;;  %v11023_v16 = vld [vmem:[%s16322_s0 + $0x1d8] sm:$0xff] }
 0x2cd   :  { %12224 = vmatmul.mubr.msk.bf16.gmra.mrb[36].mxu1 %vm73_vm1, %v3900_v28  ;;  %12378 = vmatmul.mubr.msk.bf16.vlgmr.msra.gmra.mrb[24].mxu0 %vm73_vm1, %v15154_v53  ;;  %v7048_v28 = vsel %vm98_vm0, %v11007_v59, 0 }
 0x2ce   :  { %12227 = vmatprep.mubr.msk.bf16.mxu1 %vm73_vm1, %v14671_v14  ;;  %12381 = vmatprep.mubr.msk.bf16.mxu0 %vm73_vm1, %v15156_v58  ;;  %v15183_v14 = vpack.c.bf16 %v10789_v37, %v10788_v1  ;;  %v10964_v1 = vld [vmem:[%s16322_s0 + $0x1b0] sm:$0xff]  ;;  %v10965_v37 = vld [vmem:[%s16322_s0 + $0x1b8] sm:$0xff] }
 0x2cf   :  { %12394 = vmatpush3.bf16.msra.mxu0 %v5774_v41 }
 0x2d0   :  { %13754 = vmatprep.subr.msk.bf16.mxu0 %vm98_vm0, %v10848_v18 }
 0x2d5   :  { %12228 = vmatmul.mubr.msk.bf16.gmra.mrb[40].mxu1 %vm73_vm1, %v14684_v48  ;;  %12382 = vmatmul.mubr.msk.bf16.gmra.mrb[28].mxu0 %vm73_vm1, %v15183_v14  ;;  %v10794_v48 = vld [vmem:[%s16322_s0 + $0x162] sm:$0xff] }
 0x2d6   :  { %12233 = vmatprep.mubr.msk.bf16.mxu1 %vm73_vm1, %v14768_v0  ;;  %12385 = vmatprep.mubr.msk.bf16.mxu0 %vm73_vm1, %v15185_v26  ;;  %v15207_v0 = vpack.c.bf16 %v10793_v46, %v10792_v13  ;;  %v15210_v31 = vpack.c.bf16 %v10795_v54, %v10794_v48  ;;  %v10968_v13 = vld [vmem:[%s16322_s0 + $0x1d0] sm:$0xff]  ;;  %v10969_v46 = vld [vmem:[%s16322_s0 + $0x1d8] sm:$0x3f] }
 0x2d7   :  { %v10996_v48 = vld [vmem:[%s16322_s0 + $0x18a] sm:$0xff] }
 0x2dd   :  { %12234 = vmatmul.mubr.msk.bf16.vlgmr.msra.gmra.mrb[28].mxu1 %vm73_vm1, %v14789_v52  ;;  %12386 = vmatmul.mubr.msk.bf16.gmra.mrb[32].mxu0 %vm73_vm1, %v15207_v0  ;;  %v15230_v52 = vpack.c.bf16 %v10797_v22, %v10796_v55  ;;  %v10999_v55 = vld [vmem:[%s16322_s0 + $0x1a2] sm:$0xff]  ;;  %v11000_v22 = vld [vmem:[%s16322_s0 + $0x1aa] sm:$0xff] }
 0x2de   :  { %12237 = vmatprep.mubr.msk.bf16.mxu1 %vm73_vm1, %v14791_v20  ;;  %12502 = vmatpush3.bf16.msra.mxu1 %v6825_v50  ;;  %v5939_v20 = vsel %vm98_vm0, %v10848_v18, 0  ;;  %v11026_v18 = vld [vmem:[%s16321_s1 + $0xc] sm:$0xf]  ;;  %v10997_v50 = vld [vmem:[%s16322_s0 + $0x192] sm:$0xff] }
 0x2df   :  { %12389 = vmatprep.mubr.msk.bf16.mxu0 %vm73_vm1, %v15210_v31  ;;  %13760 = vmatprep.subr.msk.bf16.mxu1 %vm98_vm0, %v6786_v7  ;;  %v10998_v7 = vld [vmem:[%s16322_s0 + $0x19a] sm:$0xff] }
 0x2e5   :  { %12238 = vmatmul.mubr.msk.bf16.gmra.mrb[32].mxu1 %vm73_vm1, %v14800_v43  ;;  %12390 = vmatmul.mubr.msk.bf16.gmra.mrb[36].mxu0 %vm73_vm1, %v15230_v52  ;;  %v10873_v43 = vld [vmem:[%s16321_s1 + $0x14] sm:$0xf] }
 0x2e6   :  { %12241 = vmatprep.mubr.msk.bf16.mxu1 %vm73_vm1, %v14802_v27  ;;  %12395 = vmatprep.mubr.msk.bf16.mxu0 %vm73_vm1, %v15053_v24  ;;  %v10970_v27 = vld [vmem:[%s16322_s0 + $0x181] sm:$0xff]  ;;  %v6104_v42 = vsel %vm98_vm0, %v10873_v43, 0 }
 0x2ed   :  { %12242 = vmatmul.mubr.msk.bf16.gmra.mrb[36].mxu1 %vm73_vm1, %v14816_v57  ;;  %12396 = vmatmul.mubr.msk.bf16.vlgmr.msra.gmra.mrb[24].mxu0 %vm73_vm1, %v15055_v39  ;;  %v10971_v57 = vld [vmem:[%s16322_s0 + $0x189] sm:$0xff] }
 0x2ee   :  { %12245 = vmatprep.mubr.msk.bf16.mxu1 %vm73_vm1, %v14754_v35  ;;  %12399 = vmatprep.mubr.msk.bf16.mxu0 %vm73_vm1, %v15085_v19  ;;  %v15259_v24 = vpack.c.bf16 %v10971_v57, %v10970_v27  ;;  %v10972_v35 = vld [vmem:[%s16322_s0 + $0x191] sm:$0xff] }
 0x2ef   :  { %12412 = vmatpush3.bf16.msra.mxu0 %v5939_v20  ;;  %v15281_v32 = vpack.c.bf16 %v10973_v36, %v10972_v35  ;;  %v7181_v20 = vsel %vm98_vm0, %v11026_v18, 0  ;;  %v11045_v57 = vld [vmem:[%s16321_s1 + $0x10] sm:$0xf]  ;;  %v10923_v35 = vld [vmem:[%s16321_s1 + $0x1c] sm:$0xf] }
 0x2f0   :  { %13755 = vmatprep.subr.msk.bf16.mxu0 %vm98_vm0, %v10873_v43  ;;  %v15440_v43 = vpack.c.bf16 %v11000_v22, %v10999_v55  ;;  %v11001_v36 = vld [vmem:[%s16322_s0 + $0x1b2] sm:$0xff]  ;;  %v7314_v5 = vsel %vm98_vm0, %v11045_v57, 0 }
 0x2f5   :  { %12246 = vmatmul.mubr.msk.bf16.gmra.mrb[40].mxu1 %vm73_vm1, %v14764_v29  ;;  %12400 = vmatmul.mubr.msk.bf16.gmra.mrb[28].mxu0 %vm73_vm1, %v15087_v33  ;;  %v10974_v29 = vld [vmem:[%s16322_s0 + $0x1a1] sm:$0xff] }
 0x2f6   :  { %12403 = vmatprep.mubr.msk.bf16.mxu0 %vm73_vm1, %v15108_v12  ;;  %12503 = vmatprep.mubr.msk.bf16.mxu1 %vm73_vm1, %v15259_v24  ;;  %v15284_v34 = vpack.c.bf16 %v10975_v56, %v10974_v29  ;;  %v11002_v29 = vld [vmem:[%s16322_s0 + $0x1ba] sm:$0xff]  ;;  %v11003_v56 = vld [vmem:[%s16322_s0 + $0x1c2] sm:$0xff] }
 0x2fd   :  { %12404 = vmatmul.mubr.msk.bf16.gmra.mrb[32].mxu0 %vm73_vm1, %v15111_v38  ;;  %12504 = vmatmul.mubr.msk.bf16.vlgmr.msra.gmra.mrb[44].mxu1 %vm73_vm1, %v15281_v32 }
 0x2fe   :  { %12516 = vmatpush3.bf16.msra.mxu1 %v6927_v47  ;;  %12407 = vmatprep.mubr.msk.bf16.mxu0 %vm73_vm1, %v15135_v17  ;;  %v11004_v47 = vld [vmem:[%s16322_s0 + $0x1ca] sm:$0xff] }
 0x2ff   :  { %12507 = vmatprep.mubr.msk.bf16.mxu1 %vm73_vm1, %v15284_v34  ;;  %13761 = vmatprep.subr.msk.bf16.mxu1 %vm98_vm0, %v11007_v59  ;;  %v15471_v59 = vpack.c.bf16 %v11002_v29, %v11001_v36  ;;  %v15473_v30 = vpack.c.bf16 %v11004_v47, %v11003_v56  ;;  %v10907_v29 = vld [vmem:[%s16322_s0 + $0x121] sm:$0xff]  ;;  %v10908_v47 = vld [vmem:[%s16322_s0 + $0x129] sm:$0xff] }
 0x305   :  { %12408 = vmatmul.mubr.msk.bf16.gmra.mrb[36].mxu0 %vm73_vm1, %v15316_v8  ;;  %12508 = vmatmul.mubr.msk.bf16.gmra.mrb[48].mxu1 %vm73_vm1, %v15318_v9 }
 0x306   :  { %12413 = vmatprep.mubr.msk.bf16.mxu0 %vm73_vm1, %v14950_v49  ;;  %12511 = vmatprep.mubr.msk.bf16.mxu1 %vm73_vm1, %v15320_v4  ;;  %v10898_v49 = vld [vmem:[%s16321_s1 + $0x18] sm:$0xf] }
 0x307   :  { %v6269_v27 = vsel %vm98_vm0, %v10898_v49, 0 }
 0x30d   :  { %12414 = vmatmul.mubr.msk.bf16.vlgmr.msra.gmra.mrb[24].mxu0 %vm73_vm1, %v14952_v40  ;;  %12512 = vmatmul.mubr.msk.bf16.gmra.mrb[52].mxu1 %vm73_vm1, %v6804_v11  ;;  %v10961_v40 = vld [vmem:[%s16322_s0 + $0x198] sm:$0xff]  ;;  %v15515_v11 = vpack.c.bf16 %v11023_v16, %v10968_v13 }
 0x30e   :  { %12417 = vmatprep.mubr.msk.bf16.mxu0 %vm73_vm1, %v14979_v21  ;;  %12517 = vmatprep.mubr.msk.bf16.mxu1 %vm73_vm1, %v15316_v8  ;;  %v10963_v21 = vld [vmem:[%s16322_s0 + $0x1a8] sm:$0xff]  ;;  %v15363_v60 = vpack.c.bf16 %v10961_v40, %v10960_v6 }
 0x30f   :  { %12430 = vmatpush3.bf16.msra.mxu0 %v6104_v42  ;;  %v15366_v41 = vpack.c.bf16 %v10963_v21, %v10962_v44  ;;  %v6434_v42 = vsel %vm98_vm0, %v10923_v35, 0  ;;  %v11025_v6 = vld [vmem:[%s16322_s0 + $0x1e8] sm:$0x3f] }
 0x310   :  { %13756 = vmatprep.subr.msk.bf16.mxu0 %vm98_vm0, %v10898_v49  ;;  %v15530_v49 = vld [vmem:[%s16325_s4] ss:$0 sm:$0xff] }
 0x315   :  { %12418 = vmatmul.mubr.msk.bf16.gmra.mrb[28].mxu0 %vm73_vm1, %v14981_v63  ;;  %12518 = vmatmul.mubr.msk.bf16.vlgmr.msra.gmra.mrb[44].mxu1 %vm73_vm1, %v15363_v60  ;;  %v10966_v63 = vld [vmem:[%s16322_s0 + $0x1c0] sm:$0xff] }
 0x316   :  { %12530 = vmatpush3.bf16.msra.mxu1 %v7048_v28  ;;  %12421 = vmatprep.mubr.msk.bf16.mxu0 %vm73_vm1, %v15003_v51  ;;  %v15392_v51 = vpack.c.bf16 %v10965_v37, %v10964_v1  ;;  %v15394_v61 = vpack.c.bf16 %v10967_v25, %v10966_v63 }
 0x317   :  { %12521 = vmatprep.mubr.msk.bf16.mxu1 %vm73_vm1, %v15366_v41  ;;  %13762 = vmatprep.subr.msk.bf16.mxu1 %vm98_vm0, %v11026_v18 }
 0x31d   :  { %12422 = vmatmul.mubr.msk.bf16.gmra.mrb[32].mxu0 %vm73_vm1, %v15006_v10  ;;  %12522 = vmatmul.mubr.msk.bf16.gmra.mrb[48].mxu1 %vm73_vm1, %v15392_v51  ;;  %v10995_v10 = vld [vmem:[%s16322_s0 + $0x182] sm:$0xff] }
 0x31e   :  { %12425 = vmatprep.mubr.msk.bf16.mxu0 %vm73_vm1, %v15032_v45  ;;  %12525 = vmatprep.mubr.msk.bf16.mxu1 %vm73_vm1, %v15394_v61  ;;  %v6785_v45 = vpack.c.bf16 %v10969_v46, %v10968_v13  ;;  %v15416_v54 = vpack.c.bf16 %v10996_v48, %v10995_v10 }
 0x325   :  { %12426 = vmatmul.mubr.msk.bf16.gmra.mrb[36].mxu0 %vm73_vm1, %v15259_v24  ;;  %12526 = vmatmul.mubr.msk.bf16.gmra.mrb[52].mxu1 %vm73_vm1, %v6785_v45 }
 0x326   :  { %12431 = vmatprep.mubr.msk.bf16.mxu0 %vm73_vm1, %v15154_v53  ;;  %12531 = vmatprep.mubr.msk.bf16.mxu1 %vm73_vm1, %v15416_v54  ;;  %v15437_v53 = vpack.c.bf16 %v10998_v7, %v10997_v50 }
 0x32d   :  { %12432 = vmatmul.mubr.msk.bf16.vlgmr.msra.gmra.mrb[24].mxu0 %vm73_vm1, %v15156_v58  ;;  %12532 = vmatmul.mubr.msk.bf16.vlgmr.msra.gmra.mrb[44].mxu1 %vm73_vm1, %v15437_v53 }
 0x32e   :  { %12544 = vmatpush3.bf16.msra.mxu1 %v7181_v20  ;;  %12435 = vmatprep.mubr.msk.bf16.mxu0 %vm73_vm1, %v15183_v14 }
 0x32f   :  { %12535 = vmatprep.mubr.msk.bf16.mxu1 %vm73_vm1, %v15440_v43  ;;  %12448 = vmatpush3.bf16.msra.mxu0 %v6269_v27 }
 0x330   :  { %13763 = vmatprep.subr.msk.bf16.mxu1 %vm98_vm0, %v11045_v57  ;;  %13757 = vmatprep.subr.msk.bf16.mxu0 %vm98_vm0, %v10923_v35  ;;  %v11083_v35 = vld [vmem:[%s16321_s1 + $0x18] sm:$0xf] }
 0x335   :  { %12436 = vmatmul.mubr.msk.bf16.gmra.mrb[28].mxu0 %vm73_vm1, %v15185_v26  ;;  %12536 = vmatmul.mubr.msk.bf16.gmra.mrb[48].mxu1 %vm73_vm1, %v15471_v59 }
 0x336   :  { %12439 = vmatprep.mubr.msk.bf16.mxu0 %vm73_vm1, %v15207_v0  ;;  %12539 = vmatprep.mubr.msk.bf16.mxu1 %vm73_vm1, %v15473_v30 }
 0x33d   :  { %12440 = vmatmul.mubr.msk.bf16.gmra.mrb[32].mxu0 %vm73_vm1, %v15210_v31  ;;  %12540 = vmatmul.mubr.msk.bf16.gmra.mrb[52].mxu1 %vm73_vm1, %v7027_v23 }
 0x33e   :  { %12443 = vmatprep.mubr.msk.bf16.mxu0 %vm73_vm1, %v15230_v52  ;;  %12545 = vmatprep.mubr.msk.bf16.mxu1 %vm73_vm1, %v15363_v60 }
 0x345   :  { %12444 = vmatmul.mubr.msk.bf16.gmra.mrb[36].mxu0 %vm73_vm1, %v15416_v54  ;;  %12546 = vmatmul.mubr.msk.bf16.vlgmr.msra.gmra.mrb[44].mxu1 %vm73_vm1, %v15366_v41 }
 0x346   :  { %12558 = vmatpush3.bf16.msra.mxu1 %v7314_v5  ;;  %12449 = vmatprep.mubr.msk.bf16.mxu0 %vm73_vm1, %v15055_v39  ;;  %v15525_v39 = vld [vmem:[%s16321_s1 + $0x20] sm:$0xf] }
 0x347   :  { %12549 = vmatprep.mubr.msk.bf16.mxu1 %vm73_vm1, %v15392_v51  ;;  %13764 = vmatprep.subr.msk.bf16.mxu1 %vm98_vm0, %v11064_v2 }
 0x34d   :  { %12450 = vmatmul.mubr.msk.bf16.vlgmr.msra.gmra.mrb[24].mxu0 %vm73_vm1, %v15085_v19  ;;  %12550 = vmatmul.mubr.msk.bf16.gmra.mrb[48].mxu1 %vm73_vm1, %v15394_v61  ;;  %v15539_v19 = vld [vmem:[%s16322_s0 + $0x1e0] sm:$0xff] }
 0x34e   :  { %12453 = vmatprep.mubr.msk.bf16.mxu0 %vm73_vm1, %v15087_v33  ;;  %12553 = vmatprep.mubr.msk.bf16.mxu1 %vm73_vm1, %v15515_v11  ;;  %v7160_v21 = vpack.c.bf16 %v11025_v6, %v15539_v19 }
 0x34f   :  { %12466 = vmatpush3.bf16.msra.mxu0 %v6434_v42  ;;  %v6400_v42 = vpack.c.bf16 %v10908_v47, %v10907_v29  ;;  %v15683_v47 = vld [vmem:[%s16322_s0 + $0x1e2] sm:$0xff] }
 0x350   :  { %v12333_v40 = vpop.f32.mrb[16].mxu0  ;;  %13758 = vmatprep.subr.msk.bf16.mxu0 %vm98_vm0, %v15525_v39 }
 0x351   :  { %v5160_v44 = vadd.f32 %v12333_v40, %v15530_v49  ;;  %v5119_v33 = vpop.f32.mrb[17].mxu0 }
 0x352   :  { %v5158_v28 = vadd.f32 %v15530_v49, %v5119_v33  ;;  %v12334_v18 = vpop.f32.mrb[18].mxu0  ;;  %v10910_v33 = vld [vmem:[%s16322_s0 + $0x139] sm:$0xff] }
 0x353   :  { %v5168_v1 = vmax.f32 %v5160_v44, 0.0  ;;  %v5161_v37 = vadd.f32 %v12334_v18, %v15530_v49  ;;  %v5122_v63 = vpop.f32.mrb[19].mxu0  ;;  %v10909_v44 = vld [vmem:[%s16322_s0 + $0x131] sm:$0xff]  ;;  %v10912_v18 = vld [vmem:[%s16322_s0 + $0x149] sm:$0xff] }
 0x354   :  { %v5166_v25 = vmax.f32 %v5158_v28, 0.0  ;;  %v5159_v13 = vadd.f32 %v15530_v49, %v5122_v63  ;;  %v10911_v28 = vld [vmem:[%s16322_s0 + $0x141] sm:$0xff] }
 0x355   :  { %5176 = vst.msk [vmem:[#allocation3 + $0x90] sm:$0xff] %vm73_vm1, %v5168_v1  ;;  %v5169_v46 = vmax.f32 %v5161_v37, 0.0  ;;  %12454 = vmatmul.mubr.msk.bf16.gmra.mrb[28].mxu0 %vm73_vm1, %v15108_v12  ;;  %12554 = vmatmul.mubr.msk.bf16.gmra.mrb[52].mxu1 %vm73_vm1, %v7160_v21  ;;  %v15604_v21 = vld [vmem:[%s16322_s0 + $0x1e1] sm:$0xff] }
 0x356   :  { %5174 = vst.msk [vmem:[#allocation3 + $0x80] sm:$0xff] %vm73_vm1, %v5166_v25  ;;  %v5167_v10 = vmax.f32 %v5159_v13, 0.0  ;;  %12457 = vmatprep.mubr.msk.bf16.mxu0 %vm73_vm1, %v15111_v38  ;;  %12559 = vmatprep.mubr.msk.bf16.mxu1 %vm73_vm1, %v15281_v32  ;;  %v7447_v38 = vsel %vm98_vm0, %v11064_v2, 0 }
 0x357   :  { %5177 = vst.msk [vmem:[#allocation3 + $0x98] sm:$0xff] %vm73_vm1, %v5169_v46  ;;  %v6401_v46 = vpack.c.bf16 %v10910_v33, %v10909_v44 }
 0x358   :  { %5175 = vst.msk [vmem:[#allocation3 + $0x88] sm:$0xff] %vm73_vm1, %v5167_v10  ;;  %v12337_v48 = vpop.f32.mrb[20].mxu0 }
 0x359   :  { %v5164_v45 = vadd.f32 %v12337_v48, %v15530_v49  ;;  %v5135_v50 = vpop.f32.mrb[21].mxu0  ;;  %v6402_v48 = vpack.c.bf16 %v10912_v18, %v10911_v28 }
 0x35a   :  { %v5162_v12 = vadd.f32 %v15530_v49, %v5135_v50  ;;  %v12338_v7 = vpop.f32.mrb[22].mxu0  ;;  %v6599_v50 = vsel %vm98_vm0, %v15525_v39, 0  ;;  %v10914_v39 = vld [vmem:[%s16322_s0 + $0x159] sm:$0xff] }
 0x35b   :  { %v5172_v55 = vmax.f32 %v5164_v45, 0.0  ;;  %v5165_v22 = vadd.f32 %v12338_v7, %v15530_v49  ;;  %v5138_v20 = vpop.f32.mrb[23].mxu0  ;;  %v10915_v7 = vld [vmem:[%s16322_s0 + $0x161] sm:$0xff] }
 0x35c   :  { %v5170_v27 = vmax.f32 %v5162_v12, 0.0  ;;  %v5163_v57 = vadd.f32 %v15530_v49, %v5138_v20  ;;  %v10913_v12 = vld [vmem:[%s16322_s0 + $0x151] sm:$0xff] }
 0x35d   :  { %5180 = vst.msk [vmem:[#allocation3 + $0xb0] sm:$0xff] %vm73_vm1, %v5172_v55  ;;  %v5173_v36 = vmax.f32 %v5165_v22, 0.0  ;;  %12458 = vmatmul.mubr.msk.bf16.gmra.mrb[32].mxu0 %vm73_vm1, %v15135_v17  ;;  %12560 = vmatmul.mubr.msk.bf16.vlgmr.msra.gmra.mrb[44].mxu1 %vm73_vm1, %v15284_v34  ;;  %v11042_v17 = vld [vmem:[%s16322_s0 + $0x1d9] sm:$0xff]  ;;  %v10916_v55 = vld [vmem:[%s16322_s0 + $0x169] sm:$0xff]  ;;  %v6403_v22 = vpack.c.bf16 %v10914_v39, %v10913_v12 }
 0x35e   :  { %5178 = vst.msk [vmem:[#allocation3 + $0xa0] sm:$0xff] %vm73_vm1, %v5170_v27  ;;  %v5171_v56 = vmax.f32 %v5163_v57, 0.0  ;;  %12572 = vmatpush3.bf16.msra.mxu1 %v7447_v38  ;;  %12461 = vmatprep.mubr.msk.bf16.mxu0 %vm73_vm1, %v15316_v8  ;;  %v5238_v3 = vld [vmem:[#allocation3 + $0x90] ss:$2 sm:$0x3f]  ;;  %v15593_v6 = vpack.c.bf16 %v11042_v17, %v15333_v15  ;;  %v6404_v20 = vpack.c.bf16 %v10916_v55, %v10915_v7  ;;  %v7580_v38 = vsel %vm98_vm0, %v11083_v35, 0 }
 0x35f   :  { %5182 = vst.msk [vmem:[#allocation3 + $0xb8] sm:$0xf] %vm5181_vm3, %v5173_v36  ;;  %12563 = vmatprep.mubr.msk.bf16.mxu1 %vm73_vm1, %v15318_v9  ;;  %13765 = vmatprep.subr.msk.bf16.mxu1 %vm98_vm0, %v11083_v35  ;;  %v5240_v23 = vld [vmem:[#allocation3 + $0x91] ss:$2 sm:$0x3f] }
 0x360   :  { %v5234_v5 = vld [vmem:[#allocation3 + $0x80] ss:$2 sm:$0x3f]  ;;  %5179 = vst.msk [vmem:[#allocation3 + $0xa8] sm:$0xff] %vm73_vm1, %v5171_v56  ;;  %v5242_v8 = vmax.f32 %v5238_v3, %v5240_v23  ;;  %v11102_v27 = vld [vmem:[%s16321_s1 + $0x1c] sm:$0xf] }
 0x361   :  { %v5236_v2 = vld [vmem:[#allocation3 + $0x81] ss:$2 sm:$0x3f]  ;;  %v10917_v57 = vld [vmem:[%s16322_s0 + $0x171] sm:$0xff]  ;;  %v10918_v35 = vld [vmem:[%s16322_s0 + $0x179] sm:$0xff] }
 0x362   :  { %v5241_v16 = vmax.f32 %v5234_v5, %v5236_v2  ;;  %v11044_v15 = vld [vmem:[%s16322_s0 + $0x1e9] sm:$0x3f]  ;;  %v11061_v36 = vld [vmem:[%s16322_s0 + $0x1da] sm:$0xff]  ;;  %v6405_v29 = vpack.c.bf16 %v10918_v35, %v10917_v57 }
 0x363   :  { %v7293_v10 = vpack.c.bf16 %v11044_v15, %v15604_v21  ;;  %v15671_v56 = vpack.c.bf16 %v11061_v36, %v15486_v62  ;;  %v11063_v62 = vld [vmem:[%s16322_s0 + $0x1ea] sm:$0x3f]  ;;  %v11121_v3 = vld [vmem:[%s16321_s1 + $0x20] sm:$0xf]  ;;  %v11119_v36 = vld [vmem:[%s16322_s0 + $0x1f2] sm:$0xff] }
 0x364   :  { %v5243_v40 = vmax.f32 %v5241_v16, %v5242_v8  ;;  %v7426_v17 = vpack.c.bf16 %v11063_v62, %v15683_v47 }
 0x365   :  { %12462 = vmatmul.mubr.msk.bf16.gmra.mrb[36].mxu0 %vm73_vm1, %v15363_v60  ;;  %12564 = vmatmul.mubr.msk.bf16.gmra.mrb[48].mxu1 %vm73_vm1, %v15320_v4 }
 0x366   :  { %10731 = vst.msk [vmem:[%s16326_s5 + $0x20] sm:$0x3f] %vm2747_vm2, %v5243_v40  ;;  %12467 = vmatprep.mubr.msk.bf16.mxu0 %vm73_vm1, %v6400_v42  ;;  %12567 = vmatprep.mubr.msk.bf16.mxu1 %vm73_vm1, %v15593_v6  ;;  %v5251_v60 = vld [vmem:[#allocation3 + $0xb0] ss:$2 sm:$0x3f] }
 0x367   :  { %v5253_v1 = vld [vmem:[#allocation3 + $0xb1] ss:$2 sm:$0x3f]  ;;  %v5247_v63 = vld [vmem:[#allocation3 + $0xa0] ss:$2 sm:$0x3f] }
 0x368   :  { %v5255_v37 = vmax.f32 %v5251_v60, %v5253_v1  ;;  %v5249_v25 = vld [vmem:[#allocation3 + $0xa1] ss:$2 sm:$0x3f] }
 0x369   :  { %v5254_v13 = vmax.f32 %v5247_v63, %v5249_v25  ;;  %v11118_v63 = vld [vmem:[%s16322_s0 + $0x1ea] sm:$0xff] }
 0x36a   :  { %v7824_v7 = vpack.c.bf16 %v11118_v63, %v15683_v47  ;;  %v11120_v47 = vld [vmem:[%s16322_s0 + $0x1fa] sm:$0x3f] }
 0x36b   :  { %v5256_v45 = vmax.f32 %v5254_v13, %v5255_v37 }
 0x36d   :  { %10732 = vst.msk [vmem:[%s16326_s5 + $0x28] sm:$0x3f] %vm2747_vm2, %v5256_v45  ;;  %12468 = vmatmul.mubr.msk.bf16.vlgmr.msra.gmra.mrb[24].mxu0 %vm73_vm1, %v6401_v46  ;;  %12568 = vmatmul.mubr.msk.bf16.gmra.mrb[52].mxu1 %vm73_vm1, %v7293_v10 }
 0x36e   :  { %12471 = vmatprep.mubr.msk.bf16.mxu0 %vm73_vm1, %v6402_v48  ;;  %12573 = vmatprep.mubr.msk.bf16.mxu1 %vm73_vm1, %v15437_v53 }
 0x36f   :  { %12484 = vmatpush3.bf16.msra.mxu0 %v6599_v50 }
 0x375   :  { %12472 = vmatmul.mubr.msk.bf16.gmra.mrb[28].mxu0 %vm73_vm1, %v6403_v22  ;;  %12574 = vmatmul.mubr.msk.bf16.vlgmr.msra.gmra.mrb[44].mxu1 %vm73_vm1, %v15440_v43 }
 0x376   :  { %12586 = vmatpush3.bf16.msra.mxu1 %v7580_v38  ;;  %12475 = vmatprep.mubr.msk.bf16.mxu0 %vm73_vm1, %v6404_v20 }
 0x377   :  { %12577 = vmatprep.mubr.msk.bf16.mxu1 %vm73_vm1, %v15471_v59  ;;  %13766 = vmatprep.subr.msk.bf16.mxu1 %vm98_vm0, %v11102_v27 }
 0x37d   :  { %12476 = vmatmul.mubr.msk.bf16.gmra.mrb[32].mxu0 %vm73_vm1, %v6405_v29  ;;  %12578 = vmatmul.mubr.msk.bf16.gmra.mrb[48].mxu1 %vm73_vm1, %v15473_v30 }
 0x37e   :  { %12479 = vmatprep.mubr.msk.bf16.mxu0 %vm73_vm1, %v15259_v24  ;;  %12581 = vmatprep.mubr.msk.bf16.mxu1 %vm73_vm1, %v15671_v56  ;;  %v7713_v24 = vsel %vm98_vm0, %v11102_v27, 0 }
 0x385   :  { %12480 = vmatmul.mubr.msk.bf16.gmra.mrb[36].mxu0 %vm73_vm1, %v15281_v32  ;;  %12582 = vmatmul.mubr.msk.bf16.gmra.mrb[52].mxu1 %vm73_vm1, %v7426_v17 }
 0x386   :  { %12485 = vmatprep.mubr.msk.bf16.mxu0 %vm73_vm1, %v15156_v58  ;;  %12587 = vmatprep.mubr.msk.bf16.mxu1 %vm73_vm1, %v15366_v41  ;;  %v11080_v58 = vld [vmem:[%s16322_s0 + $0x1e8] sm:$0xff] }
 0x387   :  { %v7558_v32 = vpack.c.bf16 %v11080_v58, %v15539_v19 }
 0x38d   :  { %12486 = vmatmul.mubr.msk.bf16.vlgmr.msra.gmra.mrb[24].mxu0 %vm73_vm1, %v15183_v14  ;;  %12588 = vmatmul.mubr.msk.bf16.vlgmr.msra.gmra.mrb[44].mxu1 %vm73_vm1, %v15392_v51  ;;  %v11081_v14 = vld [vmem:[%s16322_s0 + $0x1f0] sm:$0xff] }
 0x38e   :  { %12600 = vmatpush3.bf16.msra.mxu1 %v7713_v24  ;;  %12489 = vmatprep.mubr.msk.bf16.mxu0 %vm73_vm1, %v15185_v26  ;;  %v11082_v26 = vld [vmem:[%s16322_s0 + $0x1f8] sm:$0x3f] }
 0x38f   :  { %12591 = vmatprep.mubr.msk.bf16.mxu1 %vm73_vm1, %v15394_v61  ;;  %13767 = vmatprep.subr.msk.bf16.mxu1 %vm98_vm0, %v11121_v3  ;;  %v7559_v41 = vpack.c.bf16 %v11082_v26, %v11081_v14  ;;  %v7825_v26 = vpack.c.bf16 %v11120_v47, %v11119_v36 }
 0x395   :  { %12490 = vmatmul.mubr.msk.bf16.gmra.mrb[28].mxu0 %vm73_vm1, %v15207_v0  ;;  %12592 = vmatmul.mubr.msk.bf16.gmra.mrb[48].mxu1 %vm73_vm1, %v15515_v11  ;;  %v7846_v0 = vsel %vm98_vm0, %v11121_v3, 0 }
 0x396   :  { %12493 = vmatprep.mubr.msk.bf16.mxu0 %vm73_vm1, %v15210_v31  ;;  %12595 = vmatprep.mubr.msk.bf16.mxu1 %vm73_vm1, %v7558_v32  ;;  %v11099_v31 = vld [vmem:[%s16322_s0 + $0x1e9] sm:$0xff] }
 0x39d   :  { %12494 = vmatmul.mubr.msk.bf16.gmra.mrb[32].mxu0 %vm73_vm1, %v15230_v52  ;;  %12596 = vmatmul.mubr.msk.bf16.gmra.mrb[52].mxu1 %vm73_vm1, %v7559_v41  ;;  %v7691_v52 = vpack.c.bf16 %v11099_v31, %v15604_v21 }
 0x39e   :  { %12497 = vmatprep.mubr.msk.bf16.mxu0 %vm73_vm1, %v15416_v54  ;;  %12601 = vmatprep.mubr.msk.bf16.mxu1 %vm73_vm1, %v15284_v34  ;;  %v11100_v34 = vld [vmem:[%s16322_s0 + $0x1f1] sm:$0xff] }
 0x3a5   :  { %12498 = vmatmul.mubr.msk.bf16.gmra.mrb[36].mxu0 %vm73_vm1, %v15437_v53  ;;  %12602 = vmatmul.mubr.msk.bf16.vlgmr.msra.gmra.mrb[44].mxu1 %vm73_vm1, %v15318_v9  ;;  %v11101_v9 = vld [vmem:[%s16322_s0 + $0x1f9] sm:$0x3f] }
 0x3a6   :  { %12614 = vmatpush3.bf16.msra.mxu1 %v7846_v0  ;;  %12605 = vmatprep.mubr.msk.bf16.mxu1 %vm73_vm1, %v15320_v4  ;;  %v7692_v54 = vpack.c.bf16 %v11101_v9, %v11100_v34 }
 0x3ad   :  { %12606 = vmatmul.mubr.msk.bf16.gmra.mrb[48].mxu1 %vm73_vm1, %v15593_v6 }
 0x3ae   :  { %12609 = vmatprep.mubr.msk.bf16.mxu1 %vm73_vm1, %v7691_v52 }
 0x3b0   :  { %v12235_v4 = vpop.f32.mrb[28].mxu1 }
 0x3b1   :  { %v4219_v51 = vadd.f32 %v12235_v4, %v15530_v49  ;;  %v4132_v61 = vpop.f32.mrb[29].mxu1 }
 0x3b2   :  { %v4217_v53 = vadd.f32 %v15530_v49, %v4132_v61  ;;  %v12236_v11 = vpop.f32.mrb[30].mxu1 }
 0x3b3   :  { %v4235_v19 = vmax.f32 %v4219_v51, 0.0  ;;  %v4220_v23 = vadd.f32 %v12236_v11, %v15530_v49  ;;  %v4135_v5 = vpop.f32.mrb[31].mxu1 }
 0x3b4   :  { %v4233_v8 = vmax.f32 %v4217_v53, 0.0  ;;  %v4218_v2 = vadd.f32 %v15530_v49, %v4135_v5 }
 0x3b5   :  { %4251 = vst.msk [vmem:[#allocation3 + $0x10] sm:$0xff] %vm73_vm1, %v4235_v19  ;;  %v4236_v16 = vmax.f32 %v4220_v23, 0.0  ;;  %12610 = vmatmul.mubr.msk.bf16.gmra.mrb[52].mxu1 %vm73_vm1, %v7692_v54 }
 0x3b6   :  { %4249 = vst.msk [vmem:[#allocation3] sm:$0xff] %vm73_vm1, %v4233_v8  ;;  %v4234_v42 = vmax.f32 %v4218_v2, 0.0  ;;  %12615 = vmatprep.mubr.msk.bf16.mxu1 %vm73_vm1, %v15440_v43 }
 0x3b7   :  { %4252 = vst.msk [vmem:[#allocation3 + $0x18] sm:$0xff] %vm73_vm1, %v4236_v16 }
 0x3b8   :  { %4250 = vst.msk [vmem:[#allocation3 + $0x8] sm:$0xff] %vm73_vm1, %v4234_v42  ;;  %v12239_v6 = vpop.f32.mrb[32].mxu1 }
 0x3b9   :  { %v4223_v40 = vadd.f32 %v12239_v6, %v15530_v49  ;;  %v4148_v44 = vpop.f32.mrb[33].mxu1 }
 0x3ba   :  { %v4221_v33 = vadd.f32 %v15530_v49, %v4148_v44  ;;  %v12240_v21 = vpop.f32.mrb[34].mxu1 }
 0x3bb   :  { %v4239_v15 = vmax.f32 %v4223_v40, 0.0  ;;  %v4224_v28 = vadd.f32 %v12240_v21, %v15530_v49  ;;  %v4151_v18 = vpop.f32.mrb[35].mxu1 }
 0x3bc   :  { %v4237_v60 = vmax.f32 %v4221_v33, 0.0  ;;  %v4222_v1 = vadd.f32 %v15530_v49, %v4151_v18  ;;  %v8002_v18 = vld [vmem:[%s16323_s3] sm:$0xf] }
 0x3bd   :  { %4255 = vst.msk [vmem:[#allocation3 + $0x30] sm:$0xff] %vm73_vm1, %v4239_v15  ;;  %v4240_v43 = vmax.f32 %v4224_v28, 0.0  ;;  %12616 = vmatmul.mubr.msk.bf16.vlgmr.msra.gmra.mrb[44].mxu1 %vm73_vm1, %v15471_v59  ;;  %v11128_v15 = vld [vmem:[%s16323_s3 + $0x4] sm:$0xf] }
 0x3be   :  { %4253 = vst.msk [vmem:[#allocation3 + $0x20] sm:$0xff] %vm73_vm1, %v4237_v60  ;;  %v4238_v37 = vmax.f32 %v4222_v1, 0.0  ;;  %12619 = vmatprep.mubr.msk.bf16.mxu1 %vm73_vm1, %v15473_v30  ;;  %v5187_v25 = vld [vmem:[#allocation3 + $0x10] ss:$2 sm:$0x3f]  ;;  %13768 = vmatprep.subr.msk.bf16.mxu0 %vm98_vm0, %v11128_v15  ;;  %v8053_v28 = vsel %vm98_vm0, %v11128_v15, 0 }
 0x3bf   :  { %4256 = vst.msk [vmem:[#allocation3 + $0x38] sm:$0xff] %vm73_vm1, %v4240_v43  ;;  %v5189_v13 = vld [vmem:[#allocation3 + $0x11] ss:$2 sm:$0x3f]  ;;  %12628 = vmatpush3.bf16.msra.mxu0 %v8053_v28  ;;  %v11209_v60 = vld [vmem:[%s16323_s3 + $0x4] sm:$0xf] }
 0x3c0   :  { %v5183_v46 = vld [vmem:[#allocation3] ss:$2 sm:$0x3f]  ;;  %4254 = vst.msk [vmem:[#allocation3 + $0x28] sm:$0xff] %vm73_vm1, %v4238_v37  ;;  %v12243_v10 = vpop.f32.mrb[36].mxu1  ;;  %v5191_v48 = vmax.f32 %v5187_v25, %v5189_v13  ;;  %13769 = vmatprep.subr.msk.bf16.mxu0 %vm98_vm0, %v8002_v18  ;;  %13777 = vmatprep.subr.msk.bf16.mxu1 %vm98_vm0, %v11209_v60  ;;  %v9524_v1 = vsel %vm98_vm0, %v11209_v60, 0 }
 0x3c1   :  { %v5185_v59 = vld [vmem:[#allocation3 + $0x1] ss:$2 sm:$0x3f]  ;;  %v4227_v45 = vadd.f32 %v12243_v10, %v15530_v49  ;;  %v4164_v50 = vpop.f32.mrb[37].mxu1  ;;  %12790 = vmatpush3.bf16.msra.mxu1 %v9524_v1  ;;  %v15846_v37 = vld [vmem:[%s16324_s2] ss:$0 sm:$0xff] }
 0x3c2   :  { %v5190_v12 = vmax.f32 %v5183_v46, %v5185_v59  ;;  %v4225_v30 = vadd.f32 %v15530_v49, %v4164_v50  ;;  %v12244_v39 = vpop.f32.mrb[38].mxu1  ;;  %v15839_v43 = vld [vmem:[%s16323_s3] sm:$0xf] }
 0x3c3   :  { %v4243_v55 = vmax.f32 %v4227_v45, 0.0  ;;  %v4228_v22 = vadd.f32 %v12244_v39, %v15530_v49  ;;  %v4167_v20 = vpop.f32.mrb[39].mxu1  ;;  %13778 = vmatprep.subr.msk.bf16.mxu1 %vm98_vm0, %v15839_v43 }
 0x3c4   :  { %v5192_v38 = vmax.f32 %v5190_v12, %v5191_v48  ;;  %v4241_v27 = vmax.f32 %v4225_v30, 0.0  ;;  %v4226_v57 = vadd.f32 %v15530_v49, %v4167_v20 }
 0x3c5   :  { %4259 = vst.msk [vmem:[#allocation3 + $0x50] sm:$0xff] %vm73_vm1, %v4243_v55  ;;  %v4244_v35 = vmax.f32 %v4228_v22, 0.0  ;;  %12620 = vmatmul.mubr.msk.bf16.gmra.mrb[48].mxu1 %vm73_vm1, %v15671_v56 }
 0x3c6   :  { %5193 = vst.msk [vmem:[%s16326_s5] sm:$0x3f] %vm2747_vm2, %v5192_v38  ;;  %v4242_v29 = vmax.f32 %v4226_v57, 0.0  ;;  %12623 = vmatprep.mubr.msk.bf16.mxu1 %vm73_vm1, %v7824_v7  ;;  %v5199_v62 = vld [vmem:[#allocation3 + $0x30] ss:$2 sm:$0x3f] }
 0x3c7   :  { %4257 = vst.msk [vmem:[#allocation3 + $0x40] sm:$0xff] %vm73_vm1, %v4241_v27  ;;  %4260 = vst.msk [vmem:[#allocation3 + $0x58] sm:$0xff] %vm73_vm1, %v4244_v35  ;;  %v5201_v56 = vld [vmem:[#allocation3 + $0x31] ss:$2 sm:$0x3f] }
 0x3c8   :  { %v5195_v17 = vld [vmem:[#allocation3 + $0x20] ss:$2 sm:$0x3f]  ;;  %4258 = vst.msk [vmem:[#allocation3 + $0x48] sm:$0xff] %vm73_vm1, %v4242_v29  ;;  %v12247_v24 = vpop.f32.mrb[40].mxu1  ;;  %v5203_v3 = vmax.f32 %v5199_v62, %v5201_v56 }
 0x3c9   :  { %v5197_v58 = vld [vmem:[#allocation3 + $0x21] ss:$2 sm:$0x3f]  ;;  %v4231_v32 = vadd.f32 %v12247_v24, %v15530_v49  ;;  %v4180_v14 = vpop.f32.mrb[41].mxu1 }
 0x3ca   :  { %v5202_v41 = vmax.f32 %v5195_v17, %v5197_v58  ;;  %v4229_v0 = vadd.f32 %v15530_v49, %v4180_v14  ;;  %v12248_v31 = vpop.f32.mrb[42].mxu1 }
 0x3cb   :  { %v4247_v52 = vmax.f32 %v4231_v32, 0.0  ;;  %v4232_v34 = vadd.f32 %v12248_v31, %v15530_v49  ;;  %v4183_v9 = vpop.f32.mrb[43].mxu1 }
 0x3cc   :  { %v5204_v4 = vmax.f32 %v5202_v41, %v5203_v3  ;;  %v4245_v51 = vmax.f32 %v4229_v0, 0.0  ;;  %v4230_v61 = vadd.f32 %v15530_v49, %v4183_v9 }
 0x3cd   :  { %4263 = vst.msk [vmem:[#allocation3 + $0x70] sm:$0xff] %vm73_vm1, %v4247_v52  ;;  %v4248_v54 = vmax.f32 %v4232_v34, 0.0  ;;  %12624 = vmatmul.mubr.msk.bf16.gmra.mrb[52].mxu1 %vm73_vm1, %v7825_v26 }
 0x3ce   :  { %10728 = vst.msk [vmem:[%s16326_s5 + $0x8] sm:$0x3f] %vm2747_vm2, %v5204_v4  ;;  %v4246_v53 = vmax.f32 %v4230_v61, 0.0  ;;  %v5212_v11 = vld [vmem:[#allocation3 + $0x50] ss:$2 sm:$0x3f] }
 0x3cf   :  { %4261 = vst.msk [vmem:[#allocation3 + $0x60] sm:$0xff] %vm73_vm1, %v4245_v51  ;;  %4264 = vst.msk [vmem:[#allocation3 + $0x78] sm:$0xff] %vm73_vm1, %v4248_v54  ;;  %v5214_v19 = vld [vmem:[#allocation3 + $0x51] ss:$2 sm:$0x3f] }
 0x3d0   :  { %v5208_v23 = vld [vmem:[#allocation3 + $0x40] ss:$2 sm:$0x3f]  ;;  %4262 = vst.msk [vmem:[#allocation3 + $0x68] sm:$0xff] %vm73_vm1, %v4246_v53  ;;  %v5216_v49 = vmax.f32 %v5212_v11, %v5214_v19  ;;  %v8177_v53 = vsel %vm98_vm0, %v8002_v18, 0 }
 0x3d1   :  { %v5210_v5 = vld [vmem:[#allocation3 + $0x41] ss:$2 sm:$0x3f] }
 0x3d2   :  { %v5215_v8 = vmax.f32 %v5208_v23, %v5210_v5  ;;  %v15878_v23 = vld [vmem:[%s16323_s3 + $0x8] sm:$0xf] }
 0x3d4   :  { %v5217_v2 = vmax.f32 %v5215_v8, %v5216_v49 }
 0x3d6   :  { %10729 = vst.msk [vmem:[%s16326_s5 + $0x10] sm:$0x3f] %vm2747_vm2, %v5217_v2  ;;  %v5225_v16 = vld [vmem:[#allocation3 + $0x70] ss:$2 sm:$0x3f] }
 0x3d7   :  { %v5227_v42 = vld [vmem:[#allocation3 + $0x71] ss:$2 sm:$0x3f]  ;;  %v5221_v40 = vld [vmem:[#allocation3 + $0x60] ss:$2 sm:$0x3f] }
 0x3d8   :  { %v5229_v6 = vmax.f32 %v5225_v16, %v5227_v42  ;;  %v5223_v44 = vld [vmem:[#allocation3 + $0x61] ss:$2 sm:$0x3f] }
 0x3d9   :  { %v5228_v33 = vmax.f32 %v5221_v40, %v5223_v44 }
 0x3db   :  { %v5230_v21 = vmax.f32 %v5228_v33, %v5229_v6 }
 0x3dd   :  { %10730 = vst.msk [vmem:[%s16326_s5 + $0x18] sm:$0x3f] %vm2747_vm2, %v5230_v21 }
 0x460   :  { %v12487_v63 = vpop.f32.mrb[24].mxu0 }
 0x461   :  { %v6722_v25 = vadd.f32 %v12487_v63, %v15846_v37  ;;  %v6635_v13 = vpop.f32.mrb[25].mxu0 }
 0x462   :  { %v6720_v46 = vadd.f32 %v15846_v37, %v6635_v13  ;;  %v12488_v10 = vpop.f32.mrb[26].mxu0 }
 0x463   :  { %v6738_v48 = vmax.f32 %v6722_v25, 0.0  ;;  %v6723_v59 = vadd.f32 %v12488_v10, %v15846_v37  ;;  %v6638_v45 = vpop.f32.mrb[27].mxu0 }
 0x464   :  { %v6736_v50 = vmax.f32 %v6720_v46, 0.0  ;;  %v6721_v12 = vadd.f32 %v15846_v37, %v6638_v45 }
 0x465   :  { %6754 = vst.msk [vmem:[#allocation2 + $0x10] sm:$0xff] %vm73_vm1, %v6738_v48  ;;  %v6739_v30 = vmax.f32 %v6723_v59, 0.0 }
 0x466   :  { %6752 = vst.msk [vmem:[#allocation2] sm:$0xff] %vm73_vm1, %v6736_v50  ;;  %v6737_v39 = vmax.f32 %v6721_v12, 0.0 }
 0x467   :  { %6755 = vst.msk [vmem:[#allocation2 + $0x18] sm:$0xff] %vm73_vm1, %v6739_v30 }
 0x468   :  { %6753 = vst.msk [vmem:[#allocation2 + $0x8] sm:$0xff] %vm73_vm1, %v6737_v39  ;;  %v12491_v7 = vpop.f32.mrb[28].mxu0 }
 0x469   :  { %v6726_v55 = vadd.f32 %v12491_v7, %v15846_v37  ;;  %v6651_v22 = vpop.f32.mrb[29].mxu0 }
 0x46a   :  { %v6724_v20 = vadd.f32 %v15846_v37, %v6651_v22  ;;  %v12492_v38 = vpop.f32.mrb[30].mxu0 }
 0x46b   :  { %v6742_v27 = vmax.f32 %v6726_v55, 0.0  ;;  %v6727_v57 = vadd.f32 %v12492_v38, %v15846_v37  ;;  %v6654_v35 = vpop.f32.mrb[31].mxu0 }
 0x46c   :  { %v6740_v36 = vmax.f32 %v6724_v20, 0.0  ;;  %v6725_v29 = vadd.f32 %v15846_v37, %v6654_v35 }
 0x46d   :  { %6758 = vst.msk [vmem:[#allocation2 + $0x30] sm:$0xff] %vm73_vm1, %v6742_v27  ;;  %v6743_v47 = vmax.f32 %v6727_v57, 0.0 }
 0x46e   :  { %6756 = vst.msk [vmem:[#allocation2 + $0x20] sm:$0xff] %vm73_vm1, %v6740_v36  ;;  %v6741_v62 = vmax.f32 %v6725_v29, 0.0  ;;  %v8005_v4 = vld [vmem:[#allocation2 + $0x11] sm:$0xff] }
 0x46f   :  { %6759 = vst.msk [vmem:[#allocation2 + $0x38] sm:$0xff] %vm73_vm1, %v6743_v47  ;;  %v8003_v56 = vld [vmem:[#allocation2 + $0x1] sm:$0xff]  ;;  %v8004_v17 = vld [vmem:[#allocation2 + $0x9] sm:$0xff] }
 0x470   :  { %6757 = vst.msk [vmem:[#allocation2 + $0x28] sm:$0xff] %vm73_vm1, %v6741_v62  ;;  %v12495_v24 = vpop.f32.mrb[32].mxu0  ;;  %v8019_v3 = vpack.c.bf16 %v8004_v17, %v8003_v56 }
 0x471   :  { %v6730_v58 = vadd.f32 %v12495_v24, %v15846_v37  ;;  %v6667_v32 = vpop.f32.mrb[33].mxu0 }
 0x472   :  { %v6728_v14 = vadd.f32 %v15846_v37, %v6667_v32  ;;  %v12496_v26 = vpop.f32.mrb[34].mxu0  ;;  %12629 = vmatprep.mubr.msk.bf16.mxu0 %vm73_vm1, %v8019_v3 }
 0x473   :  { %v6746_v41 = vmax.f32 %v6730_v58, 0.0  ;;  %v6731_v0 = vadd.f32 %v12496_v26, %v15846_v37  ;;  %v6670_v31 = vpop.f32.mrb[35].mxu0  ;;  %v7979_v26 = vld [vmem:[#allocation2 + $0x8] sm:$0xff] }
 0x474   :  { %v6744_v52 = vmax.f32 %v6728_v14, 0.0  ;;  %v6729_v34 = vadd.f32 %v15846_v37, %v6670_v31 }
 0x475   :  { %6762 = vst.msk [vmem:[#allocation2 + $0x50] sm:$0xff] %vm73_vm1, %v6746_v41  ;;  %v6747_v9 = vmax.f32 %v6731_v0, 0.0  ;;  %v8006_v51 = vld [vmem:[#allocation2 + $0x19] sm:$0xff] }
 0x476   :  { %6760 = vst.msk [vmem:[#allocation2 + $0x40] sm:$0xff] %vm73_vm1, %v6744_v52  ;;  %v6745_v61 = vmax.f32 %v6729_v34, 0.0  ;;  %v15871_v54 = vpack.c.bf16 %v8006_v51, %v8005_v4  ;;  %v8009_v28 = vld [vmem:[#allocation2 + $0x31] sm:$0xff] }
 0x477   :  { %6763 = vst.msk [vmem:[#allocation2 + $0x58] sm:$0xff] %vm73_vm1, %v6747_v9  ;;  %v8007_v11 = vld [vmem:[#allocation2 + $0x21] sm:$0xff]  ;;  %v8008_v19 = vld [vmem:[#allocation2 + $0x29] sm:$0xff] }
 0x478   :  { %6761 = vst.msk [vmem:[#allocation2 + $0x48] sm:$0xff] %vm73_vm1, %v6745_v61  ;;  %v12499_v49 = vpop.f32.mrb[36].mxu0  ;;  %12630 = vmatmul.mubr.msk.bf16.vlgmr.msra.gmra.mrb[40].mxu0 %vm73_vm1, %v15871_v54  ;;  %v15883_v5 = vpack.c.bf16 %v8008_v19, %v8007_v11  ;;  %v7978_v9 = vld [vmem:[#allocation2] sm:$0xff] }
 0x479   :  { %v6734_v8 = vadd.f32 %v12499_v49, %v15846_v37  ;;  %v6683_v2 = vpop.f32.mrb[37].mxu0  ;;  %12646 = vmatpush3.bf16.msra.mxu0 %v8177_v53  ;;  %v7994_v4 = vpack.c.bf16 %v7979_v26, %v7978_v9 }
 0x47a   :  { %v6732_v16 = vadd.f32 %v15846_v37, %v6683_v2  ;;  %v12500_v42 = vpop.f32.mrb[38].mxu0  ;;  %12633 = vmatprep.mubr.msk.bf16.mxu0 %vm73_vm1, %v15883_v5  ;;  %13770 = vmatprep.subr.msk.bf16.mxu0 %vm98_vm0, %v15878_v23 }
 0x47b   :  { %v6750_v6 = vmax.f32 %v6734_v8, 0.0  ;;  %v6735_v40 = vadd.f32 %v12500_v42, %v15846_v37  ;;  %v6686_v44 = vpop.f32.mrb[39].mxu0 }
 0x47c   :  { %v6748_v33 = vmax.f32 %v6732_v16, 0.0  ;;  %v6733_v21 = vadd.f32 %v15846_v37, %v6686_v44 }
 0x47d   :  { %6766 = vst.msk [vmem:[#allocation2 + $0x70] sm:$0xff] %vm73_vm1, %v6750_v6  ;;  %v6751_v15 = vmax.f32 %v6735_v40, 0.0  ;;  %v8010_v18 = vld [vmem:[#allocation2 + $0x39] sm:$0xff] }
 0x47e   :  { %6764 = vst.msk [vmem:[#allocation2 + $0x60] sm:$0xff] %vm73_vm1, %v6748_v33  ;;  %v6749_v60 = vmax.f32 %v6733_v21, 0.0  ;;  %v15895_v1 = vpack.c.bf16 %v8010_v18, %v8009_v28  ;;  %v8013_v46 = vld [vmem:[#allocation2 + $0x51] sm:$0xff]  ;;  %v7983_v21 = vld [vmem:[#allocation2 + $0x28] sm:$0xff] }
 0x47f   :  { %6767 = vst.msk [vmem:[#allocation2 + $0x78] sm:$0xff] %vm73_vm1, %v6751_v15  ;;  %v8011_v63 = vld [vmem:[#allocation2 + $0x41] sm:$0xff]  ;;  %v8012_v25 = vld [vmem:[#allocation2 + $0x49] sm:$0xff]  ;;  %v7981_v40 = vld [vmem:[#allocation2 + $0x18] sm:$0xff] }
 0x480   :  { %6765 = vst.msk [vmem:[#allocation2 + $0x68] sm:$0xff] %vm73_vm1, %v6749_v60  ;;  %12634 = vmatmul.mubr.msk.bf16.gmra.mrb[44].mxu0 %vm73_vm1, %v15895_v1  ;;  %v15901_v13 = vpack.c.bf16 %v8012_v25, %v8011_v63  ;;  %v7980_v28 = vld [vmem:[#allocation2 + $0x10] sm:$0xff] }
 0x481   :  { %v15944_v25 = vpack.c.bf16 %v7981_v40, %v7980_v28  ;;  %v8280_v28 = vld [vmem:[#allocation2 + $0x22] sm:$0xff] }
 0x482   :  { %12637 = vmatprep.mubr.msk.bf16.mxu0 %vm73_vm1, %v15901_v13 }
 0x485   :  { %v8014_v10 = vld [vmem:[#allocation2 + $0x59] sm:$0xff] }
 0x486   :  { %v15905_v48 = vpack.c.bf16 %v8014_v10, %v8013_v46  ;;  %v8017_v0 = vld [vmem:[#allocation2 + $0x71] sm:$0xff]  ;;  %v7982_v10 = vld [vmem:[#allocation2 + $0x20] sm:$0xff] }
 0x487   :  { %v8015_v59 = vld [vmem:[#allocation2 + $0x61] sm:$0xff]  ;;  %v8016_v45 = vld [vmem:[#allocation2 + $0x69] sm:$0xff] }
 0x488   :  { %12638 = vmatmul.mubr.msk.bf16.gmra.mrb[48].mxu0 %vm73_vm1, %v15905_v48  ;;  %v15909_v50 = vpack.c.bf16 %v8016_v45, %v8015_v59  ;;  %v8326_v59 = vsel %vm98_vm0, %v15878_v23, 0  ;;  %v11218_v23 = vld [vmem:[%s16323_s3 + $0x8] sm:$0xf] }
 0x489   :  { %v9697_v9 = vsel %vm98_vm0, %v11218_v23, 0 }
 0x48a   :  { %12641 = vmatprep.mubr.msk.bf16.mxu0 %vm73_vm1, %v15909_v50 }
 0x490   :  { %v12617_v12 = vpop.f32.mrb[44].mxu1 }
 0x491   :  { %v7943_v30 = vadd.f32 %v12617_v12, %v15846_v37  ;;  %v7882_v39 = vpop.f32.mrb[45].mxu1 }
 0x492   :  { %v7941_v7 = vadd.f32 %v15846_v37, %v7882_v39  ;;  %v12618_v55 = vpop.f32.mrb[46].mxu1 }
 0x493   :  { %v7955_v22 = vmax.f32 %v7943_v30, 0.0  ;;  %v7944_v20 = vadd.f32 %v12618_v55, %v15846_v37  ;;  %v7885_v38 = vpop.f32.mrb[47].mxu1  ;;  %v9604_v30 = vsel %vm98_vm0, %v15839_v43, 0  ;;  %v7985_v43 = vld [vmem:[#allocation2 + $0x38] sm:$0xff] }
 0x494   :  { %v7953_v27 = vmax.f32 %v7941_v7, 0.0  ;;  %v7942_v57 = vadd.f32 %v15846_v37, %v7885_v38  ;;  %v15968_v7 = vld [vmem:[%s16323_s3 + $0xc] sm:$0xf] }
 0x495   :  { %7967 = vst.msk [vmem:[#allocation2 + $0x90] sm:$0xff] %vm73_vm1, %v7955_v22  ;;  %v7956_v35 = vmax.f32 %v7944_v20, 0.0  ;;  %v7987_v20 = vld [vmem:[#allocation2 + $0x48] sm:$0xff] }
 0x496   :  { %7965 = vst.msk [vmem:[#allocation2 + $0x80] sm:$0xff] %vm73_vm1, %v7953_v27  ;;  %v7954_v36 = vmax.f32 %v7942_v57, 0.0  ;;  %v7984_v27 = vld [vmem:[#allocation2 + $0x30] sm:$0xff] }
 0x497   :  { %7968 = vst.msk [vmem:[#allocation2 + $0x98] sm:$0xff] %vm73_vm1, %v7956_v35  ;;  %v15979_v57 = vpack.c.bf16 %v7985_v43, %v7984_v27 }
 0x498   :  { %7966 = vst.msk [vmem:[#allocation2 + $0x88] sm:$0xff] %vm73_vm1, %v7954_v36  ;;  %v12621_v29 = vpop.f32.mrb[48].mxu1  ;;  %v7986_v36 = vld [vmem:[#allocation2 + $0x40] sm:$0xff] }
 0x499   :  { %v7947_v47 = vadd.f32 %v12621_v29, %v15846_v37  ;;  %v7898_v62 = vpop.f32.mrb[49].mxu1 }
 0x49a   :  { %v7945_v56 = vadd.f32 %v15846_v37, %v7898_v62  ;;  %v12622_v17 = vpop.f32.mrb[50].mxu1 }
 0x49b   :  { %v7959_v24 = vmax.f32 %v7947_v47, 0.0  ;;  %v7948_v3 = vadd.f32 %v12622_v17, %v15846_v37  ;;  %v7901_v58 = vpop.f32.mrb[51].mxu1  ;;  %v15982_v47 = vpack.c.bf16 %v7987_v20, %v7986_v36  ;;  %v8283_v20 = vld [vmem:[#allocation2 + $0x3a] sm:$0xff]  ;;  %v8285_v36 = vld [vmem:[#allocation2 + $0x4a] sm:$0xff] }
 0x49c   :  { %v7957_v32 = vmax.f32 %v7945_v56, 0.0  ;;  %v7946_v14 = vadd.f32 %v15846_v37, %v7901_v58  ;;  %v7989_v56 = vld [vmem:[#allocation2 + $0x58] sm:$0xff]  ;;  %v7988_v58 = vld [vmem:[#allocation2 + $0x50] sm:$0xff] }
 0x49d   :  { %7971 = vst.msk [vmem:[#allocation2 + $0xb0] sm:$0xff] %vm73_vm1, %v7959_v24  ;;  %v7960_v41 = vmax.f32 %v7948_v3, 0.0  ;;  %v8018_v31 = vld [vmem:[#allocation2 + $0x79] sm:$0xff]  ;;  %v7991_v24 = vld [vmem:[#allocation2 + $0x68] sm:$0xff] }
 0x49e   :  { %7969 = vst.msk [vmem:[#allocation2 + $0xa0] sm:$0xff] %vm73_vm1, %v7957_v32  ;;  %v7958_v52 = vmax.f32 %v7946_v14, 0.0  ;;  %v15927_v34 = vpack.c.bf16 %v8018_v31, %v8017_v0  ;;  %v9500_v18 = vld [vmem:[#allocation2 + $0x91] sm:$0xff]  ;;  %v9485_v29 = vld [vmem:[#allocation2 + $0x80] sm:$0xff]  ;;  %v15993_v14 = vpack.c.bf16 %v7989_v56, %v7988_v58 }
 0x49f   :  { %7972 = vst.msk [vmem:[#allocation2 + $0xb8] sm:$0xff] %vm73_vm1, %v7960_v41  ;;  %v9498_v51 = vld [vmem:[#allocation2 + $0x81] sm:$0xff]  ;;  %v9499_v61 = vld [vmem:[#allocation2 + $0x89] sm:$0xff]  ;;  %v9488_v17 = vld [vmem:[#allocation2 + $0x98] sm:$0xff] }
 0x4a0   :  { %7970 = vst.msk [vmem:[#allocation2 + $0xa8] sm:$0xff] %vm73_vm1, %v7958_v52  ;;  %v12625_v53 = vpop.f32.mrb[52].mxu1  ;;  %12642 = vmatmul.mubr.msk.bf16.gmra.mrb[52].mxu0 %vm73_vm1, %v15927_v34  ;;  %v15933_v11 = vpack.c.bf16 %v9499_v61, %v9498_v51  ;;  %v9486_v38 = vld [vmem:[#allocation2 + $0x88] sm:$0xff]  ;;  %v9487_v32 = vld [vmem:[#allocation2 + $0x90] sm:$0xff]  ;;  %v7990_v41 = vld [vmem:[#allocation2 + $0x60] sm:$0xff] }
 0x4a1   :  { %v7951_v19 = vadd.f32 %v12625_v53, %v15846_v37  ;;  %v7914_v49 = vpop.f32.mrb[53].mxu1  ;;  %12647 = vmatprep.mubr.msk.bf16.mxu0 %vm73_vm1, %v7994_v4  ;;  %v15984_v62 = vpack.c.bf16 %v9486_v38, %v9485_v29  ;;  %v15995_v26 = vpack.c.bf16 %v9488_v17, %v9487_v32  ;;  %v15997_v31 = vpack.c.bf16 %v7991_v24, %v7990_v41  ;;  %v11223_v4 = vld [vmem:[%s16323_s3 + $0xc] sm:$0xf]  ;;  %v7993_v51 = vld [vmem:[#allocation2 + $0x78] sm:$0xff]  ;;  %v8276_v53 = vld [vmem:[#allocation2 + $0x2] sm:$0xff] }
 0x4a2   :  { %v7949_v8 = vadd.f32 %v15846_v37, %v7914_v49  ;;  %v12626_v2 = vpop.f32.mrb[54].mxu1  ;;  %12791 = vmatprep.mubr.msk.bf16.mxu1 %vm73_vm1, %v15933_v11  ;;  %v9671_v49 = vld [vmem:[#allocation2 + $0x82] sm:$0xff]  ;;  %v8282_v29 = vld [vmem:[#allocation2 + $0x32] sm:$0xff]  ;;  %v8289_v32 = vld [vmem:[#allocation2 + $0x6a] sm:$0xff] }
 0x4a3   :  { %v7963_v16 = vmax.f32 %v7951_v19, 0.0  ;;  %v7952_v42 = vadd.f32 %v12626_v2, %v15846_v37  ;;  %v7917_v6 = vpop.f32.mrb[55].mxu1  ;;  %v8277_v19 = vld [vmem:[#allocation2 + $0xa] sm:$0xff]  ;;  %v16051_v56 = vpack.c.bf16 %v8283_v20, %v8282_v29  ;;  %v8288_v58 = vld [vmem:[#allocation2 + $0x62] sm:$0xff] }
 0x4a4   :  { %v7961_v44 = vmax.f32 %v7949_v8, 0.0  ;;  %v7950_v33 = vadd.f32 %v15846_v37, %v7917_v6  ;;  %v15951_v37 = vpack.c.bf16 %v7983_v21, %v7982_v10  ;;  %v9672_v8 = vld [vmem:[#allocation2 + $0x8a] sm:$0xff]  ;;  %v8292_v40 = vpack.c.bf16 %v8277_v19, %v8276_v53  ;;  %v11233_v53 = vld [vmem:[%s16323_s3 + $0x14] sm:$0xf]  ;;  %v8291_v19 = vld [vmem:[#allocation2 + $0x7a] sm:$0xff] }
 0x4a5   :  { %7975 = vst.msk [vmem:[#allocation2 + $0xd0] sm:$0xff] %vm73_vm1, %v7963_v16  ;;  %v7964_v15 = vmax.f32 %v7952_v42, 0.0  ;;  %v9501_v60 = vld [vmem:[#allocation2 + $0x99] sm:$0xff]  ;;  %v7992_v2 = vld [vmem:[#allocation2 + $0x70] sm:$0xff] }
 0x4a6   :  { %7973 = vst.msk [vmem:[#allocation2 + $0xc0] sm:$0xff] %vm73_vm1, %v7961_v44  ;;  %v7962_v63 = vmax.f32 %v7950_v33, 0.0  ;;  %v15946_v46 = vpack.c.bf16 %v9501_v60, %v9500_v18  ;;  %v15974_v55 = vld [vmem:[#allocation2 + $0xb1] sm:$0xff]  ;;  %v9505_v22 = vld [vmem:[#allocation2 + $0xb9] sm:$0xf]  ;;  %v9489_v0 = vld [vmem:[#allocation2 + $0xa0] sm:$0xff]  ;;  %v16014_v42 = vpack.c.bf16 %v7993_v51, %v7992_v2  ;;  %v16016_v44 = vpack.c.bf16 %v9672_v8, %v9671_v49 }
 0x4a7   :  { %7976 = vst.msk [vmem:[#allocation2 + $0xd8] sm:$0x3f] %vm2747_vm2, %v7964_v15  ;;  %v9502_v45 = vld [vmem:[#allocation2 + $0xa1] sm:$0xff]  ;;  %v9503_v12 = vld [vmem:[#allocation2 + $0xa9] sm:$0xff]  ;;  %v9509_v35 = vpack.c.bf16 %v9505_v22, %v15974_v55  ;;  %v9492_v61 = vld [vmem:[#allocation2 + $0xb8] sm:$0xf] }
 0x4a8   :  { %7974 = vst.msk [vmem:[#allocation2 + $0xc8] sm:$0xff] %vm73_vm1, %v7962_v63  ;;  %12648 = vmatmul.mubr.msk.bf16.vlgmr.msra.gmra.mrb[40].mxu0 %vm73_vm1, %v15944_v25  ;;  %12792 = vmatmul.mubr.msk.bf16.vlgmr.msra.gmra.mrb[56].mxu1 %vm73_vm1, %v15946_v46  ;;  %v15960_v39 = vpack.c.bf16 %v9503_v12, %v9502_v45  ;;  %v9490_v3 = vld [vmem:[#allocation2 + $0xa8] sm:$0xff]  ;;  %v9491_v16 = vld [vmem:[#allocation2 + $0xb0] sm:$0xff]  ;;  %v8279_v33 = vld [vmem:[#allocation2 + $0x1a] sm:$0xff]  ;;  %v8491_v12 = vsel %vm98_vm0, %v15968_v7, 0 }
 0x4a9   :  { %12651 = vmatprep.mubr.msk.bf16.mxu0 %vm73_vm1, %v15951_v37  ;;  %12664 = vmatpush3.bf16.msra.mxu0 %v8326_v59  ;;  %v15999_v52 = vpack.c.bf16 %v9490_v3, %v9489_v0  ;;  %v9496_v6 = vpack.c.bf16 %v9492_v61, %v9491_v16  ;;  %v9674_v21 = vld [vmem:[#allocation2 + $0x9a] sm:$0xff]  ;;  %v8278_v15 = vld [vmem:[#allocation2 + $0x12] sm:$0xff]  ;;  %v8281_v18 = vld [vmem:[#allocation2 + $0x2a] sm:$0xff] }
 0x4aa   :  { %12795 = vmatprep.mubr.msk.bf16.mxu1 %vm73_vm1, %v15960_v39  ;;  %12800 = vmatpush3.bf16.msra.mxu1 %v9604_v30  ;;  %v9673_v60 = vld [vmem:[#allocation2 + $0x92] sm:$0xff]  ;;  %v9675_v63 = vld [vmem:[#allocation2 + $0xa2] sm:$0xff]  ;;  %v9676_v10 = vld [vmem:[#allocation2 + $0xaa] sm:$0xff]  ;;  %v16024_v59 = vpack.c.bf16 %v8279_v33, %v8278_v15  ;;  %v16030_v30 = vpack.c.bf16 %v8281_v18, %v8280_v28 }
 0x4ab   :  { %13779 = vmatprep.subr.msk.bf16.mxu1 %vm98_vm0, %v11218_v23  ;;  %13771 = vmatprep.subr.msk.bf16.mxu0 %vm98_vm0, %v15968_v7  ;;  %v16026_v45 = vpack.c.bf16 %v9674_v21, %v9673_v60  ;;  %v9798_v23 = vsel %vm98_vm0, %v11223_v4, 0  ;;  %v16037_v43 = vpack.c.bf16 %v9676_v10, %v9675_v63  ;;  %v11228_v22 = vld [vmem:[%s16323_s3 + $0x10] sm:$0xf]  ;;  %v9678_v27 = vld [vmem:[#allocation2 + $0xba] sm:$0xf]  ;;  %v10000_v21 = vsel %vm98_vm0, %v11233_v53, 0 }
 0x4ac   :  { %v11163_v7 = vld [vmem:[%s16323_s3 + $0x10] sm:$0xf]  ;;  %v8287_v3 = vld [vmem:[#allocation2 + $0x5a] sm:$0xff]  ;;  %v9899_v61 = vsel %vm98_vm0, %v11228_v22, 0  ;;  %v11172_v28 = vld [vmem:[%s16323_s3 + $0x14] sm:$0xf] }
 0x4ad   :  { %v9677_v38 = vld [vmem:[#allocation2 + $0xb2] sm:$0xff]  ;;  %v9778_v2 = vld [vmem:[#allocation2 + $0xc0] sm:$0xff]  ;;  %v8656_v33 = vsel %vm98_vm0, %v11163_v7, 0 }
 0x4ae   :  { %v9682_v17 = vpack.c.bf16 %v9678_v27, %v9677_v38  ;;  %v9777_v41 = vld [vmem:[#allocation2 + $0xb8] sm:$0xff]  ;;  %v8821_v27 = vsel %vm98_vm0, %v11172_v28, 0  ;;  %v11248_v29 = vld [vmem:[%s16323_s3 + $0x20] sm:$0xf] }
 0x4af   :  { %v8286_v0 = vld [vmem:[#allocation2 + $0x52] sm:$0xff]  ;;  %v9782_v51 = vpack.c.bf16 %v9777_v41, %v9491_v16  ;;  %v9779_v49 = vld [vmem:[#allocation2 + $0xc8] sm:$0xf]  ;;  %v9979_v63 = vld [vmem:[#allocation2 + $0xba] sm:$0xff]  ;;  %v10303_v41 = vsel %vm98_vm0, %v11248_v29, 0 }
 0x4b0   :  { %12652 = vmatmul.mubr.msk.bf16.gmra.mrb[44].mxu0 %vm73_vm1, %v15979_v57  ;;  %12796 = vmatmul.mubr.msk.bf16.gmra.mrb[60].mxu1 %vm73_vm1, %v9509_v35  ;;  %v8284_v35 = vld [vmem:[#allocation2 + $0x42] sm:$0xff]  ;;  %v8290_v8 = vld [vmem:[#allocation2 + $0x72] sm:$0xff]  ;;  %v9984_v10 = vpack.c.bf16 %v9979_v63, %v9677_v38 }
 0x4b1   :  { %12655 = vmatprep.mubr.msk.bf16.mxu0 %vm73_vm1, %v15982_v47  ;;  %12801 = vmatprep.mubr.msk.bf16.mxu1 %vm73_vm1, %v15984_v62  ;;  %v16053_v24 = vpack.c.bf16 %v8285_v36, %v8284_v35  ;;  %v16078_v16 = vpack.c.bf16 %v8291_v19, %v8290_v8  ;;  %v9879_v18 = vld [vmem:[#allocation2 + $0xc1] sm:$0xff]  ;;  %v9880_v60 = vld [vmem:[#allocation2 + $0xc9] sm:$0xf]  ;;  %v11190_v19 = vld [vmem:[%s16323_s3 + $0x1c] sm:$0xf] }
 0x4b2   :  { %v10080_v38 = vld [vmem:[#allocation2 + $0xc8] sm:$0xff] }
 0x4b3   :  { %v10085_v36 = vpack.c.bf16 %v10080_v38, %v9778_v2 }
 0x4b8   :  { %12656 = vmatmul.mubr.msk.bf16.gmra.mrb[48].mxu0 %vm73_vm1, %v15993_v14  ;;  %12802 = vmatmul.mubr.msk.bf16.vlgmr.msra.gmra.mrb[56].mxu1 %vm73_vm1, %v15995_v26 }
 0x4b9   :  { %12659 = vmatprep.mubr.msk.bf16.mxu0 %vm73_vm1, %v15997_v31  ;;  %12805 = vmatprep.mubr.msk.bf16.mxu1 %vm73_vm1, %v15999_v52 }
 0x4ba   :  { %12810 = vmatpush3.bf16.msra.mxu1 %v9697_v9  ;;  %v16062_v9 = vpack.c.bf16 %v8287_v3, %v8286_v0  ;;  %v10182_v0 = vld [vmem:[#allocation2 + $0xd1] sm:$0xff] }
 0x4bb   :  { %13780 = vmatprep.subr.msk.bf16.mxu1 %vm98_vm0, %v11223_v4  ;;  %v16064_v4 = vpack.c.bf16 %v8289_v32, %v8288_v58  ;;  %v10181_v58 = vld [vmem:[#allocation2 + $0xc9] sm:$0xff] }
 0x4bc   :  { %v10186_v32 = vpack.c.bf16 %v10181_v58, %v9879_v18 }
 0x4c0   :  { %12660 = vmatmul.mubr.msk.bf16.gmra.mrb[52].mxu0 %vm73_vm1, %v16014_v42  ;;  %12806 = vmatmul.mubr.msk.bf16.gmra.mrb[60].mxu1 %vm73_vm1, %v9496_v6  ;;  %v9783_v6 = vpack.c.bf16 %v9779_v49, %v9778_v2  ;;  %v9151_v2 = vsel %vm98_vm0, %v11190_v19, 0 }
 0x4c1   :  { %12665 = vmatprep.mubr.msk.bf16.mxu0 %vm73_vm1, %v8292_v40  ;;  %12811 = vmatprep.mubr.msk.bf16.mxu1 %vm73_vm1, %v16016_v44  ;;  %v9878_v40 = vld [vmem:[#allocation2 + $0xb9] sm:$0xff] }
 0x4c2   :  { %v9883_v15 = vpack.c.bf16 %v9878_v40, %v15974_v55  ;;  %v9884_v55 = vpack.c.bf16 %v9880_v60, %v9879_v18 }
 0x4c8   :  { %12666 = vmatmul.mubr.msk.bf16.vlgmr.msra.gmra.mrb[40].mxu0 %vm73_vm1, %v16024_v59  ;;  %12812 = vmatmul.mubr.msk.bf16.vlgmr.msra.gmra.mrb[56].mxu1 %vm73_vm1, %v16026_v45 }
 0x4c9   :  { %12669 = vmatprep.mubr.msk.bf16.mxu0 %vm73_vm1, %v16030_v30  ;;  %12682 = vmatpush3.bf16.msra.mxu0 %v8491_v12 }
 0x4ca   :  { %12815 = vmatprep.mubr.msk.bf16.mxu1 %vm73_vm1, %v16037_v43  ;;  %12820 = vmatpush3.bf16.msra.mxu1 %v9798_v23  ;;  %v11243_v23 = vld [vmem:[%s16323_s3 + $0x1c] sm:$0xf] }
 0x4cb   :  { %13781 = vmatprep.subr.msk.bf16.mxu1 %vm98_vm0, %v11228_v22  ;;  %13772 = vmatprep.subr.msk.bf16.mxu0 %vm98_vm0, %v11163_v7  ;;  %v9980_v22 = vld [vmem:[#allocation2 + $0xc2] sm:$0xff]  ;;  %v9981_v7 = vld [vmem:[#allocation2 + $0xca] sm:$0xf]  ;;  %v10202_v35 = vsel %vm98_vm0, %v11243_v23, 0 }
 0x4cc   :  { %v9985_v20 = vpack.c.bf16 %v9981_v7, %v9980_v22 }
 0x4d0   :  { %12670 = vmatmul.mubr.msk.bf16.gmra.mrb[44].mxu0 %vm73_vm1, %v16051_v56  ;;  %12816 = vmatmul.mubr.msk.bf16.gmra.mrb[60].mxu1 %vm73_vm1, %v9682_v17  ;;  %v10081_v17 = vld [vmem:[#allocation2 + $0xd0] sm:$0xff] }
 0x4d1   :  { %12673 = vmatprep.mubr.msk.bf16.mxu0 %vm73_vm1, %v16053_v24  ;;  %12821 = vmatprep.mubr.msk.bf16.mxu1 %vm73_vm1, %v15995_v26 }
 0x4d8   :  { %12674 = vmatmul.mubr.msk.bf16.gmra.mrb[48].mxu0 %vm73_vm1, %v16062_v9  ;;  %12822 = vmatmul.mubr.msk.bf16.vlgmr.msra.gmra.mrb[56].mxu1 %vm73_vm1, %v15999_v52 }
 0x4d9   :  { %12677 = vmatprep.mubr.msk.bf16.mxu0 %vm73_vm1, %v16064_v4  ;;  %12825 = vmatprep.mubr.msk.bf16.mxu1 %vm73_vm1, %v9782_v51 }
 0x4da   :  { %12830 = vmatpush3.bf16.msra.mxu1 %v9899_v61 }
 0x4db   :  { %13782 = vmatprep.subr.msk.bf16.mxu1 %vm98_vm0, %v11233_v53 }
 0x4e0   :  { %12678 = vmatmul.mubr.msk.bf16.gmra.mrb[52].mxu0 %vm73_vm1, %v16078_v16  ;;  %12826 = vmatmul.mubr.msk.bf16.gmra.mrb[60].mxu1 %vm73_vm1, %v9783_v6  ;;  %v11199_v6 = vld [vmem:[%s16323_s3 + $0x20] sm:$0xf] }
 0x4e1   :  { %12683 = vmatprep.mubr.msk.bf16.mxu0 %vm73_vm1, %v15944_v25  ;;  %12831 = vmatprep.mubr.msk.bf16.mxu1 %vm73_vm1, %v15946_v46  ;;  %v11238_v25 = vld [vmem:[%s16323_s3 + $0x18] sm:$0xf] }
 0x4e2   :  { %v10101_v12 = vsel %vm98_vm0, %v11238_v25, 0 }
 0x4e8   :  { %12684 = vmatmul.mubr.msk.bf16.vlgmr.msra.gmra.mrb[40].mxu0 %vm73_vm1, %v15951_v37  ;;  %12832 = vmatmul.mubr.msk.bf16.vlgmr.msra.gmra.mrb[56].mxu1 %vm73_vm1, %v15960_v39 }
 0x4e9   :  { %12687 = vmatprep.mubr.msk.bf16.mxu0 %vm73_vm1, %v15979_v57  ;;  %12700 = vmatpush3.bf16.msra.mxu0 %v8656_v33 }
 0x4ea   :  { %12835 = vmatprep.mubr.msk.bf16.mxu1 %vm73_vm1, %v9883_v15  ;;  %12840 = vmatpush3.bf16.msra.mxu1 %v10000_v21 }
 0x4eb   :  { %13783 = vmatprep.subr.msk.bf16.mxu1 %vm98_vm0, %v11238_v25  ;;  %13773 = vmatprep.subr.msk.bf16.mxu0 %vm98_vm0, %v11172_v28 }
 0x4f0   :  { %12688 = vmatmul.mubr.msk.bf16.gmra.mrb[44].mxu0 %vm73_vm1, %v15982_v47  ;;  %12836 = vmatmul.mubr.msk.bf16.gmra.mrb[60].mxu1 %vm73_vm1, %v9884_v55 }
 0x4f1   :  { %12691 = vmatprep.mubr.msk.bf16.mxu0 %vm73_vm1, %v15993_v14  ;;  %12841 = vmatprep.mubr.msk.bf16.mxu1 %vm73_vm1, %v16026_v45 }
 0x4f8   :  { %12692 = vmatmul.mubr.msk.bf16.gmra.mrb[48].mxu0 %vm73_vm1, %v15997_v31  ;;  %12842 = vmatmul.mubr.msk.bf16.vlgmr.msra.gmra.mrb[56].mxu1 %vm73_vm1, %v16037_v43 }
 0x4f9   :  { %12695 = vmatprep.mubr.msk.bf16.mxu0 %vm73_vm1, %v16014_v42  ;;  %12845 = vmatprep.mubr.msk.bf16.mxu1 %vm73_vm1, %v9984_v10 }
 0x4fa   :  { %12850 = vmatpush3.bf16.msra.mxu1 %v10101_v12 }
 0x4fb   :  { %13784 = vmatprep.subr.msk.bf16.mxu1 %vm98_vm0, %v11243_v23 }
 0x500   :  { %12696 = vmatmul.mubr.msk.bf16.gmra.mrb[52].mxu0 %vm73_vm1, %v15984_v62  ;;  %12846 = vmatmul.mubr.msk.bf16.gmra.mrb[60].mxu1 %vm73_vm1, %v9985_v20 }
 0x501   :  { %12701 = vmatprep.mubr.msk.bf16.mxu0 %vm73_vm1, %v15871_v54  ;;  %12851 = vmatprep.mubr.msk.bf16.mxu1 %vm73_vm1, %v15999_v52  ;;  %v11181_v54 = vld [vmem:[%s16323_s3 + $0x18] sm:$0xf] }
 0x502   :  { %v10082_v52 = vld [vmem:[#allocation2 + $0xd8] sm:$0xf]  ;;  %v8986_v53 = vsel %vm98_vm0, %v11181_v54, 0 }
 0x503   :  { %v10086_v3 = vpack.c.bf16 %v10082_v52, %v10081_v17 }
 0x508   :  { %12702 = vmatmul.mubr.msk.bf16.vlgmr.msra.gmra.mrb[40].mxu0 %vm73_vm1, %v15883_v5  ;;  %12852 = vmatmul.mubr.msk.bf16.vlgmr.msra.gmra.mrb[56].mxu1 %vm73_vm1, %v9782_v51  ;;  %v10183_v51 = vld [vmem:[#allocation2 + $0xd9] sm:$0xf] }
 0x509   :  { %12705 = vmatprep.mubr.msk.bf16.mxu0 %vm73_vm1, %v15895_v1  ;;  %12718 = vmatpush3.bf16.msra.mxu0 %v8821_v27  ;;  %v10187_v61 = vpack.c.bf16 %v10183_v51, %v10182_v0 }
 0x50a   :  { %12855 = vmatprep.mubr.msk.bf16.mxu1 %vm73_vm1, %v10085_v36  ;;  %12860 = vmatpush3.bf16.msra.mxu1 %v10202_v35 }
 0x50b   :  { %13785 = vmatprep.subr.msk.bf16.mxu1 %vm98_vm0, %v11248_v29  ;;  %13774 = vmatprep.subr.msk.bf16.mxu0 %vm98_vm0, %v11181_v54 }
 0x510   :  { %12706 = vmatmul.mubr.msk.bf16.gmra.mrb[44].mxu0 %vm73_vm1, %v15901_v13  ;;  %12856 = vmatmul.mubr.msk.bf16.gmra.mrb[60].mxu1 %vm73_vm1, %v10086_v3 }
 0x511   :  { %12709 = vmatprep.mubr.msk.bf16.mxu0 %vm73_vm1, %v15905_v48  ;;  %12861 = vmatprep.mubr.msk.bf16.mxu1 %vm73_vm1, %v15960_v39  ;;  %v10282_v39 = vld [vmem:[#allocation2 + $0xca] sm:$0xff] }
 0x512   :  { %v10287_v49 = vpack.c.bf16 %v10282_v39, %v9980_v22 }
 0x518   :  { %12710 = vmatmul.mubr.msk.bf16.gmra.mrb[48].mxu0 %vm73_vm1, %v15909_v50  ;;  %12862 = vmatmul.mubr.msk.bf16.vlgmr.msra.gmra.mrb[56].mxu1 %vm73_vm1, %v9883_v15 }
 0x519   :  { %12713 = vmatprep.mubr.msk.bf16.mxu0 %vm73_vm1, %v15927_v34  ;;  %12865 = vmatprep.mubr.msk.bf16.mxu1 %vm73_vm1, %v10186_v32 }
 0x51a   :  { %12870 = vmatpush3.bf16.msra.mxu1 %v10303_v41 }
 0x520   :  { %12714 = vmatmul.mubr.msk.bf16.gmra.mrb[52].mxu0 %vm73_vm1, %v15933_v11  ;;  %12866 = vmatmul.mubr.msk.bf16.gmra.mrb[60].mxu1 %vm73_vm1, %v10187_v61 }
 0x521   :  { %12719 = vmatprep.mubr.msk.bf16.mxu0 %vm73_vm1, %v16024_v59  ;;  %12871 = vmatprep.mubr.msk.bf16.mxu1 %vm73_vm1, %v16037_v43  ;;  %v10283_v59 = vld [vmem:[#allocation2 + $0xd2] sm:$0xff]  ;;  %v10284_v43 = vld [vmem:[#allocation2 + $0xda] sm:$0xf] }
 0x522   :  { %v10288_v8 = vpack.c.bf16 %v10284_v43, %v10283_v59 }
 0x528   :  { %12720 = vmatmul.mubr.msk.bf16.vlgmr.msra.gmra.mrb[40].mxu0 %vm73_vm1, %v16030_v30  ;;  %12872 = vmatmul.mubr.msk.bf16.vlgmr.msra.gmra.mrb[56].mxu1 %vm73_vm1, %v9984_v10 }
 0x529   :  { %12723 = vmatprep.mubr.msk.bf16.mxu0 %vm73_vm1, %v16051_v56  ;;  %12736 = vmatpush3.bf16.msra.mxu0 %v8986_v53 }
 0x52a   :  { %12875 = vmatprep.mubr.msk.bf16.mxu1 %vm73_vm1, %v10287_v49  ;;  %13775 = vmatprep.subr.msk.bf16.mxu0 %vm98_vm0, %v11190_v19 }
 0x530   :  { %12724 = vmatmul.mubr.msk.bf16.gmra.mrb[44].mxu0 %vm73_vm1, %v16053_v24  ;;  %12876 = vmatmul.mubr.msk.bf16.gmra.mrb[60].mxu1 %vm73_vm1, %v10288_v8 }
 0x531   :  { %12727 = vmatprep.mubr.msk.bf16.mxu0 %vm73_vm1, %v16062_v9 }
 0x538   :  { %12728 = vmatmul.mubr.msk.bf16.gmra.mrb[48].mxu0 %vm73_vm1, %v16064_v4 }
 0x539   :  { %12731 = vmatprep.mubr.msk.bf16.mxu0 %vm73_vm1, %v16078_v16 }
 0x540   :  { %12732 = vmatmul.mubr.msk.bf16.gmra.mrb[52].mxu0 %vm73_vm1, %v16016_v44 }
 0x541   :  { %12737 = vmatprep.mubr.msk.bf16.mxu0 %vm73_vm1, %v15951_v37  ;;  %v9316_v37 = vsel %vm98_vm0, %v11199_v6, 0 }
 0x548   :  { %12738 = vmatmul.mubr.msk.bf16.vlgmr.msra.gmra.mrb[40].mxu0 %vm73_vm1, %v15979_v57 }
 0x549   :  { %12741 = vmatprep.mubr.msk.bf16.mxu0 %vm73_vm1, %v15982_v47  ;;  %12754 = vmatpush3.bf16.msra.mxu0 %v9151_v2 }
 0x54a   :  { %13776 = vmatprep.subr.msk.bf16.mxu0 %vm98_vm0, %v11199_v6 }
 0x550   :  { %12742 = vmatmul.mubr.msk.bf16.gmra.mrb[44].mxu0 %vm73_vm1, %v15993_v14 }
 0x551   :  { %12745 = vmatprep.mubr.msk.bf16.mxu0 %vm73_vm1, %v15997_v31 }
 0x558   :  { %12746 = vmatmul.mubr.msk.bf16.gmra.mrb[48].mxu0 %vm73_vm1, %v16014_v42 }
 0x559   :  { %12749 = vmatprep.mubr.msk.bf16.mxu0 %vm73_vm1, %v15984_v62 }
 0x560   :  { %12750 = vmatmul.mubr.msk.bf16.gmra.mrb[52].mxu0 %vm73_vm1, %v15995_v26 }
 0x561   :  { %12755 = vmatprep.mubr.msk.bf16.mxu0 %vm73_vm1, %v15883_v5  ;;  %v16247_v5 = vld [vmem:[%s16325_s4] ss:$0 sm:$0xff] }
 0x568   :  { %12756 = vmatmul.mubr.msk.bf16.vlgmr.msra.gmra.mrb[40].mxu0 %vm73_vm1, %v15895_v1 }
 0x569   :  { %12759 = vmatprep.mubr.msk.bf16.mxu0 %vm73_vm1, %v15901_v13  ;;  %12772 = vmatpush3.bf16.msra.mxu0 %v9316_v37 }
 0x570   :  { %12760 = vmatmul.mubr.msk.bf16.gmra.mrb[44].mxu0 %vm73_vm1, %v15905_v48 }
 0x571   :  { %12763 = vmatprep.mubr.msk.bf16.mxu0 %vm73_vm1, %v15909_v50 }
 0x578   :  { %12764 = vmatmul.mubr.msk.bf16.gmra.mrb[48].mxu0 %vm73_vm1, %v15927_v34 }
 0x579   :  { %12767 = vmatprep.mubr.msk.bf16.mxu0 %vm73_vm1, %v15933_v11 }
 0x580   :  { %12768 = vmatmul.mubr.msk.bf16.gmra.mrb[52].mxu0 %vm73_vm1, %v15946_v46 }
 0x581   :  { %12773 = vmatprep.mubr.msk.bf16.mxu0 %vm73_vm1, %v16030_v30 }
 0x588   :  { %12774 = vmatmul.mubr.msk.bf16.vlgmr.msra.gmra.mrb[40].mxu0 %vm73_vm1, %v16051_v56 }
 0x589   :  { %12777 = vmatprep.mubr.msk.bf16.mxu0 %vm73_vm1, %v16053_v24 }
 0x590   :  { %12778 = vmatmul.mubr.msk.bf16.gmra.mrb[44].mxu0 %vm73_vm1, %v16062_v9 }
 0x591   :  { %12781 = vmatprep.mubr.msk.bf16.mxu0 %vm73_vm1, %v16064_v4 }
 0x598   :  { %12782 = vmatmul.mubr.msk.bf16.gmra.mrb[48].mxu0 %vm73_vm1, %v16078_v16 }
 0x599   :  { %12785 = vmatprep.mubr.msk.bf16.mxu0 %vm73_vm1, %v16016_v44 }
 0x5a0   :  { %12786 = vmatmul.mubr.msk.bf16.gmra.mrb[52].mxu0 %vm73_vm1, %v16026_v45 }
 0x5fb   :  { %v12873_v1 = vpop.f32.mrb[56].mxu1 }
 0x5fc   :  { %v10380_v13 = vadd.f32 %v12873_v1, %v16247_v5  ;;  %v10339_v48 = vpop.f32.mrb[57].mxu1 }
 0x5fd   :  { %v10378_v50 = vadd.f32 %v16247_v5, %v10339_v48  ;;  %v12874_v34 = vpop.f32.mrb[58].mxu1 }
 0x5fe   :  { %v10388_v11 = vmax.f32 %v10380_v13, 0.0  ;;  %v10381_v46 = vadd.f32 %v12874_v34, %v16247_v5  ;;  %v10342_v57 = vpop.f32.mrb[59].mxu1 }
 0x5ff   :  { %v10386_v47 = vmax.f32 %v10378_v50, 0.0  ;;  %v10379_v62 = vadd.f32 %v16247_v5, %v10342_v57 }
 0x600   :  { %10396 = vst.msk [vmem:[#allocation3 + $0x90] sm:$0xff] %vm73_vm1, %v10388_v11  ;;  %v10389_v14 = vmax.f32 %v10381_v46, 0.0 }
 0x601   :  { %10394 = vst.msk [vmem:[#allocation3 + $0x80] sm:$0xff] %vm73_vm1, %v10386_v47  ;;  %v10387_v26 = vmax.f32 %v10379_v62, 0.0 }
 0x602   :  { %10397 = vst.msk [vmem:[#allocation3 + $0x98] sm:$0xff] %vm73_vm1, %v10389_v14 }
 0x603   :  { %10395 = vst.msk [vmem:[#allocation3 + $0x88] sm:$0xff] %vm73_vm1, %v10387_v26  ;;  %v12877_v31 = vpop.f32.mrb[60].mxu1 }
 0x604   :  { %v10384_v42 = vadd.f32 %v12877_v31, %v16247_v5  ;;  %v10355_v44 = vpop.f32.mrb[61].mxu1 }
 0x605   :  { %v10382_v45 = vadd.f32 %v16247_v5, %v10355_v44  ;;  %v12878_v30 = vpop.f32.mrb[62].mxu1 }
 0x606   :  { %v10392_v56 = vmax.f32 %v10384_v42, 0.0  ;;  %v10385_v24 = vadd.f32 %v12878_v30, %v16247_v5  ;;  %v10358_v9 = vpop.f32.mrb[63].mxu1 }
 0x607   :  { %v10390_v4 = vmax.f32 %v10382_v45, 0.0  ;;  %v10383_v16 = vadd.f32 %v16247_v5, %v10358_v9 }
 0x608   :  { %10400 = vst.msk [vmem:[#allocation3 + $0xb0] sm:$0xff] %vm73_vm1, %v10392_v56  ;;  %v10393_v40 = vmax.f32 %v10385_v24, 0.0 }
 0x609   :  { %v10440_v33 = vld [vmem:[#allocation3 + $0x90] ss:$2 sm:$0x3f]  ;;  %v10441_v21 = vld [vmem:[#allocation3 + $0x91] ss:$2 sm:$0x3f] }
 0x60a   :  { %10398 = vst.msk [vmem:[#allocation3 + $0xa0] sm:$0xff] %vm73_vm1, %v10390_v4  ;;  %v10443_v15 = vmax.f32 %v10440_v33, %v10441_v21  ;;  %v10438_v25 = vld [vmem:[#allocation3 + $0x80] ss:$2 sm:$0x3f]  ;;  %v10391_v60 = vmax.f32 %v10383_v16, 0.0 }
 0x60b   :  { %v10439_v28 = vld [vmem:[#allocation3 + $0x81] ss:$2 sm:$0x3f]  ;;  %10401 = vst.msk [vmem:[#allocation3 + $0xb8] sm:$0xf] %vm5181_vm3, %v10393_v40 }
 0x60c   :  { %v10442_v18 = vmax.f32 %v10438_v25, %v10439_v28  ;;  %10399 = vst.msk [vmem:[#allocation3 + $0xa8] sm:$0xff] %vm73_vm1, %v10391_v60 }
 0x60e   :  { %v10444_v55 = vmax.f32 %v10442_v18, %v10443_v15 }
 0x610   :  { %11257 = vst.msk [vmem:[%s16326_s5 + $0x50] sm:$0x3f] %vm2747_vm2, %v10444_v55 }
 0x612   :  { %v10449_v63 = vld [vmem:[#allocation3 + $0xb0] ss:$2 sm:$0x3f]  ;;  %v10450_v10 = vld [vmem:[#allocation3 + $0xb1] ss:$2 sm:$0x3f] }
 0x613   :  { %v10452_v12 = vmax.f32 %v10449_v63, %v10450_v10  ;;  %v10447_v23 = vld [vmem:[#allocation3 + $0xa0] ss:$2 sm:$0x3f]  ;;  %v10448_v22 = vld [vmem:[#allocation3 + $0xa1] ss:$2 sm:$0x3f] }
 0x614   :  { %v10451_v7 = vmax.f32 %v10447_v23, %v10448_v22 }
 0x616   :  { %v10453_v20 = vmax.f32 %v10451_v7, %v10452_v12 }
 0x618   :  { %11258 = vst.msk [vmem:[%s16326_s5 + $0x58] sm:$0x3f] %vm2747_vm2, %v10453_v20 }
 0x65b   :  { %v12775_v38 = vpop.f32.mrb[40].mxu0 }
 0x65c   :  { %v9439_v27 = vadd.f32 %v12775_v38, %v16247_v5  ;;  %v9352_v35 = vpop.f32.mrb[41].mxu0 }
 0x65d   :  { %v9437_v36 = vadd.f32 %v16247_v5, %v9352_v35  ;;  %v12776_v29 = vpop.f32.mrb[42].mxu0 }
 0x65e   :  { %v9455_v54 = vmax.f32 %v9439_v27, 0.0  ;;  %v9440_v52 = vadd.f32 %v12776_v29, %v16247_v5  ;;  %v9355_v17 = vpop.f32.mrb[43].mxu0 }
 0x65f   :  { %v9453_v3 = vmax.f32 %v9437_v36, 0.0  ;;  %v9438_v58 = vadd.f32 %v16247_v5, %v9355_v17 }
 0x660   :  { %9471 = vst.msk [vmem:[#allocation3 + $0x10] sm:$0xff] %vm73_vm1, %v9455_v54  ;;  %v9456_v32 = vmax.f32 %v9440_v52, 0.0 }
 0x661   :  { %9469 = vst.msk [vmem:[#allocation3] sm:$0xff] %vm73_vm1, %v9453_v3  ;;  %v9454_v41 = vmax.f32 %v9438_v58, 0.0 }
 0x662   :  { %9472 = vst.msk [vmem:[#allocation3 + $0x18] sm:$0xff] %vm73_vm1, %v9456_v32 }
 0x663   :  { %9470 = vst.msk [vmem:[#allocation3 + $0x8] sm:$0xff] %vm73_vm1, %v9454_v41  ;;  %v12779_v0 = vpop.f32.mrb[44].mxu0 }
 0x664   :  { %v9443_v51 = vadd.f32 %v12779_v0, %v16247_v5  ;;  %v9368_v61 = vpop.f32.mrb[45].mxu0 }
 0x665   :  { %v9441_v39 = vadd.f32 %v16247_v5, %v9368_v61  ;;  %v12780_v53 = vpop.f32.mrb[46].mxu0 }
 0x666   :  { %v9459_v19 = vmax.f32 %v9443_v51, 0.0  ;;  %v9444_v49 = vadd.f32 %v12780_v53, %v16247_v5  ;;  %v9371_v59 = vpop.f32.mrb[47].mxu0 }
 0x667   :  { %v9457_v43 = vmax.f32 %v9441_v39, 0.0  ;;  %v9442_v8 = vadd.f32 %v16247_v5, %v9371_v59 }
 0x668   :  { %9475 = vst.msk [vmem:[#allocation3 + $0x30] sm:$0xff] %vm73_vm1, %v9459_v19  ;;  %v9460_v2 = vmax.f32 %v9444_v49, 0.0 }
 0x669   :  { %v10404_v6 = vld [vmem:[#allocation3 + $0x10] ss:$2 sm:$0x3f]  ;;  %v10405_v37 = vld [vmem:[#allocation3 + $0x11] ss:$2 sm:$0x3f] }
 0x66a   :  { %9473 = vst.msk [vmem:[#allocation3 + $0x20] sm:$0xff] %vm73_vm1, %v9457_v43  ;;  %v10407_v1 = vmax.f32 %v10404_v6, %v10405_v37  ;;  %v10402_v13 = vld [vmem:[#allocation3] ss:$2 sm:$0x3f]  ;;  %9476 = vst.msk [vmem:[#allocation3 + $0x38] sm:$0xff] %vm73_vm1, %v9460_v2  ;;  %v9458_v34 = vmax.f32 %v9442_v8, 0.0 }
 0x66b   :  { %v10403_v48 = vld [vmem:[#allocation3 + $0x1] ss:$2 sm:$0x3f]  ;;  %v12783_v11 = vpop.f32.mrb[48].mxu0 }
 0x66c   :  { %v10406_v50 = vmax.f32 %v10402_v13, %v10403_v48  ;;  %v9447_v46 = vadd.f32 %v12783_v11, %v16247_v5  ;;  %v9384_v57 = vpop.f32.mrb[49].mxu0  ;;  %9474 = vst.msk [vmem:[#allocation3 + $0x28] sm:$0xff] %vm73_vm1, %v9458_v34 }
 0x66d   :  { %v9445_v62 = vadd.f32 %v16247_v5, %v9384_v57  ;;  %v12784_v14 = vpop.f32.mrb[50].mxu0 }
 0x66e   :  { %v10408_v47 = vmax.f32 %v10406_v50, %v10407_v1  ;;  %v9463_v26 = vmax.f32 %v9447_v46, 0.0  ;;  %v9448_v31 = vadd.f32 %v12784_v14, %v16247_v5  ;;  %v9387_v42 = vpop.f32.mrb[51].mxu0 }
 0x66f   :  { %v9461_v44 = vmax.f32 %v9445_v62, 0.0  ;;  %v9446_v45 = vadd.f32 %v16247_v5, %v9387_v42 }
 0x670   :  { %11253 = vst.msk [vmem:[%s16326_s5 + $0x30] sm:$0x3f] %vm2747_vm2, %v10408_v47  ;;  %v9464_v30 = vmax.f32 %v9448_v31, 0.0 }
 0x671   :  { %9479 = vst.msk [vmem:[#allocation3 + $0x50] sm:$0xff] %vm73_vm1, %v9463_v26  ;;  %v10413_v56 = vld [vmem:[#allocation3 + $0x30] ss:$2 sm:$0x3f]  ;;  %9477 = vst.msk [vmem:[#allocation3 + $0x40] sm:$0xff] %vm73_vm1, %v9461_v44  ;;  %v9462_v9 = vmax.f32 %v9446_v45, 0.0 }
 0x672   :  { %v10414_v24 = vld [vmem:[#allocation3 + $0x31] ss:$2 sm:$0x3f]  ;;  %9480 = vst.msk [vmem:[#allocation3 + $0x58] sm:$0xff] %vm73_vm1, %v9464_v30 }
 0x673   :  { %v10416_v4 = vmax.f32 %v10413_v56, %v10414_v24  ;;  %v12787_v16 = vpop.f32.mrb[52].mxu0  ;;  %v10411_v40 = vld [vmem:[#allocation3 + $0x20] ss:$2 sm:$0x3f]  ;;  %9478 = vst.msk [vmem:[#allocation3 + $0x48] sm:$0xff] %vm73_vm1, %v9462_v9 }
 0x674   :  { %v10412_v33 = vld [vmem:[#allocation3 + $0x21] ss:$2 sm:$0x3f]  ;;  %v9451_v21 = vadd.f32 %v12787_v16, %v16247_v5  ;;  %v9400_v25 = vpop.f32.mrb[53].mxu0 }
 0x675   :  { %v10415_v15 = vmax.f32 %v10411_v40, %v10412_v33  ;;  %v9449_v18 = vadd.f32 %v16247_v5, %v9400_v25  ;;  %v12788_v60 = vpop.f32.mrb[54].mxu0 }
 0x676   :  { %v9467_v28 = vmax.f32 %v9451_v21, 0.0  ;;  %v9452_v63 = vadd.f32 %v12788_v60, %v16247_v5  ;;  %v9403_v10 = vpop.f32.mrb[55].mxu0 }
 0x677   :  { %v10417_v55 = vmax.f32 %v10415_v15, %v10416_v4  ;;  %v9465_v12 = vmax.f32 %v9449_v18, 0.0  ;;  %v9450_v23 = vadd.f32 %v16247_v5, %v9403_v10 }
 0x678   :  { %9483 = vst.msk [vmem:[#allocation3 + $0x70] sm:$0xff] %vm73_vm1, %v9467_v28  ;;  %v9468_v38 = vmax.f32 %v9452_v63, 0.0 }
 0x679   :  { %11254 = vst.msk [vmem:[%s16326_s5 + $0x38] sm:$0x3f] %vm2747_vm2, %v10417_v55  ;;  %v10422_v22 = vld [vmem:[#allocation3 + $0x50] ss:$2 sm:$0x3f]  ;;  %v9466_v27 = vmax.f32 %v9450_v23, 0.0 }
 0x67a   :  { %v10423_v7 = vld [vmem:[#allocation3 + $0x51] ss:$2 sm:$0x3f]  ;;  %9481 = vst.msk [vmem:[#allocation3 + $0x60] sm:$0xff] %vm73_vm1, %v9465_v12  ;;  %9484 = vst.msk [vmem:[#allocation3 + $0x78] sm:$0xff] %vm73_vm1, %v9468_v38 }
 0x67b   :  { %v10425_v20 = vmax.f32 %v10422_v22, %v10423_v7  ;;  %v10420_v35 = vld [vmem:[#allocation3 + $0x40] ss:$2 sm:$0x3f]  ;;  %v10421_v36 = vld [vmem:[#allocation3 + $0x41] ss:$2 sm:$0x3f] }
 0x67c   :  { %v10424_v29 = vmax.f32 %v10420_v35, %v10421_v36  ;;  %9482 = vst.msk [vmem:[#allocation3 + $0x68] sm:$0xff] %vm73_vm1, %v9466_v27 }
 0x67e   :  { %v10426_v5 = vmax.f32 %v10424_v29, %v10425_v20 }
 0x680   :  { %11255 = vst.msk [vmem:[%s16326_s5 + $0x40] sm:$0x3f] %vm2747_vm2, %v10426_v5 }
 0x681   :  { %v10431_v54 = vld [vmem:[#allocation3 + $0x70] ss:$2 sm:$0x3f]  ;;  %v10432_v52 = vld [vmem:[#allocation3 + $0x71] ss:$2 sm:$0x3f] }
 0x682   :  { %v10434_v17 = vmax.f32 %v10431_v54, %v10432_v52 }
 0x683   :  { %v10429_v3 = vld [vmem:[#allocation3 + $0x60] ss:$2 sm:$0x3f]  ;;  %v10430_v58 = vld [vmem:[#allocation3 + $0x61] ss:$2 sm:$0x3f] }
 0x684   :  { %v10433_v32 = vmax.f32 %v10429_v3, %v10430_v58 }
 0x686   :  { %v10435_v41 = vmax.f32 %v10433_v32, %v10434_v17 }
 0x688   :  { %11256 = vst.msk [vmem:[%s16326_s5 + $0x48] sm:$0x3f] %vm2747_vm2, %v10435_v41 }

</bundles_post_ra>
